<compile_context>
chip_gen: v6e
topology: v6e:2x2x1
jax: 0.10.0
libtpu: 0.0.40
codegen_flags: <defaults>
</compile_context>

<pallas_src>
import functools
import math

import jax
import jax.numpy as jnp
from jax import lax
from jax.experimental import pallas as pl
from jax.experimental.pallas import tpu as pltpu

BN_EPS = 1e-5
LANE = 128


# ------------------------------- small helpers ------------------------------

def _round_up(v, m):
    return ((v + m - 1) // m) * m


def _pad_axis(x, target, axis):
    if x.shape[axis] == target:
        return x
    pad = [(0, 0)] * x.ndim
    pad[axis] = (0, target - x.shape[axis])
    return jnp.pad(x, pad)


def _spatial_pad(x):  # pad H and W by 1 on each side (conv padding=1)
    return jnp.pad(x, ((0, 0), (1, 1), (1, 1), (0, 0)))


def _phase_split(x, s):
    """(N, Hp, Wp, C) -> (N, s*s*ceil(Hp/s), ceil(Wp/s), C), phase-major rows.

    For stride s, tap (ky, kx) of a 3x3 conv becomes a *contiguous* window of
    the returned layout: phase p = (ky%s)*s + (kx%s), offsets (ky//s, kx//s).
    """
    if s == 1:
        return x
    n, hp, wp, c = x.shape
    hpe, wpe = _round_up(hp, s), _round_up(wp, s)
    x = jnp.pad(x, ((0, 0), (0, hpe - hp), (0, wpe - wp), (0, 0)))
    x = x.reshape(n, hpe // s, s, wpe // s, s, c)
    x = jnp.transpose(x, (0, 2, 4, 1, 3, 5))          # (n, py, px, ih, iw, c)
    return x.reshape(n, s * s * (hpe // s), wpe // s, c)


def _conv_mask(h, w, s):
    """Mask (1, s*s*Hh, Wh, 1): 1 on real pixels, 0 on conv zero-padding."""
    m = jnp.ones((1, h, w, 1), jnp.float32)
    return _phase_split(_spatial_pad(m), s)


def _fold_bn(gamma, beta, mean, var):
    s = gamma * lax.rsqrt(var + BN_EPS)
    return s, beta - mean * s


def _prep_w3x3(w_hwio, c_in_p, c_out_p):
    kh, kw = w_hwio.shape[:2]
    wpad = _pad_axis(_pad_axis(w_hwio, c_in_p, 2), c_out_p, 3)
    return wpad.reshape(kh * kw, c_in_p, c_out_p).astype(jnp.bfloat16)


def _prep_vec(v, c_p):
    return _pad_axis(v.reshape(1, -1).astype(jnp.float32), c_p, 1)


def _nbytes(shape, dtype):
    return math.prod(shape) * jnp.dtype(dtype).itemsize


# ------------------------------- Pallas kernel -------------------------------

def _fused_block_kernel(*refs, stride, h_out, w_out, hh, phh,
                        c_in_p, c_out_p, nb, equal_in_out):
    """One grid step = `nb` images through the whole BasicBlock:

         a1  = relu(bn1(x))            (mask realizes conv1's zero padding)
         o1  = conv3x3_s(a1)           (9 accumulating MXU matmuls)
         res = x (identity)  |  conv1x1_s(a1)   (fused centre-tap matmul)
         a2  = relu(bn2(o1))           (padded in a zero-bordered VMEM scratch)
         out = conv3x3_1(a2) + res     (9 accumulating MXU matmuls + epilogue)

    All intermediates stay in VMEM; only x and out touch HBM."""
    it = iter(refs)
    xq_ref = next(it)                      # (nb, phh, wh, c_in_p) f32
    mask_ref = next(it)                    # (1, phh, wh, 1)       f32
    s1_ref, b1_ref = next(it), next(it)    # (1, c_in_p)  folded BN1
    s2_ref, b2_ref = next(it), next(it)    # (1, c_out_p) folded BN2
    w1_ref = next(it)                      # (9, c_in_p, c_out_p)  bf16
    w2_ref = next(it)                      # (9, c_out_p, c_out_p) bf16
    ws_ref = None if equal_in_out else next(it)   # (c_in_p, c_out_p) bf16
    out_ref = next(it)                     # (nb, m1, c_out_p) f32
    a1sh_ref = next(it)                    # (n_sh1, phh*w_out, c_in_p)    bf16
    a2pad_ref = next(it)                   # (h_out+2, w_out+2, c_out_p)   f32
    a2sh_ref = next(it)                    # (3, (h_out+2)*w_out, c_out_p) bf16

    s = stride
    m1 = h_out * w_out
    n_sh1 = len({kx // s for kx in range(3)})     # 3 if s == 1 else 2

    # Stage-2 spatial zero padding lives in the scratch border.  Zeroed every
    # step (not program_id-gated) so it is correct even when the "parallel"
    # batch axis is sharded across TensorCores; the memset is one cheap pass.
    a2pad_ref[...] = jnp.zeros_like(a2pad_ref)

    scale1, bias1 = s1_ref[...], b1_ref[...]
    scale2, bias2 = s2_ref[...], b2_ref[...]

    for b in range(nb):
        # ---- stage-1 prologue: BN1 + ReLU (mask zeroes conv1's padding),
        # cast to bf16 once, staged as n_sh1 W-shifted flattened copies so
        # every tap below is a contiguous leading-axis slice.
        for ox in range(n_sh1):
            win = xq_ref[b, :, ox:ox + w_out, :]           # (phh, w_out, c_in_p)
            msk = mask_ref[0, :, ox:ox + w_out, :]         # (phh, w_out, 1)
            a = jnp.maximum(win * scale1 + bias1, 0.0) * msk
            a1sh_ref[ox] = a.astype(jnp.bfloat16).reshape(phh * w_out, c_in_p)

        # ---- stage 1: 3x3 conv (stride s) = 9 MXU matmuls, traced f32 acc.
        acc1 = None
        for t in range(9):
            ky, kx = divmod(t, 3)
            p = (ky % s) * s + (kx % s)                    # phase block
            r0 = (p * hh + ky // s) * w_out                # flat row offset
            lhs = a1sh_ref[kx // s, r0:r0 + m1, :]
            d = jnp.dot(lhs, w1_ref[t], preferred_element_type=jnp.float32)
            acc1 = d if acc1 is None else acc1 + d

        # ---- stage-2 prologue: BN2 + ReLU, spatial pad entirely in VMEM,
        # then 3 W-shifted bf16 copies for the stride-1 conv2 taps.
        a2 = jnp.maximum(acc1 * scale2 + bias2, 0.0)       # (m1, c_out_p) f32
        a2pad_ref[1:1 + h_out, 1:1 + w_out, :] = a2.reshape(h_out, w_out, c_out_p)
        for ox in range(3):
            a2sh_ref[ox] = (a2pad_ref[:, ox:ox + w_out, :]
                            .astype(jnp.bfloat16)
                            .reshape((h_out + 2) * w_out, c_out_p))

        # ---- residual: identity (sliced from the resident raw-x tile) or the
        # fused 1x1 shortcut conv (centre-tap window of relu(bn1(x))).
        if equal_in_out:
            res = xq_ref[b, 1:1 + h_out, 1:1 + w_out, :].reshape(m1, c_in_p)
        else:
            pc = ((1 % s) * s + (1 % s)) * hh + 1 // s
            lhs_c = a1sh_ref[1 // s, pc * w_out:pc * w_out + m1, :]
            res = jnp.dot(lhs_c, ws_ref[...], preferred_element_type=jnp.float32)

        # ---- stage 2: 3x3 conv (stride 1) + fused residual-add epilogue.
        acc2 = res
        for t in range(9):
            ky, kx = divmod(t, 3)
            lhs = a2sh_ref[kx, ky * w_out:(ky + h_out) * w_out, :]
            acc2 = acc2 + jnp.dot(lhs, w2_ref[t],
                                  preferred_element_type=jnp.float32)
        out_ref[b] = acc2


# ------------------------------ Pallas wrapper --------------------------------

def _fused_block_call(xq, mask, s1, b1, s2, b2, w1, w2, ws, *,
                      stride, h_out, w_out, nb, equal_in_out):
    n, phh, wh, c_in_p = xq.shape
    c_out_p = w1.shape[-1]
    hh = phh // (stride * stride)
    m1 = h_out * w_out
    n_sh1 = len({kx // stride for kx in range(3)})

    inputs = [xq, mask, s1, b1, s2, b2, w1, w2]
    in_specs = [
        pl.BlockSpec((nb, phh, wh, c_in_p), lambda i: (i, 0, 0, 0)),
        pl.BlockSpec((1, phh, wh, 1), lambda i: (0, 0, 0, 0)),
        pl.BlockSpec((1, c_in_p), lambda i: (0, 0)),
        pl.BlockSpec((1, c_in_p), lambda i: (0, 0)),
        pl.BlockSpec((1, c_out_p), lambda i: (0, 0)),
        pl.BlockSpec((1, c_out_p), lambda i: (0, 0)),
        pl.BlockSpec((9, c_in_p, c_out_p), lambda i: (0, 0, 0)),
        pl.BlockSpec((9, c_out_p, c_out_p), lambda i: (0, 0, 0)),
    ]
    if not equal_in_out:
        inputs.append(ws)
        in_specs.append(pl.BlockSpec((c_in_p, c_out_p), lambda i: (0, 0)))
    # TODO(synk): single-buffer the grid-invariant mask/weight specs
    # (pipeline_mode=pl.Buffered(1)) to reclaim VMEM for larger batch blocks.

    scratch_shapes = [
        pltpu.VMEM((n_sh1, phh * w_out, c_in_p), jnp.bfloat16),     # a1 shifts
        pltpu.VMEM((h_out + 2, w_out + 2, c_out_p), jnp.float32),   # padded a2
        pltpu.VMEM((3, (h_out + 2) * w_out, c_out_p), jnp.bfloat16),  # a2 shifts
    ]

    # VMEM budget: double-buffered in/out blocks + scratch + 25% headroom,
    # clamped to [32, 64] MiB (64 MiB VMEM on v7x; raise the cap on v5e/v6e).
    blk_bytes = (
        2 * sum(_nbytes(spec.block_shape, arr.dtype)
                for spec, arr in zip(in_specs, inputs))
        + 2 * _nbytes((nb, m1, c_out_p), jnp.float32)
        + _nbytes((n_sh1, phh * w_out, c_in_p), jnp.bfloat16)
        + _nbytes((h_out + 2, w_out + 2, c_out_p), jnp.float32)
        + _nbytes((3, (h_out + 2) * w_out, c_out_p), jnp.bfloat16))
    vmem_limit = int(min(max(blk_bytes * 1.25, 32 * 2**20), 64 * 2**20))

    kernel = functools.partial(
        _fused_block_kernel, stride=stride, h_out=h_out, w_out=w_out,
        hh=hh, phh=phh, c_in_p=c_in_p, c_out_p=c_out_p, nb=nb,
        equal_in_out=equal_in_out)

    return pl.pallas_call(
        kernel,
        grid=(n // nb,),
        in_specs=in_specs,
        out_specs=pl.BlockSpec((nb, m1, c_out_p), lambda i: (i, 0, 0)),
        out_shape=jax.ShapeDtypeStruct((n, m1, c_out_p), jnp.float32),
        scratch_shapes=scratch_shapes,
        compiler_params=pltpu.CompilerParams(
            dimension_semantics=("parallel",),
            vmem_limit_bytes=vmem_limit),
    )(*inputs)


# ----------------------------- BasicBlock forward -----------------------------

@functools.partial(jax.jit, static_argnames=("stride", "drop_rate", "nb"))
def basic_block_forward(x_nchw, params, stride, drop_rate=0.0, nb=1):
    """Pallas forward for the pre-activation BasicBlock.  x_nchw: [N, Cin, H, W].

    `nb` = images processed per grid step (batch blocking); N % nb must be 0.
    """
    cin, cout = params["w1"].shape[2], params["w1"].shape[3]
    equal_in_out = cin == cout
    n, _, h, w = x_nchw.shape
    assert n % nb == 0, "batch must be divisible by the batch-block size nb"
    assert (not equal_in_out) or stride == 1, (
        "identity shortcut (cin == cout) requires stride == 1")
    h_out = (h - 1) // stride + 1
    w_out = (w - 1) // stride + 1
    c_in_p = _round_up(cin, LANE)
    c_out_p = _round_up(cout, LANE)

    x = jnp.transpose(x_nchw, (0, 2, 3, 1)).astype(jnp.float32)   # NCHW -> NHWC
    s1, b1 = _fold_bn(*params["bn1"])
    s2, b2 = _fold_bn(*params["bn2"])

    xq = _phase_split(_spatial_pad(_pad_axis(x, c_in_p, 3)), stride)
    mask = _conv_mask(h, w, stride)
    w1 = _prep_w3x3(params["w1"], c_in_p, c_out_p)
    w2 = _prep_w3x3(params["w2"], c_out_p, c_out_p)
    ws = None
    if not equal_in_out:
        ws = _pad_axis(_pad_axis(params["ws"], c_in_p, 0),
                       c_out_p, 1).astype(jnp.bfloat16)
    # TODO(synk): dropout (drop_rate > 0, training mode) is not implemented.

    out = _fused_block_call(
        xq, mask, _prep_vec(s1, c_in_p), _prep_vec(b1, c_in_p),
        _prep_vec(s2, c_out_p), _prep_vec(b2, c_out_p), w1, w2, ws,
        stride=stride, h_out=h_out, w_out=w_out, nb=nb,
        equal_in_out=equal_in_out)

    y = out.reshape(n, h_out, w_out, c_out_p)[..., :cout]
    return jnp.transpose(y, (0, 3, 1, 2))        # NHWC -> NCHW


# ------------------------------- Reference (JAX) ------------------------------

def _ref_forward(x_nchw, params, stride):
    """Pure-JAX reference.  Conv inputs are rounded to bf16 to mirror the MXU
    input precision used by the kernel (accumulation stays f32)."""
    equal_in_out = params["w1"].shape[2] == params["w1"].shape[3]
    x = jnp.transpose(x_nchw, (0, 2, 3, 1)).astype(jnp.float32)
    s1, b1 = _fold_bn(*params["bn1"])
    s2, b2 = _fold_bn(*params["bn2"])

    def q(v):
        return v.astype(jnp.bfloat16).astype(jnp.float32)

    def conv(v, wgt, s, pad):
        return lax.conv_general_dilated(
            q(v), q(wgt), (s, s), ((pad, pad), (pad, pad)),
            dimension_numbers=("NHWC", "HWIO", "NHWC"),
            precision=lax.Precision.HIGHEST)

    a1 = jnp.maximum(x * s1 + b1, 0.0)
    out = conv(a1, params["w1"], stride, 1)
    a2 = jnp.maximum(out * s2 + b2, 0.0)
    out = conv(a2, params["w2"], 1, 1)
    short = x if equal_in_out else conv(a1, params["ws"][None, None], stride, 0)
    return jnp.transpose(short + out, (0, 3, 1, 2))


# ----------------------------------- Params -----------------------------------

def init_params(key, in_planes, out_planes):
    ks = jax.random.split(key, 11)
    bn1 = (
        jax.random.uniform(ks[0], (in_planes,), minval=0.5, maxval=1.5),   # gamma
        0.1 * jax.random.normal(ks[1], (in_planes,)),                      # beta
        0.1 * jax.random.normal(ks[2], (in_planes,)),                      # mean
        jax.random.uniform(ks[3], (in_planes,), minval=0.5, maxval=1.5),   # var
    )
    bn2 = (
        jax.random.uniform(ks[4], (out_planes,), minval=0.5, maxval=1.5),
        0.1 * jax.random.normal(ks[5], (out_planes,)),
        0.1 * jax.random.normal(ks[6], (out_planes,)),
        jax.random.uniform(ks[7], (out_planes,), minval=0.5, maxval=1.5),
    )
    w1 = 0.1 * jax.random.normal(ks[8], (3, 3, in_planes, out_planes))
    w2 = 0.1 * jax.random.normal(ks[9], (3, 3, out_planes, out_planes))
    params = {"bn1": bn1, "bn2": bn2, "w1": w1, "w2": w2}
    if in_planes != out_planes:
        params["ws"] = 0.1 * jax.random.normal(ks[10], (in_planes, out_planes))
    return params


# ------------------------------------ Main -------------------------------------

if __name__ == "__main__":
    key = jax.random.PRNGKey(0)
    kx, kp1, kp2 = jax.random.split(key, 3)

    x = jax.random.normal(kx, (2, 4, 16, 16), dtype=jnp.float32)  # NCHW

    # Case 1: equalInOut (identity shortcut), stride 1, nb=1 (2 parallel steps)
    p_eq = init_params(kp1, 4, 4)
    y_eq = jax.block_until_ready(basic_block_forward(x, p_eq, stride=1, nb=1))
    y_eq_ref = _ref_forward(x, p_eq, stride=1)
    assert y_eq.shape == (2, 4, 16, 16), y_eq.shape
    assert jnp.allclose(y_eq, y_eq_ref, atol=2e-2, rtol=2e-2), (
        float(jnp.max(jnp.abs(y_eq - y_eq_ref))))

    # Case 2: not equalInOut (fused 1x1 shortcut), stride 2, nb=2 (batch block)
    p_ne = init_params(kp2, 4, 8)
    y_ne = jax.block_until_ready(basic_block_forward(x, p_ne, stride=2, nb=2))
    y_ne_ref = _ref_forward(x, p_ne, stride=2)
    assert y_ne.shape == (2, 8, 8, 8), y_ne.shape
    assert jnp.allclose(y_ne, y_ne_ref, atol=2e-2, rtol=2e-2), (
        float(jnp.max(jnp.abs(y_ne - y_ne_ref))))

    print("KERNEL_OK")
</pallas_src>

<mosaic_0001>
module attributes {stable_mosaic.version = 11 : i64} {
  func.func @_fused_block_kernel(%arg0: i32, %arg1: memref<1x18x18x128xf32, #tpu.memory_space<vmem>>, %arg2: memref<1x18x18x1xf32, #tpu.memory_space<vmem>>, %arg3: memref<1x128xf32, #tpu.memory_space<vmem>>, %arg4: memref<1x128xf32, #tpu.memory_space<vmem>>, %arg5: memref<1x128xf32, #tpu.memory_space<vmem>>, %arg6: memref<1x128xf32, #tpu.memory_space<vmem>>, %arg7: memref<9x128x128xbf16, #tpu.memory_space<vmem>>, %arg8: memref<9x128x128xbf16, #tpu.memory_space<vmem>>, %arg9: memref<1x256x128xf32, #tpu.memory_space<vmem>>, %arg10: memref<3x288x128xbf16, #tpu.memory_space<vmem>>, %arg11: memref<18x18x128xf32, #tpu.memory_space<vmem>>, %arg12: memref<3x288x128xbf16, #tpu.memory_space<vmem>>) attributes {dimension_semantics = [#tpu.dimension_semantics<parallel>], iteration_bounds = array<i64: 2>, scalar_prefetch = 0 : i64, scratch_operands = 3 : i64, tpu.core_type = #tpu.core_type<tc>, window_params = [{transform_indices = @transform_0, window_bounds = array<i64: 1, 18, 18, 128>}, {pipeline_mode = #tpu.pipeline_mode<synchronous>, transform_indices = @transform_1, window_bounds = array<i64: 1, 18, 18, 1>}, {pipeline_mode = #tpu.pipeline_mode<synchronous>, transform_indices = @transform_2, window_bounds = array<i64: 1, 128>}, {pipeline_mode = #tpu.pipeline_mode<synchronous>, transform_indices = @transform_3, window_bounds = array<i64: 1, 128>}, {pipeline_mode = #tpu.pipeline_mode<synchronous>, transform_indices = @transform_4, window_bounds = array<i64: 1, 128>}, {pipeline_mode = #tpu.pipeline_mode<synchronous>, transform_indices = @transform_5, window_bounds = array<i64: 1, 128>}, {pipeline_mode = #tpu.pipeline_mode<synchronous>, transform_indices = @transform_6, window_bounds = array<i64: 9, 128, 128>}, {pipeline_mode = #tpu.pipeline_mode<synchronous>, transform_indices = @transform_7, window_bounds = array<i64: 9, 128, 128>}, {transform_indices = @transform_8, window_bounds = array<i64: 1, 256, 128>}]} {
    %cst = arith.constant 0.000000e+00 : f32
    %0 = vector.broadcast %cst : f32 to vector<18x18x128xf32>
    %c0 = arith.constant 0 : index
    %c0_0 = arith.constant 0 : index
    %c0_1 = arith.constant 0 : index
    %1 = vector.load %arg11[%c0, %c0_0, %c0_1] : memref<18x18x128xf32, #tpu.memory_space<vmem>>, vector<18x18x128xf32>
    tpu.vector_store %arg11[%c0, %c0_0, %c0_1], %0 {strides = array<i32>} : memref<18x18x128xf32, #tpu.memory_space<vmem>>, vector<18x18x128xf32>,
    %c0_2 = arith.constant 0 : index
    %c0_3 = arith.constant 0 : index
    %2 = vector.load %arg3[%c0_2, %c0_3] : memref<1x128xf32, #tpu.memory_space<vmem>>, vector<1x128xf32>
    %c0_4 = arith.constant 0 : index
    %c0_5 = arith.constant 0 : index
    %3 = vector.load %arg4[%c0_4, %c0_5] : memref<1x128xf32, #tpu.memory_space<vmem>>, vector<1x128xf32>
    %c0_6 = arith.constant 0 : index
    %c0_7 = arith.constant 0 : index
    %4 = vector.load %arg5[%c0_6, %c0_7] : memref<1x128xf32, #tpu.memory_space<vmem>>, vector<1x128xf32>
    %c0_8 = arith.constant 0 : index
    %c0_9 = arith.constant 0 : index
    %5 = vector.load %arg6[%c0_8, %c0_9] : memref<1x128xf32, #tpu.memory_space<vmem>>, vector<1x128xf32>
    %c0_10 = arith.constant 0 : index
    %c0_11 = arith.constant 0 : index
    %c0_12 = arith.constant 0 : index
    %c0_13 = arith.constant 0 : index
    %6 = vector.load %arg1[%c0_10, %c0_11, %c0_12, %c0_13] : memref<1x18x18x128xf32, #tpu.memory_space<vmem>>, vector<1x18x16x128xf32>
    %7 = vector.shape_cast %6 : vector<1x18x16x128xf32> to vector<18x16x128xf32>
    %c0_14 = arith.constant 0 : index
    %c0_15 = arith.constant 0 : index
    %c0_16 = arith.constant 0 : index
    %c0_17 = arith.constant 0 : index
    %8 = vector.load %arg2[%c0_14, %c0_15, %c0_16, %c0_17] : memref<1x18x18x1xf32, #tpu.memory_space<vmem>>, vector<1x18x16x1xf32>
    %9 = vector.shape_cast %8 : vector<1x18x16x1xf32> to vector<18x16x1xf32>
    %10 = vector.shape_cast %2 : vector<1x128xf32> to vector<1x1x128xf32>
    %11 = vector.broadcast %10 : vector<1x1x128xf32> to vector<18x16x128xf32>
    %12 = arith.mulf %7, %11 : vector<18x16x128xf32>
    %13 = vector.shape_cast %3 : vector<1x128xf32> to vector<1x1x128xf32>
    %14 = vector.broadcast %13 : vector<1x1x128xf32> to vector<18x16x128xf32>
    %15 = arith.addf %12, %14 : vector<18x16x128xf32>
    %cst_18 = arith.constant 0.000000e+00 : f32
    %16 = vector.broadcast %cst_18 : f32 to vector<18x16x128xf32>
    %17 = arith.maximumf %15, %16 : vector<18x16x128xf32>
    %18 = vector.broadcast %9 : vector<18x16x1xf32> to vector<18x16x128xf32>
    %19 = arith.mulf %17, %18 : vector<18x16x128xf32>
    %20 = arith.truncf %19 : vector<18x16x128xf32> to vector<18x16x128xbf16>
    %21 = vector.shape_cast %20 : vector<18x16x128xbf16> to vector<288x128xbf16>
    %c0_19 = arith.constant 0 : index
    %c0_20 = arith.constant 0 : index
    %c0_21 = arith.constant 0 : index
    %22 = vector.load %arg10[%c0_19, %c0_20, %c0_21] : memref<3x288x128xbf16, #tpu.memory_space<vmem>>, vector<1x288x128xbf16>
    %23 = vector.shape_cast %22 : vector<1x288x128xbf16> to vector<288x128xbf16>
    %24 = vector.shape_cast %21 : vector<288x128xbf16> to vector<1x288x128xbf16>
    tpu.vector_store %arg10[%c0_19, %c0_20, %c0_21], %24 {strides = array<i32>} : memref<3x288x128xbf16, #tpu.memory_space<vmem>>, vector<1x288x128xbf16>,
    %c0_22 = arith.constant 0 : index
    %c0_23 = arith.constant 0 : index
    %c1 = arith.constant 1 : index
    %c0_24 = arith.constant 0 : index
    %25 = vector.load %arg1[%c0_22, %c0_23, %c1, %c0_24] : memref<1x18x18x128xf32, #tpu.memory_space<vmem>>, vector<1x18x16x128xf32>
    %26 = vector.shape_cast %25 : vector<1x18x16x128xf32> to vector<18x16x128xf32>
    %c0_25 = arith.constant 0 : index
    %c0_26 = arith.constant 0 : index
    %c1_27 = arith.constant 1 : index
    %c0_28 = arith.constant 0 : index
    %27 = vector.load %arg2[%c0_25, %c0_26, %c1_27, %c0_28] : memref<1x18x18x1xf32, #tpu.memory_space<vmem>>, vector<1x18x16x1xf32>
    %28 = vector.shape_cast %27 : vector<1x18x16x1xf32> to vector<18x16x1xf32>
    %29 = vector.shape_cast %2 : vector<1x128xf32> to vector<1x1x128xf32>
    %30 = vector.broadcast %29 : vector<1x1x128xf32> to vector<18x16x128xf32>
    %31 = arith.mulf %26, %30 : vector<18x16x128xf32>
    %32 = vector.shape_cast %3 : vector<1x128xf32> to vector<1x1x128xf32>
    %33 = vector.broadcast %32 : vector<1x1x128xf32> to vector<18x16x128xf32>
    %34 = arith.addf %31, %33 : vector<18x16x128xf32>
    %cst_29 = arith.constant 0.000000e+00 : f32
    %35 = vector.broadcast %cst_29 : f32 to vector<18x16x128xf32>
    %36 = arith.maximumf %34, %35 : vector<18x16x128xf32>
    %37 = vector.broadcast %28 : vector<18x16x1xf32> to vector<18x16x128xf32>
    %38 = arith.mulf %36, %37 : vector<18x16x128xf32>
    %39 = arith.truncf %38 : vector<18x16x128xf32> to vector<18x16x128xbf16>
    %40 = vector.shape_cast %39 : vector<18x16x128xbf16> to vector<288x128xbf16>
    %c1_30 = arith.constant 1 : index
    %c0_31 = arith.constant 0 : index
    %c0_32 = arith.constant 0 : index
    %41 = vector.load %arg10[%c1_30, %c0_31, %c0_32] : memref<3x288x128xbf16, #tpu.memory_space<vmem>>, vector<1x288x128xbf16>
    %42 = vector.shape_cast %41 : vector<1x288x128xbf16> to vector<288x128xbf16>
    %43 = vector.shape_cast %40 : vector<288x128xbf16> to vector<1x288x128xbf16>
    tpu.vector_store %arg10[%c1_30, %c0_31, %c0_32], %43 {strides = array<i32>} : memref<3x288x128xbf16, #tpu.memory_space<vmem>>, vector<1x288x128xbf16>,
    %c0_33 = arith.constant 0 : index
    %c0_34 = arith.constant 0 : index
    %c2 = arith.constant 2 : index
    %c0_35 = arith.constant 0 : index
    %44 = vector.load %arg1[%c0_33, %c0_34, %c2, %c0_35] : memref<1x18x18x128xf32, #tpu.memory_space<vmem>>, vector<1x18x16x128xf32>
    %45 = vector.shape_cast %44 : vector<1x18x16x128xf32> to vector<18x16x128xf32>
    %c0_36 = arith.constant 0 : index
    %c0_37 = arith.constant 0 : index
    %c2_38 = arith.constant 2 : index
    %c0_39 = arith.constant 0 : index
    %46 = vector.load %arg2[%c0_36, %c0_37, %c2_38, %c0_39] : memref<1x18x18x1xf32, #tpu.memory_space<vmem>>, vector<1x18x16x1xf32>
    %47 = vector.shape_cast %46 : vector<1x18x16x1xf32> to vector<18x16x1xf32>
    %48 = vector.shape_cast %2 : vector<1x128xf32> to vector<1x1x128xf32>
    %49 = vector.broadcast %48 : vector<1x1x128xf32> to vector<18x16x128xf32>
    %50 = arith.mulf %45, %49 : vector<18x16x128xf32>
    %51 = vector.shape_cast %3 : vector<1x128xf32> to vector<1x1x128xf32>
    %52 = vector.broadcast %51 : vector<1x1x128xf32> to vector<18x16x128xf32>
    %53 = arith.addf %50, %52 : vector<18x16x128xf32>
    %cst_40 = arith.constant 0.000000e+00 : f32
    %54 = vector.broadcast %cst_40 : f32 to vector<18x16x128xf32>
    %55 = arith.maximumf %53, %54 : vector<18x16x128xf32>
    %56 = vector.broadcast %47 : vector<18x16x1xf32> to vector<18x16x128xf32>
    %57 = arith.mulf %55, %56 : vector<18x16x128xf32>
    %58 = arith.truncf %57 : vector<18x16x128xf32> to vector<18x16x128xbf16>
    %59 = vector.shape_cast %58 : vector<18x16x128xbf16> to vector<288x128xbf16>
    %c2_41 = arith.constant 2 : index
    %c0_42 = arith.constant 0 : index
    %c0_43 = arith.constant 0 : index
    %60 = vector.load %arg10[%c2_41, %c0_42, %c0_43] : memref<3x288x128xbf16, #tpu.memory_space<vmem>>, vector<1x288x128xbf16>
    %61 = vector.shape_cast %60 : vector<1x288x128xbf16> to vector<288x128xbf16>
    %62 = vector.shape_cast %59 : vector<288x128xbf16> to vector<1x288x128xbf16>
    tpu.vector_store %arg10[%c2_41, %c0_42, %c0_43], %62 {strides = array<i32>} : memref<3x288x128xbf16, #tpu.memory_space<vmem>>, vector<1x288x128xbf16>,
    %c0_44 = arith.constant 0 : index
    %c0_45 = arith.constant 0 : index
    %c0_46 = arith.constant 0 : index
    %63 = vector.load %arg10[%c0_44, %c0_45, %c0_46] : memref<3x288x128xbf16, #tpu.memory_space<vmem>>, vector<1x256x128xbf16>
    %64 = vector.shape_cast %63 : vector<1x256x128xbf16> to vector<256x128xbf16>
    %c0_47 = arith.constant 0 : index
    %c0_48 = arith.constant 0 : index
    %c0_49 = arith.constant 0 : index
    %65 = vector.load %arg7[%c0_47, %c0_48, %c0_49] : memref<9x128x128xbf16, #tpu.memory_space<vmem>>, vector<1x128x128xbf16>
    %66 = vector.shape_cast %65 : vector<1x128x128xbf16> to vector<128x128xbf16>
    %cst_50 = arith.constant dense<0.000000e+00> : vector<256x128xf32>
    %67 = tpu.matmul %64, %66, %cst_50 {dimension_numbers = #tpu.dot_dimension_numbers<[1], [0], [0], [1], [0, 0, 1, 1], [], []>} : vector<256x128xbf16>, vector<128x128xbf16>, vector<256x128xf32> -> vector<256x128xf32>
    %c1_51 = arith.constant 1 : index
    %c0_52 = arith.constant 0 : index
    %c0_53 = arith.constant 0 : index
    %68 = vector.load %arg10[%c1_51, %c0_52, %c0_53] : memref<3x288x128xbf16, #tpu.memory_space<vmem>>, vector<1x256x128xbf16>
    %69 = vector.shape_cast %68 : vector<1x256x128xbf16> to vector<256x128xbf16>
    %c1_54 = arith.constant 1 : index
    %c0_55 = arith.constant 0 : index
    %c0_56 = arith.constant 0 : index
    %70 = vector.load %arg7[%c1_54, %c0_55, %c0_56] : memref<9x128x128xbf16, #tpu.memory_space<vmem>>, vector<1x128x128xbf16>
    %71 = vector.shape_cast %70 : vector<1x128x128xbf16> to vector<128x128xbf16>
    %cst_57 = arith.constant dense<0.000000e+00> : vector<256x128xf32>
    %72 = tpu.matmul %69, %71, %cst_57 {dimension_numbers = #tpu.dot_dimension_numbers<[1], [0], [0], [1], [0, 0, 1, 1], [], []>} : vector<256x128xbf16>, vector<128x128xbf16>, vector<256x128xf32> -> vector<256x128xf32>
    %73 = arith.addf %67, %72 : vector<256x128xf32>
    %c2_58 = arith.constant 2 : index
    %c0_59 = arith.constant 0 : index
    %c0_60 = arith.constant 0 : index
    %74 = vector.load %arg10[%c2_58, %c0_59, %c0_60] : memref<3x288x128xbf16, #tpu.memory_space<vmem>>, vector<1x256x128xbf16>
    %75 = vector.shape_cast %74 : vector<1x256x128xbf16> to vector<256x128xbf16>
    %c2_61 = arith.constant 2 : index
    %c0_62 = arith.constant 0 : index
    %c0_63 = arith.constant 0 : index
    %76 = vector.load %arg7[%c2_61, %c0_62, %c0_63] : memref<9x128x128xbf16, #tpu.memory_space<vmem>>, vector<1x128x128xbf16>
    %77 = vector.shape_cast %76 : vector<1x128x128xbf16> to vector<128x128xbf16>
    %cst_64 = arith.constant dense<0.000000e+00> : vector<256x128xf32>
    %78 = tpu.matmul %75, %77, %cst_64 {dimension_numbers = #tpu.dot_dimension_numbers<[1], [0], [0], [1], [0, 0, 1, 1], [], []>} : vector<256x128xbf16>, vector<128x128xbf16>, vector<256x128xf32> -> vector<256x128xf32>
    %79 = arith.addf %73, %78 : vector<256x128xf32>
    %c0_65 = arith.constant 0 : index
    %c16 = arith.constant 16 : index
    %c0_66 = arith.constant 0 : index
    %80 = vector.load %arg10[%c0_65, %c16, %c0_66] : memref<3x288x128xbf16, #tpu.memory_space<vmem>>, vector<1x256x128xbf16>
    %81 = vector.shape_cast %80 : vector<1x256x128xbf16> to vector<256x128xbf16>
    %c3 = arith.constant 3 : index
    %c0_67 = arith.constant 0 : index
    %c0_68 = arith.constant 0 : index
    %82 = vector.load %arg7[%c3, %c0_67, %c0_68] : memref<9x128x128xbf16, #tpu.memory_space<vmem>>, vector<1x128x128xbf16>
    %83 = vector.shape_cast %82 : vector<1x128x128xbf16> to vector<128x128xbf16>
    %cst_69 = arith.constant dense<0.000000e+00> : vector<256x128xf32>
    %84 = tpu.matmul %81, %83, %cst_69 {dimension_numbers = #tpu.dot_dimension_numbers<[1], [0], [0], [1], [0, 0, 1, 1], [], []>} : vector<256x128xbf16>, vector<128x128xbf16>, vector<256x128xf32> -> vector<256x128xf32>
    %85 = arith.addf %79, %84 : vector<256x128xf32>
    %c1_70 = arith.constant 1 : index
    %c16_71 = arith.constant 16 : index
    %c0_72 = arith.constant 0 : index
    %86 = vector.load %arg10[%c1_70, %c16_71, %c0_72] : memref<3x288x128xbf16, #tpu.memory_space<vmem>>, vector<1x256x128xbf16>
    %87 = vector.shape_cast %86 : vector<1x256x128xbf16> to vector<256x128xbf16>
    %c4 = arith.constant 4 : index
    %c0_73 = arith.constant 0 : index
    %c0_74 = arith.constant 0 : index
    %88 = vector.load %arg7[%c4, %c0_73, %c0_74] : memref<9x128x128xbf16, #tpu.memory_space<vmem>>, vector<1x128x128xbf16>
    %89 = vector.shape_cast %88 : vector<1x128x128xbf16> to vector<128x128xbf16>
    %cst_75 = arith.constant dense<0.000000e+00> : vector<256x128xf32>
    %90 = tpu.matmul %87, %89, %cst_75 {dimension_numbers = #tpu.dot_dimension_numbers<[1], [0], [0], [1], [0, 0, 1, 1], [], []>} : vector<256x128xbf16>, vector<128x128xbf16>, vector<256x128xf32> -> vector<256x128xf32>
    %91 = arith.addf %85, %90 : vector<256x128xf32>
    %c2_76 = arith.constant 2 : index
    %c16_77 = arith.constant 16 : index
    %c0_78 = arith.constant 0 : index
    %92 = vector.load %arg10[%c2_76, %c16_77, %c0_78] : memref<3x288x128xbf16, #tpu.memory_space<vmem>>, vector<1x256x128xbf16>
    %93 = vector.shape_cast %92 : vector<1x256x128xbf16> to vector<256x128xbf16>
    %c5 = arith.constant 5 : index
    %c0_79 = arith.constant 0 : index
    %c0_80 = arith.constant 0 : index
    %94 = vector.load %arg7[%c5, %c0_79, %c0_80] : memref<9x128x128xbf16, #tpu.memory_space<vmem>>, vector<1x128x128xbf16>
    %95 = vector.shape_cast %94 : vector<1x128x128xbf16> to vector<128x128xbf16>
    %cst_81 = arith.constant dense<0.000000e+00> : vector<256x128xf32>
    %96 = tpu.matmul %93, %95, %cst_81 {dimension_numbers = #tpu.dot_dimension_numbers<[1], [0], [0], [1], [0, 0, 1, 1], [], []>} : vector<256x128xbf16>, vector<128x128xbf16>, vector<256x128xf32> -> vector<256x128xf32>
    %97 = arith.addf %91, %96 : vector<256x128xf32>
    %c0_82 = arith.constant 0 : index
    %c32 = arith.constant 32 : index
    %c0_83 = arith.constant 0 : index
    %98 = vector.load %arg10[%c0_82, %c32, %c0_83] : memref<3x288x128xbf16, #tpu.memory_space<vmem>>, vector<1x256x128xbf16>
    %99 = vector.shape_cast %98 : vector<1x256x128xbf16> to vector<256x128xbf16>
    %c6 = arith.constant 6 : index
    %c0_84 = arith.constant 0 : index
    %c0_85 = arith.constant 0 : index
    %100 = vector.load %arg7[%c6, %c0_84, %c0_85] : memref<9x128x128xbf16, #tpu.memory_space<vmem>>, vector<1x128x128xbf16>
    %101 = vector.shape_cast %100 : vector<1x128x128xbf16> to vector<128x128xbf16>
    %cst_86 = arith.constant dense<0.000000e+00> : vector<256x128xf32>
    %102 = tpu.matmul %99, %101, %cst_86 {dimension_numbers = #tpu.dot_dimension_numbers<[1], [0], [0], [1], [0, 0, 1, 1], [], []>} : vector<256x128xbf16>, vector<128x128xbf16>, vector<256x128xf32> -> vector<256x128xf32>
    %103 = arith.addf %97, %102 : vector<256x128xf32>
    %c1_87 = arith.constant 1 : index
    %c32_88 = arith.constant 32 : index
    %c0_89 = arith.constant 0 : index
    %104 = vector.load %arg10[%c1_87, %c32_88, %c0_89] : memref<3x288x128xbf16, #tpu.memory_space<vmem>>, vector<1x256x128xbf16>
    %105 = vector.shape_cast %104 : vector<1x256x128xbf16> to vector<256x128xbf16>
    %c7 = arith.constant 7 : index
    %c0_90 = arith.constant 0 : index
    %c0_91 = arith.constant 0 : index
    %106 = vector.load %arg7[%c7, %c0_90, %c0_91] : memref<9x128x128xbf16, #tpu.memory_space<vmem>>, vector<1x128x128xbf16>
    %107 = vector.shape_cast %106 : vector<1x128x128xbf16> to vector<128x128xbf16>
    %cst_92 = arith.constant dense<0.000000e+00> : vector<256x128xf32>
    %108 = tpu.matmul %105, %107, %cst_92 {dimension_numbers = #tpu.dot_dimension_numbers<[1], [0], [0], [1], [0, 0, 1, 1], [], []>} : vector<256x128xbf16>, vector<128x128xbf16>, vector<256x128xf32> -> vector<256x128xf32>
    %109 = arith.addf %103, %108 : vector<256x128xf32>
    %c2_93 = arith.constant 2 : index
    %c32_94 = arith.constant 32 : index
    %c0_95 = arith.constant 0 : index
    %110 = vector.load %arg10[%c2_93, %c32_94, %c0_95] : memref<3x288x128xbf16, #tpu.memory_space<vmem>>, vector<1x256x128xbf16>
    %111 = vector.shape_cast %110 : vector<1x256x128xbf16> to vector<256x128xbf16>
    %c8 = arith.constant 8 : index
    %c0_96 = arith.constant 0 : index
    %c0_97 = arith.constant 0 : index
    %112 = vector.load %arg7[%c8, %c0_96, %c0_97] : memref<9x128x128xbf16, #tpu.memory_space<vmem>>, vector<1x128x128xbf16>
    %113 = vector.shape_cast %112 : vector<1x128x128xbf16> to vector<128x128xbf16>
    %cst_98 = arith.constant dense<0.000000e+00> : vector<256x128xf32>
    %114 = tpu.matmul %111, %113, %cst_98 {dimension_numbers = #tpu.dot_dimension_numbers<[1], [0], [0], [1], [0, 0, 1, 1], [], []>} : vector<256x128xbf16>, vector<128x128xbf16>, vector<256x128xf32> -> vector<256x128xf32>
    %115 = arith.addf %109, %114 : vector<256x128xf32>
    %116 = vector.broadcast %4 : vector<1x128xf32> to vector<256x128xf32>
    %117 = arith.mulf %115, %116 : vector<256x128xf32>
    %118 = vector.broadcast %5 : vector<1x128xf32> to vector<256x128xf32>
    %119 = arith.addf %117, %118 : vector<256x128xf32>
    %cst_99 = arith.constant 0.000000e+00 : f32
    %120 = vector.broadcast %cst_99 : f32 to vector<256x128xf32>
    %121 = arith.maximumf %119, %120 : vector<256x128xf32>
    %122 = vector.shape_cast %121 : vector<256x128xf32> to vector<16x16x128xf32>
    %c1_100 = arith.constant 1 : index
    %c1_101 = arith.constant 1 : index
    %c0_102 = arith.constant 0 : index
    %123 = vector.load %arg11[%c1_100, %c1_101, %c0_102] : memref<18x18x128xf32, #tpu.memory_space<vmem>>, vector<16x16x128xf32>
    tpu.vector_store %arg11[%c1_100, %c1_101, %c0_102], %122 {strides = array<i32>} : memref<18x18x128xf32, #tpu.memory_space<vmem>>, vector<16x16x128xf32>,
    %c0_103 = arith.constant 0 : index
    %c0_104 = arith.constant 0 : index
    %c0_105 = arith.constant 0 : index
    %124 = vector.load %arg11[%c0_103, %c0_104, %c0_105] : memref<18x18x128xf32, #tpu.memory_space<vmem>>, vector<18x16x128xf32>
    %125 = arith.truncf %124 : vector<18x16x128xf32> to vector<18x16x128xbf16>
    %126 = vector.shape_cast %125 : vector<18x16x128xbf16> to vector<288x128xbf16>
    %c0_106 = arith.constant 0 : index
    %c0_107 = arith.constant 0 : index
    %c0_108 = arith.constant 0 : index
    %127 = vector.load %arg12[%c0_106, %c0_107, %c0_108] : memref<3x288x128xbf16, #tpu.memory_space<vmem>>, vector<1x288x128xbf16>
    %128 = vector.shape_cast %127 : vector<1x288x128xbf16> to vector<288x128xbf16>
    %129 = vector.shape_cast %126 : vector<288x128xbf16> to vector<1x288x128xbf16>
    tpu.vector_store %arg12[%c0_106, %c0_107, %c0_108], %129 {strides = array<i32>} : memref<3x288x128xbf16, #tpu.memory_space<vmem>>, vector<1x288x128xbf16>,
    %c0_109 = arith.constant 0 : index
    %c1_110 = arith.constant 1 : index
    %c0_111 = arith.constant 0 : index
    %130 = vector.load %arg11[%c0_109, %c1_110, %c0_111] : memref<18x18x128xf32, #tpu.memory_space<vmem>>, vector<18x16x128xf32>
    %131 = arith.truncf %130 : vector<18x16x128xf32> to vector<18x16x128xbf16>
    %132 = vector.shape_cast %131 : vector<18x16x128xbf16> to vector<288x128xbf16>
    %c1_112 = arith.constant 1 : index
    %c0_113 = arith.constant 0 : index
    %c0_114 = arith.constant 0 : index
    %133 = vector.load %arg12[%c1_112, %c0_113, %c0_114] : memref<3x288x128xbf16, #tpu.memory_space<vmem>>, vector<1x288x128xbf16>
    %134 = vector.shape_cast %133 : vector<1x288x128xbf16> to vector<288x128xbf16>
    %135 = vector.shape_cast %132 : vector<288x128xbf16> to vector<1x288x128xbf16>
    tpu.vector_store %arg12[%c1_112, %c0_113, %c0_114], %135 {strides = array<i32>} : memref<3x288x128xbf16, #tpu.memory_space<vmem>>, vector<1x288x128xbf16>,
    %c0_115 = arith.constant 0 : index
    %c2_116 = arith.constant 2 : index
    %c0_117 = arith.constant 0 : index
    %136 = vector.load %arg11[%c0_115, %c2_116, %c0_117] : memref<18x18x128xf32, #tpu.memory_space<vmem>>, vector<18x16x128xf32>
    %137 = arith.truncf %136 : vector<18x16x128xf32> to vector<18x16x128xbf16>
    %138 = vector.shape_cast %137 : vector<18x16x128xbf16> to vector<288x128xbf16>
    %c2_118 = arith.constant 2 : index
    %c0_119 = arith.constant 0 : index
    %c0_120 = arith.constant 0 : index
    %139 = vector.load %arg12[%c2_118, %c0_119, %c0_120] : memref<3x288x128xbf16, #tpu.memory_space<vmem>>, vector<1x288x128xbf16>
    %140 = vector.shape_cast %139 : vector<1x288x128xbf16> to vector<288x128xbf16>
    %141 = vector.shape_cast %138 : vector<288x128xbf16> to vector<1x288x128xbf16>
    tpu.vector_store %arg12[%c2_118, %c0_119, %c0_120], %141 {strides = array<i32>} : memref<3x288x128xbf16, #tpu.memory_space<vmem>>, vector<1x288x128xbf16>,
    %c0_121 = arith.constant 0 : index
    %c1_122 = arith.constant 1 : index
    %c1_123 = arith.constant 1 : index
    %c0_124 = arith.constant 0 : index
    %142 = vector.load %arg1[%c0_121, %c1_122, %c1_123, %c0_124] : memref<1x18x18x128xf32, #tpu.memory_space<vmem>>, vector<1x16x16x128xf32>
    %143 = vector.shape_cast %142 : vector<1x16x16x128xf32> to vector<16x16x128xf32>
    %144 = vector.shape_cast %143 : vector<16x16x128xf32> to vector<256x128xf32>
    %c0_125 = arith.constant 0 : index
    %c0_126 = arith.constant 0 : index
    %c0_127 = arith.constant 0 : index
    %145 = vector.load %arg12[%c0_125, %c0_126, %c0_127] : memref<3x288x128xbf16, #tpu.memory_space<vmem>>, vector<1x256x128xbf16>
    %146 = vector.shape_cast %145 : vector<1x256x128xbf16> to vector<256x128xbf16>
    %c0_128 = arith.constant 0 : index
    %c0_129 = arith.constant 0 : index
    %c0_130 = arith.constant 0 : index
    %147 = vector.load %arg8[%c0_128, %c0_129, %c0_130] : memref<9x128x128xbf16, #tpu.memory_space<vmem>>, vector<1x128x128xbf16>
    %148 = vector.shape_cast %147 : vector<1x128x128xbf16> to vector<128x128xbf16>
    %cst_131 = arith.constant dense<0.000000e+00> : vector<256x128xf32>
    %149 = tpu.matmul %146, %148, %cst_131 {dimension_numbers = #tpu.dot_dimension_numbers<[1], [0], [0], [1], [0, 0, 1, 1], [], []>} : vector<256x128xbf16>, vector<128x128xbf16>, vector<256x128xf32> -> vector<256x128xf32>
    %150 = arith.addf %144, %149 : vector<256x128xf32>
    %c1_132 = arith.constant 1 : index
    %c0_133 = arith.constant 0 : index
    %c0_134 = arith.constant 0 : index
    %151 = vector.load %arg12[%c1_132, %c0_133, %c0_134] : memref<3x288x128xbf16, #tpu.memory_space<vmem>>, vector<1x256x128xbf16>
    %152 = vector.shape_cast %151 : vector<1x256x128xbf16> to vector<256x128xbf16>
    %c1_135 = arith.constant 1 : index
    %c0_136 = arith.constant 0 : index
    %c0_137 = arith.constant 0 : index
    %153 = vector.load %arg8[%c1_135, %c0_136, %c0_137] : memref<9x128x128xbf16, #tpu.memory_space<vmem>>, vector<1x128x128xbf16>
    %154 = vector.shape_cast %153 : vector<1x128x128xbf16> to vector<128x128xbf16>
    %cst_138 = arith.constant dense<0.000000e+00> : vector<256x128xf32>
    %155 = tpu.matmul %152, %154, %cst_138 {dimension_numbers = #tpu.dot_dimension_numbers<[1], [0], [0], [1], [0, 0, 1, 1], [], []>} : vector<256x128xbf16>, vector<128x128xbf16>, vector<256x128xf32> -> vector<256x128xf32>
    %156 = arith.addf %150, %155 : vector<256x128xf32>
    %c2_139 = arith.constant 2 : index
    %c0_140 = arith.constant 0 : index
    %c0_141 = arith.constant 0 : index
    %157 = vector.load %arg12[%c2_139, %c0_140, %c0_141] : memref<3x288x128xbf16, #tpu.memory_space<vmem>>, vector<1x256x128xbf16>
    %158 = vector.shape_cast %157 : vector<1x256x128xbf16> to vector<256x128xbf16>
    %c2_142 = arith.constant 2 : index
    %c0_143 = arith.constant 0 : index
    %c0_144 = arith.constant 0 : index
    %159 = vector.load %arg8[%c2_142, %c0_143, %c0_144] : memref<9x128x128xbf16, #tpu.memory_space<vmem>>, vector<1x128x128xbf16>
    %160 = vector.shape_cast %159 : vector<1x128x128xbf16> to vector<128x128xbf16>
    %cst_145 = arith.constant dense<0.000000e+00> : vector<256x128xf32>
    %161 = tpu.matmul %158, %160, %cst_145 {dimension_numbers = #tpu.dot_dimension_numbers<[1], [0], [0], [1], [0, 0, 1, 1], [], []>} : vector<256x128xbf16>, vector<128x128xbf16>, vector<256x128xf32> -> vector<256x128xf32>
    %162 = arith.addf %156, %161 : vector<256x128xf32>
    %c0_146 = arith.constant 0 : index
    %c16_147 = arith.constant 16 : index
    %c0_148 = arith.constant 0 : index
    %163 = vector.load %arg12[%c0_146, %c16_147, %c0_148] : memref<3x288x128xbf16, #tpu.memory_space<vmem>>, vector<1x256x128xbf16>
    %164 = vector.shape_cast %163 : vector<1x256x128xbf16> to vector<256x128xbf16>
    %c3_149 = arith.constant 3 : index
    %c0_150 = arith.constant 0 : index
    %c0_151 = arith.constant 0 : index
    %165 = vector.load %arg8[%c3_149, %c0_150, %c0_151] : memref<9x128x128xbf16, #tpu.memory_space<vmem>>, vector<1x128x128xbf16>
    %166 = vector.shape_cast %165 : vector<1x128x128xbf16> to vector<128x128xbf16>
    %cst_152 = arith.constant dense<0.000000e+00> : vector<256x128xf32>
    %167 = tpu.matmul %164, %166, %cst_152 {dimension_numbers = #tpu.dot_dimension_numbers<[1], [0], [0], [1], [0, 0, 1, 1], [], []>} : vector<256x128xbf16>, vector<128x128xbf16>, vector<256x128xf32> -> vector<256x128xf32>
    %168 = arith.addf %162, %167 : vector<256x128xf32>
    %c1_153 = arith.constant 1 : index
    %c16_154 = arith.constant 16 : index
    %c0_155 = arith.constant 0 : index
    %169 = vector.load %arg12[%c1_153, %c16_154, %c0_155] : memref<3x288x128xbf16, #tpu.memory_space<vmem>>, vector<1x256x128xbf16>
    %170 = vector.shape_cast %169 : vector<1x256x128xbf16> to vector<256x128xbf16>
    %c4_156 = arith.constant 4 : index
    %c0_157 = arith.constant 0 : index
    %c0_158 = arith.constant 0 : index
    %171 = vector.load %arg8[%c4_156, %c0_157, %c0_158] : memref<9x128x128xbf16, #tpu.memory_space<vmem>>, vector<1x128x128xbf16>
    %172 = vector.shape_cast %171 : vector<1x128x128xbf16> to vector<128x128xbf16>
    %cst_159 = arith.constant dense<0.000000e+00> : vector<256x128xf32>
    %173 = tpu.matmul %170, %172, %cst_159 {dimension_numbers = #tpu.dot_dimension_numbers<[1], [0], [0], [1], [0, 0, 1, 1], [], []>} : vector<256x128xbf16>, vector<128x128xbf16>, vector<256x128xf32> -> vector<256x128xf32>
    %174 = arith.addf %168, %173 : vector<256x128xf32>
    %c2_160 = arith.constant 2 : index
    %c16_161 = arith.constant 16 : index
    %c0_162 = arith.constant 0 : index
    %175 = vector.load %arg12[%c2_160, %c16_161, %c0_162] : memref<3x288x128xbf16, #tpu.memory_space<vmem>>, vector<1x256x128xbf16>
    %176 = vector.shape_cast %175 : vector<1x256x128xbf16> to vector<256x128xbf16>
    %c5_163 = arith.constant 5 : index
    %c0_164 = arith.constant 0 : index
    %c0_165 = arith.constant 0 : index
    %177 = vector.load %arg8[%c5_163, %c0_164, %c0_165] : memref<9x128x128xbf16, #tpu.memory_space<vmem>>, vector<1x128x128xbf16>
    %178 = vector.shape_cast %177 : vector<1x128x128xbf16> to vector<128x128xbf16>
    %cst_166 = arith.constant dense<0.000000e+00> : vector<256x128xf32>
    %179 = tpu.matmul %176, %178, %cst_166 {dimension_numbers = #tpu.dot_dimension_numbers<[1], [0], [0], [1], [0, 0, 1, 1], [], []>} : vector<256x128xbf16>, vector<128x128xbf16>, vector<256x128xf32> -> vector<256x128xf32>
    %180 = arith.addf %174, %179 : vector<256x128xf32>
    %c0_167 = arith.constant 0 : index
    %c32_168 = arith.constant 32 : index
    %c0_169 = arith.constant 0 : index
    %181 = vector.load %arg12[%c0_167, %c32_168, %c0_169] : memref<3x288x128xbf16, #tpu.memory_space<vmem>>, vector<1x256x128xbf16>
    %182 = vector.shape_cast %181 : vector<1x256x128xbf16> to vector<256x128xbf16>
    %c6_170 = arith.constant 6 : index
    %c0_171 = arith.constant 0 : index
    %c0_172 = arith.constant 0 : index
    %183 = vector.load %arg8[%c6_170, %c0_171, %c0_172] : memref<9x128x128xbf16, #tpu.memory_space<vmem>>, vector<1x128x128xbf16>
    %184 = vector.shape_cast %183 : vector<1x128x128xbf16> to vector<128x128xbf16>
    %cst_173 = arith.constant dense<0.000000e+00> : vector<256x128xf32>
    %185 = tpu.matmul %182, %184, %cst_173 {dimension_numbers = #tpu.dot_dimension_numbers<[1], [0], [0], [1], [0, 0, 1, 1], [], []>} : vector<256x128xbf16>, vector<128x128xbf16>, vector<256x128xf32> -> vector<256x128xf32>
    %186 = arith.addf %180, %185 : vector<256x128xf32>
    %c1_174 = arith.constant 1 : index
    %c32_175 = arith.constant 32 : index
    %c0_176 = arith.constant 0 : index
    %187 = vector.load %arg12[%c1_174, %c32_175, %c0_176] : memref<3x288x128xbf16, #tpu.memory_space<vmem>>, vector<1x256x128xbf16>
    %188 = vector.shape_cast %187 : vector<1x256x128xbf16> to vector<256x128xbf16>
    %c7_177 = arith.constant 7 : index
    %c0_178 = arith.constant 0 : index
    %c0_179 = arith.constant 0 : index
    %189 = vector.load %arg8[%c7_177, %c0_178, %c0_179] : memref<9x128x128xbf16, #tpu.memory_space<vmem>>, vector<1x128x128xbf16>
    %190 = vector.shape_cast %189 : vector<1x128x128xbf16> to vector<128x128xbf16>
    %cst_180 = arith.constant dense<0.000000e+00> : vector<256x128xf32>
    %191 = tpu.matmul %188, %190, %cst_180 {dimension_numbers = #tpu.dot_dimension_numbers<[1], [0], [0], [1], [0, 0, 1, 1], [], []>} : vector<256x128xbf16>, vector<128x128xbf16>, vector<256x128xf32> -> vector<256x128xf32>
    %192 = arith.addf %186, %191 : vector<256x128xf32>
    %c2_181 = arith.constant 2 : index
    %c32_182 = arith.constant 32 : index
    %c0_183 = arith.constant 0 : index
    %193 = vector.load %arg12[%c2_181, %c32_182, %c0_183] : memref<3x288x128xbf16, #tpu.memory_space<vmem>>, vector<1x256x128xbf16>
    %194 = vector.shape_cast %193 : vector<1x256x128xbf16> to vector<256x128xbf16>
    %c8_184 = arith.constant 8 : index
    %c0_185 = arith.constant 0 : index
    %c0_186 = arith.constant 0 : index
    %195 = vector.load %arg8[%c8_184, %c0_185, %c0_186] : memref<9x128x128xbf16, #tpu.memory_space<vmem>>, vector<1x128x128xbf16>
    %196 = vector.shape_cast %195 : vector<1x128x128xbf16> to vector<128x128xbf16>
    %cst_187 = arith.constant dense<0.000000e+00> : vector<256x128xf32>
    %197 = tpu.matmul %194, %196, %cst_187 {dimension_numbers = #tpu.dot_dimension_numbers<[1], [0], [0], [1], [0, 0, 1, 1], [], []>} : vector<256x128xbf16>, vector<128x128xbf16>, vector<256x128xf32> -> vector<256x128xf32>
    %198 = arith.addf %192, %197 : vector<256x128xf32>
    %c0_188 = arith.constant 0 : index
    %c0_189 = arith.constant 0 : index
    %c0_190 = arith.constant 0 : index
    %199 = vector.load %arg9[%c0_188, %c0_189, %c0_190] : memref<1x256x128xf32, #tpu.memory_space<vmem>>, vector<1x256x128xf32>
    %200 = vector.shape_cast %199 : vector<1x256x128xf32> to vector<256x128xf32>
    %201 = vector.shape_cast %198 : vector<256x128xf32> to vector<1x256x128xf32>
    tpu.vector_store %arg9[%c0_188, %c0_189, %c0_190], %201 {strides = array<i32>} : memref<1x256x128xf32, #tpu.memory_space<vmem>>, vector<1x256x128xf32>,
    return
  }
  func.func @transform_0(%arg0: i32) -> (i32, i32, i32, i32) {
    %c0_i32 = arith.constant 0 : i32
    %c0_i32_0 = arith.constant 0 : i32
    %c0_i32_1 = arith.constant 0 : i32
    %c0_i32_2 = arith.constant 0 : i32
    return %arg0, %c0_i32, %c0_i32_0, %c0_i32_1 : i32, i32, i32, i32
  }
  func.func @transform_1(%arg0: i32) -> (i32, i32, i32, i32) {
    %c0_i32 = arith.constant 0 : i32
    %c0_i32_0 = arith.constant 0 : i32
    %c0_i32_1 = arith.constant 0 : i32
    %c0_i32_2 = arith.constant 0 : i32
    %c0_i32_3 = arith.constant 0 : i32
    return %c0_i32, %c0_i32_0, %c0_i32_1, %c0_i32_2 : i32, i32, i32, i32
  }
  func.func @transform_2(%arg0: i32) -> (i32, i32) {
    %c0_i32 = arith.constant 0 : i32
    %c0_i32_0 = arith.constant 0 : i32
    %c0_i32_1 = arith.constant 0 : i32
    return %c0_i32, %c0_i32_0 : i32, i32
  }
  func.func @transform_3(%arg0: i32) -> (i32, i32) {
    %c0_i32 = arith.constant 0 : i32
    %c0_i32_0 = arith.constant 0 : i32
    %c0_i32_1 = arith.constant 0 : i32
    return %c0_i32, %c0_i32_0 : i32, i32
  }
  func.func @transform_4(%arg0: i32) -> (i32, i32) {
    %c0_i32 = arith.constant 0 : i32
    %c0_i32_0 = arith.constant 0 : i32
    %c0_i32_1 = arith.constant 0 : i32
    return %c0_i32, %c0_i32_0 : i32, i32
  }
  func.func @transform_5(%arg0: i32) -> (i32, i32) {
    %c0_i32 = arith.constant 0 : i32
    %c0_i32_0 = arith.constant 0 : i32
    %c0_i32_1 = arith.constant 0 : i32
    return %c0_i32, %c0_i32_0 : i32, i32
  }
  func.func @transform_6(%arg0: i32) -> (i32, i32, i32) {
    %c0_i32 = arith.constant 0 : i32
    %c0_i32_0 = arith.constant 0 : i32
    %c0_i32_1 = arith.constant 0 : i32
    %c0_i32_2 = arith.constant 0 : i32
    return %c0_i32, %c0_i32_0, %c0_i32_1 : i32, i32, i32
  }
  func.func @transform_7(%arg0: i32) -> (i32, i32, i32) {
    %c0_i32 = arith.constant 0 : i32
    %c0_i32_0 = arith.constant 0 : i32
    %c0_i32_1 = arith.constant 0 : i32
    %c0_i32_2 = arith.constant 0 : i32
    return %c0_i32, %c0_i32_0, %c0_i32_1 : i32, i32, i32
  }
  func.func @transform_8(%arg0: i32) -> (i32, i32, i32) {
    %c0_i32 = arith.constant 0 : i32
    %c0_i32_0 = arith.constant 0 : i32
    %c0_i32_1 = arith.constant 0 : i32
    return %arg0, %c0_i32, %c0_i32_0 : i32, i32, i32
  }
}

</mosaic_0001>

<bundles_post_ra>
// kernel: basic_block_forward.1
= control target key start
LH: loop header
LB: loop body
LE: loop exit
PB: predicated region body
PF: predicated region fallthrough
CT: control target
= control target key end

     0   :  { %s13515_s27 = smov 0   ;;  %s16071_s0 = inlined_call_operand.vmem [shape: f32[2,18,18,128], index: 0, kind: input, shape index: {}]   ;;  %s16072_s1 = inlined_call_operand.vmem [shape: f32[1,18,18,1], index: 1, kind: input, shape index: {}]   ;;  %s16073_s2 = inlined_call_operand.vmem [shape: f32[1,128], index: 2, kind: input, shape index: {}]   ;;  %s16074_s3 = inlined_call_operand.vmem [shape: f32[1,128], index: 3, kind: input, shape index: {}]   ;;  %s16075_s4 = inlined_call_operand.vmem [shape: f32[1,128], index: 4, kind: input, shape index: {}]   ;;  %s16076_s5 = inlined_call_operand.vmem [shape: f32[1,128], index: 5, kind: input, shape index: {}]   ;;  %s16077_s6 = inlined_call_operand.vmem [shape: bf16[9,128,128], index: 6, kind: input, shape index: {}]   ;;  %s16078_s7 = inlined_call_operand.vmem [shape: bf16[9,128,128], index: 7, kind: input, shape index: {}]   ;;  %s16079_s8 = inlined_call_operand.vmem [shape: f32[2,256,128], index: 8, kind: output, shape index: {}]  }
   0x1 LB: > { %s9900_s28 = sadd.s32 4294967295, %s13465_s27   ;;  %p9904_p0 = scmp.ge.s32.totalorder %s13465_s27, 1  ;;  %s13465_s27 = sphi %s13515_s27, %s18_s27  }
   0x2   : > { %p262_p1 = scmp.lt.s32.totalorder %s13465_s27, 3 }
   0x4   : > { %p263_p2 = pnand %p9904_p0, %p262_p1 }
   0x6   : > { %266 = sbr.rel (%p263_p2) target bundleno = 1226 (0x4ca), region = 52 }
   0xb   : > { %v991_v0 = vld [vmem:[%s16072_s1 + $0x19] sm:$0xff]  ;;  %v989_v1 = vld [vmem:[%s16072_s1 + $0x1] sm:$0xff]  ;;  %v13467_v2 = vmov 0   ;;  %v990_v4 = vld [vmem:[%s16072_s1 + $0x9] sm:$0xff]  ;;  %p296_p3 = scmp.lt.s32.totalorder %s9900_s28, 1 }
   0xc   : > { %13017 = vset.pattern.permute.xlu1 %v13467_v2  ;;  %13016 = vset.pattern.permute.xlu0 %v13467_v2  ;;  %v992_v3 = vld [vmem:[%s16072_s1 + $0x21] sm:$0xff]  ;;  %v994_v5 = vld [vmem:[%s16072_s1 + $0x39] sm:$0xff]  ;;  %v993_v6 = vld [vmem:[%s16072_s1 + $0x31] sm:$0xff] }
   0xd   : > { %1145 = vperm.xlu1 %13017, %v991_v0   ;;  %1135 = vperm.xlu0 %13016, %v989_v1   ;;  %v996_v7 = vld [vmem:[%s16072_s1 + $0x51] sm:$0xff]  ;;  %v995_v8 = vld [vmem:[%s16072_s1 + $0x49] sm:$0xff]  ;;  %v997_v10 = vld [vmem:[%s16072_s1 + $0x61] sm:$0xff]  ;;  %s16327_s28 = smov (!%p296_p3, %s9900_s28), 1 }
   0xe   : > { %v998_v9 = vld [vmem:[%s16072_s1 + $0x69] sm:$0xff]  ;;  %v1000_v11 = vld [vmem:[%s16072_s1 + $0x81] sm:$0xff]  ;;  %v999_v12 = vld [vmem:[%s16072_s1 + $0x79] sm:$0xff]  ;;  %s13005_s9 = smul.u32 432, %s16327_s28 }
   0xf   : > { %v13018_v13 = vld [vmem:[%s16077_s6 + $0x78] sm:$0xff]   ;;  %v13019_v14 = vld [vmem:[%s16077_s6 + $0x70] sm:$0xff]   ;;  %v13020_v17 = vld [vmem:[%s16077_s6 + $0x68] sm:$0xff]  }
  0x10   : > { %12141 = vmatprep.subr.bf16.mxu0 %v13018_v13  ;;  %v1002_v15 = vld [vmem:[%s16072_s1 + $0x99] sm:$0xff]  ;;  %v1001_v16 = vld [vmem:[%s16072_s1 + $0x91] sm:$0xff]  ;;  %v1003_v19 = vld [vmem:[%s16072_s1 + $0xa9] sm:$0xff]  ;;  %s13755_s16 = scalar_lea.vmem %s16071_s0, %s13005_s9 }
  0x11   : > { %1150 = vperm.xlu1 %13017, %v992_v3   ;;  %1140 = vperm.xlu0 %13016, %v990_v4   ;;  %v1004_v18 = vld [vmem:[%s16072_s1 + $0xb1] sm:$0xff]  ;;  %v13021_v20 = vld [vmem:[%s16077_s6 + $0x60] sm:$0xff]   ;;  %v1006_v21 = vld [vmem:[%s16072_s1 + $0xc9] sm:$0xff] }
  0x12   : > { %12142 = vmatpush3.bf16.msra.mxu0 %v13018_v13  ;;  %v1005_v22 = vld [vmem:[%s16072_s1 + $0xc1] sm:$0xff]  ;;  %v13022_v23 = vld [vmem:[%s16077_s6 + $0x58] sm:$0xff]   ;;  %v13023_v26 = vld [vmem:[%s16077_s6 + $0x50] sm:$0xff]  }
  0x13   : > { %12143 = vmatprep.subr.bf16.mxu0 %v13019_v14  ;;  %v1008_v24 = vld [vmem:[%s16072_s1 + $0xe1] sm:$0xff]  ;;  %v1007_v25 = vld [vmem:[%s16072_s1 + $0xd9] sm:$0xff]  ;;  %v1009_v28 = vld [vmem:[%s16072_s1 + $0xf1] sm:$0xff] }
  0x14   : > { %v1010_v27 = vld [vmem:[%s16072_s1 + $0xf9] sm:$0xff]  ;;  %v13024_v29 = vld [vmem:[%s16077_s6 + $0x48] sm:$0xff]   ;;  %v1012_v30 = vld [vmem:[%s16072_s1 + $0x111] sm:$0xff] }
  0x15   : > { %1160 = vperm.xlu1 %13017, %v994_v5   ;;  %1155 = vperm.xlu0 %13016, %v993_v6   ;;  %v1011_v31 = vld [vmem:[%s16072_s1 + $0x109] sm:$0xff]  ;;  %v13025_v32 = vld [vmem:[%s16077_s6 + $0x40] sm:$0xff]   ;;  %v13035_v35 = vld [vmem:[%s16077_s6 + $0x38] sm:$0xff]  }
  0x16   : > { %12144 = vmatpush3.bf16.msra.mxu0 %v13019_v14  ;;  %v1014_v33 = vld [vmem:[%s16072_s1 + $0x129] sm:$0xff]  ;;  %v1013_v34 = vld [vmem:[%s16072_s1 + $0x121] sm:$0xff]  ;;  %12189 = vmatprep.subr.bf16.mxu1 %v13035_v35  ;;  %v1015_v38 = vld [vmem:[%s16072_s1 + $0x139] sm:$0xff] }
  0x17   : > { %12145 = vmatprep.subr.bf16.mxu0 %v13020_v17  ;;  %v1016_v36 = vld [vmem:[%s16072_s1 + $0x141] sm:$0xff]  ;;  %v13038_v37 = vld [vmem:[%s16077_s6 + $0x30] sm:$0xff]   ;;  %12190 = vmatpush3.bf16.msra.mxu1 %v13035_v35  ;;  %v1018_v39 = vld [vmem:[%s16072_s1 + $0x159] sm:$0xff] }
  0x18   : > { %12191 = vmatprep.subr.bf16.mxu1 %v13038_v37  ;;  %v1017_v40 = vld [vmem:[%s16072_s1 + $0x151] sm:$0xff]  ;;  %v13039_v41 = vld [vmem:[%s16077_s6 + $0x28] sm:$0xff]   ;;  %v13043_v44 = vld [vmem:[%s16077_s6 + $0x20] sm:$0xff]  }
  0x19   : > { %1170 = vperm.xlu1 %13017, %v996_v7   ;;  %1165 = vperm.xlu0 %13016, %v995_v8   ;;  %v13649_v42 = vld [vmem:[%s16077_s6 + $0xb8] sm:$0xff]   ;;  %v1019_v45 = vld [vmem:[%s16072_s1 + $0x169] sm:$0xff]  ;;  %v401_v48 = vld [vmem:[%s16072_s1] sm:$0xff] }
  0x1a   : > { %12146 = vmatpush3.bf16.msra.mxu0 %v13020_v17  ;;  %v1020_v43 = vld [vmem:[%s16072_s1 + $0x171] sm:$0xff]  ;;  %v402_v46 = vld [vmem:[%s16072_s1 + $0x8] sm:$0xff]  ;;  %v404_v49 = vld [vmem:[%s16072_s1 + $0x20] sm:$0xff] }
  0x1b   : > { %12147 = vmatprep.subr.bf16.mxu0 %v13021_v20  ;;  %12192 = vmatpush3.bf16.msra.mxu1 %v13038_v37  ;;  %v13045_v47 = vld [vmem:[%s16077_s6 + $0x18] sm:$0xff]   ;;  %v13049_v50 = vld [vmem:[%s16077_s6 + $0x10] sm:$0xff]   ;;  %v13051_v53 = vld [vmem:[%s16077_s6 + $0x8] sm:$0xff]  }
  0x1c   : > { %12193 = vmatprep.subr.bf16.mxu1 %v13039_v41  ;;  %v403_v51 = vld [vmem:[%s16072_s1 + $0x18] sm:$0xff]  ;;  %v1567_v52 = vld [vmem:[%s16072_s1 + $0xa] sm:$0xff]  ;;  %v1566_v54 = vld [vmem:[%s16072_s1 + $0x2] sm:$0xff] }
  0x1d   : > { %1180 = vperm.xlu1 %13017, %v998_v9   ;;  %1175 = vperm.xlu0 %13016, %v997_v10   ;;  %v1569_v55 = vld [vmem:[%s16072_s1 + $0x22] sm:$0xff]  ;;  %v1568_v57 = vld [vmem:[%s16072_s1 + $0x1a] sm:$0xff]  ;;  %v405_v59 = vld [vmem:[%s16072_s1 + $0x30] sm:$0xff] }
  0x1e   : > { %12148 = vmatpush3.bf16.msra.mxu0 %v13021_v20  ;;  %v13054_v56 = vld [vmem:[%s16077_s6] sm:$0xff]   ;;  %v406_v58 = vld [vmem:[%s16072_s1 + $0x38] sm:$0xff]  ;;  %v408_v60 = vld [vmem:[%s16072_s1 + $0x50] sm:$0xff] }
  0x1f   : > { %12149 = vmatprep.subr.bf16.mxu0 %v13022_v23  ;;  %12194 = vmatpush3.bf16.msra.mxu1 %v13039_v41  ;;  %v407_v61 = vld [vmem:[%s16072_s1 + $0x48] sm:$0xff]  ;;  %v1571_v62 = vld [vmem:[%s16072_s1 + $0x3a] sm:$0xff]  ;;  %v1570_v63 = vld [vmem:[%s16072_s1 + $0x32] sm:$0xff] }
  0x20   : > { %12195 = vmatprep.subr.bf16.mxu1 %v13043_v44  ;;  %v1573_v0 = vld [vmem:[%s16072_s1 + $0x52] sm:$0xff]  ;;  %v1572_v1 = vld [vmem:[%s16072_s1 + $0x4a] sm:$0xff]  ;;  %v409_v3 = vld [vmem:[%s16072_s1 + $0x60] sm:$0xff] }
  0x21   : > { %1190 = vperm.xlu1 %13017, %v1000_v11   ;;  %1185 = vperm.xlu0 %13016, %v999_v12   ;;  %v410_v2 = vld [vmem:[%s16072_s1 + $0x68] sm:$0xff]  ;;  %v412_v4 = vld [vmem:[%s16072_s1 + $0x80] sm:$0xff]  ;;  %v411_v5 = vld [vmem:[%s16072_s1 + $0x78] sm:$0xff] }
  0x22   : > { %12150 = vmatpush3.bf16.msra.mxu0 %v13022_v23  ;;  %v1575_v6 = vld [vmem:[%s16072_s1 + $0x6a] sm:$0xff]  ;;  %v1574_v7 = vld [vmem:[%s16072_s1 + $0x62] sm:$0xff]  ;;  %v1576_v9 = vld [vmem:[%s16072_s1 + $0x7a] sm:$0xff] }
  0x23   : > { %12151 = vmatprep.subr.bf16.mxu0 %v13023_v26  ;;  %12196 = vmatpush3.bf16.msra.mxu1 %v13043_v44  ;;  %v1577_v8 = vld [vmem:[%s16072_s1 + $0x82] sm:$0xff]  ;;  %v13760_v10 = vld [vmem:[%s16073_s2] ss:$0 sm:$0xff]  ;;  %v414_v11 = vld [vmem:[%s16072_s1 + $0x98] sm:$0xff] }
  0x24   : > { %12197 = vmatprep.subr.bf16.mxu1 %v13045_v47  ;;  %v413_v12 = vld [vmem:[%s16072_s1 + $0x90] sm:$0xff]  ;;  %v955_v13 = vld [vmem:[%s13755_s16 + $0x19] sm:$0xff] }
  0x25   : > { %1200 = vperm.xlu1 %13017, %v1002_v15   ;;  %1195 = vperm.xlu0 %13016, %v1001_v16   ;;  %v13772_v14 = vld [vmem:[%s16074_s3] ss:$0 sm:$0xff]  ;;  %v953_v15 = vld [vmem:[%s13755_s16 + $0x1] sm:$0xff]  ;;  %v416_v17 = vld [vmem:[%s16072_s1 + $0xb0] sm:$0xff] }
  0x26   : > { %12152 = vmatpush3.bf16.msra.mxu0 %v13023_v26  ;;  %v956_v16 = vld [vmem:[%s13755_s16 + $0x21] sm:$0xff]  ;;  %v954_v20 = vld [vmem:[%s13755_s16 + $0x9] sm:$0xff]  ;;  %v958_v23 = vld [vmem:[%s13755_s16 + $0x39] sm:$0xff] }
  0x27   : > { %12153 = vmatprep.subr.bf16.mxu0 %v13024_v29  ;;  %12198 = vmatpush3.bf16.msra.mxu1 %v13045_v47  ;;  %v1580_v35 = vld [vmem:[%s16072_s1 + $0xaa] sm:$0xff] }
  0x28   : > { %12199 = vmatprep.subr.bf16.mxu1 %v13049_v50  ;;  %v962_v44 = vld [vmem:[%s13755_s16 + $0x69] sm:$0xff] }
  0x29   : > { %1210 = vperm.xlu1 %13017, %v1004_v18   ;;  %1205 = vperm.xlu0 %13016, %v1003_v19   ;;  %v415_v18 = vld [vmem:[%s16072_s1 + $0xa8] sm:$0xff]  ;;  %v1027_v19 = vmul.f32 %v13760_v10, %v955_v13 }
  0x2a   : > { %12154 = vmatpush3.bf16.msra.mxu0 %v13024_v29 }
  0x2b   : > { %12155 = vmatprep.subr.bf16.mxu0 %v13025_v32  ;;  %12200 = vmatpush3.bf16.msra.mxu1 %v13049_v50  ;;  %v1063_v26 = vadd.f32 %v13772_v14, %v1027_v19  ;;  %v965_v19 = vld [vmem:[%s13755_s16 + $0x91] sm:$0xff] }
  0x2c   : > { %12201 = vmatprep.subr.bf16.mxu1 %v13051_v53 }
  0x2d   : > { %1220 = vperm.xlu1 %13017, %v1006_v21   ;;  %1215 = vperm.xlu0 %13016, %v1005_v22   ;;  %v1025_v21 = vmul.f32 %v13760_v10, %v953_v15  ;;  %v1028_v22 = vmul.f32 %v13760_v10, %v956_v16  ;;  %v1583_v15 = vld [vmem:[%s16072_s1 + $0xca] sm:$0xff]  ;;  %v1582_v16 = vld [vmem:[%s16072_s1 + $0xc2] sm:$0xff] }
  0x2e   : > { %12156 = vmatpush3.bf16.msra.mxu0 %v13025_v32  ;;  %v960_v32 = vld [vmem:[%s13755_s16 + $0x51] sm:$0xff] }
  0x2f   : > { %12237 = vmatprep.subr.bf16.mxu0 %v13649_v42  ;;  %12202 = vmatpush3.bf16.msra.mxu1 %v13051_v53  ;;  %v1061_v29 = vadd.f32 %v13772_v14, %v1025_v21 }
  0x30   : > { %12203 = vmatprep.subr.bf16.mxu1 %v13054_v56 }
  0x31   : > { %1230 = vperm.xlu1 %13017, %v1008_v24   ;;  %1225 = vperm.xlu0 %13016, %v1007_v25   ;;  %v1579_v24 = vld [vmem:[%s16072_s1 + $0x9a] sm:$0xff]  ;;  %v1578_v25 = vld [vmem:[%s16072_s1 + $0x92] sm:$0xff] }
  0x33   : > { %12204 = vmatpush3.bf16.msra.mxu1 %v13054_v56  ;;  %v964_v56 = vld [vmem:[%s13755_s16 + $0x81] sm:$0xff] }
  0x35   : > { %1240 = vperm.xlu1 %13017, %v1010_v27   ;;  %1235 = vperm.xlu0 %13016, %v1009_v28   ;;  %v1026_v27 = vmul.f32 %v13760_v10, %v954_v20  ;;  %v957_v28 = vld [vmem:[%s13755_s16 + $0x31] sm:$0xff] }
  0x36   : > { %v1029_v37 = vmul.f32 %v13760_v10, %v957_v28 }
  0x38   : > { %v1065_v50 = vadd.f32 %v13772_v14, %v1029_v37 }
  0x39   : > { %1250 = vperm.xlu1 %13017, %v1012_v30   ;;  %1245 = vperm.xlu0 %13016, %v1011_v31   ;;  %v1064_v30 = vadd.f32 %v13772_v14, %v1028_v22  ;;  %v1030_v31 = vmul.f32 %v13760_v10, %v958_v23 }
  0x3b   : > { %v1066_v41 = vadd.f32 %v13772_v14, %v1030_v31 }
  0x3d   : > { %1260 = vperm.xlu1 %13017, %v1014_v33   ;;  %1255 = vperm.xlu0 %13016, %v1013_v34   ;;  %v1099_v33 = vmax.f32 %v1063_v26, 0.0  ;;  %v1581_v34 = vld [vmem:[%s16072_s1 + $0xb2] sm:$0xff]  ;;  %v1102_v53 = vmax.f32 %v1066_v41, 0.0 }
  0x41   : > { %1270 = vperm.xlu1 %13017, %v1016_v36   ;;  %1265 = vperm.xlu0 %13016, %v1015_v38   ;;  %v1062_v36 = vadd.f32 %v13772_v14, %v1026_v27  ;;  %v959_v38 = vld [vmem:[%s13755_s16 + $0x49] sm:$0xff] }
  0x43   : > { %v1098_v47 = vmax.f32 %v1062_v36, 0.0 }
  0x45   : > { %1280 = vperm.xlu1 %13017, %v1018_v39   ;;  %1275 = vperm.xlu0 %13016, %v1017_v40   ;;  %v1097_v39 = vmax.f32 %v1061_v29, 0.0  ;;  %v1100_v40 = vmax.f32 %v1064_v30, 0.0  ;;  %v1585_v29 = vld [vmem:[%s16072_s1 + $0xe2] sm:$0xff]  ;;  %v1584_v30 = vld [vmem:[%s16072_s1 + $0xda] sm:$0xff] }
  0x49   : > { %1290 = vperm.xlu1 %13017, %v1020_v43   ;;  %1285 = vperm.xlu0 %13016, %v1019_v45   ;;  %v1032_v43 = vmul.f32 %v13760_v10, %v960_v32 }
  0x4d   : > { %564 = vperm.xlu1 %13017, %v402_v46   ;;  %559 = vperm.xlu0 %13016, %v401_v48   ;;  %v418_v48 = vld [vmem:[%s16072_s1 + $0xc8] sm:$0xff] }
  0x51   : > { %574 = vperm.xlu1 %13017, %v404_v49   ;;  %569 = vperm.xlu0 %13016, %v403_v51   ;;  %v417_v49 = vld [vmem:[%s16072_s1 + $0xc0] sm:$0xff]  ;;  %v1031_v51 = vmul.f32 %v13760_v10, %v959_v38 }
  0x55   : > { %1717 = vperm.xlu1 %13017, %v1567_v52   ;;  %1712 = vperm.xlu0 %13016, %v1566_v54   ;;  %v961_v52 = vld [vmem:[%s13755_s16 + $0x61] sm:$0xff]  ;;  %v1068_v54 = vadd.f32 %v13772_v14, %v1032_v43 }
  0x59   : > { %1727 = vperm.xlu1 %13017, %v1569_v55   ;;  %1722 = vperm.xlu0 %13016, %v1568_v57   ;;  %v1034_v55 = vmul.f32 %v13760_v10, %v962_v44 }
  0x5d   : > { %584 = vperm.xlu1 %13017, %v406_v58   ;;  %579 = vperm.xlu0 %13016, %v405_v59  }
  0x61   : > { %594 = vperm.xlu1 %13017, %v408_v60   ;;  %589 = vperm.xlu0 %13016, %v407_v61   ;;  %v1101_v60 = vmax.f32 %v1065_v50, 0.0  ;;  %v420_v61 = vld [vmem:[%s16072_s1 + $0xe0] sm:$0xff] }
  0x62   : > { %v969_v50 = vld [vmem:[%s13755_s16 + $0xc1] sm:$0xff] }
  0x65   : > { %1737 = vperm.xlu1 %13017, %v1571_v62   ;;  %1732 = vperm.xlu0 %13016, %v1570_v63   ;;  %v419_v62 = vld [vmem:[%s16072_s1 + $0xd8] sm:$0xff]  ;;  %v1067_v63 = vadd.f32 %v13772_v14, %v1031_v51  ;;  %v13044_v51 = vld [vmem:[%s16077_s6 + $0xb0] sm:$0xff]  }
  0x67   : > { %v1103_v13 = vmax.f32 %v1067_v63, 0.0 }
  0x69   : > { %1747 = vperm.xlu1 %13017, %v1573_v0   ;;  %1742 = vperm.xlu0 %13016, %v1572_v1   ;;  %v1033_v0 = vmul.f32 %v13760_v10, %v961_v52  ;;  %v963_v1 = vld [vmem:[%s13755_s16 + $0x79] sm:$0xff] }
  0x6a   : > { %v1035_v22 = vmul.f32 %v13760_v10, %v963_v1  ;;  %v423_v1 = vld [vmem:[%s16072_s1 + $0x108] sm:$0xff] }
  0x6c   : > { %v1071_v37 = vadd.f32 %v13772_v14, %v1035_v22 }
  0x6d   : > { %604 = vperm.xlu1 %13017, %v410_v2   ;;  %599 = vperm.xlu0 %13016, %v409_v3  }
  0x71   : > { %614 = vperm.xlu1 %13017, %v412_v4   ;;  %609 = vperm.xlu0 %13016, %v411_v5  }
  0x75   : > { %1757 = vperm.xlu1 %13017, %v1575_v6   ;;  %1752 = vperm.xlu0 %13016, %v1574_v7   ;;  %v1104_v7 = vmax.f32 %v1068_v54, 0.0  ;;  %v1107_v54 = vmax.f32 %v1071_v37, 0.0 }
  0x79   : > { %1767 = vperm.xlu1 %13017, %v1577_v8   ;;  %1762 = vperm.xlu0 %13016, %v1576_v9   ;;  %v1070_v8 = vadd.f32 %v13772_v14, %v1034_v55  ;;  %v966_v9 = vld [vmem:[%s13755_s16 + $0x99] sm:$0xff] }
  0x7a   : > { %v1038_v32 = vmul.f32 %v13760_v10, %v966_v9  ;;  %v971_v9 = vld [vmem:[%s13755_s16 + $0xd9] sm:$0xff] }
  0x7b   : > { %v1043_v22 = vmul.f32 %v13760_v10, %v971_v9 }
  0x7d   : > { %624 = vperm.xlu1 %13017, %v414_v11   ;;  %619 = vperm.xlu0 %13016, %v413_v12  }
  0x81   : > { %634 = vperm.xlu1 %13017, %v416_v17   ;;  %629 = vperm.xlu0 %13016, %v415_v18   ;;  %v1069_v17 = vadd.f32 %v13772_v14, %v1033_v0  ;;  %v1036_v18 = vmul.f32 %v13760_v10, %v964_v56  ;;  %v424_v0 = vld [vmem:[%s16072_s1 + $0x110] sm:$0xff] }
  0x83   : > { %v1105_v28 = vmax.f32 %v1069_v17, 0.0  ;;  %v1072_v31 = vadd.f32 %v13772_v14, %v1036_v18  ;;  %v1587_v18 = vld [vmem:[%s16072_s1 + $0xfa] sm:$0xff] }
  0x85   : > { %1777 = vperm.xlu1 %13017, %v1579_v24   ;;  %1772 = vperm.xlu0 %13016, %v1578_v25   ;;  %v1106_v24 = vmax.f32 %v1070_v8, 0.0  ;;  %v968_v25 = vld [vmem:[%s13755_s16 + $0xb1] sm:$0xff]  ;;  %v1108_v44 = vmax.f32 %v1072_v31, 0.0  ;;  %v1041_v8 = vmul.f32 %v13760_v10, %v969_v50 }
  0x88   : > { %v1146_v45 = vpop.permute.xlu1 %1145  ;;  %v1136_v46 = vpop.permute.xlu0 %1135 }
  0x89   : > { %1787 = vperm.xlu1 %13017, %v1581_v34   ;;  %1782 = vperm.xlu0 %13016, %v1580_v35   ;;  %v1315_v57 = vmul.f32 %v1146_v45, %v1099_v33  ;;  %v1313_v2 = vmul.f32 %v1136_v46, %v1097_v39  ;;  %v1037_v33 = vmul.f32 %v13760_v10, %v965_v19  ;;  %v967_v34 = vld [vmem:[%s13755_s16 + $0xa9] sm:$0xff]  ;;  %v422_v45 = vld [vmem:[%s16072_s1 + $0xf8] sm:$0xff] }
  0x8a   : > { %v970_v39 = vld [vmem:[%s13755_s16 + $0xc9] sm:$0xff]  ;;  %v1586_v19 = vld [vmem:[%s16072_s1 + $0xf2] sm:$0xff] }
  0x8b   : > { %v421_v46 = vld [vmem:[%s16072_s1 + $0xf0] sm:$0xff]  ;;  %v1073_v56 = vadd.f32 %v13772_v14, %v1037_v33 }
  0x8c   : > { %v1151_v58 = vpop.permute.xlu1 %1150  ;;  %v1141_v59 = vpop.permute.xlu0 %1140 }
  0x8d   : > { %v1316_v3 = vmul.f32 %v1151_v58, %v1100_v40  ;;  %v1314_v4 = vmul.f32 %v1141_v59, %v1098_v47  ;;  %644 = vperm.xlu1 %13017, %v418_v48   ;;  %639 = vperm.xlu0 %13016, %v417_v49   ;;  %v1074_v47 = vadd.f32 %v13772_v14, %v1038_v32  ;;  %v972_v59 = vld [vmem:[%s13755_s16 + $0xe1] sm:$0xff] }
  0x8e   : > { %v1040_v48 = vmul.f32 %v13760_v10, %v968_v25  ;;  %v1039_v49 = vmul.f32 %v13760_v10, %v967_v34  ;;  %v1589_v34 = vld [vmem:[%s16072_s1 + $0x112] sm:$0xff] }
  0x8f   : > { %v11165_v5 = vpack.c.bf16 %v1316_v3, %v1315_v57  ;;  %v11160_v6 = vpack.c.bf16 %v1314_v4, %v1313_v2  ;;  %v13875_v57 = vld [vmem:[%s16077_s6 + $0xf8] sm:$0xff]   ;;  %v1110_v63 = vmax.f32 %v1074_v47, 0.0  ;;  %v1042_v4 = vmul.f32 %v13760_v10, %v970_v39 }
  0x90   : > { %v1161_v11 = vpop.permute.xlu1 %1160  ;;  %v1156_v12 = vpop.permute.xlu0 %1155  ;;  %v1076_v2 = vadd.f32 %v13772_v14, %v1040_v48  ;;  %v1075_v3 = vadd.f32 %v13772_v14, %v1039_v49  ;;  %12285 = vmatprep.subr.bf16.mxu1 %v13875_v57  ;;  %v978_v48 = vld [vmem:[%s13755_s16 + $0x129] sm:$0xff] }
  0x91   : > { %11624 = vst [vmem:[#allocation2 + $0x98] sm:$0xff] %v11165_v5   ;;  %11161 = vst [vmem:[#allocation2 + $0x90] sm:$0xff] %v11160_v6   ;;  %v1318_v20 = vmul.f32 %v1161_v11, %v1102_v53  ;;  %v1317_v21 = vmul.f32 %v1156_v12, %v1101_v60  ;;  %654 = vperm.xlu1 %13017, %v420_v61   ;;  %649 = vperm.xlu0 %13016, %v419_v62   ;;  %v13046_v11 = vld [vmem:[%s16077_s6 + $0xa8] sm:$0xff]  }
  0x92   : > { %v1111_v25 = vmax.f32 %v1075_v3, 0.0 }
  0x93   : > { %v11170_v23 = vpack.c.bf16 %v1318_v20, %v1317_v21  ;;  %v1078_v20 = vadd.f32 %v13772_v14, %v1042_v4  ;;  %v1044_v21 = vmul.f32 %v13760_v10, %v972_v59  ;;  %v977_v59 = vld [vmem:[%s13755_s16 + $0x121] sm:$0xff] }
  0x94   : > { %v1171_v26 = vpop.permute.xlu1 %1170  ;;  %v1166_v27 = vpop.permute.xlu0 %1165 }
  0x95   : > { %11625 = vst [vmem:[#allocation2 + $0xa0] sm:$0xff] %v11170_v23   ;;  %v1320_v35 = vmul.f32 %v1171_v26, %v1104_v7  ;;  %v1319_v36 = vmul.f32 %v1166_v27, %v1103_v13  ;;  %1797 = vperm.xlu1 %13017, %v1583_v15   ;;  %1792 = vperm.xlu0 %13016, %v1582_v16   ;;  %v1109_v7 = vmax.f32 %v1073_v56, 0.0  ;;  %v974_v13 = vld [vmem:[%s13755_s16 + $0xf9] sm:$0xff]  ;;  %v1112_v16 = vmax.f32 %v1076_v2, 0.0  ;;  %v973_v27 = vld [vmem:[%s13755_s16 + $0xf1] sm:$0xff] }
  0x96   : > { %v1077_v26 = vadd.f32 %v13772_v14, %v1041_v8  ;;  %v1114_v33 = vmax.f32 %v1078_v20, 0.0  ;;  %v1046_v37 = vmul.f32 %v13760_v10, %v974_v13  ;;  %v982_v20 = vld [vmem:[%s13755_s16 + $0x159] sm:$0xff] }
  0x97   : > { %v11175_v38 = vpack.c.bf16 %v1320_v35, %v1319_v36  ;;  %v1588_v35 = vld [vmem:[%s16072_s1 + $0x10a] sm:$0xff]  ;;  %v1080_v36 = vadd.f32 %v13772_v14, %v1044_v21 }
  0x98   : > { %v1181_v40 = vpop.permute.xlu1 %1180  ;;  %v1176_v41 = vpop.permute.xlu0 %1175  ;;  %v13026_v43 = vld [vmem:[#allocation2 + $0x90] sm:$0xff]   ;;  %v13027_v55 = vld [vmem:[#allocation2 + $0x98] sm:$0xff]  }
  0x99   : > { %11626 = vst [vmem:[#allocation2 + $0xa8] sm:$0xff] %v11175_v38   ;;  %v1322_v52 = vmul.f32 %v1181_v40, %v1106_v24  ;;  %v1321_v53 = vmul.f32 %v1176_v41, %v1105_v28  ;;  %1807 = vperm.xlu1 %13017, %v1585_v29   ;;  %1802 = vperm.xlu0 %13016, %v1584_v30   ;;  %v13050_v28 = vld [vmem:[%s16077_s6 + $0xa0] sm:$0xff]   ;;  %v1113_v41 = vmax.f32 %v1077_v26, 0.0 }
  0x9a   : > { %12157 = vmatprep.mubr.bf16.mxu0 %v13026_v43  ;;  %v1045_v38 = vmul.f32 %v13760_v10, %v973_v27  ;;  %v1079_v43 = vadd.f32 %v13772_v14, %v1043_v22  ;;  %v1590_v26 = vld [vmem:[%s16072_s1 + $0x122] sm:$0xff] }
  0x9b   : > { %v11180_v58 = vpack.c.bf16 %v1322_v52, %v1321_v53  ;;  %12158 = vmatmul.mubr.bf16.vlgmr.msra.gmra.mxu0 %v13027_v55  ;;  %v426_v52 = vld [vmem:[%s16072_s1 + $0x128] sm:$0xff]  ;;  %v425_v53 = vld [vmem:[%s16072_s1 + $0x120] sm:$0xff] }
  0x9c   : > { %v1191_v60 = vpop.permute.xlu1 %1190  ;;  %v1186_v61 = vpop.permute.xlu0 %1185  ;;  %v13028_v62 = vld [vmem:[#allocation2 + $0xa0] sm:$0xff]   ;;  %12238 = vmatpush3.bf16.msra.mxu0 %v13649_v42  ;;  %v1081_v55 = vadd.f32 %v13772_v14, %v1045_v38 }
  0x9d   : > { %11627 = vst [vmem:[#allocation2 + $0xb0] sm:$0xff] %v11180_v58   ;;  %v1324_v5 = vmul.f32 %v1191_v60, %v1108_v44  ;;  %v1323_v6 = vmul.f32 %v1186_v61, %v1107_v54  ;;  %664 = vperm.xlu1 %13017, %v422_v45   ;;  %659 = vperm.xlu0 %13016, %v421_v46   ;;  %v976_v44 = vld [vmem:[%s13755_s16 + $0x111] sm:$0xff]  ;;  %v975_v45 = vld [vmem:[%s13755_s16 + $0x109] sm:$0xff] }
  0x9e   : > { %12161 = vmatprep.mubr.bf16.mxu0 %v13028_v62  ;;  %12239 = vmatprep.subr.bf16.mxu0 %v13044_v51  ;;  %v13052_v46 = vld [vmem:[%s16077_s6 + $0x98] sm:$0xff]   ;;  %v1082_v54 = vadd.f32 %v13772_v14, %v1046_v37  ;;  %v1048_v56 = vmul.f32 %v13760_v10, %v976_v44  ;;  %v1047_v58 = vmul.f32 %v13760_v10, %v975_v45  ;;  %v1116_v62 = vmax.f32 %v1080_v36, 0.0 }
  0x9f   : > { %v11185_v12 = vpack.c.bf16 %v1324_v5, %v1323_v6  ;;  %v428_v6 = vld [vmem:[%s16072_s1 + $0x140] sm:$0xff]  ;;  %v1054_v45 = vmul.f32 %v13760_v10, %v982_v20  ;;  %v431_v20 = vld [vmem:[%s16072_s1 + $0x168] sm:$0xff] }
  0xa0   : > { %v1201_v42 = vpop.permute.xlu1 %1200  ;;  %v1196_v15 = vpop.permute.xlu0 %1195  ;;  %v13029_v17 = vld [vmem:[#allocation2 + $0xa8] sm:$0xff]   ;;  %12240 = vmatpush3.bf16.msra.mxu0 %v13044_v51  ;;  %v1118_v5 = vmax.f32 %v1082_v54, 0.0  ;;  %v1084_v8 = vadd.f32 %v13772_v14, %v1048_v56  ;;  %v1083_v9 = vadd.f32 %v13772_v14, %v1047_v58 }
  0xa1   : > { %11628 = vst [vmem:[#allocation2 + $0xb8] sm:$0xff] %v11185_v12   ;;  %v1326_v23 = vmul.f32 %v1201_v42, %v1110_v63  ;;  %v1325_v24 = vmul.f32 %v1196_v15, %v1109_v7  ;;  %674 = vperm.xlu1 %13017, %v424_v0   ;;  %669 = vperm.xlu0 %13016, %v423_v1   ;;  %v1115_v63 = vmax.f32 %v1079_v43, 0.0  ;;  %v13056_v0 = vld [vmem:[%s16077_s6 + $0x90] sm:$0xff]   ;;  %v427_v7 = vld [vmem:[%s16072_s1 + $0x138] sm:$0xff]  ;;  %v1117_v42 = vmax.f32 %v1081_v55, 0.0  ;;  %v366_v55 = vld [vmem:[%s13755_s16 + $0x8] sm:$0xff] }
  0xa2   : > { %12241 = vmatprep.subr.bf16.mxu0 %v13046_v11  ;;  %v1049_v15 = vmul.f32 %v13760_v10, %v977_v59  ;;  %v1592_v43 = vld [vmem:[%s16072_s1 + $0x13a] sm:$0xff] }
  0xa3   : > { %v11190_v29 = vpack.c.bf16 %v1326_v23, %v1325_v24  ;;  %12162 = vmatmul.mubr.bf16.gmra.mxu0 %v13029_v17  ;;  %v979_v17 = vld [vmem:[%s13755_s16 + $0x139] sm:$0xff]  ;;  %v1120_v23 = vmax.f32 %v1084_v8, 0.0 }
  0xa4   : > { %v1211_v30 = vpop.permute.xlu1 %1210  ;;  %v1206_v31 = vpop.permute.xlu0 %1205  ;;  %v13030_v32 = vld [vmem:[#allocation2 + $0xb0] sm:$0xff]   ;;  %12242 = vmatpush3.bf16.msra.mxu0 %v13046_v11  ;;  %v1050_v11 = vmul.f32 %v13760_v10, %v978_v48 }
  0xa5   : > { %11629 = vst [vmem:[#allocation2 + $0xc0] sm:$0xff] %v11190_v29   ;;  %v1328_v39 = vmul.f32 %v1211_v30, %v1112_v16  ;;  %v1327_v40 = vmul.f32 %v1206_v31, %v1111_v25  ;;  %1817 = vperm.xlu1 %13017, %v1587_v18   ;;  %1812 = vperm.xlu0 %13016, %v1586_v19   ;;  %v980_v16 = vld [vmem:[%s13755_s16 + $0x141] sm:$0xff]  ;;  %v1591_v25 = vld [vmem:[%s16072_s1 + $0x12a] sm:$0xff] }
  0xa6   : > { %12165 = vmatprep.mubr.bf16.mxu0 %v13030_v32  ;;  %12243 = vmatprep.subr.bf16.mxu0 %v13050_v28  ;;  %v13058_v18 = vld [vmem:[%s16077_s6 + $0x88] sm:$0xff]   ;;  %v1086_v27 = vadd.f32 %v13772_v14, %v1050_v11  ;;  %v1051_v29 = vmul.f32 %v13760_v10, %v979_v17  ;;  %v1119_v32 = vmax.f32 %v1083_v9, 0.0 }
  0xa7   : > { %v11195_v47 = vpack.c.bf16 %v1328_v39, %v1327_v40 }
  0xa8   : > { %v1221_v49 = vpop.permute.xlu1 %1220  ;;  %v1216_v50 = vpop.permute.xlu0 %1215  ;;  %v13031_v51 = vld [vmem:[#allocation2 + $0xb8] sm:$0xff]   ;;  %12244 = vmatpush3.bf16.msra.mxu0 %v13050_v28  ;;  %v1052_v28 = vmul.f32 %v13760_v10, %v980_v16  ;;  %v1122_v40 = vmax.f32 %v1086_v27, 0.0 }
  0xa9   : > { %11630 = vst [vmem:[#allocation2 + $0xc8] sm:$0xff] %v11195_v47   ;;  %v1330_v60 = vmul.f32 %v1221_v49, %v1114_v33  ;;  %v1329_v61 = vmul.f32 %v1216_v50, %v1113_v41  ;;  %1827 = vperm.xlu1 %13017, %v1589_v34   ;;  %1822 = vperm.xlu0 %13016, %v1588_v35   ;;  %v981_v34 = vld [vmem:[%s13755_s16 + $0x151] sm:$0xff]  ;;  %v13059_v35 = vld [vmem:[%s16077_s6 + $0x80] sm:$0xff]  }
  0xaa   : > { %12245 = vmatprep.subr.bf16.mxu0 %v13052_v46  ;;  %v1085_v33 = vadd.f32 %v13772_v14, %v1049_v15  ;;  %v1593_v41 = vld [vmem:[%s16072_s1 + $0x142] sm:$0xff]  ;;  %v1088_v44 = vadd.f32 %v13772_v14, %v1052_v28  ;;  %v1087_v50 = vadd.f32 %v13772_v14, %v1051_v29  ;;  %v444_v15 = vmul.f32 %v13760_v10, %v366_v55 }
  0xab   : > { %v11200_v1 = vpack.c.bf16 %v1330_v60, %v1329_v61  ;;  %12166 = vmatmul.mubr.bf16.gmra.mxu0 %v13031_v51  ;;  %v984_v51 = vld [vmem:[%s13755_s16 + $0x171] sm:$0xff] }
  0xac   : > { %v1231_v2 = vpop.permute.xlu1 %1230  ;;  %v1226_v3 = vpop.permute.xlu0 %1225  ;;  %v13032_v4 = vld [vmem:[#allocation2 + $0xc0] sm:$0xff]   ;;  %12246 = vmatpush3.bf16.msra.mxu0 %v13052_v46  ;;  %v1053_v46 = vmul.f32 %v13760_v10, %v981_v34  ;;  %v1121_v49 = vmax.f32 %v1085_v33, 0.0  ;;  %v1124_v59 = vmax.f32 %v1088_v44, 0.0  ;;  %v430_v61 = vld [vmem:[%s16072_s1 + $0x158] sm:$0xff] }
  0xad   : > { %11631 = vst [vmem:[#allocation2 + $0xd0] sm:$0xff] %v11200_v1   ;;  %v1332_v12 = vmul.f32 %v1231_v2, %v1116_v62  ;;  %v1331_v13 = vmul.f32 %v1226_v3, %v1115_v63  ;;  %684 = vperm.xlu1 %13017, %v426_v52   ;;  %679 = vperm.xlu0 %13016, %v425_v53   ;;  %v983_v52 = vld [vmem:[%s13755_s16 + $0x169] sm:$0xff]  ;;  %v13984_v53 = vld [vmem:[%s16077_s6 + $0x138] sm:$0xff]   ;;  %v1123_v3 = vmax.f32 %v1087_v50, 0.0 }
  0xae   : > { %12169 = vmatprep.mubr.bf16.mxu0 %v13032_v4  ;;  %12247 = vmatprep.subr.bf16.mxu0 %v13056_v0  ;;  %v1090_v62 = vadd.f32 %v13772_v14, %v1054_v45  ;;  %v1089_v63 = vadd.f32 %v13772_v14, %v1053_v46  ;;  %v1055_v4 = vmul.f32 %v13760_v10, %v983_v52  ;;  %v1597_v46 = vld [vmem:[%s16072_s1 + $0x172] sm:$0xff] }
  0xaf   : > { %v11205_v19 = vpack.c.bf16 %v1332_v12, %v1331_v13  ;;  %v432_v13 = vld [vmem:[%s16072_s1 + $0x170] sm:$0xff] }
  0xb0   : > { %v1241_v21 = vpop.permute.xlu1 %1240  ;;  %v1236_v22 = vpop.permute.xlu0 %1235  ;;  %v13033_v24 = vld [vmem:[#allocation2 + $0xc8] sm:$0xff]   ;;  %12248 = vmatpush3.bf16.msra.mxu0 %v13056_v0  ;;  %v1056_v0 = vmul.f32 %v13760_v10, %v984_v51  ;;  %v1126_v12 = vmax.f32 %v1090_v62, 0.0 }
  0xb1   : > { %11632 = vst [vmem:[#allocation2 + $0xd8] sm:$0xff] %v11205_v19   ;;  %v1334_v30 = vmul.f32 %v1241_v21, %v1118_v5  ;;  %v1333_v31 = vmul.f32 %v1236_v22, %v1117_v42  ;;  %694 = vperm.xlu1 %13017, %v428_v6   ;;  %689 = vperm.xlu0 %13016, %v427_v7   ;;  %v365_v5 = vld [vmem:[%s13755_s16] sm:$0xff]  ;;  %v429_v6 = vld [vmem:[%s16072_s1 + $0x150] sm:$0xff]  ;;  %v1125_v19 = vmax.f32 %v1089_v63, 0.0 }
  0xb2   : > { %12249 = vmatprep.subr.bf16.mxu0 %v13058_v18  ;;  %v1092_v42 = vadd.f32 %v13772_v14, %v1056_v0  ;;  %v443_v16 = vmul.f32 %v13760_v10, %v365_v5  ;;  %v1091_v21 = vadd.f32 %v13772_v14, %v1055_v4  ;;  %v368_v22 = vld [vmem:[%s13755_s16 + $0x20] sm:$0xff] }
  0xb3   : > { %v11210_v36 = vpack.c.bf16 %v1334_v30, %v1333_v31  ;;  %12170 = vmatmul.mubr.bf16.gmra.mxu0 %v13033_v24  ;;  %v1595_v30 = vld [vmem:[%s16072_s1 + $0x15a] sm:$0xff]  ;;  %v486_v31 = vadd.f32 %v13772_v14, %v444_v15  ;;  %v446_v33 = vmul.f32 %v13760_v10, %v368_v22 }
  0xb4   : > { %v1251_v37 = vpop.permute.xlu1 %1250  ;;  %v1246_v38 = vpop.permute.xlu0 %1245  ;;  %v13034_v39 = vld [vmem:[#allocation2 + $0xd0] sm:$0xff]   ;;  %12250 = vmatpush3.bf16.msra.mxu0 %v13058_v18  ;;  %v1128_v28 = vmax.f32 %v1092_v42, 0.0  ;;  %v14039_v0 = vld [vmem:[%s16074_s3] ss:$0 sm:$0xff] }
  0xb5   : > { %11633 = vst [vmem:[#allocation2 + $0xe0] sm:$0xff] %v11210_v36   ;;  %v1336_v47 = vmul.f32 %v1251_v37, %v1120_v23  ;;  %v1335_v48 = vmul.f32 %v1246_v38, %v1119_v32  ;;  %1837 = vperm.xlu1 %13017, %v1591_v25   ;;  %1832 = vperm.xlu0 %13016, %v1590_v26   ;;  %v367_v23 = vld [vmem:[%s13755_s16 + $0x18] sm:$0xff]  ;;  %v1531_v25 = vld [vmem:[%s13755_s16 + $0xa] sm:$0xff]  ;;  %v1127_v36 = vmax.f32 %v1091_v21, 0.0  ;;  %v1530_v38 = vld [vmem:[%s13755_s16 + $0x2] sm:$0xff]  ;;  %v522_v45 = vmax.f32 %v486_v31, 0.0 }
  0xb6   : > { %12173 = vmatprep.mubr.bf16.mxu0 %v13034_v39  ;;  %12251 = vmatprep.subr.bf16.mxu0 %v13059_v35  ;;  %v485_v32 = vadd.f32 %v13772_v14, %v443_v16  ;;  %v445_v37 = vmul.f32 %v13760_v10, %v367_v23  ;;  %v1594_v39 = vld [vmem:[%s16072_s1 + $0x152] sm:$0xff]  ;;  %v1022_v23 = vld [vmem:[%s16072_s1 + $0x189] sm:$0xff] }
  0xb7   : > { %v11215_v54 = vpack.c.bf16 %v1336_v47, %v1335_v48  ;;  %v488_v47 = vadd.f32 %v13772_v14, %v446_v33  ;;  %v1603_v48 = vmul.f32 %v13760_v10, %v1531_v25  ;;  %v372_v25 = vld [vmem:[%s13755_s16 + $0x50] sm:$0xff] }
  0xb8   : > { %v1261_v56 = vpop.permute.xlu1 %1260  ;;  %v1256_v58 = vpop.permute.xlu0 %1255  ;;  %v13036_v60 = vld [vmem:[#allocation2 + $0xd8] sm:$0xff]   ;;  %12252 = vmatpush3.bf16.msra.mxu0 %v13059_v35  ;;  %v521_v52 = vmax.f32 %v485_v32, 0.0  ;;  %v487_v55 = vadd.f32 %v13772_v14, %v445_v37  ;;  %v14046_v14 = vld [vmem:[%s16073_s2] ss:$0 sm:$0xff] }
  0xb9   : > { %11634 = vst [vmem:[#allocation2 + $0xe8] sm:$0xff] %v11215_v54   ;;  %v1338_v1 = vmul.f32 %v1261_v56, %v1122_v40  ;;  %v1337_v2 = vmul.f32 %v1256_v58, %v1121_v49  ;;  %1847 = vperm.xlu1 %13017, %v1593_v41   ;;  %1842 = vperm.xlu0 %13016, %v1592_v43   ;;  %v1596_v54 = vld [vmem:[%s16072_s1 + $0x16a] sm:$0xff]  ;;  %v1533_v56 = vld [vmem:[%s13755_s16 + $0x22] sm:$0xff]  ;;  %v1532_v58 = vld [vmem:[%s13755_s16 + $0x1a] sm:$0xff]  ;;  %v524_v62 = vmax.f32 %v488_v47, 0.0 }
  0xba   : > { %12333 = vmatprep.subr.bf16.mxu0 %v13984_v53  ;;  %v1602_v49 = vmul.f32 %v13760_v10, %v1530_v38  ;;  %v450_v37 = vmul.f32 %v14046_v14, %v372_v25  ;;  %v1600_v25 = vld [vmem:[%s16072_s1 + $0x19a] sm:$0xff] }
  0xbb   : > { %v11220_v7 = vpack.c.bf16 %v1338_v1, %v1337_v2  ;;  %12174 = vmatmul.mubr.bf16.gmra.mxu0 %v13036_v60  ;;  %v370_v60 = vld [vmem:[%s13755_s16 + $0x38] sm:$0xff]  ;;  %v1639_v1 = vadd.f32 %v14039_v0, %v1603_v48 }
  0xbc   : > { %v1271_v8 = vpop.permute.xlu1 %1270  ;;  %v1266_v9 = vpop.permute.xlu0 %1265  ;;  %v13037_v11 = vld [vmem:[#allocation2 + $0xe0] sm:$0xff]   ;;  %v1638_v2 = vadd.f32 %v14039_v0, %v1602_v49 }
  0xbd   : > { %11635 = vst [vmem:[#allocation2 + $0xf0] sm:$0xff] %v11220_v7   ;;  %v1340_v17 = vmul.f32 %v1271_v8, %v1124_v59  ;;  %v1339_v18 = vmul.f32 %v1266_v9, %v1123_v3  ;;  %704 = vperm.xlu1 %13017, %v430_v61   ;;  %699 = vperm.xlu0 %13016, %v429_v6   ;;  %v523_v6 = vmax.f32 %v487_v55, 0.0  ;;  %v369_v8 = vld [vmem:[%s13755_s16 + $0x30] sm:$0xff]  ;;  %v434_v9 = vld [vmem:[%s16072_s1 + $0x188] sm:$0xff]  ;;  %v1675_v16 = vmax.f32 %v1639_v1, 0.0 }
  0xbe   : > { %12177 = vmatprep.mubr.bf16.mxu0 %v13037_v11  ;;  %v1605_v3 = vmul.f32 %v14046_v14, %v1533_v56  ;;  %v1604_v7 = vmul.f32 %v14046_v14, %v1532_v58  ;;  %v433_v11 = vld [vmem:[%s16072_s1 + $0x180] sm:$0xff]  ;;  %v1674_v22 = vmax.f32 %v1638_v2, 0.0 }
  0xbf   : > { %v11225_v24 = vpack.c.bf16 %v1340_v17, %v1339_v18  ;;  %v448_v18 = vmul.f32 %v14046_v14, %v370_v60 }
  0xc0   : > { %v1281_v26 = vpop.permute.xlu1 %1280  ;;  %v1276_v27 = vpop.permute.xlu0 %1275  ;;  %v13041_v29 = vld [vmem:[#allocation2 + $0xe8] sm:$0xff]   ;;  %v1641_v17 = vadd.f32 %v14039_v0, %v1605_v3 }
  0xc1   : > { %11636 = vst [vmem:[#allocation2 + $0xf8] sm:$0xff] %v11225_v24   ;;  %v1342_v34 = vmul.f32 %v1281_v26, %v1126_v12  ;;  %v1341_v35 = vmul.f32 %v1276_v27, %v1125_v19  ;;  %714 = vperm.xlu1 %13017, %v432_v13   ;;  %709 = vperm.xlu0 %13016, %v431_v20   ;;  %v1021_v26 = vld [vmem:[%s16072_s1 + $0x181] sm:$0xff] }
  0xc2   : > { %v447_v19 = vmul.f32 %v14046_v14, %v369_v8  ;;  %v1640_v24 = vadd.f32 %v14039_v0, %v1604_v7  ;;  %v371_v27 = vld [vmem:[%s13755_s16 + $0x48] sm:$0xff]  ;;  %v1677_v32 = vmax.f32 %v1641_v17, 0.0 }
  0xc3   : > { %v11230_v40 = vpack.c.bf16 %v1342_v34, %v1341_v35  ;;  %12178 = vmatmul.mubr.bf16.gmra.mxu0 %v13041_v29  ;;  %v1535_v29 = vld [vmem:[%s13755_s16 + $0x3a] sm:$0xff]  ;;  %v1599_v34 = vld [vmem:[%s16072_s1 + $0x18a] sm:$0xff]  ;;  %v490_v35 = vadd.f32 %v14039_v0, %v448_v18 }
  0xc4   : > { %v1291_v41 = vpop.permute.xlu1 %1290  ;;  %v1286_v43 = vpop.permute.xlu0 %1285  ;;  %v13042_v44 = vld [vmem:[#allocation2 + $0xf0] sm:$0xff]   ;;  %v13083_v18 = vld [vmem:[%s16077_s6 + $0xe8] sm:$0xff]  }
  0xc5   : > { %11637 = vst [vmem:[#allocation2 + $0x100] sm:$0xff] %v11230_v40   ;;  %v1344_v50 = vmul.f32 %v1291_v41, %v1128_v28  ;;  %v1343_v51 = vmul.f32 %v1286_v43, %v1127_v36  ;;  %1857 = vperm.xlu1 %13017, %v1595_v30   ;;  %1852 = vperm.xlu0 %13016, %v1594_v39   ;;  %v1676_v40 = vmax.f32 %v1640_v24, 0.0  ;;  %v1534_v43 = vld [vmem:[%s13755_s16 + $0x32] sm:$0xff]  ;;  %v526_v49 = vmax.f32 %v490_v35, 0.0  ;;  %v1601_v24 = vld [vmem:[%s16072_s1 + $0x1a2] sm:$0xff] }
  0xc6   : > { %12181 = vmatprep.mubr.bf16.mxu0 %v13042_v44  ;;  %v489_v36 = vadd.f32 %v14039_v0, %v447_v19  ;;  %v449_v41 = vmul.f32 %v14046_v14, %v371_v27  ;;  %v1598_v44 = vld [vmem:[%s16072_s1 + $0x182] sm:$0xff]  ;;  %v1606_v55 = vmul.f32 %v14046_v14, %v1534_v43 }
  0xc7   : > { %v11235_v59 = vpack.c.bf16 %v1344_v50, %v1343_v51  ;;  %v436_v50 = vld [vmem:[%s16072_s1 + $0x1a0] sm:$0xff]  ;;  %v435_v51 = vld [vmem:[%s16072_s1 + $0x198] sm:$0xff] }
  0xc8   : > { %v565_v61 = vpop.permute.xlu1 %564  ;;  %v560_v10 = vpop.permute.xlu0 %559  ;;  %v13047_v63 = vld [vmem:[#allocation2 + $0xf8] sm:$0xff]   ;;  %v491_v60 = vadd.f32 %v14039_v0, %v449_v41  ;;  %v1642_v8 = vadd.f32 %v14039_v0, %v1606_v55 }
  0xc9   : > { %11638 = vst [vmem:[#allocation2 + $0x108] sm:$0xff] %v11235_v59   ;;  %v738_v4 = vmul.f32 %v565_v61, %v522_v45  ;;  %v737_v5 = vmul.f32 %v560_v10, %v521_v52  ;;  %1867 = vperm.xlu1 %13017, %v1597_v46   ;;  %1862 = vperm.xlu0 %13016, %v1596_v54   ;;  %v525_v59 = vmax.f32 %v489_v36, 0.0  ;;  %v1537_v61 = vld [vmem:[%s13755_s16 + $0x52] sm:$0xff]  ;;  %v1536_v10 = vld [vmem:[%s13755_s16 + $0x4a] sm:$0xff]  ;;  %v13087_v36 = vld [vmem:[%s16077_s6 + $0xe0] sm:$0xff]  }
  0xca   : > { %v492_v52 = vadd.f32 %v14039_v0, %v450_v37  ;;  %v1607_v54 = vmul.f32 %v14046_v14, %v1535_v29  ;;  %v1678_v29 = vmax.f32 %v1642_v8, 0.0 }
  0xcb   : > { %v11070_v12 = vpack.c.bf16 %v738_v4, %v737_v5  ;;  %12182 = vmatmul.mubr.bf16.gmra.mxu0 %v13047_v63  ;;  %v13079_v63 = vld [vmem:[%s16077_s6 + $0xf0] sm:$0xff]  }
  0xcc   : > { %v575_v13 = vpop.permute.xlu1 %574  ;;  %v570_v42 = vpop.permute.xlu0 %569  ;;  %v13048_v15 = vld [vmem:[#allocation2 + $0x100] sm:$0xff]   ;;  %v528_v5 = vmax.f32 %v492_v52, 0.0  ;;  %v1643_v7 = vadd.f32 %v14039_v0, %v1607_v54  ;;  %v13084_v52 = vld [vmem:[%s16077_s6 + $0x128] sm:$0xff]   ;;  %v13091_v54 = vld [vmem:[%s16077_s6 + $0xd8] sm:$0xff]  }
  0xcd   : > { %11071 = vst [vmem:[#allocation2] sm:$0xff] %v11070_v12   ;;  %v740_v20 = vmul.f32 %v575_v13, %v524_v62  ;;  %v739_v21 = vmul.f32 %v570_v42, %v523_v6  ;;  %724 = vperm.xlu1 %13017, %v434_v9   ;;  %719 = vperm.xlu0 %13016, %v433_v11   ;;  %v374_v62 = vld [vmem:[%s13755_s16 + $0x68] sm:$0xff]  ;;  %v527_v13 = vmax.f32 %v491_v60, 0.0 }
  0xce   : > { %12185 = vmatprep.mubr.bf16.mxu0 %v13048_v15  ;;  %v1024_v6 = vld [vmem:[%s16072_s1 + $0x1a1] sm:$0xff]  ;;  %v1609_v9 = vmul.f32 %v14046_v14, %v1537_v61  ;;  %v1608_v42 = vmul.f32 %v14046_v14, %v1536_v10  ;;  %v452_v17 = vmul.f32 %v14046_v14, %v374_v62 }
  0xcf   : > { %v11075_v28 = vpack.c.bf16 %v740_v20, %v739_v21  ;;  %v373_v15 = vld [vmem:[%s13755_s16 + $0x60] sm:$0xff] }
  0xd0   : > { %v1718_v30 = vpop.permute.xlu1 %1717  ;;  %v1713_v31 = vpop.permute.xlu0 %1712  ;;  %v13053_v33 = vld [vmem:[#allocation2 + $0x108] sm:$0xff]   ;;  %v451_v27 = vmul.f32 %v14046_v14, %v373_v15 }
  0xd1   : > { %11607 = vst [vmem:[#allocation2 + $0x8] sm:$0xff] %v11075_v28   ;;  %v1891_v38 = vmul.f32 %v1718_v30, %v1675_v16  ;;  %v1890_v39 = vmul.f32 %v1713_v31, %v1674_v22  ;;  %1300 = vperm.xlu1 %13017, %v1022_v23   ;;  %1295 = vperm.xlu0 %13016, %v1021_v26   ;;  %v1023_v16 = vld [vmem:[%s16072_s1 + $0x199] sm:$0xff]  ;;  %v1679_v23 = vmax.f32 %v1643_v7, 0.0  ;;  %v13095_v7 = vld [vmem:[%s16077_s6 + $0xd0] sm:$0xff]  }
  0xd2   : > { %v1645_v26 = vadd.f32 %v14039_v0, %v1609_v9  ;;  %v1644_v30 = vadd.f32 %v14039_v0, %v1608_v42  ;;  %v376_v31 = vld [vmem:[%s13755_s16 + $0x80] sm:$0xff]  ;;  %v493_v41 = vadd.f32 %v14039_v0, %v451_v27 }
  0xd3   : > { %v11250_v45 = vpack.c.bf16 %v1891_v38, %v1890_v39  ;;  %12186 = vmatmul.mubr.bf16.gmra.mxu0 %v13053_v33  ;;  %v494_v33 = vadd.f32 %v14039_v0, %v452_v17  ;;  %v454_v43 = vmul.f32 %v14046_v14, %v376_v31 }
  0xd4   : > { %v1728_v46 = vpop.permute.xlu1 %1727  ;;  %v1723_v47 = vpop.permute.xlu0 %1722  ;;  %v13055_v48 = vld [vmem:[#allocation2] sm:$0xff]   ;;  %v529_v60 = vmax.f32 %v493_v41, 0.0 }
  0xd5   : > { %11251 = vst [vmem:[#allocation2 + $0x120] sm:$0xff] %v11250_v45   ;;  %v1893_v56 = vmul.f32 %v1728_v46, %v1677_v32  ;;  %v1892_v58 = vmul.f32 %v1723_v47, %v1676_v40  ;;  %1877 = vperm.xlu1 %13017, %v1599_v34   ;;  %1872 = vperm.xlu0 %13016, %v1598_v44   ;;  %v375_v32 = vld [vmem:[%s13755_s16 + $0x78] sm:$0xff]  ;;  %v13080_v34 = vld [vmem:[%s16077_s6 + $0x130] sm:$0xff]   ;;  %v1681_v40 = vmax.f32 %v1645_v26, 0.0  ;;  %v1680_v46 = vmax.f32 %v1644_v30, 0.0 }
  0xd6   : > { %12205 = vmatprep.mubr.bf16.mxu1 %v13055_v48  ;;  %v453_v47 = vmul.f32 %v14046_v14, %v375_v32  ;;  %v1539_v48 = vld [vmem:[%s13755_s16 + $0x6a] sm:$0xff]  ;;  %v496_v61 = vadd.f32 %v14039_v0, %v454_v43 }
  0xd7   : > { %v11255_v1 = vpack.c.bf16 %v1893_v56, %v1892_v58  ;;  %v1611_v10 = vmul.f32 %v14046_v14, %v1539_v48 }
  0xd8   : > { %v585_v2 = vpop.permute.xlu1 %584  ;;  %v580_v3 = vpop.permute.xlu0 %579  ;;  %v13057_v4 = vld [vmem:[#allocation2 + $0x8] sm:$0xff]  }
  0xd9   : > { %11641 = vst [vmem:[#allocation2 + $0x128] sm:$0xff] %v11255_v1   ;;  %v742_v11 = vmul.f32 %v585_v2, %v526_v49  ;;  %v741_v12 = vmul.f32 %v580_v3, %v525_v59  ;;  %734 = vperm.xlu1 %13017, %v436_v50   ;;  %729 = vperm.xlu0 %13016, %v435_v51   ;;  %v1538_v49 = vld [vmem:[%s13755_s16 + $0x62] sm:$0xff]  ;;  %v530_v50 = vmax.f32 %v494_v33, 0.0 }
  0xda   : > { %12206 = vmatmul.mubr.bf16.vlgmr.msra.gmra.mxu1 %v13057_v4  ;;  %v1541_v51 = vld [vmem:[%s13755_s16 + $0x82] sm:$0xff]  ;;  %v495_v1 = vadd.f32 %v14039_v0, %v453_v47  ;;  %v1610_v2 = vmul.f32 %v14046_v14, %v1538_v49 }
  0xdb   : > { %v11080_v19 = vpack.c.bf16 %v742_v11, %v741_v12  ;;  %12286 = vmatpush3.bf16.msra.mxu1 %v13875_v57  ;;  %v13088_v3 = vld [vmem:[%s16077_s6 + $0x120] sm:$0xff]   ;;  %v532_v12 = vmax.f32 %v496_v61, 0.0 }
  0xdc   : > { %v595_v20 = vpop.permute.xlu1 %594  ;;  %v590_v21 = vpop.permute.xlu0 %589  ;;  %v13060_v22 = vld [vmem:[#allocation2 + $0x120] sm:$0xff]   ;;  %12287 = vmatprep.subr.bf16.mxu1 %v13079_v63  ;;  %v531_v17 = vmax.f32 %v495_v1, 0.0 }
  0xdd   : > { %11608 = vst [vmem:[#allocation2 + $0x10] sm:$0xff] %v11080_v19   ;;  %v744_v57 = vmul.f32 %v595_v20, %v528_v5  ;;  %v743_v28 = vmul.f32 %v590_v21, %v527_v13  ;;  %1310 = vperm.xlu1 %13017, %v1024_v6   ;;  %1305 = vperm.xlu0 %13016, %v1023_v16   ;;  %v378_v6 = vld [vmem:[%s13755_s16 + $0x98] sm:$0xff]  ;;  %v377_v19 = vld [vmem:[%s13755_s16 + $0x90] sm:$0xff] }
  0xde   : > { %12253 = vmatprep.mubr.bf16.mxu0 %v13060_v22  ;;  %v1613_v5 = vmul.f32 %v14046_v14, %v1541_v51  ;;  %v1647_v13 = vadd.f32 %v14039_v0, %v1611_v10  ;;  %v13092_v20 = vld [vmem:[%s16077_s6 + $0x118] sm:$0xff]   ;;  %v455_v33 = vmul.f32 %v14046_v14, %v377_v19 }
  0xdf   : > { %v11085_v35 = vpack.c.bf16 %v744_v57, %v743_v28  ;;  %12288 = vmatpush3.bf16.msra.mxu1 %v13079_v63  ;;  %v1542_v51 = vld [vmem:[%s13755_s16 + $0x92] sm:$0xff] }
  0xe0   : > { %v1738_v37 = vpop.permute.xlu1 %1737  ;;  %v1733_v38 = vpop.permute.xlu0 %1732  ;;  %v13061_v39 = vld [vmem:[#allocation2 + $0x128] sm:$0xff]   ;;  %12289 = vmatprep.subr.bf16.mxu1 %v13083_v18  ;;  %v1649_v22 = vadd.f32 %v14039_v0, %v1613_v5  ;;  %v1683_v57 = vmax.f32 %v1647_v13, 0.0  ;;  %v497_v49 = vadd.f32 %v14039_v0, %v455_v33 }
  0xe1   : > { %11609 = vst [vmem:[#allocation2 + $0x18] sm:$0xff] %v11085_v35   ;;  %v1895_v44 = vmul.f32 %v1738_v37, %v1679_v23  ;;  %v1894_v45 = vmul.f32 %v1733_v38, %v1678_v29  ;;  %1887 = vperm.xlu1 %13017, %v1601_v24   ;;  %1882 = vperm.xlu0 %13016, %v1600_v25   ;;  %v380_v23 = vld [vmem:[%s13755_s16 + $0xb0] sm:$0xff]  ;;  %v13099_v24 = vld [vmem:[%s16077_s6 + $0xc8] sm:$0xff]   ;;  %v1543_v35 = vld [vmem:[%s13755_s16 + $0x9a] sm:$0xff] }
  0xe2   : > { %12254 = vmatmul.mubr.bf16.vlgmr.msra.gmra.mxu0 %v13061_v39  ;;  %v456_v29 = vmul.f32 %v14046_v14, %v378_v6  ;;  %v1685_v38 = vmax.f32 %v1649_v22, 0.0  ;;  %v13104_v39 = vld [vmem:[%s16077_s6 + $0xc0] sm:$0xff]  }
  0xe3   : > { %v11260_v55 = vpack.c.bf16 %v1895_v44, %v1894_v45  ;;  %12334 = vmatpush3.bf16.msra.mxu0 %v13984_v53  ;;  %12290 = vmatpush3.bf16.msra.mxu1 %v13083_v18  ;;  %v1540_v53 = vld [vmem:[%s13755_s16 + $0x7a] sm:$0xff]  ;;  %v1646_v18 = vadd.f32 %v14039_v0, %v1610_v2  ;;  %v533_v2 = vmax.f32 %v497_v49, 0.0  ;;  %v1546_v49 = vld [vmem:[%s13755_s16 + $0xc2] sm:$0xff] }
  0xe4   : > { %v1748_v56 = vpop.permute.xlu1 %1747  ;;  %v1743_v58 = vpop.permute.xlu0 %1742  ;;  %v13062_v59 = vld [vmem:[#allocation2 + $0x10] sm:$0xff]   ;;  %12335 = vmatprep.subr.bf16.mxu0 %v13080_v34  ;;  %12291 = vmatprep.subr.bf16.mxu1 %v13087_v36  ;;  %v1612_v42 = vmul.f32 %v14046_v14, %v1540_v53  ;;  %v498_v45 = vadd.f32 %v14039_v0, %v456_v29 }
  0xe5   : > { %11642 = vst [vmem:[#allocation2 + $0x130] sm:$0xff] %v11260_v55   ;;  %v1897_v62 = vmul.f32 %v1748_v56, %v1681_v40  ;;  %v1896_v63 = vmul.f32 %v1743_v58, %v1680_v46  ;;  %12209 = vmatprep.mubr.bf16.mxu1 %v13062_v59  ;;  %v1682_v32 = vmax.f32 %v1646_v18, 0.0  ;;  %v458_v46 = vmul.f32 %v14046_v14, %v380_v23  ;;  %v13110_v56 = vld [vmem:[%s16077_s6 + $0x178] sm:$0xff]  }
  0xe6   : > { %v1648_v28 = vadd.f32 %v14039_v0, %v1612_v42  ;;  %v1615_v55 = vmul.f32 %v14046_v14, %v1543_v35  ;;  %v534_v61 = vmax.f32 %v498_v45, 0.0 }
  0xe7   : > { %v11265_v4 = vpack.c.bf16 %v1897_v62, %v1896_v63  ;;  %12336 = vmatpush3.bf16.msra.mxu0 %v13080_v34  ;;  %12292 = vmatpush3.bf16.msra.mxu1 %v13087_v36  ;;  %v379_v34 = vld [vmem:[%s13755_s16 + $0xa8] sm:$0xff]  ;;  %v13096_v36 = vld [vmem:[%s16077_s6 + $0x110] sm:$0xff]   ;;  %v500_v10 = vadd.f32 %v14039_v0, %v458_v46  ;;  %v1614_v62 = vmul.f32 %v14046_v14, %v1542_v51 }
  0xe8   : > { %v605_v8 = vpop.permute.xlu1 %604  ;;  %v600_v9 = vpop.permute.xlu0 %599  ;;  %v13063_v11 = vld [vmem:[#allocation2 + $0x18] sm:$0xff]   ;;  %12337 = vmatprep.subr.bf16.mxu0 %v13084_v52  ;;  %12293 = vmatprep.subr.bf16.mxu1 %v13091_v54  ;;  %v1684_v44 = vmax.f32 %v1648_v28, 0.0  ;;  %v1651_v6 = vadd.f32 %v14039_v0, %v1615_v55 }
  0xe9   : > { %11643 = vst [vmem:[#allocation2 + $0x138] sm:$0xff] %v11265_v4   ;;  %v746_v15 = vmul.f32 %v605_v8, %v530_v50  ;;  %v745_v16 = vmul.f32 %v600_v9, %v529_v60  ;;  %12210 = vmatmul.mubr.bf16.gmra.mxu1 %v13063_v11  ;;  %v457_v50 = vmul.f32 %v14046_v14, %v379_v34  ;;  %v1544_v4 = vld [vmem:[%s13755_s16 + $0xaa] sm:$0xff]  ;;  %v13105_v8 = vld [vmem:[%s16077_s6 + $0x100] sm:$0xff]   ;;  %v536_v13 = vmax.f32 %v500_v10, 0.0  ;;  %v383_v34 = vld [vmem:[%s13755_s16 + $0xd8] sm:$0xff] }
  0xea   : > { %v1650_v42 = vadd.f32 %v14039_v0, %v1614_v62  ;;  %v1616_v19 = vmul.f32 %v14046_v14, %v1544_v4  ;;  %v1687_v23 = vmax.f32 %v1651_v6, 0.0  ;;  %v1618_v62 = vmul.f32 %v14046_v14, %v1546_v49 }
  0xeb   : > { %v11090_v21 = vpack.c.bf16 %v746_v15, %v745_v16  ;;  %12338 = vmatpush3.bf16.msra.mxu0 %v13084_v52  ;;  %12294 = vmatpush3.bf16.msra.mxu1 %v13091_v54  ;;  %v13100_v52 = vld [vmem:[%s16077_s6 + $0x108] sm:$0xff]   ;;  %v499_v53 = vadd.f32 %v14039_v0, %v457_v50 }
  0xec   : > { %v615_v25 = vpop.permute.xlu1 %614  ;;  %v610_v26 = vpop.permute.xlu0 %609  ;;  %v13064_v27 = vld [vmem:[#allocation2 + $0x130] sm:$0xff]   ;;  %12339 = vmatprep.subr.bf16.mxu0 %v13088_v3  ;;  %12295 = vmatprep.subr.bf16.mxu1 %v13095_v7 }
  0xed   : > { %11610 = vst [vmem:[#allocation2 + $0x20] sm:$0xff] %v11090_v21   ;;  %v748_v30 = vmul.f32 %v615_v25, %v532_v12  ;;  %v747_v31 = vmul.f32 %v610_v26, %v531_v17  ;;  %12257 = vmatprep.mubr.bf16.mxu0 %v13064_v27  ;;  %v535_v18 = vmax.f32 %v499_v53, 0.0  ;;  %v384_v21 = vld [vmem:[%s13755_s16 + $0xe0] sm:$0xff] }
  0xef   : > { %v11095_v37 = vpack.c.bf16 %v748_v30, %v747_v31  ;;  %12340 = vmatpush3.bf16.msra.mxu0 %v13088_v3  ;;  %12296 = vmatpush3.bf16.msra.mxu1 %v13095_v7  ;;  %v1545_v3 = vld [vmem:[%s13755_s16 + $0xb2] sm:$0xff]  ;;  %v382_v7 = vld [vmem:[%s13755_s16 + $0xc8] sm:$0xff] }
  0xf0   : > { %v1758_v40 = vpop.permute.xlu1 %1757  ;;  %v1753_v41 = vpop.permute.xlu0 %1752  ;;  %v13065_v43 = vld [vmem:[#allocation2 + $0x138] sm:$0xff]   ;;  %12341 = vmatprep.subr.bf16.mxu0 %v13092_v20  ;;  %12297 = vmatprep.subr.bf16.mxu1 %v13099_v24  ;;  %v1617_v15 = vmul.f32 %v14046_v14, %v1545_v3  ;;  %v460_v29 = vmul.f32 %v14046_v14, %v382_v7 }
  0xf1   : > { %11611 = vst [vmem:[#allocation2 + $0x28] sm:$0xff] %v11095_v37   ;;  %v1899_v47 = vmul.f32 %v1758_v40, %v1683_v57  ;;  %v1898_v48 = vmul.f32 %v1753_v41, %v1682_v32  ;;  %12258 = vmatmul.mubr.bf16.gmra.mxu0 %v13065_v43  ;;  %v1686_v57 = vmax.f32 %v1650_v42, 0.0  ;;  %v1652_v32 = vadd.f32 %v14039_v0, %v1616_v19  ;;  %v386_v3 = vld [vmem:[%s13755_s16 + $0xf8] sm:$0xff] }
  0xf2   : > { %v1653_v28 = vadd.f32 %v14039_v0, %v1617_v15  ;;  %v502_v41 = vadd.f32 %v14039_v0, %v460_v29  ;;  %v461_v43 = vmul.f32 %v14046_v14, %v383_v34  ;;  %v385_v15 = vld [vmem:[%s13755_s16 + $0xf0] sm:$0xff] }
  0xf3   : > { %v11270_v54 = vpack.c.bf16 %v1899_v47, %v1898_v48  ;;  %12342 = vmatpush3.bf16.msra.mxu0 %v13092_v20  ;;  %12298 = vmatpush3.bf16.msra.mxu1 %v13099_v24  ;;  %v381_v20 = vld [vmem:[%s13755_s16 + $0xc0] sm:$0xff]  ;;  %v13111_v24 = vld [vmem:[%s16077_s6 + $0x1b8] sm:$0xff]   ;;  %v1688_v46 = vmax.f32 %v1652_v32, 0.0  ;;  %v1547_v48 = vld [vmem:[%s13755_s16 + $0xca] sm:$0xff] }
  0xf4   : > { %v1768_v58 = vpop.permute.xlu1 %1767  ;;  %v1763_v59 = vpop.permute.xlu0 %1762  ;;  %v13066_v60 = vld [vmem:[#allocation2 + $0x20] sm:$0xff]   ;;  %12343 = vmatprep.subr.bf16.mxu0 %v13096_v36  ;;  %12299 = vmatprep.subr.bf16.mxu1 %v13104_v39  ;;  %v459_v33 = vmul.f32 %v14046_v14, %v381_v20  ;;  %v1689_v40 = vmax.f32 %v1653_v28, 0.0  ;;  %v387_v28 = vld [vmem:[%s13755_s16 + $0x108] sm:$0xff] }
  0xf5   : > { %11644 = vst [vmem:[#allocation2 + $0x140] sm:$0xff] %v11270_v54   ;;  %v1901_v63 = vmul.f32 %v1768_v58, %v1685_v38  ;;  %v1900_v1 = vmul.f32 %v1763_v59, %v1684_v44  ;;  %12213 = vmatprep.mubr.bf16.mxu1 %v13066_v60  ;;  %v503_v58 = vadd.f32 %v14039_v0, %v461_v43  ;;  %v1550_v43 = vld [vmem:[%s13755_s16 + $0xf2] sm:$0xff] }
  0xf6   : > { %v501_v47 = vadd.f32 %v14039_v0, %v459_v33  ;;  %v1619_v59 = vmul.f32 %v14046_v14, %v1547_v48 }
  0xf7   : > { %v11275_v5 = vpack.c.bf16 %v1901_v63, %v1900_v1  ;;  %12344 = vmatpush3.bf16.msra.mxu0 %v13096_v36  ;;  %12300 = vmatpush3.bf16.msra.mxu1 %v13104_v39  ;;  %v462_v36 = vmul.f32 %v14046_v14, %v384_v21  ;;  %v1549_v63 = vld [vmem:[%s13755_s16 + $0xe2] sm:$0xff]  ;;  %v1548_v1 = vld [vmem:[%s13755_s16 + $0xda] sm:$0xff]  ;;  %v539_v7 = vmax.f32 %v503_v58, 0.0 }
  0xf8   : > { %v625_v9 = vpop.permute.xlu1 %624  ;;  %v620_v11 = vpop.permute.xlu0 %619  ;;  %v13067_v12 = vld [vmem:[#allocation2 + $0x28] sm:$0xff]   ;;  %12345 = vmatprep.subr.bf16.mxu0 %v13100_v52  ;;  %12381 = vmatprep.subr.bf16.mxu1 %v13110_v56  ;;  %v538_v56 = vmax.f32 %v502_v41, 0.0  ;;  %v537_v10 = vmax.f32 %v501_v47, 0.0  ;;  %v1620_v42 = vmul.f32 %v14046_v14, %v1548_v1  ;;  %v1551_v41 = vld [vmem:[%s13755_s16 + $0xfa] sm:$0xff] }
  0xf9   : > { %11645 = vst [vmem:[#allocation2 + $0x148] sm:$0xff] %v11275_v5   ;;  %v750_v16 = vmul.f32 %v625_v9, %v534_v61  ;;  %v749_v17 = vmul.f32 %v620_v11, %v533_v2  ;;  %12214 = vmatmul.mubr.bf16.gmra.mxu1 %v13067_v12  ;;  %v504_v51 = vadd.f32 %v14039_v0, %v462_v36 }
  0xfa   : > { %v1621_v9 = vmul.f32 %v14046_v14, %v1549_v63 }
  0xfb   : > { %v11100_v22 = vpack.c.bf16 %v750_v16, %v749_v17  ;;  %12346 = vmatpush3.bf16.msra.mxu0 %v13100_v52  ;;  %v540_v53 = vmax.f32 %v504_v51, 0.0  ;;  %v464_v17 = vmul.f32 %v14046_v14, %v386_v3 }
  0xfc   : > { %v635_v25 = vpop.permute.xlu1 %634  ;;  %v630_v26 = vpop.permute.xlu0 %629  ;;  %v13068_v27 = vld [vmem:[#allocation2 + $0x140] sm:$0xff]   ;;  %12347 = vmatprep.subr.bf16.mxu0 %v13105_v8 }
  0xfd   : > { %11612 = vst [vmem:[#allocation2 + $0x30] sm:$0xff] %v11100_v22   ;;  %v752_v30 = vmul.f32 %v635_v25, %v536_v13  ;;  %v751_v31 = vmul.f32 %v630_v26, %v535_v18  ;;  %12261 = vmatprep.mubr.bf16.mxu0 %v13068_v27  ;;  %v1654_v13 = vadd.f32 %v14039_v0, %v1618_v62 }
  0xfe   : > { %v1657_v22 = vadd.f32 %v14039_v0, %v1621_v9  ;;  %v1656_v27 = vadd.f32 %v14039_v0, %v1620_v42 }
  0xff   : > { %v11105_v35 = vpack.c.bf16 %v752_v30, %v751_v31  ;;  %12348 = vmatpush3.bf16.msra.mxu0 %v13105_v8  ;;  %v1655_v8 = vadd.f32 %v14039_v0, %v1619_v59  ;;  %v1690_v26 = vmax.f32 %v1654_v13, 0.0  ;;  %v506_v30 = vadd.f32 %v14039_v0, %v464_v17  ;;  %v1552_v59 = vld [vmem:[%s13755_s16 + $0x10a] sm:$0xff] }
 0x100   : > { %v1778_v37 = vpop.permute.xlu1 %1777  ;;  %v1773_v38 = vpop.permute.xlu0 %1772  ;;  %v13069_v39 = vld [vmem:[#allocation2 + $0x148] sm:$0xff]   ;;  %12429 = vmatprep.subr.bf16.mxu0 %v13111_v24  ;;  %v1693_v34 = vmax.f32 %v1657_v22, 0.0  ;;  %v392_v22 = vld [vmem:[%s13755_s16 + $0x140] sm:$0xff] }
 0x101   : > { %11613 = vst [vmem:[#allocation2 + $0x38] sm:$0xff] %v11105_v35   ;;  %v1903_v44 = vmul.f32 %v1778_v37, %v1687_v23  ;;  %v1902_v45 = vmul.f32 %v1773_v38, %v1686_v57  ;;  %12262 = vmatmul.mubr.bf16.gmra.mxu0 %v13069_v39  ;;  %v1691_v21 = vmax.f32 %v1655_v8, 0.0  ;;  %v463_v23 = vmul.f32 %v14046_v14, %v385_v15  ;;  %v388_v57 = vld [vmem:[%s13755_s16 + $0x110] sm:$0xff]  ;;  %v389_v8 = vld [vmem:[%s13755_s16 + $0x120] sm:$0xff] }
 0x102   : > { %v466_v36 = vmul.f32 %v14046_v14, %v388_v57  ;;  %v1692_v39 = vmax.f32 %v1656_v27, 0.0 }
 0x103   : > { %v11280_v50 = vpack.c.bf16 %v1903_v44, %v1902_v45  ;;  %v505_v35 = vadd.f32 %v14039_v0, %v463_v23  ;;  %v542_v45 = vmax.f32 %v506_v30, 0.0  ;;  %v14249_v0 = vld [vmem:[%s16074_s3] ss:$0 sm:$0xff]  ;;  %v391_v23 = vld [vmem:[%s13755_s16 + $0x138] sm:$0xff] }
 0x104   : > { %v1788_v52 = vpop.permute.xlu1 %1787  ;;  %v1783_v54 = vpop.permute.xlu0 %1782  ;;  %v13070_v55 = vld [vmem:[#allocation2 + $0x30] sm:$0xff]   ;;  %v508_v51 = vadd.f32 %v14249_v0, %v466_v36  ;;  %v1554_v36 = vld [vmem:[%s13755_s16 + $0x122] sm:$0xff] }
 0x105   : > { %11646 = vst [vmem:[#allocation2 + $0x150] sm:$0xff] %v11280_v50   ;;  %v1905_v60 = vmul.f32 %v1788_v52, %v1689_v40  ;;  %v1904_v61 = vmul.f32 %v1783_v54, %v1688_v46  ;;  %12217 = vmatprep.mubr.bf16.mxu1 %v13070_v55  ;;  %v465_v40 = vmul.f32 %v14046_v14, %v387_v28  ;;  %v1553_v46 = vld [vmem:[%s13755_s16 + $0x112] sm:$0xff]  ;;  %v541_v50 = vmax.f32 %v505_v35, 0.0  ;;  %v14255_v14 = vld [vmem:[%s16073_s2] ss:$0 sm:$0xff] }
 0x106   : > { %v1623_v52 = vmul.f32 %v14255_v14, %v1551_v41  ;;  %v1622_v58 = vmul.f32 %v14255_v14, %v1550_v43  ;;  %v544_v1 = vmax.f32 %v508_v51, 0.0  ;;  %v469_v35 = vmul.f32 %v14255_v14, %v391_v23  ;;  %v1556_v51 = vld [vmem:[%s13755_s16 + $0x13a] sm:$0xff] }
 0x107   : > { %v11285_v2 = vpack.c.bf16 %v1905_v60, %v1904_v61  ;;  %v1625_v61 = vmul.f32 %v14255_v14, %v1553_v46 }
 0x108   : > { %v645_v4 = vpop.permute.xlu1 %644  ;;  %v640_v5 = vpop.permute.xlu0 %639  ;;  %v13071_v6 = vld [vmem:[#allocation2 + $0x38] sm:$0xff]  }
 0x109   : > { %11647 = vst [vmem:[#allocation2 + $0x158] sm:$0xff] %v11285_v2   ;;  %v754_v11 = vmul.f32 %v645_v4, %v538_v56  ;;  %v753_v12 = vmul.f32 %v640_v5, %v537_v10  ;;  %12218 = vmatmul.mubr.bf16.gmra.mxu1 %v13071_v6  ;;  %v507_v56 = vadd.f32 %v14249_v0, %v465_v40 }
 0x10a   : > { %v1659_v2 = vadd.f32 %v14249_v0, %v1623_v52  ;;  %v1658_v6 = vadd.f32 %v14249_v0, %v1622_v58 }
 0x10b   : > { %v11110_v16 = vpack.c.bf16 %v754_v11, %v753_v12  ;;  %v543_v5 = vmax.f32 %v507_v56, 0.0  ;;  %v1661_v11 = vadd.f32 %v14249_v0, %v1625_v61 }
 0x10c   : > { %v655_v18 = vpop.permute.xlu1 %654  ;;  %v650_v19 = vpop.permute.xlu0 %649  ;;  %v13072_v20 = vld [vmem:[#allocation2 + $0x150] sm:$0xff]   ;;  %v1695_v15 = vmax.f32 %v1659_v2, 0.0  ;;  %v394_v2 = vld [vmem:[%s13755_s16 + $0x158] sm:$0xff] }
 0x10d   : > { %11614 = vst [vmem:[#allocation2 + $0x40] sm:$0xff] %v11110_v16   ;;  %v756_v24 = vmul.f32 %v655_v18, %v540_v53  ;;  %v755_v25 = vmul.f32 %v650_v19, %v539_v7  ;;  %12265 = vmatprep.mubr.bf16.mxu0 %v13072_v20  ;;  %v1624_v53 = vmul.f32 %v14255_v14, %v1552_v59  ;;  %v390_v7 = vld [vmem:[%s13755_s16 + $0x128] sm:$0xff]  ;;  %v1694_v20 = vmax.f32 %v1658_v6, 0.0 }
 0x10e   : > { %v468_v17 = vmul.f32 %v14255_v14, %v390_v7 }
 0x10f   : > { %v11115_v29 = vpack.c.bf16 %v756_v24, %v755_v25  ;;  %v1660_v16 = vadd.f32 %v14249_v0, %v1624_v53  ;;  %v1697_v25 = vmax.f32 %v1661_v11, 0.0  ;;  %v393_v53 = vld [vmem:[%s13755_s16 + $0x150] sm:$0xff] }
 0x110   : > { %v1798_v31 = vpop.permute.xlu1 %1797  ;;  %v1793_v32 = vpop.permute.xlu0 %1792  ;;  %v13073_v33 = vld [vmem:[#allocation2 + $0x158] sm:$0xff]   ;;  %v510_v30 = vadd.f32 %v14249_v0, %v468_v17  ;;  %v395_v17 = vld [vmem:[%s13755_s16 + $0x168] sm:$0xff] }
 0x111   : > { %11615 = vst [vmem:[#allocation2 + $0x48] sm:$0xff] %v11115_v29   ;;  %v1907_v37 = vmul.f32 %v1798_v31, %v1691_v21  ;;  %v1906_v38 = vmul.f32 %v1793_v32, %v1690_v26  ;;  %12266 = vmatmul.mubr.bf16.gmra.mxu0 %v13073_v33  ;;  %v467_v21 = vmul.f32 %v14255_v14, %v389_v8  ;;  %v1555_v26 = vld [vmem:[%s13755_s16 + $0x12a] sm:$0xff]  ;;  %v1696_v29 = vmax.f32 %v1660_v16, 0.0 }
 0x112   : > { %v470_v31 = vmul.f32 %v14255_v14, %v392_v22  ;;  %v546_v43 = vmax.f32 %v510_v30, 0.0  ;;  %v471_v16 = vmul.f32 %v14255_v14, %v393_v53  ;;  %v1558_v30 = vld [vmem:[%s13755_s16 + $0x152] sm:$0xff] }
 0x113   : > { %v11290_v44 = vpack.c.bf16 %v1907_v37, %v1906_v38  ;;  %v1627_v38 = vmul.f32 %v14255_v14, %v1555_v26 }
 0x114   : > { %v1808_v47 = vpop.permute.xlu1 %1807  ;;  %v1803_v48 = vpop.permute.xlu0 %1802  ;;  %v13074_v49 = vld [vmem:[#allocation2 + $0x40] sm:$0xff]  }
 0x115   : > { %11648 = vst [vmem:[#allocation2 + $0x160] sm:$0xff] %v11290_v44   ;;  %v1909_v54 = vmul.f32 %v1808_v47, %v1693_v34  ;;  %v1908_v55 = vmul.f32 %v1803_v48, %v1692_v39  ;;  %12221 = vmatprep.mubr.bf16.mxu1 %v13074_v49  ;;  %v509_v34 = vadd.f32 %v14249_v0, %v467_v21 }
 0x116   : > { %v512_v44 = vadd.f32 %v14249_v0, %v470_v31  ;;  %v511_v49 = vadd.f32 %v14249_v0, %v469_v35 }
 0x117   : > { %v11295_v60 = vpack.c.bf16 %v1909_v54, %v1908_v55  ;;  %v545_v48 = vmax.f32 %v509_v34, 0.0  ;;  %v1663_v54 = vadd.f32 %v14249_v0, %v1627_v38 }
 0x118   : > { %v665_v10 = vpop.permute.xlu1 %664  ;;  %v660_v62 = vpop.permute.xlu0 %659  ;;  %v13077_v63 = vld [vmem:[#allocation2 + $0x48] sm:$0xff]   ;;  %v548_v59 = vmax.f32 %v512_v44, 0.0  ;;  %v1561_v44 = vld [vmem:[%s13755_s16 + $0x172] sm:$0xff] }
 0x119   : > { %11649 = vst [vmem:[#allocation2 + $0x168] sm:$0xff] %v11295_v60   ;;  %v758_v3 = vmul.f32 %v665_v10, %v542_v45  ;;  %v757_v4 = vmul.f32 %v660_v62, %v541_v50  ;;  %12222 = vmatmul.mubr.bf16.gmra.mxu1 %v13077_v63  ;;  %v1626_v45 = vmul.f32 %v14255_v14, %v1554_v36  ;;  %v1557_v50 = vld [vmem:[%s13755_s16 + $0x142] sm:$0xff]  ;;  %v547_v63 = vmax.f32 %v511_v49, 0.0 }
 0x11a   : > { %v1629_v61 = vmul.f32 %v14255_v14, %v1557_v50 }
 0x11b   : > { %v11120_v9 = vpack.c.bf16 %v758_v3, %v757_v4  ;;  %v1662_v60 = vadd.f32 %v14249_v0, %v1626_v45  ;;  %v1699_v4 = vmax.f32 %v1663_v54, 0.0  ;;  %v1560_v45 = vld [vmem:[%s13755_s16 + $0x16a] sm:$0xff] }
 0x11c   : > { %v675_v12 = vpop.permute.xlu1 %674  ;;  %v670_v13 = vpop.permute.xlu0 %669  ;;  %v13078_v42 = vld [vmem:[#allocation2 + $0x160] sm:$0xff]   ;;  %v1665_v11 = vadd.f32 %v14249_v0, %v1629_v61 }
 0x11d   : > { %11616 = vst [vmem:[#allocation2 + $0x50] sm:$0xff] %v11120_v9   ;;  %v760_v18 = vmul.f32 %v675_v12, %v544_v1  ;;  %v759_v19 = vmul.f32 %v670_v13, %v543_v5  ;;  %12269 = vmatprep.mubr.bf16.mxu0 %v13078_v42  ;;  %v1628_v1 = vmul.f32 %v14255_v14, %v1556_v51  ;;  %v396_v5 = vld [vmem:[%s13755_s16 + $0x170] sm:$0xff]  ;;  %v1698_v9 = vmax.f32 %v1662_v60, 0.0  ;;  %v397_v61 = vld [vmem:[%s13755_s16 + $0x180] sm:$0xff] }
 0x11e   : > { %v472_v12 = vmul.f32 %v14255_v14, %v394_v2  ;;  %v1701_v23 = vmax.f32 %v1665_v11, 0.0  ;;  %v1632_v60 = vmul.f32 %v14255_v14, %v1560_v45  ;;  %v985_v11 = vld [vmem:[%s13755_s16 + $0x181] sm:$0xff] }
 0x11f   : > { %v11125_v24 = vpack.c.bf16 %v760_v18, %v759_v19  ;;  %v474_v19 = vmul.f32 %v14255_v14, %v396_v5 }
 0x120   : > { %v1818_v27 = vpop.permute.xlu1 %1817  ;;  %v1813_v57 = vpop.permute.xlu0 %1812  ;;  %v13081_v28 = vld [vmem:[#allocation2 + $0x168] sm:$0xff]  }
 0x121   : > { %11617 = vst [vmem:[#allocation2 + $0x58] sm:$0xff] %v11125_v24   ;;  %v1911_v32 = vmul.f32 %v1818_v27, %v1695_v15  ;;  %v1910_v33 = vmul.f32 %v1813_v57, %v1694_v20  ;;  %12270 = vmatmul.mubr.bf16.gmra.mxu0 %v13081_v28  ;;  %v1664_v15 = vadd.f32 %v14249_v0, %v1628_v1 }
 0x122   : > { %v514_v24 = vadd.f32 %v14249_v0, %v472_v12  ;;  %v513_v28 = vadd.f32 %v14249_v0, %v471_v16 }
 0x123   : > { %v11300_v37 = vpack.c.bf16 %v1911_v32, %v1910_v33  ;;  %v1700_v57 = vmax.f32 %v1664_v15, 0.0  ;;  %v516_v32 = vadd.f32 %v14249_v0, %v474_v19 }
 0x124   : > { %v1828_v39 = vpop.permute.xlu1 %1827  ;;  %v1823_v40 = vpop.permute.xlu0 %1822  ;;  %v13082_v41 = vld [vmem:[#allocation2 + $0x50] sm:$0xff]   ;;  %v550_v36 = vmax.f32 %v514_v24, 0.0 }
 0x125   : > { %11650 = vst [vmem:[#allocation2 + $0x170] sm:$0xff] %v11300_v37   ;;  %v1913_v46 = vmul.f32 %v1828_v39, %v1697_v25  ;;  %v1912_v47 = vmul.f32 %v1823_v40, %v1696_v29  ;;  %12225 = vmatprep.mubr.bf16.mxu1 %v13082_v41  ;;  %v473_v25 = vmul.f32 %v14255_v14, %v395_v17  ;;  %v1559_v29 = vld [vmem:[%s13755_s16 + $0x15a] sm:$0xff]  ;;  %v549_v41 = vmax.f32 %v513_v28, 0.0  ;;  %v1563_v24 = vld [vmem:[%s13755_s16 + $0x18a] sm:$0xff] }
 0x126   : > { %v1631_v38 = vmul.f32 %v14255_v14, %v1559_v29 }
 0x127   : > { %v11305_v52 = vpack.c.bf16 %v1913_v46, %v1912_v47  ;;  %v515_v37 = vadd.f32 %v14249_v0, %v473_v25  ;;  %v552_v47 = vmax.f32 %v516_v32, 0.0  ;;  %v1562_v25 = vld [vmem:[%s13755_s16 + $0x182] sm:$0xff] }
 0x128   : > { %v685_v55 = vpop.permute.xlu1 %684  ;;  %v680_v56 = vpop.permute.xlu0 %679  ;;  %v13085_v58 = vld [vmem:[#allocation2 + $0x58] sm:$0xff]   ;;  %v1667_v54 = vadd.f32 %v14249_v0, %v1631_v38 }
 0x129   : > { %11651 = vst [vmem:[#allocation2 + $0x178] sm:$0xff] %v11305_v52   ;;  %v762_v10 = vmul.f32 %v685_v55, %v546_v43  ;;  %v761_v62 = vmul.f32 %v680_v56, %v545_v48  ;;  %12226 = vmatmul.mubr.bf16.gmra.mxu1 %v13085_v58  ;;  %v1630_v43 = vmul.f32 %v14255_v14, %v1558_v30  ;;  %v398_v48 = vld [vmem:[%s13755_s16 + $0x188] sm:$0xff]  ;;  %v551_v52 = vmax.f32 %v515_v37, 0.0  ;;  %v399_v38 = vld [vmem:[%s13755_s16 + $0x198] sm:$0xff] }
 0x12a   : > { %v1633_v55 = vmul.f32 %v14255_v14, %v1561_v44  ;;  %v1703_v53 = vmax.f32 %v1667_v54, 0.0  ;;  %v1634_v37 = vmul.f32 %v14255_v14, %v1562_v25 }
 0x12b   : > { %v11130_v3 = vpack.c.bf16 %v762_v10, %v761_v62  ;;  %v476_v62 = vmul.f32 %v14255_v14, %v398_v48  ;;  %v477_v48 = vmul.f32 %v14255_v14, %v399_v38 }
 0x12c   : > { %v695_v6 = vpop.permute.xlu1 %694  ;;  %v690_v7 = vpop.permute.xlu0 %689  ;;  %v13086_v8 = vld [vmem:[#allocation2 + $0x170] sm:$0xff]   ;;  %v1670_v54 = vadd.f32 %v14249_v0, %v1634_v37  ;;  %v13112_v37 = vld [vmem:[#allocation2 + $0x20] sm:$0xff]  }
 0x12d   : > { %11618 = vst [vmem:[#allocation2 + $0x60] sm:$0xff] %v11130_v3   ;;  %v764_v13 = vmul.f32 %v695_v6, %v548_v59  ;;  %v763_v42 = vmul.f32 %v690_v7, %v547_v63  ;;  %12273 = vmatprep.mubr.bf16.mxu0 %v13086_v8  ;;  %v1666_v59 = vadd.f32 %v14249_v0, %v1630_v43 }
 0x12e   : > { %v1669_v3 = vadd.f32 %v14249_v0, %v1633_v55  ;;  %v1668_v8 = vadd.f32 %v14249_v0, %v1632_v60  ;;  %v987_v55 = vld [vmem:[%s13755_s16 + $0x199] sm:$0xff] }
 0x12f   : > { %v11135_v18 = vpack.c.bf16 %v764_v13, %v763_v42  ;;  %v1702_v7 = vmax.f32 %v1666_v59, 0.0  ;;  %v518_v13 = vadd.f32 %v14249_v0, %v476_v62  ;;  %v519_v62 = vadd.f32 %v14249_v0, %v477_v48 }
 0x130   : > { %v1838_v20 = vpop.permute.xlu1 %1837  ;;  %v1833_v21 = vpop.permute.xlu0 %1832  ;;  %v13089_v22 = vld [vmem:[#allocation2 + $0x178] sm:$0xff]   ;;  %v1705_v17 = vmax.f32 %v1669_v3, 0.0  ;;  %v1059_v3 = vmul.f32 %v14255_v14, %v987_v55  ;;  %v13119_v55 = vld [vmem:[#allocation2 + $0xb0] sm:$0xff]  }
 0x131   : > { %11619 = vst [vmem:[#allocation2 + $0x68] sm:$0xff] %v11135_v18   ;;  %v1915_v26 = vmul.f32 %v1838_v20, %v1699_v4  ;;  %v1914_v27 = vmul.f32 %v1833_v21, %v1698_v9  ;;  %12274 = vmatmul.mubr.bf16.gmra.mxu0 %v13089_v22  ;;  %v475_v4 = vmul.f32 %v14255_v14, %v397_v61  ;;  %v986_v9 = vld [vmem:[%s13755_s16 + $0x189] sm:$0xff]  ;;  %v1704_v22 = vmax.f32 %v1668_v8, 0.0 }
 0x132   : > { %v1058_v19 = vmul.f32 %v14255_v14, %v986_v9  ;;  %v13109_v9 = vld [vmem:[#allocation2 + $0x98] sm:$0xff]  }
 0x133   : > { %v11310_v31 = vpack.c.bf16 %v1915_v26, %v1914_v27  ;;  %v517_v18 = vadd.f32 %v14249_v0, %v475_v4  ;;  %v554_v27 = vmax.f32 %v518_v13, 0.0  ;;  %v1565_v4 = vld [vmem:[%s13755_s16 + $0x1a2] sm:$0xff] }
 0x134   : > { %v1848_v33 = vpop.permute.xlu1 %1847  ;;  %v1843_v34 = vpop.permute.xlu0 %1842  ;;  %v13090_v35 = vld [vmem:[#allocation2 + $0x60] sm:$0xff]   ;;  %v1094_v32 = vadd.f32 %v14249_v0, %v1058_v19 }
 0x135   : > { %11652 = vst [vmem:[#allocation2 + $0x180] sm:$0xff] %v11310_v31   ;;  %v1917_v39 = vmul.f32 %v1848_v33, %v1701_v23  ;;  %v1916_v40 = vmul.f32 %v1843_v34, %v1700_v57  ;;  %12229 = vmatprep.mubr.bf16.mxu1 %v13090_v35  ;;  %v1057_v23 = vmul.f32 %v14255_v14, %v985_v11  ;;  %v400_v57 = vld [vmem:[%s13755_s16 + $0x1a0] sm:$0xff]  ;;  %v553_v31 = vmax.f32 %v517_v18, 0.0  ;;  %v13116_v11 = vld [vmem:[%s16077_s6 + $0x170] sm:$0xff]  }
 0x136   : > { %v1635_v33 = vmul.f32 %v14255_v14, %v1563_v24 }
 0x137   : > { %v11315_v46 = vpack.c.bf16 %v1917_v39, %v1916_v40  ;;  %v478_v40 = vmul.f32 %v14255_v14, %v400_v57 }
 0x138   : > { %v705_v49 = vpop.permute.xlu1 %704  ;;  %v700_v50 = vpop.permute.xlu0 %699  ;;  %v13093_v51 = vld [vmem:[#allocation2 + $0x68] sm:$0xff]  }
 0x139   : > { %11653 = vst [vmem:[#allocation2 + $0x188] sm:$0xff] %v11315_v46   ;;  %v766_v56 = vmul.f32 %v705_v49, %v550_v36  ;;  %v765_v58 = vmul.f32 %v700_v50, %v549_v41  ;;  %12230 = vmatmul.mubr.bf16.gmra.mxu1 %v13093_v51  ;;  %v1093_v36 = vadd.f32 %v14249_v0, %v1057_v23  ;;  %v988_v41 = vld [vmem:[%s13755_s16 + $0x1a1] sm:$0xff]  ;;  %v1130_v46 = vmax.f32 %v1094_v32, 0.0 }
 0x13a   : > { %v13113_v32 = vld [vmem:[#allocation2 + $0xa0] sm:$0xff]  }
 0x13b   : > { %v11140_v10 = vpack.c.bf16 %v766_v56, %v765_v58  ;;  %v1129_v51 = vmax.f32 %v1093_v36, 0.0  ;;  %v520_v58 = vadd.f32 %v14249_v0, %v478_v40 }
 0x13c   : > { %v715_v63 = vpop.permute.xlu1 %714  ;;  %v710_v1 = vpop.permute.xlu0 %709  ;;  %v13094_v2 = vld [vmem:[#allocation2 + $0x180] sm:$0xff]  }
 0x13d   : > { %11620 = vst [vmem:[#allocation2 + $0x70] sm:$0xff] %v11140_v10   ;;  %v768_v5 = vmul.f32 %v715_v63, %v552_v47  ;;  %v767_v6 = vmul.f32 %v710_v1, %v551_v52  ;;  %12277 = vmatprep.mubr.bf16.mxu0 %v13094_v2  ;;  %v1671_v47 = vadd.f32 %v14249_v0, %v1635_v33  ;;  %v13102_v52 = vld [vmem:[#allocation2 + $0x8] sm:$0xff]   ;;  %v556_v8 = vmax.f32 %v520_v58, 0.0  ;;  %v13117_v33 = vld [vmem:[%s16077_s6 + $0x1b0] sm:$0xff]  }
 0x13e   : > { %v1060_v63 = vmul.f32 %v14255_v14, %v988_v41 }
 0x13f   : > { %v11145_v12 = vpack.c.bf16 %v768_v5, %v767_v6  ;;  %v1707_v10 = vmax.f32 %v1671_v47, 0.0  ;;  %v1564_v5 = vld [vmem:[%s13755_s16 + $0x19a] sm:$0xff] }
 0x140   : > { %v1858_v42 = vpop.permute.xlu1 %1857  ;;  %v1853_v15 = vpop.permute.xlu0 %1852  ;;  %v13097_v16 = vld [vmem:[#allocation2 + $0x188] sm:$0xff]  }
 0x141   : > { %11621 = vst [vmem:[#allocation2 + $0x78] sm:$0xff] %v11145_v12   ;;  %v1919_v20 = vmul.f32 %v1858_v42, %v1703_v53  ;;  %v1918_v21 = vmul.f32 %v1853_v15, %v1702_v7  ;;  %12278 = vmatmul.mubr.bf16.gmra.mxu0 %v13097_v16  ;;  %v1706_v53 = vmax.f32 %v1670_v54, 0.0  ;;  %v13107_v7 = vld [vmem:[#allocation2 + $0x10] sm:$0xff]   ;;  %v555_v15 = vmax.f32 %v519_v62, 0.0 }
 0x142   : > { %v1096_v16 = vadd.f32 %v14249_v0, %v1060_v63  ;;  %v13120_v63 = vld [vmem:[#allocation2 + $0x38] sm:$0xff]  }
 0x143   : > { %v11320_v26 = vpack.c.bf16 %v1919_v20, %v1918_v21  ;;  %v13108_v20 = vld [vmem:[#allocation2 + $0x18] sm:$0xff]   ;;  %v1095_v21 = vadd.f32 %v14249_v0, %v1059_v3 }
 0x144   : > { %v1868_v28 = vpop.permute.xlu1 %1867  ;;  %v1863_v29 = vpop.permute.xlu0 %1862  ;;  %v13098_v30 = vld [vmem:[#allocation2 + $0x70] sm:$0xff]   ;;  %v13135_v3 = vld [vmem:[%s16077_s6 + $0x198] sm:$0xff]  }
 0x145   : > { %11654 = vst [vmem:[#allocation2 + $0x190] sm:$0xff] %v11320_v26   ;;  %v1921_v34 = vmul.f32 %v1868_v28, %v1705_v17  ;;  %v1920_v35 = vmul.f32 %v1863_v29, %v1704_v22  ;;  %12233 = vmatprep.mubr.bf16.mxu1 %v13098_v30  ;;  %v1637_v17 = vmul.f32 %v14255_v14, %v1565_v4  ;;  %v1132_v26 = vmax.f32 %v1096_v16, 0.0  ;;  %v13147_v16 = vld [vmem:[%s16077_s6 + $0x188] sm:$0xff]  }
 0x146   : > { %v1636_v22 = vmul.f32 %v14255_v14, %v1564_v5  ;;  %v1131_v30 = vmax.f32 %v1095_v21, 0.0  ;;  %v13125_v5 = vld [vmem:[#allocation2 + $0xc0] sm:$0xff]  }
 0x147   : > { %v11325_v39 = vpack.c.bf16 %v1921_v34, %v1920_v35  ;;  %v1673_v57 = vadd.f32 %v14249_v0, %v1637_v17 }
 0x148   : > { %v725_v43 = vpop.permute.xlu1 %724  ;;  %v720_v44 = vpop.permute.xlu0 %719  ;;  %v13101_v45 = vld [vmem:[#allocation2 + $0x78] sm:$0xff]   ;;  %v1672_v14 = vadd.f32 %v14249_v0, %v1636_v22  ;;  %v13128_v0 = vld [vmem:[%s16077_s6 + $0x160] sm:$0xff]  }
 0x149   : > { %11655 = vst [vmem:[#allocation2 + $0x198] sm:$0xff] %v11325_v39   ;;  %v770_v49 = vmul.f32 %v725_v43, %v554_v27  ;;  %v769_v50 = vmul.f32 %v720_v44, %v553_v31  ;;  %12234 = vmatmul.mubr.bf16.gmra.mxu1 %v13101_v45  ;;  %v13454_v27 = vld [vmem:[%s16077_s6 + $0x178] sm:$0xff]   ;;  %v13122_v31 = vld [vmem:[%s16077_s6 + $0x168] sm:$0xff]   ;;  %v1709_v38 = vmax.f32 %v1673_v57, 0.0 }
 0x14a   : > { %12301 = vmatprep.mubr.bf16.mxu1 %v13102_v52  ;;  %v13115_v39 = vld [vmem:[#allocation2 + $0xa8] sm:$0xff]   ;;  %v1708_v43 = vmax.f32 %v1672_v14, 0.0  ;;  %v13132_v22 = vld [vmem:[#allocation2 + $0x58] sm:$0xff]  }
 0x14b   : > { %v11150_v56 = vpack.c.bf16 %v770_v49, %v769_v50  ;;  %v13114_v44 = vld [vmem:[#allocation2 + $0x28] sm:$0xff]  }
 0x14c   : > { %v1301_v59 = vpop.permute.xlu1 %1300  ;;  %v1296_v60 = vpop.permute.xlu0 %1295  ;;  %v13103_v61 = vld [vmem:[#allocation2 + $0x190] sm:$0xff]   ;;  %v13123_v50 = vld [vmem:[%s16077_s6 + $0x1a8] sm:$0xff]  }
 0x14d   : > { %11622 = vst [vmem:[#allocation2 + $0x80] sm:$0xff] %v11150_v56   ;;  %v1346_v1 = vmul.f32 %v1301_v59, %v1130_v46  ;;  %v1345_v2 = vmul.f32 %v1296_v60, %v1129_v51  ;;  %12281 = vmatprep.mubr.bf16.mxu0 %v13103_v61  ;;  %v13455_v46 = vld [vmem:[%s16077_s6 + $0x1b8] sm:$0xff]   ;;  %v13129_v61 = vld [vmem:[%s16077_s6 + $0x1a0] sm:$0xff]   ;;  %v13138_v14 = vld [vmem:[#allocation2 + $0x68] sm:$0xff]  }
 0x14e   : > { %v13134_v56 = vld [vmem:[%s16077_s6 + $0x158] sm:$0xff]  }
 0x14f   : > { %v11240_v6 = vpack.c.bf16 %v1346_v1, %v1345_v2  ;;  %v13121_v60 = vld [vmem:[#allocation2 + $0xb8] sm:$0xff]   ;;  %v13140_v1 = vld [vmem:[%s16077_s6 + $0x150] sm:$0xff]  }
 0x150   : > { %v1878_v12 = vpop.permute.xlu1 %1877  ;;  %v1873_v13 = vpop.permute.xlu0 %1872  ;;  %v13106_v42 = vld [vmem:[#allocation2 + $0x198] sm:$0xff]  }
 0x151   : > { %11639 = vst [vmem:[#allocation2 + $0x110] sm:$0xff] %v11240_v6   ;;  %v1923_v18 = vmul.f32 %v1878_v12, %v1707_v10  ;;  %v1922_v19 = vmul.f32 %v1873_v13, %v1706_v53  ;;  %12282 = vmatmul.mubr.bf16.gmra.mxu0 %v13106_v42  ;;  %12302 = vmatmul.mubr.bf16.vlgmr.msra.gmra.mxu1 %v13107_v7  ;;  %v13118_v10 = vld [vmem:[#allocation2 + $0x30] sm:$0xff]   ;;  %v13146_v6 = vld [vmem:[%s16077_s6 + $0x148] sm:$0xff]   ;;  %v13124_v7 = vld [vmem:[#allocation2 + $0x40] sm:$0xff]  }
 0x152   : > { %12305 = vmatprep.mubr.bf16.mxu1 %v13108_v20  ;;  %12349 = vmatprep.mubr.bf16.mxu0 %v13109_v9  ;;  %v13126_v9 = vld [vmem:[#allocation2 + $0x48] sm:$0xff]   ;;  %v13141_v12 = vld [vmem:[%s16077_s6 + $0x190] sm:$0xff]   ;;  %v13152_v13 = vld [vmem:[%s16077_s6 + $0x140] sm:$0xff]  }
 0x153   : > { %v11330_v23 = vpack.c.bf16 %v1923_v18, %v1922_v19  ;;  %12382 = vmatpush3.bf16.msra.mxu1 %v13454_v27  ;;  %v13130_v18 = vld [vmem:[#allocation2 + $0x50] sm:$0xff]   ;;  %v14421_v20 = vld [vmem:[%s16077_s6 + $0x1f8] sm:$0xff]  }
 0x154   : > { %v735_v24 = vpop.permute.xlu1 %734  ;;  %v730_v25 = vpop.permute.xlu0 %729  ;;  %12383 = vmatprep.subr.bf16.mxu1 %v13116_v11  ;;  %v13131_v19 = vld [vmem:[#allocation2 + $0xd0] sm:$0xff]   ;;  %v14436_v27 = vld [vmem:[%s16077_s6 + $0x238] sm:$0xff]  }
 0x155   : > { %11656 = vst [vmem:[#allocation2 + $0x1a0] sm:$0xff] %v11330_v23   ;;  %v772_v28 = vmul.f32 %v735_v24, %v556_v8  ;;  %v771_v29 = vmul.f32 %v730_v25, %v555_v15  ;;  %v13133_v23 = vld [vmem:[#allocation2 + $0xd8] sm:$0xff]   ;;  %v13153_v24 = vld [vmem:[%s16077_s6 + $0x180] sm:$0xff]  }
 0x157   : > { %v11155_v34 = vpack.c.bf16 %v772_v28, %v771_v29  ;;  %12384 = vmatpush3.bf16.msra.mxu1 %v13116_v11  ;;  %v13127_v11 = vld [vmem:[#allocation2 + $0xc8] sm:$0xff]   ;;  %v13136_v28 = vld [vmem:[#allocation2 + $0x60] sm:$0xff]  }
 0x158   : > { %v1311_v35 = vpop.permute.xlu1 %1310  ;;  %v1306_v36 = vpop.permute.xlu0 %1305  ;;  %12385 = vmatprep.subr.bf16.mxu1 %v13122_v31  ;;  %v13137_v29 = vld [vmem:[#allocation2 + $0xe0] sm:$0xff]  }
 0x159   : > { %11623 = vst [vmem:[#allocation2 + $0x88] sm:$0xff] %v11155_v34   ;;  %v1348_v40 = vmul.f32 %v1311_v35, %v1132_v26  ;;  %v1347_v41 = vmul.f32 %v1306_v36, %v1131_v30  ;;  %12306 = vmatmul.mubr.bf16.gmra.mxu1 %v13112_v37  ;;  %12350 = vmatmul.mubr.bf16.vlgmr.msra.gmra.mxu0 %v13113_v32  ;;  %v13142_v35 = vld [vmem:[#allocation2 + $0x70] sm:$0xff]  }
 0x15a   : > { %12430 = vmatpush3.bf16.msra.mxu0 %v13455_v46  ;;  %12309 = vmatprep.mubr.bf16.mxu1 %v13114_v44  ;;  %v13143_v36 = vld [vmem:[#allocation2 + $0xf0] sm:$0xff]   ;;  %v13149_v44 = vld [vmem:[#allocation2 + $0x100] sm:$0xff]   ;;  %v13150_v46 = vld [vmem:[#allocation2 + $0x108] sm:$0xff]  }
 0x15b   : > { %v11245_v45 = vpack.c.bf16 %v1348_v40, %v1347_v41  ;;  %v14369_v47 = vpop.f32.mrf.mxu0  ;;  %12353 = vmatprep.mubr.bf16.mxu0 %v13115_v39  ;;  %12431 = vmatprep.subr.bf16.mxu0 %v13117_v33  ;;  %v13145_v39 = vld [vmem:[#allocation2 + $0xf8] sm:$0xff]  }
 0x15c   : > { %v1888_v48 = vpop.permute.xlu1 %1887  ;;  %v1883_v49 = vpop.permute.xlu0 %1882  ;;  %12386 = vmatpush3.bf16.msra.mxu1 %v13122_v31  ;;  %v13139_v31 = vld [vmem:[#allocation2 + $0xe8] sm:$0xff]  }
 0x15d   : > { %11640 = vst [vmem:[#allocation2 + $0x118] sm:$0xff] %v11245_v45   ;;  %v1925_v51 = vmul.f32 %v1888_v48, %v1709_v38  ;;  %v1924_v52 = vmul.f32 %v1883_v49, %v1708_v43  ;;  %v14374_v54 = vpop.f32.mrf.mxu0  ;;  %12387 = vmatprep.subr.bf16.mxu1 %v13128_v0  ;;  %v13144_v38 = vld [vmem:[#allocation2 + $0x78] sm:$0xff]   ;;  %v13148_v43 = vld [vmem:[#allocation2 + $0x80] sm:$0xff]   ;;  %v13151_v48 = vld [vmem:[#allocation2 + $0x128] sm:$0xff]  }
 0x15e   : > { %12432 = vmatpush3.bf16.msra.mxu0 %v13117_v33 }
 0x15f   : > { %v11335_v58 = vpack.c.bf16 %v1925_v51, %v1924_v52  ;;  %v14379_v59 = vpop.f32.mrf.mxu0  ;;  %12433 = vmatprep.subr.bf16.mxu0 %v13123_v50  ;;  %v13154_v52 = vld [vmem:[#allocation2 + $0x110] sm:$0xff]  }
 0x160   : > { %12388 = vmatpush3.bf16.msra.mxu1 %v13128_v0 }
 0x161   : > { %11657 = vst [vmem:[#allocation2 + $0x1a8] sm:$0xff] %v11335_v58   ;;  %v14384_v62 = vpop.f32.mrf.mxu0  ;;  %12310 = vmatmul.mubr.bf16.gmra.mxu1 %v13118_v10  ;;  %12354 = vmatmul.mubr.bf16.gmra.mxu0 %v13119_v55  ;;  %v13155_v55 = vld [vmem:[#allocation2 + $0x130] sm:$0xff]   ;;  %v13156_v58 = vld [vmem:[#allocation2 + $0x138] sm:$0xff]  }
 0x162   : > { %12313 = vmatprep.mubr.bf16.mxu1 %v13120_v63  ;;  %12357 = vmatprep.mubr.bf16.mxu0 %v13121_v60  ;;  %v13157_v60 = vld [vmem:[#allocation2 + $0x10] sm:$0xff]   ;;  %v13170_v63 = vld [vmem:[%s16077_s6 + $0x1e8] sm:$0xff]  }
 0x163   : > { %v14389_v2 = vpop.f32.mrf.mxu0  ;;  %12434 = vmatpush3.bf16.msra.mxu0 %v13123_v50  ;;  %12389 = vmatprep.subr.bf16.mxu1 %v13134_v56 }
 0x164   : > { %12435 = vmatprep.subr.bf16.mxu0 %v13129_v61  ;;  %12390 = vmatpush3.bf16.msra.mxu1 %v13134_v56 }
 0x165   : > { %v14391_v53 = vpop.f32.mrf.mxu0  ;;  %12391 = vmatprep.subr.bf16.mxu1 %v13140_v1 }
 0x167   : > { %v14396_v4 = vpop.f32.mrf.mxu0  ;;  %12436 = vmatpush3.bf16.msra.mxu0 %v13129_v61  ;;  %v13164_v61 = vld [vmem:[%s16077_s6 + $0x1f0] sm:$0xff]  }
 0x168   : > { %12437 = vmatprep.subr.bf16.mxu0 %v13135_v3  ;;  %12392 = vmatpush3.bf16.msra.mxu1 %v13140_v1 }
 0x169   : > { %v14401_v8 = vpop.f32.mrf.mxu0  ;;  %12314 = vmatmul.mubr.bf16.gmra.mxu1 %v13124_v7  ;;  %12358 = vmatmul.mubr.bf16.gmra.mxu0 %v13125_v5  ;;  %v13161_v5 = vld [vmem:[#allocation2 + $0x18] sm:$0xff]   ;;  %v13162_v7 = vld [vmem:[#allocation2 + $0x148] sm:$0xff]  }
 0x16a   : > { %12317 = vmatprep.mubr.bf16.mxu1 %v13126_v9  ;;  %12361 = vmatprep.mubr.bf16.mxu0 %v13127_v11  ;;  %v13163_v11 = vld [vmem:[#allocation2 + $0x20] sm:$0xff]  }
 0x16b   : > { %v14409_v42 = vpop.f32.mrf.mxu0  ;;  %12438 = vmatpush3.bf16.msra.mxu0 %v13135_v3  ;;  %12393 = vmatprep.subr.bf16.mxu1 %v13146_v6  ;;  %v13160_v3 = vld [vmem:[#allocation2 + $0x140] sm:$0xff]  }
 0x16c   : > { %12439 = vmatprep.subr.bf16.mxu0 %v13141_v12  ;;  %12394 = vmatpush3.bf16.msra.mxu1 %v13146_v6  ;;  %v13165_v6 = vld [vmem:[%s16077_s6 + $0x230] sm:$0xff]  }
 0x16d   : > { %v14411_v15 = vpop.f32.mrf.mxu0  ;;  %12395 = vmatprep.subr.bf16.mxu1 %v13152_v13 }
 0x16f   : > { %v14416_v17 = vpop.f32.mrf.mxu0  ;;  %12440 = vmatpush3.bf16.msra.mxu0 %v13141_v12  ;;  %v13176_v12 = vld [vmem:[%s16077_s6 + $0x1e0] sm:$0xff]  }
 0x170   : > { %12441 = vmatprep.subr.bf16.mxu0 %v13147_v16  ;;  %12396 = vmatpush3.bf16.msra.mxu1 %v13152_v13 }
 0x171   : > { %v14423_v21 = vpop.f32.mrf.mxu0  ;;  %12318 = vmatmul.mubr.bf16.gmra.mxu1 %v13130_v18  ;;  %12362 = vmatmul.mubr.bf16.gmra.mxu0 %v13131_v19  ;;  %v13171_v19 = vld [vmem:[%s16077_s6 + $0x228] sm:$0xff]  }
 0x172   : > { %12321 = vmatprep.mubr.bf16.mxu1 %v13132_v22  ;;  %12365 = vmatprep.mubr.bf16.mxu0 %v13133_v23 }
 0x173   : > { %v14428_v25 = vpop.f32.mrf.mxu0  ;;  %12442 = vmatpush3.bf16.msra.mxu0 %v13147_v16  ;;  %12477 = vmatprep.subr.bf16.mxu1 %v14421_v20 }
 0x174   : > { %12443 = vmatprep.subr.bf16.mxu0 %v13153_v24 }
 0x175   : > { %v14431_v26 = vpop.f32.mrf.mxu0 }
 0x177   : > { %v14438_v57 = vpop.f32.mrf.mxu0  ;;  %12444 = vmatpush3.bf16.msra.mxu0 %v13153_v24  ;;  %v13166_v24 = vld [vmem:[#allocation2 + $0x150] sm:$0xff]  }
 0x178   : > { %12525 = vmatprep.subr.bf16.mxu0 %v14436_v27 }
 0x179   : > { %v14440_v30 = vpop.f32.mrf.mxu0  ;;  %12322 = vmatmul.mubr.bf16.gmra.mxu1 %v13136_v28  ;;  %12366 = vmatmul.mubr.bf16.gmra.mxu0 %v13137_v29  ;;  %v13182_v28 = vld [vmem:[%s16077_s6 + $0x1d8] sm:$0xff]  }
 0x17a   : > { %12325 = vmatprep.mubr.bf16.mxu1 %v13138_v14  ;;  %12369 = vmatprep.mubr.bf16.mxu0 %v13139_v31  ;;  %v13168_v29 = vld [vmem:[#allocation2 + $0x158] sm:$0xff]   ;;  %v13169_v14 = vld [vmem:[#allocation2 + $0x30] sm:$0xff]  }
 0x17b   : > { %v14443_v32 = vpop.f32.mrf.mxu0 }
 0x17d   : > { %v14445_v33 = vpop.f32.mrf.mxu0 }
 0x17f   : > { %v14447_v34 = vpop.f32.mrf.mxu0 }
 0x181   : > { %v14449_v37 = vpop.f32.mrf.mxu0  ;;  %12326 = vmatmul.mubr.bf16.gmra.mxu1 %v13142_v35  ;;  %12370 = vmatmul.mubr.bf16.gmra.mxu0 %v13143_v36 }
 0x182   : > { %12329 = vmatprep.mubr.bf16.mxu1 %v13144_v38  ;;  %12373 = vmatprep.mubr.bf16.mxu0 %v13145_v39  ;;  %v13183_v39 = vld [vmem:[%s16077_s6 + $0x218] sm:$0xff]  }
 0x183   : > { %v14451_v0 = vpop.f32.mrf.mxu0 }
 0x185   : > { %v14453_v40 = vpop.f32.mrf.mxu0 }
 0x187   : > { %v14455_v41 = vpop.f32.mrf.mxu0 }
 0x189   : > { %v14457_v45 = vpop.f32.mrf.mxu0  ;;  %12330 = vmatmul.mubr.bf16.gmra.mxu1 %v13148_v43  ;;  %12374 = vmatmul.mubr.bf16.gmra.mxu0 %v13149_v44 }
 0x18a   : > { %12377 = vmatprep.mubr.bf16.mxu0 %v13150_v46  ;;  %12397 = vmatprep.mubr.bf16.mxu1 %v13151_v48  ;;  %v13172_v48 = vld [vmem:[#allocation2 + $0x160] sm:$0xff]  }
 0x18b   : > { %v14459_v49 = vpop.f32.mrf.mxu0 }
 0x18d   : > { %v14461_v50 = vpop.f32.mrf.mxu0 }
 0x18f   : > { %v14463_v51 = vpop.f32.mrf.mxu0 }
 0x191   : > { %v14465_v56 = vpop.f32.mrf.mxu0  ;;  %12378 = vmatmul.mubr.bf16.gmra.mxu0 %v13154_v52  ;;  %12398 = vmatmul.mubr.bf16.vlgmr.msra.gmra.mxu1 %v13155_v55  ;;  %v13173_v52 = vld [vmem:[#allocation2 + $0x38] sm:$0xff]   ;;  %v13194_v55 = vld [vmem:[%s16077_s6 + $0x1c8] sm:$0xff]  }
 0x192   : > { %12401 = vmatprep.mubr.bf16.mxu1 %v13156_v58  ;;  %12445 = vmatprep.mubr.bf16.mxu0 %v13157_v60  ;;  %v13174_v58 = vld [vmem:[#allocation2 + $0x168] sm:$0xff]   ;;  %v13175_v60 = vld [vmem:[#allocation2 + $0x40] sm:$0xff]  }
 0x193   : > { %v14470_v10 = vpop.f32.mrf.mxu0  ;;  %12478 = vmatpush3.bf16.msra.mxu1 %v14421_v20 }
 0x194   : > { %12479 = vmatprep.subr.bf16.mxu1 %v13164_v61 }
 0x195   : > { %v14476_v1 = vpop.f32.mrf.mxu0 }
 0x197   : > { %12480 = vmatpush3.bf16.msra.mxu1 %v13164_v61  ;;  %v14486_v16 = vpop.f32.mrf.mxu0  ;;  %v13189_v61 = vld [vmem:[%s16077_s6 + $0x210] sm:$0xff]  }
 0x198   : > { %12481 = vmatprep.subr.bf16.mxu1 %v13170_v63 }
 0x199   : > { %12402 = vmatmul.mubr.bf16.gmra.mxu1 %v13160_v3  ;;  %12446 = vmatmul.mubr.bf16.vlgmr.msra.gmra.mxu0 %v13161_v5  ;;  %v13200_v3 = vld [vmem:[%s16077_s6 + $0x1c0] sm:$0xff]   ;;  %v13195_v5 = vld [vmem:[%s16077_s6 + $0x208] sm:$0xff]  }
 0x19a   : > { %v12207_v9 = vpop.f32.mrf.mxu1  ;;  %12526 = vmatpush3.bf16.msra.mxu0 %v14436_v27  ;;  %12405 = vmatprep.mubr.bf16.mxu1 %v13162_v7  ;;  %v13167_v27 = vld [vmem:[#allocation2 + $0x28] sm:$0xff]  }
 0x19b   : > { %v2696_v13 = vadd.f32 %v12207_v9, %v14369_v47  ;;  %12449 = vmatprep.mubr.bf16.mxu0 %v13163_v11  ;;  %12527 = vmatprep.subr.bf16.mxu0 %v13165_v6  ;;  %v14493_v47 = vpop.f32.mrf.mxu0  ;;  %v13178_v9 = vld [vmem:[#allocation2 + $0x170] sm:$0xff]   ;;  %v13179_v11 = vld [vmem:[#allocation2 + $0x48] sm:$0xff]  }
 0x19c   : > { %v2687_v18 = vpop.f32.mrf.mxu1  ;;  %12482 = vmatpush3.bf16.msra.mxu1 %v13170_v63 }
 0x19d   : > { %v2688_v20 = vadd.f32 %v2687_v18, %v14374_v54  ;;  %12483 = vmatprep.subr.bf16.mxu1 %v13176_v12  ;;  %v13177_v54 = vld [vmem:[%s16077_s6 + $0x220] sm:$0xff]   ;;  %v13181_v18 = vld [vmem:[#allocation2 + $0x50] sm:$0xff]  }
 0x19e   : > { %v12208_v22 = vpop.f32.mrf.mxu1  ;;  %12528 = vmatpush3.bf16.msra.mxu0 %v13165_v6 }
 0x19f   : > { %v2699_v23 = vadd.f32 %v12208_v22, %v14379_v59  ;;  %12529 = vmatprep.subr.bf16.mxu0 %v13171_v19  ;;  %v13188_v59 = vld [vmem:[%s16077_s6 + $0x1d0] sm:$0xff]  }
 0x1a0   : > { %12484 = vmatpush3.bf16.msra.mxu1 %v13176_v12  ;;  %v14513_v46 = vpop.f32.mrf.mxu1 }
 0x1a1   : > { %12406 = vmatmul.mubr.bf16.gmra.mxu1 %v13166_v24  ;;  %12450 = vmatmul.mubr.bf16.gmra.mxu0 %v13167_v27 }
 0x1a2   : > { %v12255_v31 = vpop.f32.mrf.mxu0  ;;  %12409 = vmatprep.mubr.bf16.mxu1 %v13168_v29  ;;  %12453 = vmatprep.mubr.bf16.mxu0 %v13169_v14 }
 0x1a3   : > { %v14504_v35 = vadd.f32 %v12255_v31, %v2696_v13  ;;  %12530 = vmatpush3.bf16.msra.mxu0 %v13171_v19  ;;  %12485 = vmatprep.subr.bf16.mxu1 %v13182_v28  ;;  %v13180_v13 = vld [vmem:[#allocation2 + $0x178] sm:$0xff]   ;;  %v13201_v19 = vld [vmem:[%s16077_s6 + $0x200] sm:$0xff]  }
 0x1a4   : > { %v3041_v36 = vpop.f32.mrf.mxu0  ;;  %12531 = vmatprep.subr.bf16.mxu0 %v13177_v54  ;;  %12486 = vmatpush3.bf16.msra.mxu1 %v13182_v28  ;;  %v13184_v31 = vld [vmem:[#allocation2 + $0x180] sm:$0xff]  }
 0x1a5   : > { %v14506_v38 = vadd.f32 %v3041_v36, %v2688_v20  ;;  %12487 = vmatprep.subr.bf16.mxu1 %v13188_v59  ;;  %v13187_v36 = vld [vmem:[#allocation2 + $0x60] sm:$0xff]  }
 0x1a6   : > { %v12256_v43 = vpop.f32.mrf.mxu0 }
 0x1a7   : > { %v14511_v44 = vadd.f32 %v12256_v43, %v2699_v23  ;;  %12532 = vmatpush3.bf16.msra.mxu0 %v13177_v54 }
 0x1a8   : > { %12533 = vmatprep.subr.bf16.mxu0 %v13183_v39  ;;  %12488 = vmatpush3.bf16.msra.mxu1 %v13188_v59  ;;  %v14527_v7 = vpop.f32.mrf.mxu0  ;;  %v13185_v59 = vld [vmem:[#allocation2 + $0x58] sm:$0xff]  }
 0x1a9   : > { %v12211_v63 = vpop.f32.mrf.mxu1  ;;  %12410 = vmatmul.mubr.bf16.gmra.mxu1 %v13172_v48  ;;  %12454 = vmatmul.mubr.bf16.gmra.mxu0 %v13173_v52  ;;  %v13190_v48 = vld [vmem:[#allocation2 + $0x190] sm:$0xff]   ;;  %v13191_v52 = vld [vmem:[#allocation2 + $0x68] sm:$0xff]  }
 0x1aa   : > { %12413 = vmatprep.mubr.bf16.mxu1 %v13174_v58  ;;  %12457 = vmatprep.mubr.bf16.mxu0 %v13175_v60  ;;  %v2712_v12 = vadd.f32 %v12211_v63, %v14389_v2  ;;  %v13192_v58 = vld [vmem:[#allocation2 + $0x198] sm:$0xff]   ;;  %v13193_v60 = vld [vmem:[#allocation2 + $0x70] sm:$0xff]  }
 0x1ab   : > { %12534 = vmatpush3.bf16.msra.mxu0 %v13183_v39  ;;  %12489 = vmatprep.subr.bf16.mxu1 %v13194_v55  ;;  %v2703_v6 = vpop.f32.mrf.mxu1 }
 0x1ac   : > { %12535 = vmatprep.subr.bf16.mxu0 %v13189_v61  ;;  %12490 = vmatpush3.bf16.msra.mxu1 %v13194_v55  ;;  %v2704_v23 = vadd.f32 %v2703_v6, %v14391_v53  ;;  %v13186_v53 = vld [vmem:[#allocation2 + $0x188] sm:$0xff]  }
 0x1ad   : > { %12491 = vmatprep.subr.bf16.mxu1 %v13200_v3  ;;  %v12212_v20 = vpop.f32.mrf.mxu1 }
 0x1ae   : > { %v2715_v2 = vadd.f32 %v12212_v20, %v14396_v4  ;;  %v13198_v20 = vld [vmem:[#allocation2 + $0x80] sm:$0xff]  }
 0x1af   : > { %12536 = vmatpush3.bf16.msra.mxu0 %v13189_v61  ;;  %v14541_v54 = vpop.f32.mrf.mxu1 }
 0x1b0   : > { %12537 = vmatprep.subr.bf16.mxu0 %v13195_v5  ;;  %12492 = vmatpush3.bf16.msra.mxu1 %v13200_v3 }
 0x1b1   : > { %v12259_v22 = vpop.f32.mrf.mxu0  ;;  %12414 = vmatmul.mubr.bf16.gmra.mxu1 %v13178_v9  ;;  %12458 = vmatmul.mubr.bf16.gmra.mxu0 %v13179_v11 }
 0x1b2   : > { %v14534_v24 = vadd.f32 %v12259_v22, %v2712_v12  ;;  %12417 = vmatprep.mubr.bf16.mxu1 %v13180_v13  ;;  %12461 = vmatprep.mubr.bf16.mxu0 %v13181_v18  ;;  %v13196_v18 = vld [vmem:[#allocation2 + $0x1a0] sm:$0xff]  }
 0x1b3   : > { %v3057_v27 = vpop.f32.mrf.mxu0  ;;  %12538 = vmatpush3.bf16.msra.mxu0 %v13195_v5  ;;  %v13199_v22 = vld [vmem:[#allocation2 + $0xa0] sm:$0xff]  }
 0x1b4   : > { %v14537_v28 = vadd.f32 %v3057_v27, %v2704_v23  ;;  %12539 = vmatprep.subr.bf16.mxu0 %v13201_v19 }
 0x1b5   : > { %v12260_v29 = vpop.f32.mrf.mxu0 }
 0x1b6   : > { %v14539_v14 = vadd.f32 %v12260_v29, %v2715_v2  ;;  %v13202_v2 = vld [vmem:[#allocation2 + $0x88] sm:$0xff]  }
 0x1b7   : > { %12540 = vmatpush3.bf16.msra.mxu0 %v13201_v19  ;;  %v14543_v4 = vpop.f32.mrf.mxu0  ;;  %v13197_v19 = vld [vmem:[#allocation2 + $0x78] sm:$0xff]   ;;  %v13203_v29 = vld [vmem:[#allocation2 + $0xa8] sm:$0xff]  }
 0x1b9   : > { %v12215_v39 = vpop.f32.mrf.mxu1  ;;  %12418 = vmatmul.mubr.bf16.gmra.mxu1 %v13184_v31  ;;  %12462 = vmatmul.mubr.bf16.gmra.mxu0 %v13185_v59  ;;  %v13204_v59 = vld [vmem:[#allocation2 + $0xb0] sm:$0xff]  }
 0x1ba   : > { %12421 = vmatprep.mubr.bf16.mxu1 %v13186_v53  ;;  %12465 = vmatprep.mubr.bf16.mxu0 %v13187_v36  ;;  %v2728_v55 = vadd.f32 %v12215_v39, %v14409_v42  ;;  %v13205_v53 = vld [vmem:[#allocation2 + $0x130] sm:$0xff]  }
 0x1bb   : > { %v2719_v43 = vpop.f32.mrf.mxu1 }
 0x1bc   : > { %v2720_v3 = vadd.f32 %v2719_v43, %v14411_v15 }
 0x1bd   : > { %v12216_v61 = vpop.f32.mrf.mxu1 }
 0x1be   : > { %v2731_v9 = vadd.f32 %v12216_v61, %v14416_v17 }
 0x1bf   : > { %v14554_v42 = vpop.f32.mrf.mxu1 }
 0x1c1   : > { %v12263_v63 = vpop.f32.mrf.mxu0  ;;  %12422 = vmatmul.mubr.bf16.gmra.mxu1 %v13190_v48  ;;  %12466 = vmatmul.mubr.bf16.gmra.mxu0 %v13191_v52 }
 0x1c2   : > { %v14547_v5 = vadd.f32 %v12263_v63, %v2728_v55  ;;  %12425 = vmatprep.mubr.bf16.mxu1 %v13192_v58  ;;  %12469 = vmatprep.mubr.bf16.mxu0 %v13193_v60 }
 0x1c3   : > { %v3073_v6 = vpop.f32.mrf.mxu0 }
 0x1c4   : > { %v14550_v11 = vadd.f32 %v3073_v6, %v2720_v3  ;;  %v13206_v3 = vld [vmem:[#allocation2 + $0xb8] sm:$0xff]  }
 0x1c5   : > { %v12264_v12 = vpop.f32.mrf.mxu0  ;;  %v13207_v6 = vld [vmem:[#allocation2 + $0x138] sm:$0xff]  }
 0x1c6   : > { %v14552_v13 = vadd.f32 %v12264_v12, %v2731_v9  ;;  %v13209_v12 = vld [vmem:[#allocation2 + $0x140] sm:$0xff]  }
 0x1c7   : > { %v14556_v27 = vpop.f32.mrf.mxu0 }
 0x1c9   : > { %v12219_v23 = vpop.f32.mrf.mxu1  ;;  %12426 = vmatmul.mubr.bf16.gmra.mxu1 %v13196_v18  ;;  %12470 = vmatmul.mubr.bf16.gmra.mxu0 %v13197_v19  ;;  %v13210_v19 = vld [vmem:[#allocation2 + $0xc8] sm:$0xff]  }
 0x1ca   : > { %12473 = vmatprep.mubr.bf16.mxu0 %v13198_v20  ;;  %12493 = vmatprep.mubr.bf16.mxu1 %v13199_v22  ;;  %v2744_v31 = vadd.f32 %v12219_v23, %v14428_v25  ;;  %v13211_v20 = vld [vmem:[#allocation2 + $0x148] sm:$0xff]   ;;  %v13213_v23 = vld [vmem:[#allocation2 + $0x150] sm:$0xff]  }
 0x1cb   : > { %v2735_v15 = vpop.f32.mrf.mxu1 }
 0x1cc   : > { %v2736_v39 = vadd.f32 %v2735_v15, %v14431_v26  ;;  %v13208_v26 = vld [vmem:[#allocation2 + $0xc0] sm:$0xff]  }
 0x1cd   : > { %v12220_v17 = vpop.f32.mrf.mxu1 }
 0x1ce   : > { %v2747_v55 = vadd.f32 %v12220_v17, %v14438_v57 }
 0x1cf   : > { %v2738_v48 = vpop.f32.mrf.mxu1 }
 0x1d0   : > { %v2739_v25 = vadd.f32 %v2738_v48, %v14440_v30  ;;  %v13212_v30 = vld [vmem:[#allocation2 + $0xd0] sm:$0xff]   ;;  %v13214_v48 = vld [vmem:[#allocation2 + $0xd8] sm:$0xff]  }
 0x1d1   : > { %v12267_v36 = vpop.f32.mrf.mxu0  ;;  %12474 = vmatmul.mubr.bf16.gmra.mxu0 %v13202_v2  ;;  %12494 = vmatmul.mubr.bf16.vlgmr.msra.gmra.mxu1 %v13203_v29 }
 0x1d2   : > { %v14560_v43 = vadd.f32 %v12267_v36, %v2744_v31  ;;  %12497 = vmatprep.mubr.bf16.mxu1 %v13204_v59  ;;  %12541 = vmatprep.mubr.bf16.mxu0 %v13205_v53 }
 0x1d3   : > { %v3089_v52 = vpop.f32.mrf.mxu0 }
 0x1d4   : > { %v14563_v58 = vadd.f32 %v3089_v52, %v2736_v39  ;;  %v13215_v52 = vld [vmem:[#allocation2 + $0x158] sm:$0xff]  }
 0x1d5   : > { %v12268_v60 = vpop.f32.mrf.mxu0 }
 0x1d6   : > { %v14566_v61 = vadd.f32 %v12268_v60, %v2747_v55  ;;  %v13216_v55 = vld [vmem:[#allocation2 + $0xe0] sm:$0xff]  }
 0x1d7   : > { %v3092_v63 = vpop.f32.mrf.mxu0  ;;  %v13217_v60 = vld [vmem:[#allocation2 + $0x160] sm:$0xff]  }
 0x1d8   : > { %v14568_v9 = vadd.f32 %v3092_v63, %v2739_v25 }
 0x1d9   : > { %v12223_v18 = vpop.f32.mrf.mxu1  ;;  %12498 = vmatmul.mubr.bf16.gmra.mxu1 %v13206_v3  ;;  %12542 = vmatmul.mubr.bf16.vlgmr.msra.gmra.mxu0 %v13207_v6  ;;  %v13219_v3 = vld [vmem:[#allocation2 + $0x168] sm:$0xff]  }
 0x1da   : > { %12501 = vmatprep.mubr.bf16.mxu1 %v13208_v26  ;;  %12545 = vmatprep.mubr.bf16.mxu0 %v13209_v12  ;;  %v2760_v22 = vadd.f32 %v12223_v18, %v14443_v32  ;;  %v13220_v26 = vld [vmem:[#allocation2 + $0xf0] sm:$0xff]  }
 0x1db   : > { %v2751_v57 = vpop.f32.mrf.mxu1  ;;  %v13221_v12 = vld [vmem:[#allocation2 + $0x170] sm:$0xff]  }
 0x1dc   : > { %v2752_v2 = vadd.f32 %v2751_v57, %v14445_v33 }
 0x1dd   : > { %v12224_v15 = vpop.f32.mrf.mxu1 }
 0x1de   : > { %v2763_v59 = vadd.f32 %v12224_v15, %v14447_v34  ;;  %v13218_v34 = vld [vmem:[#allocation2 + $0xe8] sm:$0xff]  }
 0x1df   : > { %v14579_v32 = vpop.f32.mrf.mxu1 }
 0x1e1   : > { %v12271_v17 = vpop.f32.mrf.mxu0  ;;  %12502 = vmatmul.mubr.bf16.gmra.mxu1 %v13210_v19  ;;  %12546 = vmatmul.mubr.bf16.gmra.mxu0 %v13211_v20 }
 0x1e2   : > { %v14572_v29 = vadd.f32 %v12271_v17, %v2760_v22  ;;  %12505 = vmatprep.mubr.bf16.mxu1 %v13212_v30  ;;  %12549 = vmatprep.mubr.bf16.mxu0 %v13213_v23 }
 0x1e3   : > { %v3105_v31 = vpop.f32.mrf.mxu0 }
 0x1e4   : > { %v14575_v53 = vadd.f32 %v3105_v31, %v2752_v2  ;;  %v13222_v2 = vld [vmem:[#allocation2 + $0xf8] sm:$0xff]  }
 0x1e5   : > { %v12272_v36 = vpop.f32.mrf.mxu0  ;;  %v13223_v31 = vld [vmem:[#allocation2 + $0x178] sm:$0xff]  }
 0x1e6   : > { %v14577_v39 = vadd.f32 %v12272_v36, %v2763_v59  ;;  %v13224_v59 = vld [vmem:[#allocation2 + $0x100] sm:$0xff]  }
 0x1e7   : > { %v14581_v63 = vpop.f32.mrf.mxu0  ;;  %v13225_v36 = vld [vmem:[#allocation2 + $0x180] sm:$0xff]  }
 0x1e9   : > { %v12227_v25 = vpop.f32.mrf.mxu1  ;;  %12506 = vmatmul.mubr.bf16.gmra.mxu1 %v13214_v48  ;;  %12550 = vmatmul.mubr.bf16.gmra.mxu0 %v13215_v52 }
 0x1ea   : > { %12509 = vmatprep.mubr.bf16.mxu1 %v13216_v55  ;;  %12553 = vmatprep.mubr.bf16.mxu0 %v13217_v60  ;;  %v2776_v6 = vadd.f32 %v12227_v25, %v14451_v0  ;;  %v13226_v55 = vld [vmem:[#allocation2 + $0x108] sm:$0xff]  }
 0x1eb   : > { %v2767_v33 = vpop.f32.mrf.mxu1  ;;  %v13227_v60 = vld [vmem:[#allocation2 + $0x188] sm:$0xff]  }
 0x1ec   : > { %v2768_v19 = vadd.f32 %v2767_v33, %v14453_v40  ;;  %v13234_v40 = vld [vmem:[%s16078_s7 + $0x38] sm:$0xff]   ;;  %v13228_v33 = vld [vmem:[#allocation2 + $0x110] sm:$0xff]  }
 0x1ed   : > { %v12228_v18 = vpop.f32.mrf.mxu1  ;;  %12573 = vmatprep.subr.bf16.mxu1 %v13234_v40 }
 0x1ee   : > { %v2779_v30 = vadd.f32 %v12228_v18, %v14455_v41  ;;  %12574 = vmatpush3.bf16.msra.mxu1 %v13234_v40 }
 0x1ef   : > { %v14592_v0 = vpop.f32.mrf.mxu1 }
 0x1f1   : > { %v12275_v57 = vpop.f32.mrf.mxu0  ;;  %12510 = vmatmul.mubr.bf16.gmra.mxu1 %v13218_v34  ;;  %12554 = vmatmul.mubr.bf16.gmra.mxu0 %v13219_v3  ;;  %v13229_v34 = vld [vmem:[#allocation2 + $0x190] sm:$0xff]  }
 0x1f2   : > { %v14585_v20 = vadd.f32 %v12275_v57, %v2776_v6  ;;  %12513 = vmatprep.mubr.bf16.mxu1 %v13220_v26  ;;  %12557 = vmatprep.mubr.bf16.mxu0 %v13221_v12 }
 0x1f3   : > { %v3121_v22 = vpop.f32.mrf.mxu0 }
 0x1f4   : > { %v14588_v23 = vadd.f32 %v3121_v22, %v2768_v19 }
 0x1f5   : > { %v12276_v15 = vpop.f32.mrf.mxu0 }
 0x1f6   : > { %v14590_v17 = vadd.f32 %v12276_v15, %v2779_v30 }
 0x1f7   : > { %v14597_v52 = vpop.f32.mrf.mxu0 }
 0x1f9   : > { %v12231_v48 = vpop.f32.mrf.mxu1  ;;  %12514 = vmatmul.mubr.bf16.gmra.mxu1 %v13222_v2  ;;  %12558 = vmatmul.mubr.bf16.gmra.mxu0 %v13223_v31  ;;  %v13231_v2 = vld [vmem:[#allocation2 + $0x198] sm:$0xff]   ;;  %v13232_v31 = vld [vmem:[#allocation2 + $0x1a0] sm:$0xff]  }
 0x1fa   : > { %12517 = vmatprep.mubr.bf16.mxu1 %v13224_v59  ;;  %12561 = vmatprep.mubr.bf16.mxu0 %v13225_v36  ;;  %v2792_v25 = vadd.f32 %v12231_v48, %v14459_v49  ;;  %v13235_v49 = vld [vmem:[%s16078_s7 + $0x30] sm:$0xff]   ;;  %v13236_v36 = vld [vmem:[%s16078_s7 + $0x28] sm:$0xff]  }
 0x1fb   : > { %v2783_v41 = vpop.f32.mrf.mxu1  ;;  %12575 = vmatprep.subr.bf16.mxu1 %v13235_v49 }
 0x1fc   : > { %v2784_v26 = vadd.f32 %v2783_v41, %v14461_v50  ;;  %v13230_v50 = vld [vmem:[#allocation2 + $0x118] sm:$0xff]   ;;  %12576 = vmatpush3.bf16.msra.mxu1 %v13235_v49 }
 0x1fd   : > { %v12232_v3 = vpop.f32.mrf.mxu1  ;;  %12577 = vmatprep.subr.bf16.mxu1 %v13236_v36 }
 0x1fe   : > { %v2795_v57 = vadd.f32 %v12232_v3, %v14463_v51 }
 0x1ff   : > { %v14611_v15 = vpop.f32.mrf.mxu1 }
 0x200   : > { %12578 = vmatpush3.bf16.msra.mxu1 %v13236_v36 }
 0x201   : > { %v12279_v6 = vpop.f32.mrf.mxu0  ;;  %12518 = vmatmul.mubr.bf16.gmra.mxu1 %v13226_v55  ;;  %12562 = vmatmul.mubr.bf16.gmra.mxu0 %v13227_v60  ;;  %v13233_v55 = vld [vmem:[#allocation2 + $0x1a8] sm:$0xff]  }
 0x202   : > { %v14601_v12 = vadd.f32 %v12279_v6, %v2792_v25  ;;  %12521 = vmatprep.mubr.bf16.mxu1 %v13228_v33  ;;  %12565 = vmatprep.mubr.bf16.mxu0 %v13229_v34 }
 0x203   : > { %v3137_v18 = vpop.f32.mrf.mxu0 }
 0x204   : > { %v14604_v19 = vadd.f32 %v3137_v18, %v2784_v26 }
 0x205   : > { %v12280_v22 = vpop.f32.mrf.mxu0 }
 0x206   : > { %v14609_v30 = vadd.f32 %v12280_v22, %v2795_v57 }
 0x207   : > { %v14616_v40 = vpop.f32.mrf.mxu0 }
 0x209   : > { %v12235_v59 = vpop.f32.mrf.mxu1  ;;  %12522 = vmatmul.mubr.bf16.gmra.mxu1 %v13230_v50  ;;  %12566 = vmatmul.mubr.bf16.gmra.mxu0 %v13231_v2 }
 0x20a   : > { %12569 = vmatprep.mubr.bf16.mxu0 %v13232_v31  ;;  %v2808_v60 = vadd.f32 %v12235_v59, %v14470_v10  ;;  %v13237_v10 = vld [vmem:[%s16078_s7 + $0x20] sm:$0xff]  }
 0x20b   : > { %v2799_v51 = vpop.f32.mrf.mxu1  ;;  %12579 = vmatprep.subr.bf16.mxu1 %v13237_v10 }
 0x20c   : > { %v2800_v34 = vadd.f32 %v2799_v51, %v14476_v1  ;;  %12580 = vmatpush3.bf16.msra.mxu1 %v13237_v10 }
 0x20d   : > { %v12236_v48 = vpop.f32.mrf.mxu1 }
 0x20e   : > { %v2811_v57 = vadd.f32 %v12236_v48, %v14486_v16 }
 0x20f   : > { %v14618_v41 = vpop.f32.mrf.mxu1 }
 0x211   : > { %v12283_v25 = vpop.f32.mrf.mxu0  ;;  %v12303_v33 = vpop.f32.mrf.mxu1  ;;  %12570 = vmatmul.mubr.bf16.gmra.mxu0 %v13233_v55 }
 0x212   : > { %v14622_v3 = vadd.f32 %v12283_v25, %v2808_v60  ;;  %v3556_v6 = vadd.f32 %v12303_v33, %v14504_v35  ;;  %v13468_v60 = vmov 0.0  }
 0x213   : > { %v3153_v26 = vpop.f32.mrf.mxu0  ;;  %v3427_v18 = vpop.f32.mrf.mxu1  ;;  %313 = vst [vmem:[#allocation3 + $0x30] sm:$0xff] %v13468_v60  ;;  %314 = vst [vmem:[#allocation3 + $0x38] sm:$0xff] %v13468_v60 }
 0x214   : > { %v14626_v49 = vadd.f32 %v3153_v26, %v2800_v34  ;;  %v14629_v22 = vadd.f32 %v3427_v18, %v14506_v38  ;;  %v13239_v38 = vld [vmem:[%s16078_s7 + $0x78] sm:$0xff]   ;;  %307 = vst [vmem:[#allocation3] sm:$0xff] %v13468_v60  ;;  %308 = vst [vmem:[#allocation3 + $0x8] sm:$0xff] %v13468_v60 }
 0x215   : > { %v12284_v50 = vpop.f32.mrf.mxu0  ;;  %v12304_v2 = vpop.f32.mrf.mxu1  ;;  %12621 = vmatprep.subr.bf16.mxu0 %v13239_v38  ;;  %309 = vst [vmem:[#allocation3 + $0x10] sm:$0x3] %v13468_v60  ;;  %310 = vst [vmem:[#allocation3 + $0x18] sm:$0xff] %v13468_v60 }
 0x216   : > { %v14634_v1 = vadd.f32 %v12284_v50, %v2811_v57  ;;  %v14637_v31 = vadd.f32 %v12304_v2, %v14511_v44  ;;  %12622 = vmatpush3.bf16.msra.mxu0 %v13239_v38  ;;  %311 = vst [vmem:[#allocation3 + $0x20] sm:$0xff] %v13468_v60  ;;  %312 = vst [vmem:[#allocation3 + $0x28] sm:$0x3] %v13468_v60 }
 0x217   : > { %v14639_v35 = vpop.f32.mrf.mxu0  ;;  %v14641_v16 = vpop.f32.mrf.mxu1  ;;  %315 = vst [vmem:[#allocation3 + $0x40] sm:$0x3] %v13468_v60  ;;  %316 = vst [vmem:[#allocation3 + $0x48] sm:$0xff] %v13468_v60 }
 0x218   : > { %317 = vst [vmem:[#allocation3 + $0x50] sm:$0xff] %v13468_v60  ;;  %318 = vst [vmem:[#allocation3 + $0x58] sm:$0x3] %v13468_v60 }
 0x219   : > { %v12307_v59 = vpop.f32.mrf.mxu1  ;;  %v12351_v51 = vpop.f32.mrf.mxu0  ;;  %319 = vst [vmem:[#allocation3 + $0x60] sm:$0xff] %v13468_v60  ;;  %320 = vst [vmem:[#allocation3 + $0x68] sm:$0xff] %v13468_v60 }
 0x21a   : > { %v14647_v36 = vadd.f32 %v12307_v59, %v14534_v24  ;;  %v14649_v48 = vadd.f32 %v12351_v51, %v3556_v6  ;;  %321 = vst [vmem:[#allocation3 + $0x70] sm:$0x3] %v13468_v60  ;;  %322 = vst [vmem:[#allocation3 + $0x78] sm:$0xff] %v13468_v60  ;;  %v13240_v24 = vld [vmem:[%s16078_s7 + $0x70] sm:$0xff]   ;;  %v13243_v59 = vld [vmem:[%s16078_s7 + $0x60] sm:$0xff]  }
 0x21b   : > { %v3443_v44 = vpop.f32.mrf.mxu1  ;;  %v3813_v55 = vpop.f32.mrf.mxu0  ;;  %323 = vst [vmem:[#allocation3 + $0x80] sm:$0xff] %v13468_v60  ;;  %324 = vst [vmem:[#allocation3 + $0x88] sm:$0x3] %v13468_v60  ;;  %12623 = vmatprep.subr.bf16.mxu0 %v13240_v24 }
 0x21c   : > { %325 = vst [vmem:[#allocation3 + $0x90] sm:$0xff] %v13468_v60  ;;  %326 = vst [vmem:[#allocation3 + $0x98] sm:$0xff] %v13468_v60  ;;  %v3558_v25 = vadd.f32 %v3443_v44, %v14537_v28  ;;  %v14656_v33 = vadd.f32 %v3813_v55, %v14629_v22  ;;  %12624 = vmatpush3.bf16.msra.mxu0 %v13240_v24  ;;  %v13242_v28 = vld [vmem:[%s16078_s7 + $0x68] sm:$0xff]  }
 0x21d   : > { %327 = vst [vmem:[#allocation3 + $0xa0] sm:$0x3] %v13468_v60  ;;  %328 = vst [vmem:[#allocation3 + $0xa8] sm:$0xff] %v13468_v60  ;;  %v12308_v34 = vpop.f32.mrf.mxu1  ;;  %v12352_v6 = vpop.f32.mrf.mxu0  ;;  %12625 = vmatprep.subr.bf16.mxu0 %v13242_v28 }
 0x21e   : > { %329 = vst [vmem:[#allocation3 + $0xb0] sm:$0xff] %v13468_v60  ;;  %330 = vst [vmem:[#allocation3 + $0xb8] sm:$0x3] %v13468_v60  ;;  %v3561_v26 = vadd.f32 %v12308_v34, %v14539_v14  ;;  %v14660_v18 = vadd.f32 %v12352_v6, %v14637_v31  ;;  %v13245_v6 = vld [vmem:[%s16078_s7 + $0x58] sm:$0xff]  }
 0x21f   : > { %331 = vst [vmem:[#allocation3 + $0xc0] sm:$0xff] %v13468_v60  ;;  %332 = vst [vmem:[#allocation3 + $0xc8] sm:$0xff] %v13468_v60  ;;  %v14662_v57 = vpop.f32.mrf.mxu1  ;;  %v14664_v10 = vpop.f32.mrf.mxu0 }
 0x220   : > { %333 = vst [vmem:[#allocation3 + $0xd0] sm:$0x3] %v13468_v60  ;;  %334 = vst [vmem:[#allocation3 + $0xd8] sm:$0xff] %v13468_v60  ;;  %12626 = vmatpush3.bf16.msra.mxu0 %v13242_v28 }
 0x221   : > { %335 = vst [vmem:[#allocation3 + $0xe0] sm:$0xff] %v13468_v60  ;;  %336 = vst [vmem:[#allocation3 + $0xe8] sm:$0x3] %v13468_v60  ;;  %v12311_v50 = vpop.f32.mrf.mxu1  ;;  %v12355_v22 = vpop.f32.mrf.mxu0  ;;  %12627 = vmatprep.subr.bf16.mxu0 %v13243_v59 }
 0x222   : > { %337 = vst [vmem:[#allocation3 + $0xf0] sm:$0xff] %v13468_v60  ;;  %338 = vst [vmem:[#allocation3 + $0xf8] sm:$0xff] %v13468_v60  ;;  %v3564_v2 = vadd.f32 %v12311_v50, %v14547_v5  ;;  %v14671_v38 = vadd.f32 %v12355_v22, %v14647_v36  ;;  %v13238_v22 = vld [vmem:[%s16078_s7 + $0x18] sm:$0xff]  }
 0x223   : > { %339 = vst [vmem:[#allocation3 + $0x100] sm:$0x3] %v13468_v60  ;;  %340 = vst [vmem:[#allocation3 + $0x108] sm:$0xff] %v13468_v60  ;;  %v3459_v14 = vpop.f32.mrf.mxu1  ;;  %v3829_v31 = vpop.f32.mrf.mxu0  ;;  %12581 = vmatprep.subr.bf16.mxu1 %v13238_v22 }
 0x224   : > { %341 = vst [vmem:[#allocation3 + $0x110] sm:$0xff] %v13468_v60  ;;  %342 = vst [vmem:[#allocation3 + $0x118] sm:$0x3] %v13468_v60  ;;  %v3562_v51 = vadd.f32 %v3459_v14, %v14550_v11  ;;  %v14677_v44 = vadd.f32 %v3829_v31, %v3558_v25  ;;  %12628 = vmatpush3.bf16.msra.mxu0 %v13243_v59  ;;  %v13246_v14 = vld [vmem:[%s16078_s7 + $0x50] sm:$0xff]   ;;  %12582 = vmatpush3.bf16.msra.mxu1 %v13238_v22 }
 0x225   : > { %343 = vst [vmem:[#allocation3 + $0x120] sm:$0xff] %v13468_v60  ;;  %344 = vst [vmem:[#allocation3 + $0x128] sm:$0xff] %v13468_v60  ;;  %v12312_v55 = vpop.f32.mrf.mxu1  ;;  %12629 = vmatprep.subr.bf16.mxu0 %v13245_v6  ;;  %v13241_v22 = vld [vmem:[%s16078_s7 + $0x10] sm:$0xff]  }
 0x226   : > { %345 = vst [vmem:[#allocation3 + $0x130] sm:$0x3] %v13468_v60  ;;  %346 = vst [vmem:[#allocation3 + $0x138] sm:$0xff] %v13468_v60  ;;  %v3565_v24 = vadd.f32 %v12312_v55, %v14552_v13  ;;  %v5873_v55 = vld [vmem:[#allocation3 + $0x1] sm:$0xff]  ;;  %12583 = vmatprep.subr.bf16.mxu1 %v13241_v22 }
 0x227   : > { %347 = vst [vmem:[#allocation3 + $0x140] sm:$0xff] %v13468_v60  ;;  %348 = vst [vmem:[#allocation3 + $0x148] sm:$0x3] %v13468_v60  ;;  %v14682_v36 = vpop.f32.mrf.mxu1 }
 0x228   : > { %349 = vst [vmem:[#allocation3 + $0x150] sm:$0xff] %v13468_v60  ;;  %350 = vst [vmem:[#allocation3 + $0x158] sm:$0xff] %v13468_v60  ;;  %12630 = vmatpush3.bf16.msra.mxu0 %v13245_v6  ;;  %12584 = vmatpush3.bf16.msra.mxu1 %v13241_v22 }
 0x229   : > { %351 = vst [vmem:[#allocation3 + $0x160] sm:$0x3] %v13468_v60  ;;  %352 = vst [vmem:[#allocation3 + $0x168] sm:$0xff] %v13468_v60  ;;  %v12315_v28 = vpop.f32.mrf.mxu1  ;;  %12631 = vmatprep.subr.bf16.mxu0 %v13246_v14 }
 0x22a   : > { %353 = vst [vmem:[#allocation3 + $0x170] sm:$0xff] %v13468_v60  ;;  %354 = vst [vmem:[#allocation3 + $0x178] sm:$0x3] %v13468_v60  ;;  %v3568_v25 = vadd.f32 %v12315_v28, %v14560_v43 }
 0x22b   : > { %355 = vst [vmem:[#allocation3 + $0x180] sm:$0xff] %v13468_v60  ;;  %356 = vst [vmem:[#allocation3 + $0x188] sm:$0xff] %v13468_v60  ;;  %v3475_v13 = vpop.f32.mrf.mxu1 }
 0x22c   : > { %357 = vst [vmem:[#allocation3 + $0x190] sm:$0x3] %v13468_v60  ;;  %358 = vst [vmem:[#allocation3 + $0x198] sm:$0xff] %v13468_v60  ;;  %v3566_v31 = vadd.f32 %v3475_v13, %v14563_v58  ;;  %12632 = vmatpush3.bf16.msra.mxu0 %v13246_v14  ;;  %v13248_v58 = vld [vmem:[%s16078_s7 + $0x48] sm:$0xff]   ;;  %v13249_v14 = vld [vmem:[%s16078_s7 + $0x40] sm:$0xff]  }
 0x22d   : > { %359 = vst [vmem:[#allocation3 + $0x1a0] sm:$0xff] %v13468_v60  ;;  %360 = vst [vmem:[#allocation3 + $0x1a8] sm:$0x3] %v13468_v60  ;;  %v12356_v60 = vpop.f32.mrf.mxu0  ;;  %v12316_v43 = vpop.f32.mrf.mxu1  ;;  %12633 = vmatprep.subr.bf16.mxu0 %v13248_v58 }
 0x22e   : > { %v14680_v5 = vadd.f32 %v12356_v60, %v3561_v26  ;;  %v5874_v60 = vld [vmem:[#allocation3 + $0x9] sm:$0xff]  ;;  %v3569_v28 = vadd.f32 %v12316_v43, %v14566_v61 }
 0x22f   : > { %v14684_v34 = vpop.f32.mrf.mxu0  ;;  %v11430_v6 = vpack.c.bf16 %v5874_v60, %v5873_v55 }
 0x230   : > { %16082 = vst [vmem:[#allocation5_spill] sm:$0xff] %v14680_v5  ;;  %12634 = vmatpush3.bf16.msra.mxu0 %v13248_v58 }
 0x231   : > { %v12359_v11 = vpop.f32.mrf.mxu0  ;;  %11431 = vst [vmem:[#allocation4 + $0x90] sm:$0xff] %v11430_v6   ;;  %12635 = vmatprep.subr.bf16.mxu0 %v13249_v14 }
 0x232   : > { %v14690_v50 = vadd.f32 %v12359_v11, %v3564_v2 }
 0x233   : > { %v3845_v26 = vpop.f32.mrf.mxu0 }
 0x234   : > { %16083 = vst [vmem:[#allocation6_spill] sm:$0xff] %v14690_v50  ;;  %v14699_v59 = vadd.f32 %v3845_v26, %v3562_v51  ;;  %v14704_v50 = vpop.f32.mrf.mxu1  ;;  %12636 = vmatpush3.bf16.msra.mxu0 %v13249_v14 }
 0x235   : > { %v12360_v2 = vpop.f32.mrf.mxu0 }
 0x236   : > { %16084 = vst [vmem:[#allocation7_spill] sm:$0xff] %v14699_v59  ;;  %v14702_v11 = vadd.f32 %v12360_v2, %v3565_v24  ;;  %v12319_v51 = vpop.f32.mrf.mxu1 }
 0x237   : > { %v14706_v5 = vpop.f32.mrf.mxu0  ;;  %v3572_v26 = vadd.f32 %v12319_v51, %v14572_v29 }
 0x238   : > { %16085 = vst [vmem:[#allocation8_spill] sm:$0xff] %v14702_v11  ;;  %v3491_v61 = vpop.f32.mrf.mxu1  ;;  %v13251_v58 = vld [vmem:[#allocation4 + $0x90] sm:$0xff]  }
 0x239   : > { %v12363_v13 = vpop.f32.mrf.mxu0  ;;  %v3570_v60 = vadd.f32 %v3491_v61, %v14575_v53  ;;  %v13244_v53 = vld [vmem:[%s16078_s7 + $0x8] sm:$0xff]   ;;  %12637 = vmatprep.mubr.bf16.mxu0 %v13251_v58 }
 0x23a   : > { %v14712_v55 = vadd.f32 %v12363_v13, %v3568_v25  ;;  %v12320_v2 = vpop.f32.mrf.mxu1  ;;  %12585 = vmatprep.subr.bf16.mxu1 %v13244_v53 }
 0x23b   : > { %v3861_v24 = vpop.f32.mrf.mxu0  ;;  %v3573_v29 = vadd.f32 %v12320_v2, %v14577_v39  ;;  %12586 = vmatpush3.bf16.msra.mxu1 %v13244_v53  ;;  %v13247_v2 = vld [vmem:[%s16078_s7] sm:$0xff]  }
 0x23c   : > { %16086 = vst [vmem:[#allocation9_spill] sm:$0xff] %v14712_v55  ;;  %v14721_v43 = vadd.f32 %v3861_v24, %v3566_v31  ;;  %v14726_v51 = vpop.f32.mrf.mxu1  ;;  %v13469_v31 = vmov 0.0|0.0   ;;  %12587 = vmatprep.subr.bf16.mxu1 %v13247_v2 }
 0x23d   : > { %v12364_v6 = vpop.f32.mrf.mxu0  ;;  %11341 = vst [vmem:[#allocation4] sm:$0xff] %v13469_v31  }
 0x23e   : > { %16087 = vst [vmem:[#allocation10_spill] sm:$0xff] %v14721_v43  ;;  %v14724_v25 = vadd.f32 %v12364_v6, %v3569_v28  ;;  %v12323_v61 = vpop.f32.mrf.mxu1 }
 0x23f   : > { %v14728_v13 = vpop.f32.mrf.mxu0  ;;  %v3576_v39 = vadd.f32 %v12323_v61, %v14585_v20  ;;  %12588 = vmatpush3.bf16.msra.mxu1 %v13247_v2 }
 0x240   : > { %16088 = vst [vmem:[#allocation11_spill] sm:$0xff] %v14724_v25  ;;  %v3507_v22 = vpop.f32.mrf.mxu1 }
 0x241   : > { %v12367_v24 = vpop.f32.mrf.mxu0  ;;  %v3574_v6 = vadd.f32 %v3507_v22, %v14588_v23 }
 0x242   : > { %v14734_v28 = vadd.f32 %v12367_v24, %v3572_v26  ;;  %v12324_v31 = vpop.f32.mrf.mxu1 }
 0x243   : > { %v3877_v14 = vpop.f32.mrf.mxu0  ;;  %v3577_v43 = vadd.f32 %v12324_v31, %v14590_v17 }
 0x244   : > { %16089 = vst [vmem:[#allocation12_spill] sm:$0xff] %v14734_v28  ;;  %v14740_v25 = vadd.f32 %v3877_v14, %v3570_v60  ;;  %v13250_v20 = vld [vmem:[#allocation4] sm:$0xff]   ;;  %v14745_v26 = vpop.f32.mrf.mxu1 }
 0x245   : > { %v12368_v58 = vpop.f32.mrf.mxu0  ;;  %12589 = vmatprep.mubr.bf16.mxu1 %v13250_v20 }
 0x246   : > { %16090 = vst [vmem:[#allocation13_spill] sm:$0xff] %v14740_v25  ;;  %v14743_v55 = vadd.f32 %v12368_v58, %v3573_v29  ;;  %v12327_v61 = vpop.f32.mrf.mxu1 }
 0x247   : > { %v14747_v53 = vpop.f32.mrf.mxu0  ;;  %v3580_v23 = vadd.f32 %v12327_v61, %v14601_v12 }
 0x248   : > { %16091 = vst [vmem:[#allocation14_spill] sm:$0xff] %v14743_v55  ;;  %v3523_v22 = vpop.f32.mrf.mxu1 }
 0x249   : > { %v12371_v24 = vpop.f32.mrf.mxu0  ;;  %v3578_v25 = vadd.f32 %v3523_v22, %v14604_v19 }
 0x24a   : > { %v14750_v60 = vadd.f32 %v12371_v24, %v3576_v39  ;;  %v12328_v29 = vpop.f32.mrf.mxu1 }
 0x24b   : > { %v3893_v14 = vpop.f32.mrf.mxu0  ;;  %v3581_v31 = vadd.f32 %v12328_v29, %v14609_v30 }
 0x24c   : > { %16092 = vst [vmem:[#allocation15_spill] sm:$0xff] %v14750_v60  ;;  %v14753_v17 = vadd.f32 %v3893_v14, %v3574_v6  ;;  %v14758_v55 = vpop.f32.mrf.mxu1  ;;  %v14768_v6 = vld [vmem:[%s16078_s7 + $0xb8] sm:$0xff]  }
 0x24d   : > { %v12372_v2 = vpop.f32.mrf.mxu0  ;;  %16096 = vst [vmem:[#allocation19_spill] sm:$0xff] %v14768_v6  ;;  %12669 = vmatprep.subr.bf16.mxu1 %v14768_v6 }
 0x24e   : > { %16093 = vst [vmem:[#allocation16_spill] sm:$0xff] %v14753_v17  ;;  %v14756_v58 = vadd.f32 %v12372_v2, %v3577_v43  ;;  %v12331_v28 = vpop.f32.mrf.mxu1 }
 0x24f   : > { %v14760_v20 = vpop.f32.mrf.mxu0  ;;  %v3584_v39 = vadd.f32 %v12331_v28, %v14622_v3 }
 0x250   : > { %16094 = vst [vmem:[#allocation17_spill] sm:$0xff] %v14756_v58  ;;  %v3539_v24 = vpop.f32.mrf.mxu1 }
 0x251   : > { %v12375_v12 = vpop.f32.mrf.mxu0  ;;  %v3582_v30 = vadd.f32 %v3539_v24, %v14626_v49 }
 0x252   : > { %v14763_v61 = vadd.f32 %v12375_v12, %v3580_v23  ;;  %v12332_v22 = vpop.f32.mrf.mxu1 }
 0x253   : > { %v3909_v19 = vpop.f32.mrf.mxu0  ;;  %v3585_v29 = vadd.f32 %v12332_v22, %v14634_v1 }
 0x254   : > { %16095 = vst [vmem:[#allocation18_spill] sm:$0xff] %v14763_v61  ;;  %v14771_v43 = vadd.f32 %v3909_v19, %v3578_v25  ;;  %v14777_v28 = vpop.f32.mrf.mxu1 }
 0x255   : > { %v12376_v14 = vpop.f32.mrf.mxu0 }
 0x256   : > { %16097 = vst [vmem:[#allocation20_spill] sm:$0xff] %v14771_v43  ;;  %v14775_v3 = vadd.f32 %v12376_v14, %v3581_v31  ;;  %v14781_v12 = vpop.f32.mrf.mxu1  ;;  %v14800_v14 = vld [vmem:[%s16078_s7 + $0xf8] sm:$0xff]  }
 0x257   : > { %v14779_v23 = vpop.f32.mrf.mxu0  ;;  %16102 = vst [vmem:[#allocation25_spill] sm:$0xff] %v14800_v14  ;;  %12717 = vmatprep.subr.bf16.mxu0 %v14800_v14 }
 0x258   : > { %16098 = vst [vmem:[#allocation21_spill] sm:$0xff] %v14775_v3  ;;  %v14785_v25 = vpop.f32.mrf.mxu1 }
 0x259   : > { %v12379_v2 = vpop.f32.mrf.mxu0 }
 0x25a   : > { %v14783_v61 = vadd.f32 %v12379_v2, %v3584_v39  ;;  %v14789_v6 = vpop.f32.mrf.mxu1 }
 0x25b   : > { %v3925_v49 = vpop.f32.mrf.mxu0 }
 0x25c   : > { %16099 = vst [vmem:[#allocation22_spill] sm:$0xff] %v14783_v61  ;;  %v14787_v24 = vadd.f32 %v3925_v49, %v3582_v30  ;;  %v14795_v22 = vpop.f32.mrf.mxu1 }
 0x25d   : > { %v12380_v19 = vpop.f32.mrf.mxu0 }
 0x25e   : > { %16100 = vst [vmem:[#allocation23_spill] sm:$0xff] %v14787_v24  ;;  %v14791_v1 = vadd.f32 %v12380_v19, %v3585_v29  ;;  %v14802_v39 = vpop.f32.mrf.mxu1 }
 0x25f   : > { %v14793_v31 = vpop.f32.mrf.mxu0 }
 0x260   : > { %16101 = vst [vmem:[#allocation24_spill] sm:$0xff] %v14791_v1  ;;  %v14807_v30 = vpop.f32.mrf.mxu1 }
 0x261   : > { %v14804_v2 = vpop.f32.mrf.mxu0  ;;  %16103 = vst [vmem:[#allocation26_spill] sm:$0xff] %v14807_v30 }
 0x262   : > { %v14811_v29 = vpop.f32.mrf.mxu1 }
 0x263   : > { %v14809_v49 = vpop.f32.mrf.mxu0  ;;  %16104 = vst [vmem:[#allocation27_spill] sm:$0xff] %v14811_v29 }
 0x264   : > { %v14815_v1 = vpop.f32.mrf.mxu1 }
 0x265   : > { %v14813_v19 = vpop.f32.mrf.mxu0  ;;  %16105 = vst [vmem:[#allocation28_spill] sm:$0xff] %v14815_v1 }
 0x266   : > { %v14819_v61 = vpop.f32.mrf.mxu1 }
 0x267   : > { %v14817_v24 = vpop.f32.mrf.mxu0  ;;  %16107 = vst [vmem:[#allocation30_spill] sm:$0xff] %v14819_v61 }
 0x268   : > { %16106 = vst [vmem:[#allocation29_spill] sm:$0xff] %v14817_v24  ;;  %v14823_v43 = vpop.f32.mrf.mxu1 }
 0x269   : > { %v14821_v3 = vpop.f32.mrf.mxu0  ;;  %16109 = vst [vmem:[#allocation32_spill] sm:$0xff] %v14823_v43 }
 0x26a   : > { %16108 = vst [vmem:[#allocation31_spill] sm:$0xff] %v14821_v3  ;;  %v14827_v14 = vpop.f32.mrf.mxu1 }
 0x26b   : > { %v14825_v58 = vpop.f32.mrf.mxu0  ;;  %16111 = vst [vmem:[#allocation34_spill] sm:$0xff] %v14827_v14 }
 0x26c   : > { %16110 = vst [vmem:[#allocation33_spill] sm:$0xff] %v14825_v58  ;;  %v14831_v60 = vpop.f32.mrf.mxu1 }
 0x26d   : > { %v14829_v17 = vpop.f32.mrf.mxu0  ;;  %16113 = vst [vmem:[#allocation36_spill] sm:$0xff] %v14831_v60 }
 0x26e   : > { %16112 = vst [vmem:[#allocation35_spill] sm:$0xff] %v14829_v17  ;;  %v14835_v59 = vpop.f32.mrf.mxu1 }
 0x26f   : > { %v14833_v11 = vpop.f32.mrf.mxu0  ;;  %16115 = vst [vmem:[#allocation38_spill] sm:$0xff] %v14835_v59 }
 0x270   : > { %16114 = vst [vmem:[#allocation37_spill] sm:$0xff] %v14833_v11  ;;  %v14839_v24 = vpop.f32.mrf.mxu1 }
 0x271   : > { %v14837_v1 = vpop.f32.mrf.mxu0  ;;  %16117 = vst [vmem:[#allocation40_spill] sm:$0xff] %v14839_v24  ;;  %v6091_v24 = vld [vmem:[#allocation3 + $0xa] sm:$0xff] }
 0x272   : > { %16116 = vst [vmem:[#allocation39_spill] sm:$0xff] %v14837_v1  ;;  %v14843_v3 = vpop.f32.mrf.mxu1  ;;  %v6090_v1 = vld [vmem:[#allocation3 + $0x2] sm:$0xff] }
 0x273   : > { %v14841_v61 = vpop.f32.mrf.mxu0  ;;  %16119 = vst [vmem:[#allocation42_spill] sm:$0xff] %v14843_v3  ;;  %v11520_v3 = vpack.c.bf16 %v6091_v24, %v6090_v1 }
 0x274   : > { %16118 = vst [vmem:[#allocation41_spill] sm:$0xff] %v14841_v61  ;;  %v14847_v58 = vpop.f32.mrf.mxu1 }
 0x275   : > { %v14845_v43 = vpop.f32.mrf.mxu0  ;;  %16121 = vst [vmem:[#allocation44_spill] sm:$0xff] %v14847_v58  ;;  %11521 = vst [vmem:[#allocation4 + $0x120] sm:$0xff] %v11520_v3  }
 0x276   : > { %16120 = vst [vmem:[#allocation43_spill] sm:$0xff] %v14845_v43  ;;  %v14851_v17 = vpop.f32.mrf.mxu1 }
 0x277   : > { %v14849_v14 = vpop.f32.mrf.mxu0  ;;  %16123 = vst [vmem:[#allocation46_spill] sm:$0xff] %v14851_v17 }
 0x278   : > { %16122 = vst [vmem:[#allocation45_spill] sm:$0xff] %v14849_v14  ;;  %v14855_v11 = vpop.f32.mrf.mxu1 }
 0x279   : > { %v14853_v60 = vpop.f32.mrf.mxu0  ;;  %16125 = vst [vmem:[#allocation48_spill] sm:$0xff] %v14855_v11 }
 0x27a   : > { %16124 = vst [vmem:[#allocation47_spill] sm:$0xff] %v14853_v60  ;;  %v14859_v29 = vpop.f32.mrf.mxu1 }
 0x27b   : > { %v14857_v59 = vpop.f32.mrf.mxu0  ;;  %16127 = vst [vmem:[#allocation50_spill] sm:$0xff] %v14859_v29 }
 0x27c   : > { %16126 = vst [vmem:[#allocation49_spill] sm:$0xff] %v14857_v59  ;;  %v14863_v43 = vpop.f32.mrf.mxu1 }
 0x27d   : > { %v14861_v61 = vpop.f32.mrf.mxu0 }
 0x27e   : > { %v14867_v14 = vpop.f32.mrf.mxu1 }
 0x27f   : > { %v14865_v58 = vpop.f32.mrf.mxu0  ;;  %16129 = vst [vmem:[#allocation52_spill] sm:$0xff] %v14867_v14 }
 0x280   : > { %16128 = vst [vmem:[#allocation51_spill] sm:$0xff] %v14865_v58  ;;  %v14871_v60 = vpop.f32.mrf.mxu1 }
 0x281   : > { %v14869_v17 = vpop.f32.mrf.mxu0  ;;  %16131 = vst [vmem:[#allocation54_spill] sm:$0xff] %v14871_v60 }
 0x282   : > { %16130 = vst [vmem:[#allocation53_spill] sm:$0xff] %v14869_v17  ;;  %v14875_v59 = vpop.f32.mrf.mxu1 }
 0x283   : > { %v14873_v11 = vpop.f32.mrf.mxu0  ;;  %16133 = vst [vmem:[#allocation56_spill] sm:$0xff] %v14875_v59 }
 0x284   : > { %16132 = vst [vmem:[#allocation55_spill] sm:$0xff] %v14873_v11  ;;  %v14879_v29 = vpop.f32.mrf.mxu1 }
 0x285   : > { %v14877_v30 = vpop.f32.mrf.mxu0  ;;  %16135 = vst [vmem:[#allocation58_spill] sm:$0xff] %v14879_v29 }
 0x286   : > { %16134 = vst [vmem:[#allocation57_spill] sm:$0xff] %v14877_v30  ;;  %v14883_v1 = vpop.f32.mrf.mxu1 }
 0x287   : > { %v14881_v24 = vpop.f32.mrf.mxu0  ;;  %16137 = vst [vmem:[#allocation60_spill] sm:$0xff] %v14883_v1 }
 0x288   : > { %16136 = vst [vmem:[#allocation59_spill] sm:$0xff] %v14881_v24  ;;  %v14887_v3 = vpop.f32.mrf.mxu1 }
 0x289   : > { %v14885_v58 = vpop.f32.mrf.mxu0  ;;  %16139 = vst [vmem:[#allocation62_spill] sm:$0xff] %v14887_v3 }
 0x28a   : > { %16138 = vst [vmem:[#allocation61_spill] sm:$0xff] %v14885_v58  ;;  %v14891_v17 = vpop.f32.mrf.mxu1 }
 0x28b   : > { %v14889_v14 = vpop.f32.mrf.mxu0  ;;  %16140 = vst [vmem:[#allocation63_spill] sm:$0xff] %v14891_v17  ;;  %v2691_v17 = vadd.f32 %v14513_v46, %v14384_v62 }
 0x28c   : > { %v14895_v11 = vpop.f32.mrf.mxu1 }
 0x28d   : > { %v14893_v60 = vpop.f32.mrf.mxu0  ;;  %16142 = vst [vmem:[#allocation65_spill] sm:$0xff] %v14895_v11  ;;  %v2707_v11 = vadd.f32 %v14541_v54, %v14401_v8  ;;  %v2771_v8 = vadd.f32 %v14592_v0, %v14457_v45  ;;  %v2787_v54 = vadd.f32 %v14611_v15, %v14465_v56  ;;  %v4328_v56 = vadd.f32 %v14781_v12, %v14649_v48 }
 0x28e   : > { %16141 = vst [vmem:[#allocation64_spill] sm:$0xff] %v14893_v60  ;;  %v14899_v30 = vpop.f32.mrf.mxu1  ;;  %v3567_v15 = vadd.f32 %v14704_v50, %v14568_v9 }
 0x28f   : > { %v14897_v59 = vpop.f32.mrf.mxu0  ;;  %v4714_v48 = vadd.f32 %v14804_v2, %v4328_v56  ;;  %v16149_v2 = vld [vmem:[#allocation26_spill] sm:$0xff] }
 0x290   : > { %16143 = vst [vmem:[#allocation66_spill] sm:$0xff] %v14897_v59  ;;  %v14903_v24 = vpop.f32.mrf.mxu1 }
 0x291   : > { %v14901_v29 = vpop.f32.mrf.mxu0  ;;  %16145 = vst [vmem:[#allocation68_spill] sm:$0xff] %v14903_v24  ;;  %v3169_v24 = vadd.f32 %v14527_v7, %v2691_v17  ;;  %v2803_v7 = vadd.f32 %v14618_v41, %v14493_v47 }
 0x292   : > { %16144 = vst [vmem:[#allocation67_spill] sm:$0xff] %v14901_v29  ;;  %v14907_v58 = vpop.f32.mrf.mxu1  ;;  %v2723_v29 = vadd.f32 %v14554_v42, %v14423_v21 }
 0x293   : > { %v14905_v1 = vpop.f32.mrf.mxu0  ;;  %16147 = vst [vmem:[#allocation70_spill] sm:$0xff] %v14907_v58 }
 0x294   : > { %16146 = vst [vmem:[#allocation69_spill] sm:$0xff] %v14905_v1  ;;  %v14915_v60 = vpop.f32.mrf.mxu1  ;;  %v3173_v1 = vadd.f32 %v14543_v4, %v2707_v11  ;;  %v3177_v46 = vadd.f32 %v14556_v27, %v2723_v29  ;;  %v3555_v4 = vadd.f32 %v14641_v16, %v3169_v24  ;;  %v3189_v27 = vadd.f32 %v14597_v52, %v2771_v8  ;;  %v16151_v29 = vld [vmem:[#allocation27_spill] sm:$0xff]  ;;  %v16152_v24 = vld [vmem:[#allocation28_spill] sm:$0xff]  ;;  %v16155_v8 = vld [vmem:[#allocation30_spill] sm:$0xff] }
 0x295   : > { %v14909_v3 = vpop.f32.mrf.mxu0  ;;  %v3193_v11 = vadd.f32 %v14616_v40, %v2787_v54 }
 0x296   : > { %16148 = vst [vmem:[#allocation71_spill] sm:$0xff] %v14909_v3  ;;  %v2755_v3 = vadd.f32 %v14579_v32, %v14449_v37  ;;  %v12495_v62 = vpop.f32.mrf.mxu1  ;;  %v3559_v37 = vadd.f32 %v14662_v57, %v3173_v1  ;;  %v3563_v45 = vadd.f32 %v14682_v36, %v3177_v46  ;;  %v3941_v47 = vadd.f32 %v14664_v10, %v3555_v4  ;;  %v14997_v46 = vld [vmem:[%s16076_s5] ss:$0 sm:$0xff] }
 0x297   : > { %v14917_v59 = vpop.f32.mrf.mxu0  ;;  %v4326_v57 = vadd.f32 %v14785_v25, %v14656_v33  ;;  %v3575_v10 = vadd.f32 %v14745_v26, %v3189_v27  ;;  %v3579_v36 = vadd.f32 %v14758_v55, %v3193_v11  ;;  %v4329_v33 = vadd.f32 %v14789_v6, %v14660_v18  ;;  %v16156_v4 = vld [vmem:[#allocation31_spill] sm:$0xff]  ;;  %v16158_v27 = vld [vmem:[#allocation32_spill] sm:$0xff] }
 0x298   : > { %v3185_v21 = vadd.f32 %v14581_v63, %v2755_v3  ;;  %v4971_v32 = vpop.f32.mrf.mxu1  ;;  %v3197_v63 = vadd.f32 %v14639_v35, %v2803_v7  ;;  %v3945_v0 = vadd.f32 %v14684_v34, %v3559_v37  ;;  %v3949_v52 = vadd.f32 %v14706_v5, %v3563_v45  ;;  %v16153_v3 = vld [vmem:[#allocation29_spill] sm:$0xff] }
 0x299   : > { %v14925_v58 = vpop.f32.mrf.mxu0  ;;  %v14957_v35 = vadd.f32 %v14728_v13, %v3567_v15  ;;  %v5100_v17 = vadd.f32 %v12495_v62, %v4714_v48  ;;  %v14971_v13 = vadd.f32 %v14760_v20, %v3575_v10  ;;  %v14974_v26 = vadd.f32 %v14779_v23, %v3579_v36  ;;  %v16159_v45 = vld [vmem:[#allocation33_spill] sm:$0xff] }
 0x29a   : > { %v12496_v16 = vpop.f32.mrf.mxu1  ;;  %v3571_v40 = vadd.f32 %v14726_v51, %v3185_v21  ;;  %v3583_v9 = vadd.f32 %v14777_v28, %v3197_v63  ;;  %v4712_v51 = vadd.f32 %v14809_v49, %v4326_v57  ;;  %v4327_v28 = vadd.f32 %v14795_v22, %v3941_v47  ;;  %v16150_v49 = vld [vmem:[#allocation5_spill] sm:$0xff]  ;;  %v16160_v63 = vld [vmem:[#allocation8_spill] sm:$0xff]  ;;  %v16161_v47 = vld [vmem:[#allocation34_spill] sm:$0xff] }
 0x29b   : > { %v14937_v42 = vpop.f32.mrf.mxu0  ;;  %v4332_v6 = vadd.f32 %v14802_v39, %v14671_v38  ;;  %v4715_v20 = vadd.f32 %v14813_v19, %v4329_v33  ;;  %v4333_v22 = vadd.f32 %v16151_v29, %v16150_v49  ;;  %v4331_v1 = vadd.f32 %v16152_v24, %v3945_v0  ;;  %v16154_v19 = vld [vmem:[#allocation6_spill] sm:$0xff]  ;;  %v16162_v57 = vld [vmem:[#allocation35_spill] sm:$0xff] }
 0x29c   : > { %v4974_v50 = vpop.f32.mrf.mxu1  ;;  %v14965_v5 = vadd.f32 %v14747_v53, %v3571_v40  ;;  %v14977_v55 = vadd.f32 %v14793_v31, %v3583_v9  ;;  %v14983_v53 = vld [vmem:[%s16075_s4] ss:$0 sm:$0xff]  ;;  %v5098_v25 = vadd.f32 %v4971_v32, %v4712_v51  ;;  %v4330_v31 = vadd.f32 %v16149_v2, %v14677_v44  ;;  %v16163_v9 = vld [vmem:[#allocation36_spill] sm:$0xff]  ;;  %v16164_v51 = vld [vmem:[#allocation37_spill] sm:$0xff] }
 0x29d   : > { %v14949_v41 = vpop.f32.mrf.mxu0  ;;  %v4713_v62 = vadd.f32 %v16153_v3, %v4327_v28  ;;  %v4336_v54 = vadd.f32 %v16155_v8, %v16154_v19  ;;  %v5101_v21 = vadd.f32 %v12496_v16, %v4715_v20  ;;  %v4718_v37 = vadd.f32 %v16156_v4, %v4332_v6  ;;  %v16157_v32 = vld [vmem:[#allocation7_spill] sm:$0xff]  ;;  %v16165_v28 = vld [vmem:[#allocation9_spill] sm:$0xff]  ;;  %v16168_v3 = vld [vmem:[#allocation10_spill] sm:$0xff] }
 0x29e   : > { %v12499_v12 = vpop.f32.mrf.mxu1  ;;  %v4334_v11 = vadd.f32 %v16158_v27, %v16157_v32  ;;  %v4716_v56 = vadd.f32 %v16159_v45, %v4330_v31  ;;  %v4337_v0 = vadd.f32 %v16161_v47, %v16160_v63  ;;  %v4719_v48 = vadd.f32 %v16162_v57, %v4333_v22  ;;  %v16167_v22 = vld [vmem:[#allocation39_spill] sm:$0xff] }
 0x29f   : > { %v14962_v34 = vpop.f32.mrf.mxu0  ;;  %v4335_v33 = vadd.f32 %v16163_v9, %v3949_v52  ;;  %v5099_v20 = vadd.f32 %v4974_v50, %v4713_v62  ;;  %v5104_v2 = vadd.f32 %v12499_v12, %v4718_v37  ;;  %v4722_v24 = vadd.f32 %v16167_v22, %v4336_v54  ;;  %v16170_v52 = vld [vmem:[#allocation41_spill] sm:$0xff]  ;;  %v16171_v4 = vld [vmem:[#allocation11_spill] sm:$0xff]  ;;  %v16172_v37 = vld [vmem:[#allocation42_spill] sm:$0xff] }
 0x2a0   : > { %v4987_v38 = vpop.f32.mrf.mxu1  ;;  %v4720_v8 = vadd.f32 %v16170_v52, %v4334_v11  ;;  %v4341_v32 = vadd.f32 %v16172_v37, %v16171_v4  ;;  %v16173_v27 = vld [vmem:[#allocation43_spill] sm:$0xff]  ;;  %v16174_v54 = vld [vmem:[#allocation44_spill] sm:$0xff]  ;;  %v16182_v37 = vld [vmem:[#allocation14_spill] sm:$0xff] }
 0x2a1   : > { %v12543_v18 = vpop.f32.mrf.mxu0  ;;  %v5102_v50 = vadd.f32 %v4987_v38, %v4716_v56  ;;  %v4723_v45 = vadd.f32 %v16173_v27, %v4337_v0  ;;  %v4339_v63 = vadd.f32 %v16174_v54, %v14957_v35  ;;  %v16176_v9 = vld [vmem:[#allocation12_spill] sm:$0xff]  ;;  %v16183_v27 = vld [vmem:[#allocation50_spill] sm:$0xff] }
 0x2a2   : > { %v5486_v23 = vadd.f32 %v12543_v18, %v5100_v17  ;;  %v12500_v15 = vpop.f32.mrf.mxu1  ;;  %v4717_v17 = vadd.f32 %v16164_v51, %v4331_v1  ;;  %v16166_v18 = vld [vmem:[#allocation38_spill] sm:$0xff]  ;;  %v15049_v54 = vadd.f32 %v16183_v27, %v16182_v37 }
 0x2a3   : > { %v5357_v39 = vpop.f32.mrf.mxu0  ;;  %v4340_v6 = vadd.f32 %v16166_v18, %v16165_v28  ;;  %v5105_v57 = vadd.f32 %v12500_v15, %v4719_v48  ;;  %v16177_v51 = vld [vmem:[#allocation46_spill] sm:$0xff]  ;;  %v16178_v18 = vld [vmem:[#allocation47_spill] sm:$0xff] }
 0x2a4   : > { %v5524_v44 = vmul.f32 %v14983_v53, %v5486_v23  ;;  %v5484_v7 = vadd.f32 %v5357_v39, %v5098_v25  ;;  %v4990_v25 = vpop.f32.mrf.mxu1  ;;  %v16169_v39 = vld [vmem:[#allocation40_spill] sm:$0xff]  ;;  %v4344_v28 = vadd.f32 %v16177_v51, %v16176_v9 }
 0x2a5   : > { %v12544_v40 = vpop.f32.mrf.mxu0  ;;  %v4338_v19 = vadd.f32 %v16169_v39, %v16168_v3  ;;  %v15033_v0 = vadd.f32 %v16178_v18, %v4340_v6  ;;  %v5103_v39 = vadd.f32 %v4990_v25, %v4717_v17 }
 0x2a6   : > { %v5562_v10 = vadd.f32 %v14997_v46, %v5524_v44  ;;  %v5522_v16 = vmul.f32 %v14983_v53, %v5484_v7  ;;  %v5487_v36 = vadd.f32 %v12544_v40, %v5101_v21  ;;  %v12503_v21 = vpop.f32.mrf.mxu1 }
 0x2a7   : > { %v5360_v23 = vpop.f32.mrf.mxu0 }
 0x2a8   : > { %v5594_v31 = vmax.f32 %v5562_v10, 0.0  ;;  %v5560_v49 = vadd.f32 %v14997_v46, %v5522_v16  ;;  %v5525_v29 = vmul.f32 %v14983_v53, %v5487_v36  ;;  %v5485_v1 = vadd.f32 %v5360_v23, %v5099_v20  ;;  %v5003_v11 = vpop.f32.mrf.mxu1  ;;  %v16175_v16 = vld [vmem:[#allocation45_spill] sm:$0xff] }
 0x2a9   : > { %v12547_v44 = vpop.f32.mrf.mxu0  ;;  %v4721_v36 = vadd.f32 %v16175_v16, %v4335_v33  ;;  %v16181_v33 = vld [vmem:[#allocation49_spill] sm:$0xff] }
 0x2aa   : > { %5627 = vst [vmem:[#allocation3 + $0x31] sm:$0xff] %v5594_v31  ;;  %v5592_v62 = vmax.f32 %v5560_v49, 0.0  ;;  %v5563_v12 = vadd.f32 %v14997_v46, %v5525_v29  ;;  %v5490_v7 = vadd.f32 %v12547_v44, %v5104_v2  ;;  %v5523_v47 = vmul.f32 %v14983_v53, %v5485_v1  ;;  %v12504_v20 = vpop.f32.mrf.mxu1  ;;  %v16179_v2 = vld [vmem:[#allocation13_spill] sm:$0xff]  ;;  %v16180_v49 = vld [vmem:[#allocation48_spill] sm:$0xff] }
 0x2ab   : > { %v5373_v40 = vpop.f32.mrf.mxu0  ;;  %v4342_v29 = vadd.f32 %v16180_v49, %v16179_v2  ;;  %v15041_v3 = vadd.f32 %v16181_v33, %v4338_v19  ;;  %v5109_v9 = vadd.f32 %v12504_v20, %v4723_v45  ;;  %v16190_v49 = vld [vmem:[#allocation55_spill] sm:$0xff] }
 0x2ac   : > { %5625 = vst [vmem:[#allocation3 + $0x19] sm:$0xff] %v5592_v62  ;;  %v5595_v10 = vmax.f32 %v5563_v12, 0.0  ;;  %v5528_v38 = vmul.f32 %v14983_v53, %v5490_v7  ;;  %v5488_v56 = vadd.f32 %v5373_v40, %v5102_v50  ;;  %v5561_v35 = vadd.f32 %v14997_v46, %v5523_v47  ;;  %v5006_v6 = vpop.f32.mrf.mxu1 }
 0x2ad   : > { %v12548_v23 = vpop.f32.mrf.mxu0  ;;  %v5108_v50 = vadd.f32 %v12503_v21, %v4722_v24  ;;  %v15052_v47 = vadd.f32 %v14861_v61, %v4341_v32  ;;  %v16185_v32 = vld [vmem:[#allocation15_spill] sm:$0xff] }
 0x2ae   : > { %5628 = vst [vmem:[#allocation3 + $0x39] sm:$0xff] %v5595_v10  ;;  %v5566_v15 = vadd.f32 %v14997_v46, %v5528_v38  ;;  %v5526_v48 = vmul.f32 %v14983_v53, %v5488_v56  ;;  %v5491_v22 = vadd.f32 %v12548_v23, %v5105_v57  ;;  %v5593_v52 = vmax.f32 %v5561_v35, 0.0  ;;  %v12507_v19 = vpop.f32.mrf.mxu1  ;;  %v16184_v38 = vld [vmem:[#allocation51_spill] sm:$0xff]  ;;  %v16189_v23 = vld [vmem:[#allocation54_spill] sm:$0xff] }
 0x2af   : > { %v5376_v1 = vpop.f32.mrf.mxu0  ;;  %v11440_v44 = vpack.c.bf16 %v5595_v10, %v5594_v31  ;;  %v5106_v31 = vadd.f32 %v5003_v11, %v4720_v8  ;;  %v15058_v10 = vadd.f32 %v14863_v43, %v14965_v5  ;;  %v15061_v61 = vadd.f32 %v16184_v38, %v4339_v63  ;;  %v16187_v43 = vld [vmem:[#allocation53_spill] sm:$0xff]  ;;  %v16188_v63 = vld [vmem:[#allocation16_spill] sm:$0xff] }
 0x2b0   : > { %v5598_v12 = vmax.f32 %v5566_v15, 0.0  ;;  %v15044_v7 = vadd.f32 %v14997_v46, %v5526_v48  ;;  %v5529_v4 = vmul.f32 %v14983_v53, %v5491_v22  ;;  %5626 = vst [vmem:[#allocation3 + $0x21] sm:$0xff] %v5593_v52  ;;  %v11435_v17 = vpack.c.bf16 %v5593_v52, %v5592_v62  ;;  %v16186_v62 = vld [vmem:[#allocation52_spill] sm:$0xff]  ;;  %v5019_v8 = vpop.f32.mrf.mxu1 }
 0x2b1   : > { %v5489_v25 = vadd.f32 %v5376_v1, %v5103_v39  ;;  %v12551_v40 = vpop.f32.mrf.mxu0  ;;  %11676 = vst [vmem:[#allocation4 + $0xa0] sm:$0xff] %v11440_v44   ;;  %v15065_v56 = vadd.f32 %v16186_v62, %v16185_v32  ;;  %v15070_v5 = vadd.f32 %v16187_v43, %v4344_v28  ;;  %v15074_v2 = vadd.f32 %v16189_v23, %v16188_v63  ;;  %v16191_v63 = vld [vmem:[#allocation17_spill] sm:$0xff]  ;;  %v16192_v23 = vld [vmem:[#allocation56_spill] sm:$0xff] }
 0x2b2   : > { %5631 = vst [vmem:[#allocation3 + $0x61] sm:$0xff] %v5598_v12  ;;  %v5596_v24 = vmax.f32 %v15044_v7, 0.0  ;;  %v5567_v21 = vadd.f32 %v14997_v46, %v5529_v4  ;;  %v5494_v57 = vadd.f32 %v12551_v40, %v5108_v50  ;;  %11675 = vst [vmem:[#allocation4 + $0x98] sm:$0xff] %v11435_v17   ;;  %v15077_v15 = vadd.f32 %v16190_v49, %v4342_v29  ;;  %v12508_v22 = vpop.f32.mrf.mxu1  ;;  %v5661_v50 = vld [vmem:[#allocation3 + $0x30] sm:$0xff] }
 0x2b3   : > { %v5527_v16 = vmul.f32 %v14983_v53, %v5489_v25  ;;  %v5389_v11 = vpop.f32.mrf.mxu0  ;;  %v5107_v52 = vadd.f32 %v5006_v6, %v4721_v36  ;;  %v5659_v7 = vld [vmem:[#allocation3 + $0x18] sm:$0xff]  ;;  %v15100_v49 = vadd.f32 %v16192_v23, %v16191_v63  ;;  %v15145_v63 = vld [vmem:[%s16078_s7 + $0xb0] sm:$0xff]  }
 0x2b4   : > { %5629 = vst [vmem:[#allocation3 + $0x49] sm:$0xff] %v5596_v24  ;;  %v5599_v51 = vmax.f32 %v5567_v21, 0.0  ;;  %v5532_v18 = vmul.f32 %v14983_v53, %v5494_v57  ;;  %v5492_v35 = vadd.f32 %v5389_v11, %v5106_v31  ;;  %v5022_v29 = vpop.f32.mrf.mxu1  ;;  %v5112_v57 = vadd.f32 %v12507_v19, %v15033_v0  ;;  %v15093_v0 = vld [vmem:[%s16078_s7 + $0xf0] sm:$0xff]  }
 0x2b5   : > { %v5565_v48 = vadd.f32 %v14997_v46, %v5527_v16  ;;  %v12552_v33 = vpop.f32.mrf.mxu0  ;;  %v5662_v39 = vld [vmem:[#allocation3 + $0x38] sm:$0xff]  ;;  %v5110_v19 = vadd.f32 %v5019_v8, %v15041_v3  ;;  %v16199_v23 = vld [vmem:[#allocation61_spill] sm:$0xff] }
 0x2b6   : > { %v6094_v45 = vld [vmem:[#allocation3 + $0x32] sm:$0xff]  ;;  %v6095_v20 = vld [vmem:[#allocation3 + $0x3a] sm:$0xff]  ;;  %5632 = vst [vmem:[#allocation3 + $0x69] sm:$0xff] %v5599_v51  ;;  %v15081_v1 = vadd.f32 %v14997_v46, %v5532_v18  ;;  %v5530_v28 = vmul.f32 %v14983_v53, %v5492_v35  ;;  %v5495_v44 = vadd.f32 %v12552_v33, %v5109_v9  ;;  %v11350_v27 = vpack.c.bf16 %v5662_v39, %v5661_v50  ;;  %v12511_v11 = vpop.f32.mrf.mxu1  ;;  %v16194_v33 = vld [vmem:[#allocation58_spill] sm:$0xff] }
 0x2b7   : > { %v5597_v4 = vmax.f32 %v5565_v48, 0.0  ;;  %v5392_v37 = vpop.f32.mrf.mxu0  ;;  %v11450_v17 = vpack.c.bf16 %v5599_v51, %v5598_v12  ;;  %v11530_v25 = vpack.c.bf16 %v6095_v20, %v6094_v45  ;;  %v5660_v40 = vld [vmem:[#allocation3 + $0x20] sm:$0xff]  ;;  %v15108_v39 = vadd.f32 %v16194_v33, %v14971_v13  ;;  %v16196_v50 = vld [vmem:[#allocation18_spill] sm:$0xff] }
 0x2b8   : > { %v6092_v31 = vld [vmem:[#allocation3 + $0x1a] sm:$0xff]  ;;  %v6093_v21 = vld [vmem:[#allocation3 + $0x22] sm:$0xff]  ;;  %v5602_v36 = vmax.f32 %v15081_v1, 0.0  ;;  %v15087_v6 = vadd.f32 %v14997_v46, %v5530_v28  ;;  %v5533_v38 = vmul.f32 %v14983_v53, %v5495_v44  ;;  %v11345_v32 = vpack.c.bf16 %v5660_v40, %v5659_v7  ;;  %11659 = vst [vmem:[#allocation4 + $0x10] sm:$0xff] %v11350_v27   ;;  %v5035_v8 = vpop.f32.mrf.mxu1  ;;  %v13256_v20 = vld [vmem:[#allocation4 + $0xa0] sm:$0xff]  }
 0x2b9   : > { %v11525_v62 = vpack.c.bf16 %v6093_v21, %v6092_v31  ;;  %5630 = vst [vmem:[#allocation3 + $0x51] sm:$0xff] %v5597_v4  ;;  %v5493_v16 = vadd.f32 %v5392_v37, %v5107_v52  ;;  %v12555_v9 = vpop.f32.mrf.mxu0  ;;  %v11445_v12 = vpack.c.bf16 %v5597_v4, %v5596_v24  ;;  %11678 = vst [vmem:[#allocation4 + $0xb0] sm:$0xff] %v11450_v17   ;;  %v13254_v43 = vld [vmem:[#allocation4 + $0x98] sm:$0xff]   ;;  %v16193_v24 = vld [vmem:[#allocation57_spill] sm:$0xff] }
 0x2ba   : > { %11693 = vst [vmem:[#allocation4 + $0x130] sm:$0xff] %v11530_v25   ;;  %5635 = vst [vmem:[#allocation3 + $0x91] sm:$0xff] %v5602_v36  ;;  %v5600_v51 = vmax.f32 %v15087_v6, 0.0  ;;  %v5571_v18 = vadd.f32 %v14997_v46, %v5533_v38  ;;  %v5498_v35 = vadd.f32 %v12555_v9, %v5112_v57  ;;  %v15104_v48 = vadd.f32 %v16193_v24, %v15049_v54  ;;  %v16195_v44 = vld [vmem:[#allocation59_spill] sm:$0xff]  ;;  %v16197_v7 = vld [vmem:[#allocation60_spill] sm:$0xff]  ;;  %v12512_v27 = vpop.f32.mrf.mxu1 }
 0x2bb   : > { %11658 = vst [vmem:[#allocation4 + $0x8] sm:$0xff] %v11345_v32   ;;  %11692 = vst [vmem:[#allocation4 + $0x128] sm:$0xff] %v11525_v62   ;;  %v5531_v3 = vmul.f32 %v14983_v53, %v5493_v16  ;;  %v5405_v45 = vpop.f32.mrf.mxu0  ;;  %v5113_v52 = vadd.f32 %v12508_v22, %v15052_v47  ;;  %12638 = vmatmul.mubr.bf16.vlgmr.msra.gmra.mxu0 %v13254_v43  ;;  %v15115_v13 = vadd.f32 %v16195_v44, %v15058_v10  ;;  %v16198_v47 = vld [vmem:[#allocation25_spill] sm:$0xff]  ;;  %v15132_v38 = vld [vmem:[%s16078_s7 + $0xe8] sm:$0xff]  }
 0x2bc   : > { %11677 = vst [vmem:[#allocation4 + $0xa8] sm:$0xff] %v11445_v12   ;;  %5633 = vst [vmem:[#allocation3 + $0x79] sm:$0xff] %v5600_v51  ;;  %v5603_v1 = vmax.f32 %v5571_v18, 0.0  ;;  %v5536_v28 = vmul.f32 %v14983_v53, %v5498_v35  ;;  %v5496_v54 = vadd.f32 %v5405_v45, %v5110_v19  ;;  %v15119_v4 = vadd.f32 %v16197_v7, %v16196_v50  ;;  %v5665_v6 = vld [vmem:[#allocation3 + $0x60] sm:$0xff]  ;;  %v15134_v62 = vpop.f32.mrf.mxu1  ;;  %v5663_v12 = vld [vmem:[#allocation3 + $0x48] sm:$0xff] }
 0x2bd   : > { %v5569_v37 = vadd.f32 %v14997_v46, %v5531_v3  ;;  %v12556_v17 = vpop.f32.mrf.mxu0  ;;  %12641 = vmatprep.mubr.bf16.mxu0 %v13256_v20  ;;  %v5666_v25 = vld [vmem:[#allocation3 + $0x68] sm:$0xff]  ;;  %12718 = vmatpush3.bf16.msra.mxu0 %v16198_v47  ;;  %v5111_v31 = vadd.f32 %v5022_v29, %v15061_v61  ;;  %v5116_v19 = vadd.f32 %v12511_v11, %v15070_v5  ;;  %v16202_v50 = vld [vmem:[#allocation21_spill] sm:$0xff]  ;;  %v16203_v7 = vld [vmem:[#allocation63_spill] sm:$0xff] }
 0x2be   : > { %v6098_v22 = vld [vmem:[#allocation3 + $0x62] sm:$0xff]  ;;  %v6099_v40 = vld [vmem:[#allocation3 + $0x6a] sm:$0xff]  ;;  %5636 = vst [vmem:[#allocation3 + $0x99] sm:$0xff] %v5603_v1  ;;  %v15125_v10 = vadd.f32 %v14997_v46, %v5536_v28  ;;  %v5534_v21 = vmul.f32 %v14983_v53, %v5496_v54  ;;  %v5499_v57 = vadd.f32 %v12556_v17, %v5113_v52  ;;  %12719 = vmatprep.subr.bf16.mxu0 %v15093_v0  ;;  %v12515_v11 = vpop.f32.mrf.mxu1 }
 0x2bf   : > { %v5601_v32 = vmax.f32 %v5569_v37, 0.0  ;;  %v5408_v16 = vpop.f32.mrf.mxu0  ;;  %v11360_v9 = vpack.c.bf16 %v5666_v25, %v5665_v6  ;;  %v11460_v61 = vpack.c.bf16 %v5603_v1, %v5602_v36  ;;  %v11540_v29 = vpack.c.bf16 %v6099_v40, %v6098_v22  ;;  %v16200_v36 = vld [vmem:[#allocation20_spill] sm:$0xff]  ;;  %v16201_v33 = vld [vmem:[#allocation62_spill] sm:$0xff] }
 0x2c0   : > { %v5606_v18 = vmax.f32 %v15125_v10, 0.0  ;;  %v15139_v35 = vadd.f32 %v14997_v46, %v5534_v21  ;;  %v5537_v43 = vmul.f32 %v14983_v53, %v5499_v57  ;;  %v4734_v24 = vadd.f32 %v16199_v23, %v15065_v56  ;;  %v5664_v20 = vld [vmem:[#allocation3 + $0x50] sm:$0xff]  ;;  %v5051_v17 = vpop.f32.mrf.mxu1  ;;  %v15172_v21 = vld [vmem:[%s16078_s7 + $0xa8] sm:$0xff]  }
 0x2c1   : > { %v15151_v3 = vadd.f32 %v16201_v33, %v16200_v36  ;;  %5634 = vst [vmem:[#allocation3 + $0x81] sm:$0xff] %v5601_v32  ;;  %v5497_v5 = vadd.f32 %v5408_v16, %v5111_v31  ;;  %v12559_v45 = vpop.f32.mrf.mxu0  ;;  %11661 = vst [vmem:[#allocation4 + $0x20] sm:$0xff] %v11360_v9   ;;  %v11455_v52 = vpack.c.bf16 %v5601_v32, %v5600_v51  ;;  %12720 = vmatpush3.bf16.msra.mxu0 %v15093_v0  ;;  %v15177_v57 = vld [vmem:[%s16078_s7 + $0xe0] sm:$0xff]   ;;  %v16204_v6 = vld [vmem:[#allocation64_spill] sm:$0xff] }
 0x2c2   : > { %11680 = vst [vmem:[#allocation4 + $0xc0] sm:$0xff] %v11460_v61   ;;  %11695 = vst [vmem:[#allocation4 + $0x140] sm:$0xff] %v11540_v29   ;;  %v5114_v56 = vadd.f32 %v5035_v8, %v15077_v15  ;;  %v5604_v1 = vmax.f32 %v15139_v35, 0.0  ;;  %v5575_v28 = vadd.f32 %v14997_v46, %v5537_v43  ;;  %v5502_v54 = vadd.f32 %v12559_v45, %v5116_v19  ;;  %v13253_v44 = vld [vmem:[#allocation4 + $0x8] sm:$0xff]   ;;  %v13255_v15 = vld [vmem:[#allocation4 + $0x10] sm:$0xff]   ;;  %v12516_v61 = vpop.f32.mrf.mxu1 }
 0x2c3   : > { %5639 = vst [vmem:[#allocation3 + $0xc1] sm:$0xff] %v5606_v18  ;;  %12721 = vmatprep.subr.bf16.mxu0 %v15132_v38  ;;  %v4732_v51 = vadd.f32 %v14889_v14, %v15074_v2  ;;  %v15164_v0 = vadd.f32 %v16203_v7, %v16202_v50  ;;  %v5535_v37 = vmul.f32 %v14983_v53, %v5497_v5  ;;  %v5421_v25 = vpop.f32.mrf.mxu0  ;;  %11679 = vst [vmem:[#allocation4 + $0xb8] sm:$0xff] %v11455_v52   ;;  %v13259_v14 = vld [vmem:[#allocation4 + $0xa8] sm:$0xff]   ;;  %v13261_v2 = vld [vmem:[#allocation4 + $0xb0] sm:$0xff]  }
 0x2c4   : > { %v11355_v8 = vpack.c.bf16 %v5664_v20, %v5663_v12  ;;  %5637 = vst [vmem:[#allocation3 + $0xa9] sm:$0xff] %v5604_v1  ;;  %v5117_v47 = vadd.f32 %v12512_v27, %v15104_v48  ;;  %v5607_v22 = vmax.f32 %v5575_v28, 0.0  ;;  %v5540_v40 = vmul.f32 %v14983_v53, %v5502_v54  ;;  %12590 = vmatmul.mubr.bf16.vlgmr.msra.gmra.mxu1 %v13253_v44  ;;  %v16205_v27 = vld [vmem:[#allocation65_spill] sm:$0xff]  ;;  %v16206_v9 = vld [vmem:[#allocation19_spill] sm:$0xff]  ;;  %v16207_v19 = vld [vmem:[#allocation66_spill] sm:$0xff]  ;;  %v15198_v5 = vpop.f32.mrf.mxu1 }
 0x2c5   : > { %v5500_v31 = vadd.f32 %v5421_v25, %v5114_v56  ;;  %v4735_v48 = vadd.f32 %v16204_v6, %v15100_v49  ;;  %v15183_v32 = vadd.f32 %v16205_v27, %v14974_v26  ;;  %v5573_v16 = vadd.f32 %v14997_v46, %v5535_v37  ;;  %12670 = vmatpush3.bf16.msra.mxu1 %v16206_v9  ;;  %v12560_v29 = vpop.f32.mrf.mxu0  ;;  %v5670_v12 = vld [vmem:[#allocation3 + $0x98] sm:$0xff]  ;;  %v5669_v23 = vld [vmem:[#allocation3 + $0x90] sm:$0xff] }
 0x2c6   : > { %12593 = vmatprep.mubr.bf16.mxu1 %v13255_v15  ;;  %11660 = vst [vmem:[#allocation4 + $0x18] sm:$0xff] %v11355_v8   ;;  %v15189_v35 = vadd.f32 %v16207_v19, %v15108_v39  ;;  %5640 = vst [vmem:[#allocation3 + $0xc9] sm:$0xff] %v5607_v22  ;;  %v15192_v49 = vadd.f32 %v14997_v46, %v5540_v40  ;;  %v5503_v43 = vadd.f32 %v12560_v29, %v5117_v47  ;;  %v16210_v8 = vld [vmem:[#allocation23_spill] sm:$0xff]  ;;  %v15238_v29 = vld [vmem:[%s16078_s7 + $0x98] sm:$0xff]  }
 0x2c7   : > { %v5538_v26 = vmul.f32 %v14983_v53, %v5500_v31  ;;  %12671 = vmatprep.subr.bf16.mxu1 %v15145_v63  ;;  %v5115_v36 = vadd.f32 %v15134_v62, %v15115_v13  ;;  %v5605_v33 = vmax.f32 %v5573_v16, 0.0  ;;  %v5424_v45 = vpop.f32.mrf.mxu0  ;;  %12642 = vmatmul.mubr.bf16.gmra.mxu0 %v13259_v14  ;;  %v11370_v39 = vpack.c.bf16 %v5670_v12, %v5669_v23  ;;  %v15211_v13 = vld [vmem:[%s16078_s7 + $0xd8] sm:$0xff]   ;;  %v15244_v12 = vld [vmem:[%s16078_s7 + $0xd0] sm:$0xff]  }
 0x2c8   : > { %v11470_v20 = vpack.c.bf16 %v5607_v22, %v5606_v18  ;;  %v5120_v52 = vadd.f32 %v12515_v11, %v4734_v24  ;;  %v5610_v56 = vmax.f32 %v15192_v49, 0.0  ;;  %v5541_v54 = vmul.f32 %v14983_v53, %v5503_v43  ;;  %12645 = vmatprep.mubr.bf16.mxu0 %v13261_v2  ;;  %12722 = vmatpush3.bf16.msra.mxu0 %v15132_v38  ;;  %v16208_v62 = vld [vmem:[#allocation22_spill] sm:$0xff]  ;;  %v12519_v24 = vpop.f32.mrf.mxu1  ;;  %v5668_v44 = vld [vmem:[#allocation3 + $0x80] sm:$0xff]  ;;  %v5667_v38 = vld [vmem:[#allocation3 + $0x78] sm:$0xff] }
 0x2c9   : > { %v15204_v28 = vadd.f32 %v14997_v46, %v5538_v26  ;;  %v15215_v10 = vadd.f32 %v14899_v30, %v16208_v62  ;;  %5638 = vst [vmem:[#allocation3 + $0xb1] sm:$0xff] %v5605_v33  ;;  %v5501_v18 = vadd.f32 %v5424_v45, %v5115_v36  ;;  %v12563_v11 = vpop.f32.mrf.mxu0  ;;  %12672 = vmatpush3.bf16.msra.mxu1 %v15145_v63  ;;  %11663 = vst [vmem:[#allocation4 + $0x30] sm:$0xff] %v11370_v39   ;;  %v16209_v63 = vld [vmem:[#allocation67_spill] sm:$0xff]  ;;  %v16212_v19 = vld [vmem:[#allocation69_spill] sm:$0xff] }
 0x2ca   : > { %v11465_v50 = vpack.c.bf16 %v5605_v33, %v5604_v1  ;;  %11682 = vst [vmem:[#allocation4 + $0xd0] sm:$0xff] %v11470_v20   ;;  %12723 = vmatprep.subr.bf16.mxu0 %v15177_v57  ;;  %5643 = vst [vmem:[#allocation3 + $0xf1] sm:$0xff] %v5610_v56  ;;  %v5118_v7 = vadd.f32 %v5051_v17, %v4732_v51  ;;  %v5579_v37 = vadd.f32 %v14997_v46, %v5541_v54  ;;  %v16211_v1 = vld [vmem:[#allocation68_spill] sm:$0xff]  ;;  %v5067_v40 = vpop.f32.mrf.mxu1  ;;  %v13260_v14 = vld [vmem:[#allocation4 + $0x20] sm:$0xff]  }
 0x2cb   : > { %v5608_v30 = vmax.f32 %v15204_v28, 0.0  ;;  %v5506_v25 = vadd.f32 %v12563_v11, %v5120_v52  ;;  %12673 = vmatprep.subr.bf16.mxu1 %v15172_v21  ;;  %v4738_v15 = vadd.f32 %v16209_v63, %v15119_v4  ;;  %v15228_v47 = vadd.f32 %v16211_v1, %v16210_v8  ;;  %v5437_v31 = vpop.f32.mrf.mxu0  ;;  %v13264_v17 = vld [vmem:[#allocation4 + $0xb8] sm:$0xff]   ;;  %v13267_v2 = vld [vmem:[%s16078_s7 + $0xa0] sm:$0xff]   ;;  %v5673_v54 = vld [vmem:[#allocation3 + $0xc0] sm:$0xff] }
 0x2cc   : > { %v5539_v22 = vmul.f32 %v14983_v53, %v5501_v18  ;;  %v11365_v51 = vpack.c.bf16 %v5668_v44, %v5667_v38  ;;  %11681 = vst [vmem:[#allocation4 + $0xc8] sm:$0xff] %v11465_v50   ;;  %v5121_v6 = vadd.f32 %v12516_v61, %v4735_v48  ;;  %v5611_v27 = vmax.f32 %v5579_v37, 0.0  ;;  %12724 = vmatpush3.bf16.msra.mxu0 %v15177_v57  ;;  %v16213_v61 = vld [vmem:[#allocation24_spill] sm:$0xff]  ;;  %v16214_v26 = vld [vmem:[#allocation70_spill] sm:$0xff]  ;;  %v12520_v36 = vpop.f32.mrf.mxu1  ;;  %v13266_v57 = vld [vmem:[#allocation4 + $0xc0] sm:$0xff]  }
 0x2cd   : > { %5641 = vst [vmem:[#allocation3 + $0xd9] sm:$0xff] %v5608_v30  ;;  %v5544_v4 = vmul.f32 %v14983_v53, %v5506_v25  ;;  %v5504_v16 = vadd.f32 %v5437_v31, %v5118_v7  ;;  %v13258_v9 = vld [vmem:[#allocation4 + $0x18] sm:$0xff]   ;;  %v4736_v48 = vadd.f32 %v16212_v19, %v15151_v3  ;;  %v15250_v43 = vadd.f32 %v16214_v26, %v16213_v61  ;;  %v12564_v33 = vpop.f32.mrf.mxu0  ;;  %v16215_v39 = vld [vmem:[#allocation71_spill] sm:$0xff]  ;;  %v13279_v1 = vld [vmem:[%s16078_s7 + $0x90] sm:$0xff]  }
 0x2ce   : > { %v5577_v23 = vadd.f32 %v14997_v46, %v5539_v22  ;;  %11662 = vst [vmem:[#allocation4 + $0x28] sm:$0xff] %v11365_v51   ;;  %12674 = vmatpush3.bf16.msra.mxu1 %v15172_v21  ;;  %v5674_v45 = vld [vmem:[#allocation3 + $0xc8] sm:$0xff]  ;;  %12725 = vmatprep.subr.bf16.mxu0 %v15211_v13  ;;  %v4739_v20 = vadd.f32 %v16215_v39, %v15164_v0  ;;  %5644 = vst [vmem:[#allocation3 + $0xf9] sm:$0xff] %v5611_v27  ;;  %v5070_v18 = vpop.f32.mrf.mxu1  ;;  %v15316_v39 = vld [vmem:[%s16078_s7 + $0xc0] sm:$0xff]  }
 0x2cf   : > { %v15258_v3 = vadd.f32 %v14997_v46, %v5544_v4  ;;  %v5542_v52 = vmul.f32 %v14983_v53, %v5504_v16  ;;  %12594 = vmatmul.mubr.bf16.gmra.mxu1 %v13258_v9  ;;  %v5507_v28 = vadd.f32 %v12564_v33, %v5121_v6  ;;  %v5119_v62 = vadd.f32 %v15198_v5, %v15189_v35  ;;  %v5440_v11 = vpop.f32.mrf.mxu0  ;;  %v6096_v6 = vld [vmem:[#allocation3 + $0x4a] sm:$0xff]  ;;  %v15298_v16 = vld [vmem:[%s16078_s7 + $0x88] sm:$0xff]  }
 0x2d0   : > { %v5609_v21 = vmax.f32 %v5577_v23, 0.0  ;;  %12597 = vmatprep.mubr.bf16.mxu1 %v13260_v14  ;;  %12646 = vmatmul.mubr.bf16.gmra.mxu0 %v13264_v17  ;;  %v11380_v44 = vpack.c.bf16 %v5674_v45, %v5673_v54  ;;  %v11480_v0 = vpack.c.bf16 %v5611_v27, %v5610_v56  ;;  %v5124_v50 = vadd.f32 %v12519_v24, %v4738_v15  ;;  %v12523_v25 = vpop.f32.mrf.mxu1  ;;  %v5672_v49 = vld [vmem:[#allocation3 + $0xb0] sm:$0xff]  ;;  %v5671_v24 = vld [vmem:[#allocation3 + $0xa8] sm:$0xff]  ;;  %v13265_v14 = vld [vmem:[#allocation4 + $0x30] sm:$0xff]  }
 0x2d1   : > { %v5614_v38 = vmax.f32 %v15258_v3, 0.0  ;;  %v15267_v7 = vadd.f32 %v14997_v46, %v5542_v52  ;;  %v5545_v37 = vmul.f32 %v14983_v53, %v5507_v28  ;;  %12649 = vmatprep.mubr.bf16.mxu0 %v13266_v57  ;;  %12675 = vmatprep.subr.bf16.mxu1 %v13267_v2  ;;  %v15272_v35 = vadd.f32 %v14915_v60, %v14977_v55  ;;  %v12567_v63 = vpop.f32.mrf.mxu0  ;;  %v13271_v4 = vld [vmem:[#allocation4 + $0xd0] sm:$0xff]   ;;  %v6097_v23 = vld [vmem:[#allocation3 + $0x52] sm:$0xff] }
 0x2d2   : > { %5642 = vst [vmem:[#allocation3 + $0xe1] sm:$0xff] %v5609_v21  ;;  %v5505_v5 = vadd.f32 %v5440_v11, %v5119_v62  ;;  %12676 = vmatpush3.bf16.msra.mxu1 %v13267_v2  ;;  %11665 = vst [vmem:[#allocation4 + $0x40] sm:$0xff] %v11380_v44   ;;  %v11475_v56 = vpack.c.bf16 %v5609_v21, %v5608_v30  ;;  %12726 = vmatpush3.bf16.msra.mxu0 %v15211_v13  ;;  %v13296_v2 = vld [vmem:[%s16078_s7 + $0xc8] sm:$0xff]  }
 0x2d3   : > { %11684 = vst [vmem:[#allocation4 + $0xe0] sm:$0xff] %v11480_v0   ;;  %5647 = vst [vmem:[#allocation3 + $0x121] sm:$0xff] %v5614_v38  ;;  %v5122_v15 = vadd.f32 %v5067_v40, %v4736_v48  ;;  %v5612_v8 = vmax.f32 %v15267_v7, 0.0  ;;  %v5583_v60 = vadd.f32 %v14997_v46, %v5545_v37  ;;  %v5510_v55 = vadd.f32 %v12567_v63, %v5124_v50  ;;  %v5083_v40 = vpop.f32.mrf.mxu1  ;;  %v5453_v31 = vpop.f32.mrf.mxu0  ;;  %v13269_v17 = vld [vmem:[#allocation4 + $0xc8] sm:$0xff]  }
 0x2d4   : > { %12677 = vmatprep.subr.bf16.mxu1 %v15238_v29  ;;  %12727 = vmatprep.subr.bf16.mxu0 %v15244_v12  ;;  %v4737_v13 = vadd.f32 %v14917_v59, %v15183_v32  ;;  %v4742_v30 = vadd.f32 %v14925_v58, %v15215_v10  ;;  %v5543_v22 = vmul.f32 %v14983_v53, %v5505_v5  ;;  %v5675_v52 = vld [vmem:[#allocation3 + $0xd8] sm:$0xff] }
 0x2d5   : > { %v11375_v51 = vpack.c.bf16 %v5672_v49, %v5671_v24  ;;  %11683 = vst [vmem:[#allocation4 + $0xd8] sm:$0xff] %v11475_v56   ;;  %5645 = vst [vmem:[#allocation3 + $0x109] sm:$0xff] %v5612_v8  ;;  %v5125_v59 = vadd.f32 %v12520_v36, %v4739_v20  ;;  %v5615_v32 = vmax.f32 %v5583_v60, 0.0  ;;  %v5548_v58 = vmul.f32 %v14983_v53, %v5510_v55  ;;  %v13263_v27 = vld [vmem:[#allocation4 + $0x28] sm:$0xff]   ;;  %v12568_v61 = vpop.f32.mrf.mxu0 }
 0x2d6   : > { %v5508_v10 = vadd.f32 %v5453_v31, %v5122_v15  ;;  %v4740_v9 = vadd.f32 %v14937_v42, %v15228_v47  ;;  %v4743_v19 = vadd.f32 %v14949_v41, %v15250_v43  ;;  %v5581_v48 = vadd.f32 %v14997_v46, %v5543_v22  ;;  %12678 = vmatpush3.bf16.msra.mxu1 %v15238_v29  ;;  %v5678_v26 = vld [vmem:[#allocation3 + $0xf8] sm:$0xff]  ;;  %v12524_v47 = vpop.f32.mrf.mxu1  ;;  %v5677_v43 = vld [vmem:[#allocation3 + $0xf0] sm:$0xff] }
 0x2d7   : > { %11664 = vst [vmem:[#allocation4 + $0x38] sm:$0xff] %v11375_v51   ;;  %12728 = vmatpush3.bf16.msra.mxu0 %v15244_v12  ;;  %5648 = vst [vmem:[#allocation3 + $0x129] sm:$0xff] %v5615_v32  ;;  %v5123_v36 = vadd.f32 %v5070_v18, %v4737_v13  ;;  %v15308_v33 = vadd.f32 %v14997_v46, %v5548_v58  ;;  %12598 = vmatmul.mubr.bf16.gmra.mxu1 %v13263_v27  ;;  %v5456_v45 = vpop.f32.mrf.mxu0  ;;  %v13293_v15 = vld [vmem:[%s16078_s7 + $0x80] sm:$0xff]   ;;  %v6101_v58 = vld [vmem:[#allocation3 + $0x82] sm:$0xff] }
 0x2d8   : > { %v5546_v42 = vmul.f32 %v14983_v53, %v5508_v10  ;;  %v5511_v41 = vadd.f32 %v12568_v61, %v5125_v59  ;;  %v5613_v57 = vmax.f32 %v5581_v48, 0.0  ;;  %12601 = vmatprep.mubr.bf16.mxu1 %v13265_v14  ;;  %12650 = vmatmul.mubr.bf16.gmra.mxu0 %v13269_v17  ;;  %v11390_v29 = vpack.c.bf16 %v5678_v26, %v5677_v43  ;;  %v5086_v37 = vpop.f32.mrf.mxu1  ;;  %v13456_v61 = vld [vmem:[%s16075_s4] ss:$0 sm:$0xff]  ;;  %v6102_v43 = vld [vmem:[#allocation3 + $0x92] sm:$0xff] }
 0x2d9   : > { %v11490_v12 = vpack.c.bf16 %v5615_v32, %v5614_v38  ;;  %v11535_v20 = vpack.c.bf16 %v6097_v23, %v6096_v6  ;;  %v5128_v28 = vadd.f32 %v12523_v25, %v4742_v30  ;;  %v5618_v54 = vmax.f32 %v15308_v33, 0.0  ;;  %12653 = vmatprep.mubr.bf16.mxu0 %v13271_v4  ;;  %12679 = vmatprep.subr.bf16.mxu1 %v13279_v1  ;;  %v12571_v11 = vpop.f32.mrf.mxu0  ;;  %v5676_v44 = vld [vmem:[#allocation3 + $0xe0] sm:$0xff]  ;;  %v13270_v56 = vld [vmem:[#allocation4 + $0x40] sm:$0xff]   ;;  %v15344_v30 = vld [vmem:[%s16078_s7 + $0x178] sm:$0xff]  }
 0x2da   : > { %v15320_v62 = vadd.f32 %v14997_v46, %v5546_v42  ;;  %v5549_v21 = vmul.f32 %v14983_v53, %v5511_v41  ;;  %5646 = vst [vmem:[#allocation3 + $0x111] sm:$0xff] %v5613_v57  ;;  %v5126_v3 = vadd.f32 %v5083_v40, %v4740_v9  ;;  %v5509_v18 = vadd.f32 %v5456_v45, %v5123_v36  ;;  %v5681_v14 = vld [vmem:[#allocation3 + $0x120] sm:$0xff] }
 0x2db   : > { %11667 = vst [vmem:[#allocation4 + $0x50] sm:$0xff] %v11390_v29   ;;  %v11485_v0 = vpack.c.bf16 %v5613_v57, %v5612_v8  ;;  %12680 = vmatpush3.bf16.msra.mxu1 %v13279_v1  ;;  %11686 = vst [vmem:[#allocation4 + $0xf0] sm:$0xff] %v11490_v12   ;;  %12729 = vmatprep.subr.bf16.mxu0 %v13296_v2  ;;  %v5514_v5 = vadd.f32 %v12571_v11, %v5128_v28  ;;  %v5469_v49 = vpop.f32.mrf.mxu0  ;;  %v6100_v32 = vld [vmem:[#allocation3 + $0x7a] sm:$0xff] }
 0x2dc   : > { %11694 = vst [vmem:[#allocation4 + $0x138] sm:$0xff] %v11535_v20   ;;  %5651 = vst [vmem:[#allocation3 + $0x151] sm:$0xff] %v5618_v54  ;;  %v5616_v50 = vmax.f32 %v15320_v62, 0.0  ;;  %v5587_v38 = vadd.f32 %v14997_v46, %v5549_v21  ;;  %v11385_v25 = vpack.c.bf16 %v5676_v44, %v5675_v52  ;;  %12681 = vmatprep.subr.bf16.mxu1 %v15298_v16  ;;  %12730 = vmatpush3.bf16.msra.mxu0 %v13296_v2  ;;  %v13274_v24 = vld [vmem:[#allocation4 + $0xd8] sm:$0xff]   ;;  %v6103_v21 = vld [vmem:[#allocation3 + $0x9a] sm:$0xff] }
 0x2dd   : > { %v4741_v63 = vadd.f32 %v14962_v34, %v15272_v35  ;;  %v5547_v7 = vmul.f32 %v14983_v53, %v5509_v18  ;;  %11685 = vst [vmem:[#allocation4 + $0xe8] sm:$0xff] %v11485_v0   ;;  %12731 = vmatprep.subr.bf16.mxu0 %v15316_v39  ;;  %v5129_v8 = vadd.f32 %v12524_v47, %v4743_v19  ;;  %v13277_v34 = vld [vmem:[#allocation4 + $0xe0] sm:$0xff]   ;;  %v15339_v35 = vld [vmem:[%s16078_s7 + $0x138] sm:$0xff]   ;;  %v12572_v31 = vpop.f32.mrf.mxu0 }
 0x2de   : > { %5649 = vst [vmem:[#allocation3 + $0x139] sm:$0xff] %v5616_v50  ;;  %v5619_v60 = vmax.f32 %v5587_v38, 0.0  ;;  %v5552_v55 = vmul.f32 %v14983_v53, %v5514_v5  ;;  %v5512_v1 = vadd.f32 %v5469_v49, %v5126_v3  ;;  %v13268_v13 = vld [vmem:[#allocation4 + $0x38] sm:$0xff]   ;;  %11666 = vst [vmem:[#allocation4 + $0x48] sm:$0xff] %v11385_v25   ;;  %v11545_v9 = vpack.c.bf16 %v6101_v58, %v6100_v32  ;;  %v6110_v58 = vld [vmem:[#allocation3 + $0xf2] sm:$0xff] }
 0x2df   : > { %v5127_v22 = vadd.f32 %v5086_v37, %v4741_v63  ;;  %v5585_v40 = vadd.f32 %v14997_v46, %v5547_v7  ;;  %v5682_v51 = vld [vmem:[#allocation3 + $0x128] sm:$0xff]  ;;  %12682 = vmatpush3.bf16.msra.mxu1 %v15298_v16  ;;  %v5515_v6 = vadd.f32 %v12572_v31, %v5129_v8  ;;  %v5472_v27 = vpop.f32.mrf.mxu0  ;;  %v11550_v11 = vpack.c.bf16 %v6103_v21, %v6102_v43 }
 0x2e0   : > { %5652 = vst [vmem:[#allocation3 + $0x159] sm:$0xff] %v5619_v60  ;;  %v5590_v17 = vadd.f32 %v14997_v46, %v5552_v55  ;;  %v5550_v2 = vmul.f32 %v14983_v53, %v5512_v1  ;;  %12602 = vmatmul.mubr.bf16.gmra.mxu1 %v13268_v13  ;;  %v11400_v59 = vpack.c.bf16 %v5682_v51, %v5681_v14  ;;  %v5679_v19 = vld [vmem:[#allocation3 + $0x108] sm:$0xff]  ;;  %11696 = vst [vmem:[#allocation4 + $0x148] sm:$0xff] %v11545_v9  }
 0x2e1   : > { %v5617_v10 = vmax.f32 %v5585_v40, 0.0  ;;  %12605 = vmatprep.mubr.bf16.mxu1 %v13270_v56  ;;  %12654 = vmatmul.mubr.bf16.gmra.mxu0 %v13274_v24  ;;  %v11500_v4 = vpack.c.bf16 %v5619_v60, %v5618_v54  ;;  %v5553_v53 = vmul.f32 %v13456_v61, %v5515_v6  ;;  %v5513_v26 = vadd.f32 %v5472_v27, %v5127_v22  ;;  %v5680_v23 = vld [vmem:[#allocation3 + $0x110] sm:$0xff]  ;;  %v6106_v14 = vld [vmem:[#allocation3 + $0xc2] sm:$0xff]  ;;  %v6108_v6 = vld [vmem:[#allocation3 + $0xda] sm:$0xff] }
 0x2e2   : > { %v5622_v48 = vmax.f32 %v5590_v17, 0.0  ;;  %v5588_v16 = vadd.f32 %v14997_v46, %v5550_v2  ;;  %12657 = vmatprep.mubr.bf16.mxu0 %v13277_v34  ;;  %11669 = vst [vmem:[#allocation4 + $0x60] sm:$0xff] %v11400_v59   ;;  %12683 = vmatprep.subr.bf16.mxu1 %v13293_v15  ;;  %v13457_v46 = vld [vmem:[%s16076_s5] ss:$0 sm:$0xff]  ;;  %v11395_v41 = vpack.c.bf16 %v5680_v23, %v5679_v19  ;;  %v13284_v54 = vld [vmem:[#allocation4 + $0xf0] sm:$0xff]   ;;  %11697 = vst [vmem:[#allocation4 + $0x150] sm:$0xff] %v11550_v11  }
 0x2e3   : > { %5650 = vst [vmem:[#allocation3 + $0x141] sm:$0xff] %v5617_v10  ;;  %v11495_v36 = vpack.c.bf16 %v5617_v10, %v5616_v50  ;;  %11688 = vst [vmem:[#allocation4 + $0x100] sm:$0xff] %v11500_v4   ;;  %12684 = vmatpush3.bf16.msra.mxu1 %v13293_v15  ;;  %12732 = vmatpush3.bf16.msra.mxu0 %v15316_v39  ;;  %v5591_v42 = vadd.f32 %v13457_v46, %v5553_v53  ;;  %v13276_v39 = vld [vmem:[#allocation4 + $0x50] sm:$0xff]   ;;  %v5685_v20 = vld [vmem:[#allocation3 + $0x150] sm:$0xff] }
 0x2e4   : > { %5655 = vst [vmem:[#allocation3 + $0x181] sm:$0xff] %v5622_v48  ;;  %v5620_v33 = vmax.f32 %v5588_v16, 0.0  ;;  %v5551_v47 = vmul.f32 %v13456_v61, %v5513_v26  ;;  %12765 = vmatprep.subr.bf16.mxu1 %v15339_v35  ;;  %12813 = vmatprep.subr.bf16.mxu0 %v15344_v30  ;;  %v13281_v57 = vld [vmem:[#allocation4 + $0xe8] sm:$0xff]   ;;  %11668 = vst [vmem:[#allocation4 + $0x58] sm:$0xff] %v11395_v41   ;;  %v6104_v1 = vld [vmem:[#allocation3 + $0xaa] sm:$0xff] }
 0x2e5   : > { %11687 = vst [vmem:[#allocation4 + $0xf8] sm:$0xff] %v11495_v36   ;;  %v5623_v45 = vmax.f32 %v5591_v42, 0.0  ;;  %v13273_v12 = vld [vmem:[#allocation4 + $0x48] sm:$0xff]   ;;  %v6107_v51 = vld [vmem:[#allocation3 + $0xca] sm:$0xff]  ;;  %v6109_v59 = vld [vmem:[#allocation3 + $0xe2] sm:$0xff] }
 0x2e6   : > { %5653 = vst [vmem:[#allocation3 + $0x169] sm:$0xff] %v5620_v33  ;;  %v5589_v29 = vadd.f32 %v13457_v46, %v5551_v47  ;;  %v5683_v18 = vld [vmem:[#allocation3 + $0x138] sm:$0xff]  ;;  %v11560_v2 = vpack.c.bf16 %v6107_v51, %v6106_v14  ;;  %v11565_v32 = vpack.c.bf16 %v6109_v59, %v6108_v6  ;;  %v13299_v27 = vld [vmem:[#allocation4 + $0x120] sm:$0xff]   ;;  %v13326_v16 = vld [vmem:[%s16078_s7 + $0x170] sm:$0xff]  }
 0x2e7   : > { %v5686_v52 = vld [vmem:[#allocation3 + $0x158] sm:$0xff]  ;;  %5656 = vst [vmem:[#allocation3 + $0x189] sm:$0xff] %v5623_v45  ;;  %v11510_v3 = vpack.c.bf16 %v5623_v45, %v5622_v48  ;;  %v6112_v9 = vld [vmem:[#allocation3 + $0x10a] sm:$0xff]  ;;  %v6114_v53 = vld [vmem:[#allocation3 + $0x122] sm:$0xff] }
 0x2e8   : > { %v5621_v28 = vmax.f32 %v5589_v29, 0.0  ;;  %12606 = vmatmul.mubr.bf16.gmra.mxu1 %v13273_v12  ;;  %v11410_v62 = vpack.c.bf16 %v5686_v52, %v5685_v20  ;;  %v6105_v22 = vld [vmem:[#allocation3 + $0xb2] sm:$0xff]  ;;  %11699 = vst [vmem:[#allocation4 + $0x160] sm:$0xff] %v11560_v2   ;;  %v6111_v10 = vld [vmem:[#allocation3 + $0xfa] sm:$0xff]  ;;  %11700 = vst [vmem:[#allocation4 + $0x168] sm:$0xff] %v11565_v32  }
 0x2e9   : > { %12609 = vmatprep.mubr.bf16.mxu1 %v13276_v39  ;;  %12658 = vmatmul.mubr.bf16.gmra.mxu0 %v13281_v57  ;;  %11690 = vst [vmem:[#allocation4 + $0x110] sm:$0xff] %v11510_v3   ;;  %v13283_v38 = vld [vmem:[#allocation4 + $0x60] sm:$0xff]   ;;  %v11555_v31 = vpack.c.bf16 %v6105_v22, %v6104_v1  ;;  %v13297_v17 = vld [vmem:[#allocation4 + $0x8] sm:$0xff]   ;;  %v11570_v4 = vpack.c.bf16 %v6111_v10, %v6110_v58  ;;  %v13302_v23 = vld [vmem:[#allocation4 + $0x10] sm:$0xff]  }
 0x2ea   : > { %5654 = vst [vmem:[#allocation3 + $0x171] sm:$0xff] %v5621_v28  ;;  %12661 = vmatprep.mubr.bf16.mxu0 %v13284_v54  ;;  %v5684_v44 = vld [vmem:[#allocation3 + $0x140] sm:$0xff]  ;;  %11671 = vst [vmem:[#allocation4 + $0x70] sm:$0xff] %v11410_v62   ;;  %v11505_v0 = vpack.c.bf16 %v5621_v28, %v5620_v33  ;;  %v13291_v56 = vld [vmem:[#allocation4 + $0x100] sm:$0xff]  }
 0x2eb   : > { %v11405_v50 = vpack.c.bf16 %v5684_v44, %v5683_v18  ;;  %v5689_v5 = vld [vmem:[#allocation3 + $0x180] sm:$0xff]  ;;  %v13280_v25 = vld [vmem:[#allocation4 + $0x58] sm:$0xff]   ;;  %11698 = vst [vmem:[#allocation4 + $0x158] sm:$0xff] %v11555_v31   ;;  %11701 = vst [vmem:[#allocation4 + $0x170] sm:$0xff] %v11570_v4  }
 0x2ec   : > { %11689 = vst [vmem:[#allocation4 + $0x108] sm:$0xff] %v11505_v0   ;;  %v13288_v37 = vld [vmem:[#allocation4 + $0xf8] sm:$0xff]   ;;  %v6113_v48 = vld [vmem:[#allocation3 + $0x112] sm:$0xff]  ;;  %v6116_v42 = vld [vmem:[#allocation3 + $0x13a] sm:$0xff] }
 0x2ed   : > { %11670 = vst [vmem:[#allocation4 + $0x68] sm:$0xff] %v11405_v50   ;;  %v5687_v8 = vld [vmem:[#allocation3 + $0x168] sm:$0xff]  ;;  %v11575_v61 = vpack.c.bf16 %v6113_v48, %v6112_v9  ;;  %v13330_v46 = vld [vmem:[%s16078_s7 + $0x168] sm:$0xff]   ;;  %v13305_v41 = vld [vmem:[%s16078_s7 + $0x130] sm:$0xff]  }
 0x2ee   : > { %v5690_v63 = vld [vmem:[#allocation3 + $0x188] sm:$0xff]  ;;  %v13301_v57 = vld [vmem:[#allocation4 + $0x128] sm:$0xff]   ;;  %v13333_v29 = vld [vmem:[%s16078_s7 + $0x160] sm:$0xff]  }
 0x2ef   : > { %v6122_v7 = vld [vmem:[#allocation3 + $0x182] sm:$0xff]  ;;  %v6123_v49 = vld [vmem:[#allocation3 + $0x18a] sm:$0xff]  ;;  %v11420_v24 = vpack.c.bf16 %v5690_v63, %v5689_v5  ;;  %11702 = vst [vmem:[#allocation4 + $0x178] sm:$0xff] %v11575_v61   ;;  %v6118_v45 = vld [vmem:[#allocation3 + $0x152] sm:$0xff] }
 0x2f0   : > { %12610 = vmatmul.mubr.bf16.gmra.mxu1 %v13280_v25  ;;  %v11600_v15 = vpack.c.bf16 %v6123_v49, %v6122_v7  ;;  %v6115_v26 = vld [vmem:[#allocation3 + $0x12a] sm:$0xff]  ;;  %v6117_v47 = vld [vmem:[#allocation3 + $0x142] sm:$0xff]  ;;  %v13309_v52 = vld [vmem:[#allocation4 + $0x28] sm:$0xff]  }
 0x2f1   : > { %12613 = vmatprep.mubr.bf16.mxu1 %v13283_v38  ;;  %12662 = vmatmul.mubr.bf16.gmra.mxu0 %v13288_v37  ;;  %v5688_v60 = vld [vmem:[#allocation3 + $0x170] sm:$0xff]  ;;  %11673 = vst [vmem:[#allocation4 + $0x80] sm:$0xff] %v11420_v24   ;;  %v13290_v40 = vld [vmem:[#allocation4 + $0x70] sm:$0xff]   ;;  %v11580_v36 = vpack.c.bf16 %v6115_v26, %v6114_v53  ;;  %v13304_v33 = vld [vmem:[#allocation4 + $0x18] sm:$0xff]   ;;  %v11585_v43 = vpack.c.bf16 %v6117_v47, %v6116_v42 }
 0x2f2   : > { %12665 = vmatprep.mubr.bf16.mxu0 %v13291_v56  ;;  %11707 = vst [vmem:[#allocation4 + $0x1a0] sm:$0xff] %v11600_v15   ;;  %v11415_v55 = vpack.c.bf16 %v5688_v60, %v5687_v8  ;;  %v13303_v12 = vld [vmem:[#allocation4 + $0x130] sm:$0xff]   ;;  %v13307_v20 = vld [vmem:[#allocation4 + $0x20] sm:$0xff]   ;;  %v13310_v62 = vld [vmem:[%s16078_s7 + $0x128] sm:$0xff]  }
 0x2f3   : > { %v13295_v34 = vld [vmem:[#allocation4 + $0x108] sm:$0xff]   ;;  %11703 = vst [vmem:[#allocation4 + $0x180] sm:$0xff] %v11580_v36   ;;  %11704 = vst [vmem:[#allocation4 + $0x188] sm:$0xff] %v11585_v43   ;;  %v6120_v28 = vld [vmem:[#allocation3 + $0x16a] sm:$0xff] }
 0x2f4   : > { %v13287_v13 = vld [vmem:[#allocation4 + $0x68] sm:$0xff]   ;;  %11672 = vst [vmem:[#allocation4 + $0x78] sm:$0xff] %v11415_v55   ;;  %v13337_v3 = vld [vmem:[%s16078_s7 + $0x158] sm:$0xff]   ;;  %v13340_v11 = vld [vmem:[%s16078_s7 + $0x150] sm:$0xff]  }
 0x2f5   : > { %v6121_v54 = vld [vmem:[#allocation3 + $0x172] sm:$0xff]  ;;  %v13306_v18 = vld [vmem:[#allocation4 + $0x138] sm:$0xff]   ;;  %v13312_v0 = vld [vmem:[#allocation4 + $0x30] sm:$0xff]  }
 0x2f6   : > { %v11595_v21 = vpack.c.bf16 %v6121_v54, %v6120_v28  ;;  %v13308_v44 = vld [vmem:[#allocation4 + $0x140] sm:$0xff]   ;;  %v13314_v50 = vld [vmem:[#allocation4 + $0x38] sm:$0xff]   ;;  %v13344_v37 = vld [vmem:[%s16078_s7 + $0x148] sm:$0xff]  }
 0x2f7   : > { %v13320_v38 = vld [vmem:[%s16078_s7 + $0x118] sm:$0xff]   ;;  %v13327_v5 = vld [vmem:[%s16078_s7 + $0x110] sm:$0xff]   ;;  %v13311_v25 = vld [vmem:[#allocation4 + $0x148] sm:$0xff]  }
 0x2f8   : > { %12614 = vmatmul.mubr.bf16.gmra.mxu1 %v13287_v13  ;;  %11706 = vst [vmem:[#allocation4 + $0x198] sm:$0xff] %v11595_v21   ;;  %v13347_v63 = vld [vmem:[%s16078_s7 + $0x140] sm:$0xff]   ;;  %v13313_v7 = vld [vmem:[#allocation4 + $0x150] sm:$0xff]   ;;  %v13319_v56 = vld [vmem:[#allocation4 + $0x48] sm:$0xff]  }
 0x2f9   : > { %12617 = vmatprep.mubr.bf16.mxu1 %v13290_v40  ;;  %12666 = vmatmul.mubr.bf16.gmra.mxu0 %v13295_v34  ;;  %v13317_v49 = vld [vmem:[#allocation4 + $0x40] sm:$0xff]   ;;  %v13334_v24 = vld [vmem:[%s16078_s7 + $0x108] sm:$0xff]   ;;  %v13316_v8 = vld [vmem:[#allocation4 + $0x158] sm:$0xff]  }
 0x2fa   : > { %12733 = vmatprep.mubr.bf16.mxu0 %v13297_v17  ;;  %v13341_v15 = vld [vmem:[%s16078_s7 + $0x100] sm:$0xff]   ;;  %v13322_v55 = vld [vmem:[#allocation4 + $0x50] sm:$0xff]   ;;  %v13325_v1 = vld [vmem:[#allocation4 + $0x58] sm:$0xff]  }
 0x2fb   : > { %v13294_v19 = vld [vmem:[#allocation4 + $0x78] sm:$0xff]   ;;  %v13318_v60 = vld [vmem:[#allocation4 + $0x160] sm:$0xff]   ;;  %v13321_v22 = vld [vmem:[#allocation4 + $0x168] sm:$0xff]  }
 0x2fc   : > { %v13371_v13 = vld [vmem:[%s16078_s7 + $0x1f8] sm:$0xff]   ;;  %v13324_v40 = vld [vmem:[#allocation4 + $0x170] sm:$0xff]   ;;  %v13329_v31 = vld [vmem:[#allocation4 + $0x60] sm:$0xff]  }
 0x2fd   : > { %v13348_v34 = vld [vmem:[%s16078_s7 + $0x1b8] sm:$0xff]   ;;  %v13332_v14 = vld [vmem:[#allocation4 + $0x68] sm:$0xff]   ;;  %v13331_v17 = vld [vmem:[#allocation4 + $0x180] sm:$0xff]  }
 0x2fe   : > { %v13328_v51 = vld [vmem:[#allocation4 + $0x178] sm:$0xff]   ;;  %v13336_v2 = vld [vmem:[#allocation4 + $0x70] sm:$0xff]   ;;  %v13335_v59 = vld [vmem:[#allocation4 + $0x188] sm:$0xff]  }
 0x2ff   : > { %v13339_v6 = vld [vmem:[#allocation4 + $0x78] sm:$0xff]   ;;  %v13343_v58 = vld [vmem:[#allocation4 + $0x80] sm:$0xff]   ;;  %v13346_v10 = vld [vmem:[#allocation4 + $0x128] sm:$0xff]  }
 0x300   : > { %12618 = vmatmul.mubr.bf16.gmra.mxu1 %v13294_v19  ;;  %v13345_v4 = vld [vmem:[#allocation4 + $0x98] sm:$0xff]   ;;  %v13350_v9 = vld [vmem:[#allocation4 + $0x130] sm:$0xff]   ;;  %v13378_v53 = vld [vmem:[%s16078_s7 + $0x1e8] sm:$0xff]  }
 0x301   : > { %12685 = vmatprep.mubr.bf16.mxu1 %v13299_v27  ;;  %12734 = vmatmul.mubr.bf16.vlgmr.msra.gmra.mxu0 %v13302_v23  ;;  %v13342_v27 = vld [vmem:[#allocation4 + $0x198] sm:$0xff]   ;;  %v13374_v19 = vld [vmem:[%s16078_s7 + $0x1f0] sm:$0xff]   ;;  %v13349_v26 = vld [vmem:[#allocation4 + $0xa0] sm:$0xff]  }
 0x302   : > { %12737 = vmatprep.mubr.bf16.mxu0 %v13304_v33  ;;  %12814 = vmatpush3.bf16.msra.mxu0 %v15344_v30  ;;  %v6119_v30 = vld [vmem:[#allocation3 + $0x15a] sm:$0xff]  ;;  %v13352_v48 = vld [vmem:[#allocation4 + $0x138] sm:$0xff]   ;;  %v13355_v33 = vld [vmem:[#allocation4 + $0x140] sm:$0xff]  }
 0x303   : > { %12815 = vmatprep.subr.bf16.mxu0 %v13326_v16  ;;  %v11590_v39 = vpack.c.bf16 %v6119_v30, %v6118_v45  ;;  %v13353_v23 = vld [vmem:[%s16078_s7 + $0x1b0] sm:$0xff]   ;;  %v13351_v36 = vld [vmem:[#allocation4 + $0xa8] sm:$0xff]   ;;  %v13356_v45 = vld [vmem:[#allocation4 + $0xb8] sm:$0xff]  }
 0x304   : > { %v13357_v42 = vld [vmem:[#allocation4 + $0x148] sm:$0xff]   ;;  %v13354_v43 = vld [vmem:[#allocation4 + $0xb0] sm:$0xff]   ;;  %v13395_v21 = vld [vmem:[%s16078_s7 + $0x1c0] sm:$0xff]  }
 0x305   : > { %11705 = vst [vmem:[#allocation4 + $0x190] sm:$0xff] %v11590_v39   ;;  %v13358_v47 = vld [vmem:[%s16078_s7 + $0x1a8] sm:$0xff]   ;;  %v13388_v30 = vld [vmem:[%s16078_s7 + $0x1d0] sm:$0xff]   ;;  %v13368_v39 = vld [vmem:[%s16078_s7 + $0x198] sm:$0xff]  }
 0x306   : > { %12816 = vmatpush3.bf16.msra.mxu0 %v13326_v16  ;;  %v13458_v16 = vld [vmem:[#allocation3] sm:$0xff]  ;;  %v13361_v28 = vld [vmem:[#allocation4 + $0xc8] sm:$0xff]  }
 0x307   : > { %12817 = vmatprep.subr.bf16.mxu0 %v13330_v46  ;;  %v11425_v61 = vpack.c.bf16 %v13458_v16, %v13458_v16  ;;  %v13375_v54 = vld [vmem:[%s16078_s7 + $0x190] sm:$0xff]   ;;  %v13399_v16 = vld [vmem:[#allocation4 + $0x20] sm:$0xff]  }
 0x308   : > { %12686 = vmatmul.mubr.bf16.vlgmr.msra.gmra.mxu1 %v13301_v57  ;;  %v13363_v57 = vld [vmem:[%s16078_s7 + $0x1a0] sm:$0xff]  }
 0x309   : > { %12766 = vmatpush3.bf16.msra.mxu1 %v15339_v35  ;;  %12689 = vmatprep.mubr.bf16.mxu1 %v13303_v12  ;;  %v13315_v35 = vld [vmem:[%s16078_s7 + $0x120] sm:$0xff]   ;;  %11674 = vst [vmem:[#allocation4 + $0x88] sm:$0xff] %v11425_v61   ;;  %v13362_v12 = vld [vmem:[#allocation4 + $0x158] sm:$0xff]  }
 0x30a   : > { %12767 = vmatprep.subr.bf16.mxu1 %v13305_v41  ;;  %12738 = vmatmul.mubr.bf16.gmra.mxu0 %v13307_v20  ;;  %v13359_v20 = vld [vmem:[#allocation4 + $0xc0] sm:$0xff]  }
 0x30b   : > { %12741 = vmatprep.mubr.bf16.mxu0 %v13309_v52  ;;  %12818 = vmatpush3.bf16.msra.mxu0 %v13330_v46  ;;  %v13381_v46 = vld [vmem:[%s16078_s7 + $0x1e0] sm:$0xff]   ;;  %v13392_v52 = vld [vmem:[%s16078_s7 + $0x1c8] sm:$0xff]  }
 0x30c   : > { %12819 = vmatprep.subr.bf16.mxu0 %v13333_v29  ;;  %v13338_v32 = vld [vmem:[#allocation4 + $0x190] sm:$0xff]  }
 0x30d   : > { %12768 = vmatpush3.bf16.msra.mxu1 %v13305_v41  ;;  %v13385_v41 = vld [vmem:[%s16078_s7 + $0x1d8] sm:$0xff]  }
 0x30e   : > { %12769 = vmatprep.subr.bf16.mxu1 %v13310_v62 }
 0x30f   : > { %12820 = vmatpush3.bf16.msra.mxu0 %v13333_v29  ;;  %v13360_v29 = vld [vmem:[#allocation4 + $0x150] sm:$0xff]  }
 0x310   : > { %12690 = vmatmul.mubr.bf16.gmra.mxu1 %v13306_v18  ;;  %12821 = vmatprep.subr.bf16.mxu0 %v13337_v3  ;;  %v5907_v18 = vld [vmem:[#allocation3 + $0x199] sm:$0xff] }
 0x311   : > { %12693 = vmatprep.mubr.bf16.mxu1 %v13308_v44  ;;  %12770 = vmatpush3.bf16.msra.mxu1 %v13310_v62  ;;  %v13365_v62 = vld [vmem:[#allocation4 + $0x160] sm:$0xff]   ;;  %v13364_v44 = vld [vmem:[#allocation4 + $0xd0] sm:$0xff]  }
 0x312   : > { %12742 = vmatmul.mubr.bf16.gmra.mxu0 %v13312_v0  ;;  %12771 = vmatprep.subr.bf16.mxu1 %v13315_v35  ;;  %v13389_v0 = vld [vmem:[%s16078_s7 + $0x180] sm:$0xff]  }
 0x313   : > { %12745 = vmatprep.mubr.bf16.mxu0 %v13314_v50  ;;  %12822 = vmatpush3.bf16.msra.mxu0 %v13337_v3  ;;  %v13367_v3 = vld [vmem:[#allocation4 + $0x168] sm:$0xff]  }
 0x314   : > { %12823 = vmatprep.subr.bf16.mxu0 %v13340_v11 }
 0x315   : > { %12772 = vmatpush3.bf16.msra.mxu1 %v13315_v35  ;;  %v13382_v35 = vld [vmem:[%s16078_s7 + $0x188] sm:$0xff]  }
 0x316   : > { %12773 = vmatprep.subr.bf16.mxu1 %v13320_v38 }
 0x317   : > { %12824 = vmatpush3.bf16.msra.mxu0 %v13340_v11  ;;  %v5908_v11 = vld [vmem:[#allocation3 + $0x1a1] sm:$0xff] }
 0x318   : > { %12694 = vmatmul.mubr.bf16.gmra.mxu1 %v13311_v25  ;;  %12825 = vmatprep.subr.bf16.mxu0 %v13344_v37  ;;  %v11515_v50 = vpack.c.bf16 %v5908_v11, %v5907_v18  ;;  %v13396_v25 = vld [vmem:[%s16078_s7 + $0x238] sm:$0xff]   ;;  %v13408_v18 = vld [vmem:[#allocation4 + $0xc8] sm:$0xff]  }
 0x319   : > { %12697 = vmatprep.mubr.bf16.mxu1 %v13313_v7  ;;  %12774 = vmatpush3.bf16.msra.mxu1 %v13320_v38  ;;  %v13366_v38 = vld [vmem:[#allocation4 + $0xd8] sm:$0xff]   ;;  %v13372_v7 = vld [vmem:[#allocation4 + $0xe8] sm:$0xff]  }
 0x31a   : > { %12746 = vmatmul.mubr.bf16.gmra.mxu0 %v13317_v49  ;;  %12775 = vmatprep.subr.bf16.mxu1 %v13327_v5  ;;  %11691 = vst [vmem:[#allocation4 + $0x118] sm:$0xff] %v11515_v50   ;;  %v13377_v49 = vld [vmem:[#allocation4 + $0x180] sm:$0xff]  }
 0x31b   : > { %12749 = vmatprep.mubr.bf16.mxu0 %v13319_v56  ;;  %12826 = vmatpush3.bf16.msra.mxu0 %v13344_v37  ;;  %v13370_v37 = vld [vmem:[#allocation4 + $0x170] sm:$0xff]   ;;  %v13380_v56 = vld [vmem:[#allocation4 + $0x188] sm:$0xff]  }
 0x31c   : > { %12827 = vmatprep.subr.bf16.mxu0 %v13347_v63 }
 0x31d   : > { %12776 = vmatpush3.bf16.msra.mxu1 %v13327_v5  ;;  %v13373_v5 = vld [vmem:[#allocation4 + $0x178] sm:$0xff]  }
 0x31e   : > { %12777 = vmatprep.subr.bf16.mxu1 %v13334_v24 }
 0x31f   : > { %12828 = vmatpush3.bf16.msra.mxu0 %v13347_v63  ;;  %v13369_v63 = vld [vmem:[#allocation4 + $0xe0] sm:$0xff]  }
 0x320   : > { %12698 = vmatmul.mubr.bf16.gmra.mxu1 %v13316_v8  ;;  %12909 = vmatprep.subr.bf16.mxu0 %v13371_v13  ;;  %v13384_v8 = vld [vmem:[#allocation4 + $0x190] sm:$0xff]  }
 0x321   : > { %12701 = vmatprep.mubr.bf16.mxu1 %v13318_v60  ;;  %12778 = vmatpush3.bf16.msra.mxu1 %v13334_v24  ;;  %v13376_v24 = vld [vmem:[#allocation4 + $0xf0] sm:$0xff]   ;;  %v13387_v60 = vld [vmem:[#allocation4 + $0x198] sm:$0xff]  }
 0x322   : > { %12750 = vmatmul.mubr.bf16.gmra.mxu0 %v13322_v55  ;;  %12779 = vmatprep.subr.bf16.mxu1 %v13341_v15  ;;  %v13383_v55 = vld [vmem:[#allocation4 + $0x100] sm:$0xff]  }
 0x323   : > { %12753 = vmatprep.mubr.bf16.mxu0 %v13325_v1  ;;  %v13386_v1 = vld [vmem:[#allocation4 + $0x108] sm:$0xff]  }
 0x325   : > { %12780 = vmatpush3.bf16.msra.mxu1 %v13341_v15  ;;  %v13379_v15 = vld [vmem:[#allocation4 + $0xf8] sm:$0xff]  }
 0x326   : > { %12861 = vmatprep.subr.bf16.mxu1 %v13348_v34 }
 0x328   : > { %12702 = vmatmul.mubr.bf16.gmra.mxu1 %v13321_v22  ;;  %v13390_v22 = vld [vmem:[#allocation4 + $0x110] sm:$0xff]  }
 0x329   : > { %12705 = vmatprep.mubr.bf16.mxu1 %v13324_v40 }
 0x32a   : > { %12754 = vmatmul.mubr.bf16.gmra.mxu0 %v13329_v31  ;;  %v13393_v31 = vld [vmem:[#allocation4 + $0x10] sm:$0xff]  }
 0x32b   : > { %12757 = vmatprep.mubr.bf16.mxu0 %v13332_v14  ;;  %v13398_v14 = vld [vmem:[#allocation4 + $0xa8] sm:$0xff]  }
 0x330   : > { %12706 = vmatmul.mubr.bf16.gmra.mxu1 %v13328_v51 }
 0x331   : > { %12709 = vmatprep.mubr.bf16.mxu1 %v13331_v17  ;;  %v13400_v17 = vld [vmem:[#allocation4 + $0xb0] sm:$0xff]  }
 0x332   : > { %12758 = vmatmul.mubr.bf16.gmra.mxu0 %v13336_v2 }
 0x333   : > { %12761 = vmatprep.mubr.bf16.mxu0 %v13339_v6  ;;  %v6124_v6 = vld [vmem:[#allocation3 + $0x19a] sm:$0xff] }
 0x338   : > { %12710 = vmatmul.mubr.bf16.gmra.mxu1 %v13335_v59  ;;  %v6125_v59 = vld [vmem:[#allocation3 + $0x1a2] sm:$0xff] }
 0x339   : > { %12713 = vmatprep.mubr.bf16.mxu1 %v13338_v32  ;;  %v10474_v32 = vld [vmem:[%s13755_s16 + $0x31] sm:$0xff] }
 0x33a   : > { %12762 = vmatmul.mubr.bf16.gmra.mxu0 %v13343_v58  ;;  %v11605_v58 = vpack.c.bf16 %v6125_v59, %v6124_v6  ;;  %v13415_v59 = vld [vmem:[#allocation4 + $0xe0] sm:$0xff]  }
 0x33b   : > { %12829 = vmatprep.mubr.bf16.mxu0 %v13346_v10 }
 0x33c   : > { %11708 = vst [vmem:[#allocation4 + $0x1a8] sm:$0xff] %v11605_v58   ;;  %v10483_v58 = vld [vmem:[%s13755_s16 + $0x99] sm:$0xff] }
 0x340   : > { %12714 = vmatmul.mubr.bf16.gmra.mxu1 %v13342_v27 }
 0x341   : > { %12781 = vmatprep.mubr.bf16.mxu1 %v13345_v4  ;;  %v13397_v4 = vld [vmem:[#allocation4 + $0x18] sm:$0xff]  }
 0x342   : > { %12830 = vmatmul.mubr.bf16.vlgmr.msra.gmra.mxu0 %v13350_v9  ;;  %v10472_v9 = vld [vmem:[%s13755_s16 + $0x19] sm:$0xff] }
 0x343   : > { %12833 = vmatprep.mubr.bf16.mxu0 %v13352_v48  ;;  %12910 = vmatpush3.bf16.msra.mxu0 %v13371_v13  ;;  %v13391_v13 = vld [vmem:[#allocation4 + $0x1a0] sm:$0xff]  }
 0x344   : > { %12911 = vmatprep.subr.bf16.mxu0 %v13374_v19 }
 0x347   : > { %12912 = vmatpush3.bf16.msra.mxu0 %v13374_v19  ;;  %v13401_v19 = vld [vmem:[%s16078_s7 + $0x230] sm:$0xff]  }
 0x348   : > { %12782 = vmatmul.mubr.bf16.vlgmr.msra.gmra.mxu1 %v13349_v26  ;;  %12913 = vmatprep.subr.bf16.mxu0 %v13378_v53  ;;  %v13403_v26 = vld [vmem:[#allocation4 + $0xb8] sm:$0xff]  }
 0x349   : > { %12862 = vmatpush3.bf16.msra.mxu1 %v13348_v34  ;;  %12785 = vmatprep.mubr.bf16.mxu1 %v13351_v36  ;;  %v13394_v34 = vld [vmem:[#allocation4 + $0xa0] sm:$0xff]  }
 0x34a   : > { %12863 = vmatprep.subr.bf16.mxu1 %v13353_v23  ;;  %12834 = vmatmul.mubr.bf16.gmra.mxu0 %v13355_v33 }
 0x34b   : > { %12837 = vmatprep.mubr.bf16.mxu0 %v13357_v42  ;;  %12914 = vmatpush3.bf16.msra.mxu0 %v13378_v53  ;;  %v10475_v53 = vld [vmem:[%s13755_s16 + $0x39] sm:$0xff] }
 0x34c   : > { %12915 = vmatprep.subr.bf16.mxu0 %v13381_v46 }
 0x34d   : > { %12864 = vmatpush3.bf16.msra.mxu1 %v13353_v23 }
 0x34e   : > { %12865 = vmatprep.subr.bf16.mxu1 %v13358_v47 }
 0x34f   : > { %12916 = vmatpush3.bf16.msra.mxu0 %v13381_v46  ;;  %v13405_v46 = vld [vmem:[#allocation4 + $0xc0] sm:$0xff]  }
 0x350   : > { %12786 = vmatmul.mubr.bf16.gmra.mxu1 %v13354_v43  ;;  %12917 = vmatprep.subr.bf16.mxu0 %v13385_v41 }
 0x351   : > { %12789 = vmatprep.mubr.bf16.mxu1 %v13356_v45  ;;  %12866 = vmatpush3.bf16.msra.mxu1 %v13358_v47  ;;  %v10473_v47 = vld [vmem:[%s13755_s16 + $0x21] sm:$0xff] }
 0x352   : > { %12838 = vmatmul.mubr.bf16.gmra.mxu0 %v13360_v29  ;;  %12867 = vmatprep.subr.bf16.mxu1 %v13363_v57 }
 0x353   : > { %12841 = vmatprep.mubr.bf16.mxu0 %v13362_v12  ;;  %12918 = vmatpush3.bf16.msra.mxu0 %v13385_v41  ;;  %v13406_v41 = vld [vmem:[%s16078_s7 + $0x228] sm:$0xff]  }
 0x354   : > { %12919 = vmatprep.subr.bf16.mxu0 %v13388_v30 }
 0x355   : > { %12868 = vmatpush3.bf16.msra.mxu1 %v13363_v57 }
 0x356   : > { %12869 = vmatprep.subr.bf16.mxu1 %v13368_v39 }
 0x357   : > { %12920 = vmatpush3.bf16.msra.mxu0 %v13388_v30 }
 0x358   : > { %12790 = vmatmul.mubr.bf16.gmra.mxu1 %v13359_v20  ;;  %12921 = vmatprep.subr.bf16.mxu0 %v13392_v52  ;;  %v10478_v20 = vld [vmem:[%s13755_s16 + $0x61] sm:$0xff] }
 0x359   : > { %12793 = vmatprep.mubr.bf16.mxu1 %v13361_v28  ;;  %12870 = vmatpush3.bf16.msra.mxu1 %v13368_v39  ;;  %v13411_v28 = vld [vmem:[%s16078_s7 + $0x220] sm:$0xff]  }
 0x35a   : > { %12842 = vmatmul.mubr.bf16.gmra.mxu0 %v13365_v62  ;;  %12871 = vmatprep.subr.bf16.mxu1 %v13375_v54  ;;  %v13404_v62 = vld [vmem:[#allocation4 + $0x30] sm:$0xff]  }
 0x35b   : > { %12845 = vmatprep.mubr.bf16.mxu0 %v13367_v3  ;;  %12922 = vmatpush3.bf16.msra.mxu0 %v13392_v52  ;;  %v13402_v52 = vld [vmem:[#allocation4 + $0x28] sm:$0xff]  }
 0x35c   : > { %12923 = vmatprep.subr.bf16.mxu0 %v13395_v21 }
 0x35d   : > { %12872 = vmatpush3.bf16.msra.mxu1 %v13375_v54 }
 0x35e   : > { %12873 = vmatprep.subr.bf16.mxu1 %v13382_v35 }
 0x35f   : > { %12924 = vmatpush3.bf16.msra.mxu0 %v13395_v21 }
 0x360   : > { %12794 = vmatmul.mubr.bf16.gmra.mxu1 %v13364_v44 }
 0x361   : > { %12797 = vmatprep.mubr.bf16.mxu1 %v13366_v38  ;;  %12874 = vmatpush3.bf16.msra.mxu1 %v13382_v35  ;;  %v10476_v35 = vld [vmem:[%s13755_s16 + $0x49] sm:$0xff] }
 0x362   : > { %12846 = vmatmul.mubr.bf16.gmra.mxu0 %v13370_v37  ;;  %12875 = vmatprep.subr.bf16.mxu1 %v13389_v0  ;;  %v10479_v38 = vld [vmem:[%s13755_s16 + $0x69] sm:$0xff]  ;;  %v13416_v37 = vld [vmem:[%s16078_s7 + $0x218] sm:$0xff]  }
 0x363   : > { %12849 = vmatprep.mubr.bf16.mxu0 %v13373_v5 }
 0x365   : > { %12876 = vmatpush3.bf16.msra.mxu1 %v13389_v0  ;;  %v13410_v0 = vld [vmem:[#allocation4 + $0xd0] sm:$0xff]  }
 0x366   : > { %12957 = vmatprep.subr.bf16.mxu1 %v13396_v25 }
 0x368   : > { %12798 = vmatmul.mubr.bf16.gmra.mxu1 %v13369_v63 }
 0x369   : > { %12801 = vmatprep.mubr.bf16.mxu1 %v13372_v7 }
 0x36a   : > { %12850 = vmatmul.mubr.bf16.gmra.mxu0 %v13377_v49  ;;  %v10477_v49 = vld [vmem:[%s13755_s16 + $0x51] sm:$0xff] }
 0x36b   : > { %12853 = vmatprep.mubr.bf16.mxu0 %v13380_v56 }
 0x370   : > { %12802 = vmatmul.mubr.bf16.gmra.mxu1 %v13376_v24 }
 0x371   : > { %12805 = vmatprep.mubr.bf16.mxu1 %v13379_v15 }
 0x372   : > { %12854 = vmatmul.mubr.bf16.gmra.mxu0 %v13384_v8 }
 0x373   : > { %12857 = vmatprep.mubr.bf16.mxu0 %v13387_v60  ;;  %v10482_v60 = vld [vmem:[%s13755_s16 + $0x91] sm:$0xff] }
 0x378   : > { %12806 = vmatmul.mubr.bf16.gmra.mxu1 %v13383_v55  ;;  %v13407_v55 = vld [vmem:[#allocation4 + $0x38] sm:$0xff]  }
 0x379   : > { %12809 = vmatprep.mubr.bf16.mxu1 %v13386_v1  ;;  %v13421_v1 = vld [vmem:[%s16078_s7 + $0x210] sm:$0xff]  }
 0x37a   : > { %12858 = vmatmul.mubr.bf16.gmra.mxu0 %v13391_v13 }
 0x37b   : > { %12925 = vmatprep.mubr.bf16.mxu0 %v13394_v34  ;;  %v12639_v40 = vpop.f32.mrf.mxu0 }
 0x37d   : > { %v6952_v51 = vpop.f32.mrf.mxu0 }
 0x37f   : > { %v12640_v2 = vpop.f32.mrf.mxu0 }
 0x380   : > { %12810 = vmatmul.mubr.bf16.gmra.mxu1 %v13390_v22  ;;  %v13409_v22 = vld [vmem:[#allocation4 + $0x40] sm:$0xff]  }
 0x381   : > { %12877 = vmatprep.mubr.bf16.mxu1 %v13393_v31  ;;  %v6955_v10 = vpop.f32.mrf.mxu0 }
 0x382   : > { %12926 = vmatmul.mubr.bf16.vlgmr.msra.gmra.mxu0 %v13398_v14  ;;  %v10480_v14 = vld [vmem:[%s13755_s16 + $0x79] sm:$0xff] }
 0x383   : > { %12929 = vmatprep.mubr.bf16.mxu0 %v13400_v17 }
 0x384   : > { %v12591_v27 = vpop.f32.mrf.mxu1 }
 0x385   : > { %v6695_v48 = vadd.f32 %v12591_v27, %v10474_v32 }
 0x386   : > { %v6566_v61 = vpop.f32.mrf.mxu1 }
 0x387   : > { %v15461_v23 = vadd.f32 %v12639_v40, %v6695_v48  ;;  %v6693_v36 = vadd.f32 %v10472_v9, %v6566_v61  ;;  %v12643_v33 = vpop.f32.mrf.mxu0  ;;  %v10481_v48 = vld [vmem:[%s13755_s16 + $0x81] sm:$0xff] }
 0x388   : > { %12878 = vmatmul.mubr.bf16.vlgmr.msra.gmra.mxu1 %v13397_v4  ;;  %v12592_v42 = vpop.f32.mrf.mxu1 }
 0x389   : > { %12958 = vmatpush3.bf16.msra.mxu1 %v13396_v25  ;;  %12881 = vmatprep.mubr.bf16.mxu1 %v13399_v16  ;;  %v15467_v43 = vadd.f32 %v6952_v51, %v6693_v36  ;;  %v6696_v57 = vadd.f32 %v12592_v42, %v10475_v53  ;;  %v6968_v45 = vpop.f32.mrf.mxu0  ;;  %v13413_v51 = vld [vmem:[#allocation4 + $0xd8] sm:$0xff]   ;;  %v10486_v36 = vld [vmem:[%s13755_s16 + $0xc1] sm:$0xff] }
 0x38a   : > { %12959 = vmatprep.subr.bf16.mxu1 %v13401_v19  ;;  %12930 = vmatmul.mubr.bf16.gmra.mxu0 %v13403_v26  ;;  %v6569_v29 = vpop.f32.mrf.mxu1 }
 0x38b   : > { %12933 = vmatprep.mubr.bf16.mxu0 %v13405_v46  ;;  %v15469_v30 = vadd.f32 %v12640_v2, %v6696_v57  ;;  %v6694_v12 = vadd.f32 %v10473_v47, %v6569_v29  ;;  %v12644_v39 = vpop.f32.mrf.mxu0  ;;  %v13431_v46 = vld [vmem:[%s16078_s7 + $0x200] sm:$0xff]   ;;  %v10484_v29 = vld [vmem:[%s13755_s16 + $0xa9] sm:$0xff] }
 0x38d   : > { %12960 = vmatpush3.bf16.msra.mxu1 %v13401_v19  ;;  %v15475_v54 = vadd.f32 %v6955_v10, %v6694_v12  ;;  %v6971_v21 = vpop.f32.mrf.mxu0  ;;  %v13426_v10 = vld [vmem:[%s16078_s7 + $0x208] sm:$0xff]  }
 0x38e   : > { %12961 = vmatprep.subr.bf16.mxu1 %v13406_v41  ;;  %v13418_v12 = vld [vmem:[#allocation4 + $0xe8] sm:$0xff]  }
 0x38f   : > { %v12595_v3 = vpop.f32.mrf.mxu1 }
 0x390   : > { %12882 = vmatmul.mubr.bf16.gmra.mxu1 %v13402_v52  ;;  %v6699_v11 = vadd.f32 %v12595_v3, %v10478_v20  ;;  %v12647_v44 = vpop.f32.mrf.mxu0 }
 0x391   : > { %12885 = vmatprep.mubr.bf16.mxu1 %v13404_v62  ;;  %12962 = vmatpush3.bf16.msra.mxu1 %v13406_v41  ;;  %v6582_v50 = vpop.f32.mrf.mxu1  ;;  %v13414_v41 = vld [vmem:[#allocation4 + $0x50] sm:$0xff]  }
 0x392   : > { %12934 = vmatmul.mubr.bf16.gmra.mxu0 %v13408_v18  ;;  %12963 = vmatprep.subr.bf16.mxu1 %v13411_v28  ;;  %v15482_v5 = vadd.f32 %v12643_v33, %v6699_v11  ;;  %v6697_v25 = vadd.f32 %v10476_v35, %v6582_v50  ;;  %v6984_v63 = vpop.f32.mrf.mxu0  ;;  %v13412_v33 = vld [vmem:[#allocation4 + $0x48] sm:$0xff]  }
 0x393   : > { %12937 = vmatprep.mubr.bf16.mxu0 %v13410_v0  ;;  %v12596_v7 = vpop.f32.mrf.mxu1 }
 0x394   : > { %v15485_v56 = vadd.f32 %v6968_v45, %v6697_v25  ;;  %v6700_v24 = vadd.f32 %v12596_v7, %v10479_v38  ;;  %v12648_v15 = vpop.f32.mrf.mxu0  ;;  %v10490_v25 = vld [vmem:[%s13755_s16 + $0xf1] sm:$0xff] }
 0x395   : > { %12964 = vmatpush3.bf16.msra.mxu1 %v13411_v28  ;;  %v6585_v8 = vpop.f32.mrf.mxu1  ;;  %v13420_v28 = vld [vmem:[#allocation4 + $0xf0] sm:$0xff]  }
 0x396   : > { %12965 = vmatprep.subr.bf16.mxu1 %v13416_v37  ;;  %v15491_v13 = vadd.f32 %v12644_v39, %v6700_v24  ;;  %v6698_v34 = vadd.f32 %v10477_v49, %v6585_v8  ;;  %v6987_v40 = vpop.f32.mrf.mxu0  ;;  %v13419_v24 = vld [vmem:[#allocation4 + $0x60] sm:$0xff]  }
 0x397   : > { %v12599_v31 = vpop.f32.mrf.mxu1 }
 0x398   : > { %12886 = vmatmul.mubr.bf16.gmra.mxu1 %v13407_v55  ;;  %v15494_v17 = vadd.f32 %v6971_v21, %v6698_v34  ;;  %v6703_v2 = vadd.f32 %v12599_v31, %v10482_v60  ;;  %v12651_v6 = vpop.f32.mrf.mxu0  ;;  %v10487_v21 = vld [vmem:[%s13755_s16 + $0xc9] sm:$0xff]  ;;  %v10488_v60 = vld [vmem:[%s13755_s16 + $0xd9] sm:$0xff] }
 0x399   : > { %12889 = vmatprep.mubr.bf16.mxu1 %v13409_v22  ;;  %12966 = vmatpush3.bf16.msra.mxu1 %v13416_v37  ;;  %v6598_v32 = vpop.f32.mrf.mxu1  ;;  %v13423_v55 = vld [vmem:[#allocation4 + $0xf8] sm:$0xff]  }
 0x39a   : > { %12938 = vmatmul.mubr.bf16.gmra.mxu0 %v13413_v51  ;;  %12967 = vmatprep.subr.bf16.mxu1 %v13421_v1  ;;  %v15500_v27 = vadd.f32 %v12647_v44, %v6703_v2  ;;  %v6701_v4 = vadd.f32 %v10480_v14, %v6598_v32  ;;  %v7000_v9 = vpop.f32.mrf.mxu0  ;;  %v10485_v44 = vld [vmem:[%s13755_s16 + $0xb1] sm:$0xff]  ;;  %v10491_v14 = vld [vmem:[%s13755_s16 + $0xf9] sm:$0xff]  ;;  %v10489_v32 = vld [vmem:[%s13755_s16 + $0xe1] sm:$0xff] }
 0x39b   : > { %12941 = vmatprep.mubr.bf16.mxu0 %v13415_v59  ;;  %v12600_v19 = vpop.f32.mrf.mxu1 }
 0x39c   : > { %v15503_v16 = vadd.f32 %v6984_v63, %v6701_v4  ;;  %v6704_v61 = vadd.f32 %v12600_v19, %v10483_v58  ;;  %v12652_v53 = vpop.f32.mrf.mxu0  ;;  %v13417_v63 = vld [vmem:[#allocation4 + $0x58] sm:$0xff]   ;;  %v10494_v19 = vld [vmem:[%s13755_s16 + $0x121] sm:$0xff] }
 0x39d   : > { %12968 = vmatpush3.bf16.msra.mxu1 %v13421_v1  ;;  %v6601_v26 = vpop.f32.mrf.mxu1 }
 0x39e   : > { %12969 = vmatprep.subr.bf16.mxu1 %v13426_v10  ;;  %v15509_v42 = vadd.f32 %v12648_v15, %v6704_v61  ;;  %v6702_v47 = vadd.f32 %v10481_v48, %v6601_v26  ;;  %v7003_v57 = vpop.f32.mrf.mxu0  ;;  %v13422_v48 = vld [vmem:[#allocation4 + $0x68] sm:$0xff]   ;;  %v13424_v26 = vld [vmem:[#allocation4 + $0x70] sm:$0xff]  }
 0x3a0   : > { %v12603_v45 = vpop.f32.mrf.mxu1  ;;  %12890 = vmatmul.mubr.bf16.gmra.mxu1 %v13412_v33  ;;  %v15512_v39 = vadd.f32 %v6987_v40, %v6702_v47  ;;  %v13425_v40 = vld [vmem:[#allocation4 + $0x100] sm:$0xff]   ;;  %v13428_v47 = vld [vmem:[#allocation4 + $0x108] sm:$0xff]  }
 0x3a1   : > { %v6707_v20 = vadd.f32 %v12603_v45, %v10486_v36  ;;  %12893 = vmatprep.mubr.bf16.mxu1 %v13414_v41  ;;  %v12655_v52 = vpop.f32.mrf.mxu0  ;;  %12970 = vmatpush3.bf16.msra.mxu1 %v13426_v10 }
 0x3a2   : > { %v6614_v62 = vpop.f32.mrf.mxu1  ;;  %12942 = vmatmul.mubr.bf16.gmra.mxu0 %v13418_v12  ;;  %12971 = vmatprep.subr.bf16.mxu1 %v13431_v46 }
 0x3a3   : > { %v15515_v3 = vadd.f32 %v12651_v6, %v6707_v20  ;;  %v6705_v35 = vadd.f32 %v10484_v29, %v6614_v62  ;;  %12945 = vmatprep.mubr.bf16.mxu0 %v13420_v28  ;;  %v7016_v18 = vpop.f32.mrf.mxu0  ;;  %v13430_v29 = vld [vmem:[#allocation4 + $0x110] sm:$0xff]  }
 0x3a4   : > { %v12604_v11 = vpop.f32.mrf.mxu1  ;;  %v10495_v20 = vld [vmem:[%s13755_s16 + $0x129] sm:$0xff] }
 0x3a5   : > { %v15518_v0 = vadd.f32 %v7000_v9, %v6705_v35  ;;  %v6708_v50 = vadd.f32 %v12604_v11, %v10487_v21  ;;  %v12656_v38 = vpop.f32.mrf.mxu0  ;;  %12972 = vmatpush3.bf16.msra.mxu1 %v13431_v46  ;;  %v10492_v46 = vld [vmem:[%s13755_s16 + $0x109] sm:$0xff]  ;;  %v10493_v35 = vld [vmem:[%s13755_s16 + $0x111] sm:$0xff] }
 0x3a6   : > { %v6617_v37 = vpop.f32.mrf.mxu1 }
 0x3a7   : > { %v15521_v7 = vadd.f32 %v12652_v53, %v6708_v50  ;;  %v6706_v49 = vadd.f32 %v10485_v44, %v6617_v37  ;;  %v7019_v15 = vpop.f32.mrf.mxu0  ;;  %v13427_v37 = vld [vmem:[#allocation4 + $0x78] sm:$0xff]  }
 0x3a8   : > { %v12607_v8 = vpop.f32.mrf.mxu1  ;;  %12894 = vmatmul.mubr.bf16.gmra.mxu1 %v13417_v63 }
 0x3a9   : > { %v15524_v1 = vadd.f32 %v7003_v57, %v6706_v49  ;;  %v6711_v34 = vadd.f32 %v12607_v8, %v10490_v25  ;;  %12897 = vmatprep.mubr.bf16.mxu1 %v13419_v24  ;;  %v12659_v22 = vpop.f32.mrf.mxu0  ;;  %v13434_v25 = vld [vmem:[#allocation4 + $0x118] sm:$0xff]   ;;  %v13429_v24 = vld [vmem:[#allocation4 + $0x80] sm:$0xff]  }
 0x3aa   : > { %v6630_v31 = vpop.f32.mrf.mxu1  ;;  %12946 = vmatmul.mubr.bf16.gmra.mxu0 %v13423_v55 }
 0x3ab   : > { %v15527_v51 = vadd.f32 %v12655_v52, %v6711_v34  ;;  %v6709_v2 = vadd.f32 %v10488_v60, %v6630_v31  ;;  %12949 = vmatprep.mubr.bf16.mxu0 %v13425_v40  ;;  %v7032_v6 = vpop.f32.mrf.mxu0  ;;  %v10496_v60 = vld [vmem:[%s13755_s16 + $0x139] sm:$0xff] }
 0x3ac   : > { %v12608_v59 = vpop.f32.mrf.mxu1  ;;  %v10499_v31 = vld [vmem:[%s13755_s16 + $0x159] sm:$0xff] }
 0x3ad   : > { %v15530_v58 = vadd.f32 %v7016_v18, %v6709_v2  ;;  %v6712_v10 = vadd.f32 %v12608_v59, %v10491_v14  ;;  %v12660_v4 = vpop.f32.mrf.mxu0 }
 0x3ae   : > { %v6633_v9 = vpop.f32.mrf.mxu1 }
 0x3af   : > { %v15533_v61 = vadd.f32 %v12656_v38, %v6712_v10  ;;  %v6710_v53 = vadd.f32 %v10489_v32, %v6633_v9  ;;  %v7035_v36 = vpop.f32.mrf.mxu0  ;;  %v10498_v38 = vld [vmem:[%s13755_s16 + $0x151] sm:$0xff]  ;;  %v10497_v32 = vld [vmem:[%s13755_s16 + $0x141] sm:$0xff] }
 0x3b0   : > { %v12611_v33 = vpop.f32.mrf.mxu1  ;;  %12898 = vmatmul.mubr.bf16.gmra.mxu1 %v13422_v48  ;;  %v13432_v10 = vld [vmem:[#allocation4 + $0x88] sm:$0xff]  }
 0x3b1   : > { %v15536_v41 = vadd.f32 %v7019_v15, %v6710_v53  ;;  %v6715_v57 = vadd.f32 %v12611_v33, %v10494_v19  ;;  %12901 = vmatprep.mubr.bf16.mxu1 %v13424_v26  ;;  %v12663_v45 = vpop.f32.mrf.mxu0  ;;  %v10502_v53 = vld [vmem:[%s13755_s16 + $0x181] sm:$0xff]  ;;  %v13433_v33 = vld [vmem:[#allocation4 + $0x130] sm:$0xff]  }
 0x3b2   : > { %v6646_v12 = vpop.f32.mrf.mxu1  ;;  %12950 = vmatmul.mubr.bf16.gmra.mxu0 %v13428_v47 }
 0x3b3   : > { %v15539_v52 = vadd.f32 %v12659_v22, %v6715_v57  ;;  %v6713_v28 = vadd.f32 %v10492_v46, %v6646_v12  ;;  %12953 = vmatprep.mubr.bf16.mxu0 %v13430_v29  ;;  %v7048_v62 = vpop.f32.mrf.mxu0  ;;  %v10500_v57 = vld [vmem:[%s13755_s16 + $0x169] sm:$0xff] }
 0x3b4   : > { %v12612_v21 = vpop.f32.mrf.mxu1 }
 0x3b5   : > { %v15542_v18 = vadd.f32 %v7032_v6, %v6713_v28  ;;  %v6716_v11 = vadd.f32 %v12612_v21, %v10495_v20  ;;  %v12664_v44 = vpop.f32.mrf.mxu0  ;;  %v10503_v28 = vld [vmem:[%s13755_s16 + $0x189] sm:$0xff] }
 0x3b6   : > { %v6649_v50 = vpop.f32.mrf.mxu1 }
 0x3b7   : > { %v15545_v63 = vadd.f32 %v12660_v4, %v6716_v11  ;;  %v6714_v49 = vadd.f32 %v10493_v35, %v6649_v50  ;;  %v7051_v15 = vpop.f32.mrf.mxu0 }
 0x3b8   : > { %v12615_v8 = vpop.f32.mrf.mxu1  ;;  %12902 = vmatmul.mubr.bf16.gmra.mxu1 %v13427_v37 }
 0x3b9   : > { %v15548_v55 = vadd.f32 %v7035_v36, %v6714_v49  ;;  %v6719_v34 = vadd.f32 %v12615_v8, %v10498_v38  ;;  %12905 = vmatprep.mubr.bf16.mxu1 %v13429_v24  ;;  %v12667_v22 = vpop.f32.mrf.mxu0  ;;  %v13435_v49 = vld [vmem:[#allocation4 + $0x138] sm:$0xff]   ;;  %v13436_v8 = vld [vmem:[#allocation4 + $0x140] sm:$0xff]  }
 0x3ba   : > { %v6662_v40 = vpop.f32.mrf.mxu1  ;;  %12954 = vmatmul.mubr.bf16.gmra.mxu0 %v13434_v25 }
 0x3bb   : > { %v15551_v14 = vadd.f32 %v12663_v45, %v6719_v34  ;;  %v6717_v2 = vadd.f32 %v10496_v60, %v6662_v40  ;;  %v7064_v6 = vpop.f32.mrf.mxu0 }
 0x3bc   : > { %v12616_v59 = vpop.f32.mrf.mxu1 }
 0x3bd   : > { %v15554_v4 = vadd.f32 %v7048_v62, %v6717_v2  ;;  %v6720_v9 = vadd.f32 %v12616_v59, %v10499_v31  ;;  %v12668_v19 = vpop.f32.mrf.mxu0 }
 0x3be   : > { %v6665_v48 = vpop.f32.mrf.mxu1 }
 0x3bf   : > { %v15557_v26 = vadd.f32 %v12664_v44, %v6720_v9  ;;  %v6718_v36 = vadd.f32 %v10497_v32, %v6665_v48  ;;  %v7067_v46 = vpop.f32.mrf.mxu0  ;;  %v10501_v44 = vld [vmem:[%s13755_s16 + $0x171] sm:$0xff]  ;;  %s10850_s16 = sshll.u32 %s16327_s28, 8 }
 0x3c0   : > { %v12619_v47 = vpop.f32.mrf.mxu1  ;;  %12906 = vmatmul.mubr.bf16.gmra.mxu1 %v13432_v10  ;;  %s15922_s21 = scalar_lea.vmem %s16079_s8, %s10850_s16 }
 0x3c1   : > { %v15560_v45 = vadd.f32 %v7051_v15, %v6718_v36  ;;  %v6723_v29 = vadd.f32 %v12619_v47, %v10502_v53  ;;  %12973 = vmatprep.mubr.bf16.mxu1 %v13433_v33  ;;  %v12735_v12 = vpop.f32.mrf.mxu0  ;;  %v13437_v53 = vld [vmem:[#allocation4 + $0x148] sm:$0xff]  }
 0x3c2   : > { %v6678_v20 = vpop.f32.mrf.mxu1 }
 0x3c3   : > { %v15563_v62 = vadd.f32 %v12667_v22, %v6723_v29  ;;  %v6721_v21 = vadd.f32 %v10500_v57, %v6678_v20  ;;  %v7724_v35 = vpop.f32.mrf.mxu0 }
 0x3c4   : > { %v12620_v11 = vpop.f32.mrf.mxu1 }
 0x3c5   : > { %v15566_v50 = vadd.f32 %v7064_v6, %v6721_v21  ;;  %v6724_v38 = vadd.f32 %v12620_v11, %v10503_v28  ;;  %v12736_v37 = vpop.f32.mrf.mxu0 }
 0x3c6   : > { %v6681_v25 = vpop.f32.mrf.mxu1 }
 0x3c7   : > { %v15568_v24 = vadd.f32 %v12668_v19, %v6724_v38  ;;  %v6722_v15 = vadd.f32 %v10501_v44, %v6681_v25  ;;  %v7727_v60 = vpop.f32.mrf.mxu0  ;;  %v13439_v38 = vld [vmem:[#allocation4 + $0x158] sm:$0xff]  }
 0x3c8   : > { %v12687_v34 = vpop.f32.mrf.mxu1  ;;  %12974 = vmatmul.mubr.bf16.vlgmr.msra.gmra.mxu1 %v13435_v49  ;;  %v13440_v49 = vld [vmem:[#allocation4 + $0x160] sm:$0xff]  }
 0x3c9   : > { %v15570_v40 = vadd.f32 %v7067_v46, %v6722_v15  ;;  %v7467_v22 = vadd.f32 %v12687_v34, %v15461_v23  ;;  %12977 = vmatprep.mubr.bf16.mxu1 %v13436_v8  ;;  %v13438_v46 = vld [vmem:[#allocation4 + $0x150] sm:$0xff]  }
 0x3ca   : > { %v7338_v31 = vpop.f32.mrf.mxu1  ;;  %v12739_v2 = vpop.f32.mrf.mxu0 }
 0x3cb   : > { %v15573_v6 = vadd.f32 %v12735_v12, %v7467_v22  ;;  %v7465_v59 = vadd.f32 %v7338_v31, %v15467_v43 }
 0x3cc   : > { %v12688_v32 = vpop.f32.mrf.mxu1  ;;  %v7740_v10 = vpop.f32.mrf.mxu0 }
 0x3cd   : > { %v15576_v9 = vadd.f32 %v7724_v35, %v7465_v59  ;;  %v7468_v19 = vadd.f32 %v12688_v32, %v15469_v30 }
 0x3ce   : > { %v7341_v48 = vpop.f32.mrf.mxu1  ;;  %v12740_v36 = vpop.f32.mrf.mxu0 }
 0x3cf   : > { %v15579_v33 = vadd.f32 %v12736_v37, %v7468_v19  ;;  %v7466_v23 = vadd.f32 %v7341_v48, %v15475_v54  ;;  %v13441_v19 = vld [vmem:[#allocation4 + $0x168] sm:$0xff]  }
 0x3d0   : > { %v12691_v47 = vpop.f32.mrf.mxu1  ;;  %12978 = vmatmul.mubr.bf16.gmra.mxu1 %v13437_v53  ;;  %v7743_v57 = vpop.f32.mrf.mxu0 }
 0x3d1   : > { %v15582_v29 = vadd.f32 %v7727_v60, %v7466_v23  ;;  %v7471_v43 = vadd.f32 %v12691_v47, %v15482_v5  ;;  %12981 = vmatprep.mubr.bf16.mxu1 %v13438_v46 }
 0x3d2   : > { %v7354_v12 = vpop.f32.mrf.mxu1  ;;  %v12743_v20 = vpop.f32.mrf.mxu0 }
 0x3d3   : > { %v15585_v28 = vadd.f32 %v12739_v2, %v7471_v43  ;;  %v7469_v30 = vadd.f32 %v7354_v12, %v15485_v56 }
 0x3d4   : > { %v12692_v21 = vpop.f32.mrf.mxu1  ;;  %v7756_v35 = vpop.f32.mrf.mxu0 }
 0x3d5   : > { %v15588_v11 = vadd.f32 %v7740_v10, %v7469_v30  ;;  %v7472_v54 = vadd.f32 %v12692_v21, %v15491_v13 }
 0x3d6   : > { %v7357_v44 = vpop.f32.mrf.mxu1  ;;  %v12744_v37 = vpop.f32.mrf.mxu0 }
 0x3d7   : > { %v15591_v25 = vadd.f32 %v12740_v36, %v7472_v54  ;;  %v7470_v5 = vadd.f32 %v7357_v44, %v15494_v17  ;;  %v13442_v36 = vld [vmem:[#allocation4 + $0x170] sm:$0xff]   ;;  %v13443_v54 = vld [vmem:[#allocation4 + $0x178] sm:$0xff]  }
 0x3d8   : > { %v12695_v15 = vpop.f32.mrf.mxu1  ;;  %12982 = vmatmul.mubr.bf16.gmra.mxu1 %v13439_v38  ;;  %v7759_v8 = vpop.f32.mrf.mxu0 }
 0x3d9   : > { %v15594_v60 = vadd.f32 %v7743_v57, %v7470_v5  ;;  %v7475_v56 = vadd.f32 %v12695_v15, %v15500_v27  ;;  %12985 = vmatprep.mubr.bf16.mxu1 %v13440_v49 }
 0x3da   : > { %v7370_v34 = vpop.f32.mrf.mxu1  ;;  %v12747_v22 = vpop.f32.mrf.mxu0 }
 0x3db   : > { %v15597_v31 = vadd.f32 %v12743_v20, %v7475_v56  ;;  %v7473_v13 = vadd.f32 %v7370_v34, %v15503_v16 }
 0x3dc   : > { %v12696_v2 = vpop.f32.mrf.mxu1  ;;  %v7772_v59 = vpop.f32.mrf.mxu0 }
 0x3dd   : > { %v15600_v32 = vadd.f32 %v7756_v35, %v7473_v13  ;;  %v7476_v17 = vadd.f32 %v12696_v2, %v15509_v42 }
 0x3de   : > { %v7373_v10 = vpop.f32.mrf.mxu1  ;;  %v12748_v48 = vpop.f32.mrf.mxu0 }
 0x3df   : > { %v15603_v53 = vadd.f32 %v12744_v37, %v7476_v17  ;;  %v7474_v27 = vadd.f32 %v7373_v10, %v15512_v39  ;;  %v13444_v37 = vld [vmem:[#allocation4 + $0x180] sm:$0xff]   ;;  %v13445_v17 = vld [vmem:[#allocation4 + $0x188] sm:$0xff]  }
 0x3e0   : > { %v12699_v23 = vpop.f32.mrf.mxu1  ;;  %12986 = vmatmul.mubr.bf16.gmra.mxu1 %v13441_v19  ;;  %v7775_v46 = vpop.f32.mrf.mxu0 }
 0x3e1   : > { %v15606_v47 = vadd.f32 %v7759_v8, %v7474_v27  ;;  %v7479_v16 = vadd.f32 %v12699_v23, %v15515_v3  ;;  %12989 = vmatprep.mubr.bf16.mxu1 %v13442_v36 }
 0x3e2   : > { %v7386_v57 = vpop.f32.mrf.mxu1  ;;  %v12751_v43 = vpop.f32.mrf.mxu0 }
 0x3e3   : > { %v15609_v12 = vadd.f32 %v12747_v22, %v7479_v16  ;;  %v7477_v42 = vadd.f32 %v7386_v57, %v15518_v0 }
 0x3e4   : > { %v12700_v20 = vpop.f32.mrf.mxu1  ;;  %v7788_v30 = vpop.f32.mrf.mxu0 }
 0x3e5   : > { %v15612_v21 = vadd.f32 %v7772_v59, %v7477_v42  ;;  %v7480_v39 = vadd.f32 %v12700_v20, %v15521_v7 }
 0x3e6   : > { %v7389_v35 = vpop.f32.mrf.mxu1  ;;  %v12752_v44 = vpop.f32.mrf.mxu0 }
 0x3e7   : > { %v15615_v38 = vadd.f32 %v12748_v48, %v7480_v39  ;;  %v7478_v3 = vadd.f32 %v7389_v35, %v15524_v1  ;;  %v13446_v48 = vld [vmem:[#allocation4 + $0x190] sm:$0xff]   ;;  %v13447_v39 = vld [vmem:[#allocation4 + $0x198] sm:$0xff]  }
 0x3e8   : > { %v12703_v5 = vpop.f32.mrf.mxu1  ;;  %12990 = vmatmul.mubr.bf16.gmra.mxu1 %v13443_v54  ;;  %v7791_v49 = vpop.f32.mrf.mxu0 }
 0x3e9   : > { %v15618_v15 = vadd.f32 %v7775_v46, %v7478_v3  ;;  %v7483_v0 = vadd.f32 %v12703_v5, %v15527_v51  ;;  %12993 = vmatprep.mubr.bf16.mxu1 %v13444_v37 }
 0x3ea   : > { %v7402_v8 = vpop.f32.mrf.mxu1  ;;  %v12755_v56 = vpop.f32.mrf.mxu0 }
 0x3eb   : > { %v15621_v34 = vadd.f32 %v12751_v43, %v7483_v0  ;;  %v7481_v7 = vadd.f32 %v7402_v8, %v15530_v58 }
 0x3ec   : > { %v12704_v22 = vpop.f32.mrf.mxu1  ;;  %v7804_v13 = vpop.f32.mrf.mxu0 }
 0x3ed   : > { %v15624_v2 = vadd.f32 %v7788_v30, %v7481_v7  ;;  %v7484_v1 = vadd.f32 %v12704_v22, %v15533_v61  ;;  %v13449_v7 = vld [vmem:[#allocation4 + $0x1a8] sm:$0xff]  }
 0x3ee   : > { %v7405_v59 = vpop.f32.mrf.mxu1  ;;  %v12756_v10 = vpop.f32.mrf.mxu0 }
 0x3ef   : > { %v15627_v19 = vadd.f32 %v12752_v44, %v7484_v1  ;;  %v7482_v51 = vadd.f32 %v7405_v59, %v15536_v41  ;;  %v13448_v44 = vld [vmem:[#allocation4 + $0x1a0] sm:$0xff]  }
 0x3f0   : > { %v12707_v27 = vpop.f32.mrf.mxu1  ;;  %12994 = vmatmul.mubr.bf16.gmra.mxu1 %v13445_v17  ;;  %v7807_v36 = vpop.f32.mrf.mxu0 }
 0x3f1   : > { %v15630_v23 = vadd.f32 %v7791_v49, %v7482_v51  ;;  %v7487_v58 = vadd.f32 %v12707_v27, %v15539_v52  ;;  %12997 = vmatprep.mubr.bf16.mxu1 %v13446_v48 }
 0x3f2   : > { %v7418_v46 = vpop.f32.mrf.mxu1  ;;  %v12759_v16 = vpop.f32.mrf.mxu0 }
 0x3f3   : > { %v15633_v57 = vadd.f32 %v12755_v56, %v7487_v58  ;;  %v7485_v61 = vadd.f32 %v7418_v46, %v15542_v18 }
 0x3f4   : > { %v12708_v43 = vpop.f32.mrf.mxu1  ;;  %v7820_v42 = vpop.f32.mrf.mxu0 }
 0x3f5   : > { %v15636_v20 = vadd.f32 %v7804_v13, %v7485_v61  ;;  %v7488_v41 = vadd.f32 %v12708_v43, %v15545_v63 }
 0x3f6   : > { %v7421_v30 = vpop.f32.mrf.mxu1  ;;  %v12760_v35 = vpop.f32.mrf.mxu0 }
 0x3f7   : > { %v15639_v54 = vadd.f32 %v12756_v10, %v7488_v41  ;;  %v7486_v52 = vadd.f32 %v7421_v30, %v15548_v55 }
 0x3f8   : > { %v12711_v3 = vpop.f32.mrf.mxu1  ;;  %12998 = vmatmul.mubr.bf16.gmra.mxu1 %v13447_v39  ;;  %v7823_v37 = vpop.f32.mrf.mxu0 }
 0x3f9   : > { %v15642_v5 = vadd.f32 %v7807_v36, %v7486_v52  ;;  %v7491_v18 = vadd.f32 %v12711_v3, %v15551_v14  ;;  %13001 = vmatprep.mubr.bf16.mxu1 %v13448_v44 }
 0x3fa   : > { %v7434_v49 = vpop.f32.mrf.mxu1  ;;  %v12763_v0 = vpop.f32.mrf.mxu0 }
 0x3fb   : > { %v15645_v8 = vadd.f32 %v12759_v16, %v7491_v18  ;;  %v7489_v63 = vadd.f32 %v7434_v49, %v15554_v4 }
 0x3fc   : > { %v12712_v56 = vpop.f32.mrf.mxu1  ;;  %v7836_v22 = vpop.f32.mrf.mxu0 }
 0x3fd   : > { %v15648_v13 = vadd.f32 %v7820_v42, %v7489_v63  ;;  %v7492_v55 = vadd.f32 %v12712_v56, %v15557_v26 }
 0x3fe   : > { %v7437_v1 = vpop.f32.mrf.mxu1  ;;  %v12764_v59 = vpop.f32.mrf.mxu0 }
 0x3ff   : > { %v15651_v17 = vadd.f32 %v12760_v35, %v7492_v55  ;;  %v7490_v14 = vadd.f32 %v7437_v1, %v15560_v45 }
 0x400   : > { %v12715_v10 = vpop.f32.mrf.mxu1  ;;  %13002 = vmatmul.mubr.bf16.gmra.mxu1 %v13449_v7  ;;  %v7839_v51 = vpop.f32.mrf.mxu0 }
 0x401   : > { %v15654_v48 = vadd.f32 %v7823_v37, %v7490_v14  ;;  %v7495_v4 = vadd.f32 %v12715_v10, %v15563_v62 }
 0x402   : > { %v7450_v27 = vpop.f32.mrf.mxu1  ;;  %v15657_v36 = vpop.f32.mrf.mxu0 }
 0x403   : > { %v15659_v58 = vadd.f32 %v12763_v0, %v7495_v4  ;;  %v7493_v26 = vadd.f32 %v7450_v27, %v15566_v50 }
 0x404   : > { %v12716_v46 = vpop.f32.mrf.mxu1  ;;  %v15662_v16 = vpop.f32.mrf.mxu0 }
 0x405   : > { %v15664_v61 = vadd.f32 %v7836_v22, %v7493_v26  ;;  %v7496_v45 = vadd.f32 %v12716_v46, %v15568_v24 }
 0x406   : > { %v7453_v43 = vpop.f32.mrf.mxu1  ;;  %v15667_v42 = vpop.f32.mrf.mxu0 }
 0x407   : > { %v15669_v41 = vadd.f32 %v12764_v59, %v7496_v45  ;;  %v7494_v62 = vadd.f32 %v7453_v43, %v15570_v40 }
 0x408   : > { %v12783_v30 = vpop.f32.mrf.mxu1  ;;  %v15672_v39 = vpop.f32.mrf.mxu0 }
 0x409   : > { %v15674_v35 = vadd.f32 %v7839_v51, %v7494_v62  ;;  %v15677_v50 = vadd.f32 %v12783_v30, %v15573_v6 }
 0x40a   : > { %v8110_v52 = vpop.f32.mrf.mxu1  ;;  %v15679_v44 = vpop.f32.mrf.mxu0 }
 0x40b   : > { %v15682_v24 = vadd.f32 %v8110_v52, %v15576_v9 }
 0x40c   : > { %v12784_v3 = vpop.f32.mrf.mxu1  ;;  %v15684_v37 = vpop.f32.mrf.mxu0 }
 0x40d   : > { %v15687_v18 = vadd.f32 %v12784_v3, %v15579_v33 }
 0x40e   : > { %v8113_v40 = vpop.f32.mrf.mxu1  ;;  %v15689_v49 = vpop.f32.mrf.mxu0 }
 0x40f   : > { %v15692_v0 = vadd.f32 %v8113_v40, %v15582_v29 }
 0x410   : > { %v12787_v6 = vpop.f32.mrf.mxu1  ;;  %v15694_v63 = vpop.f32.mrf.mxu0 }
 0x411   : > { %v15697_v56 = vadd.f32 %v12787_v6, %v15585_v28 }
 0x412   : > { %v8126_v9 = vpop.f32.mrf.mxu1  ;;  %v15699_v7 = vpop.f32.mrf.mxu0 }
 0x413   : > { %v15702_v22 = vadd.f32 %v8126_v9, %v15588_v11 }
 0x414   : > { %v12788_v33 = vpop.f32.mrf.mxu1  ;;  %v15704_v55 = vpop.f32.mrf.mxu0 }
 0x415   : > { %v15707_v1 = vadd.f32 %v12788_v33, %v15591_v25 }
 0x416   : > { %v8129_v29 = vpop.f32.mrf.mxu1  ;;  %v15709_v59 = vpop.f32.mrf.mxu0 }
 0x417   : > { %v15712_v14 = vadd.f32 %v8129_v29, %v15594_v60 }
 0x418   : > { %v12791_v28 = vpop.f32.mrf.mxu1  ;;  %v15714_v10 = vpop.f32.mrf.mxu0 }
 0x419   : > { %v15717_v51 = vadd.f32 %v12791_v28, %v15597_v31 }
 0x41a   : > { %v8142_v11 = vpop.f32.mrf.mxu1  ;;  %v15719_v4 = vpop.f32.mrf.mxu0 }
 0x41b   : > { %v15722_v27 = vadd.f32 %v8142_v11, %v15600_v32 }
 0x41c   : > { %v12792_v25 = vpop.f32.mrf.mxu1  ;;  %v15724_v26 = vpop.f32.mrf.mxu0 }
 0x41d   : > { %v15727_v46 = vadd.f32 %v12792_v25, %v15603_v53 }
 0x41e   : > { %v8145_v60 = vpop.f32.mrf.mxu1  ;;  %v15729_v45 = vpop.f32.mrf.mxu0 }
 0x41f   : > { %v15732_v43 = vadd.f32 %v8145_v60, %v15606_v47 }
 0x420   : > { %v12795_v31 = vpop.f32.mrf.mxu1  ;;  %v15734_v62 = vpop.f32.mrf.mxu0 }
 0x421   : > { %16216 = vst [vmem:[#allocation26_spill] sm:$0xff] %v15734_v62  ;;  %v15737_v30 = vadd.f32 %v12795_v31, %v15609_v12 }
 0x422   : > { %v8158_v32 = vpop.f32.mrf.mxu1  ;;  %v15739_v52 = vpop.f32.mrf.mxu0 }
 0x423   : > { %16217 = vst [vmem:[#allocation5_spill] sm:$0xff] %v15739_v52  ;;  %v15742_v3 = vadd.f32 %v8158_v32, %v15612_v21 }
 0x424   : > { %v12796_v53 = vpop.f32.mrf.mxu1  ;;  %v15744_v40 = vpop.f32.mrf.mxu0 }
 0x425   : > { %16218 = vst [vmem:[#allocation27_spill] sm:$0xff] %v15744_v40  ;;  %v15747_v6 = vadd.f32 %v12796_v53, %v15615_v38 }
 0x426   : > { %v8161_v47 = vpop.f32.mrf.mxu1  ;;  %v15749_v9 = vpop.f32.mrf.mxu0 }
 0x427   : > { %16219 = vst [vmem:[#allocation28_spill] sm:$0xff] %v15749_v9  ;;  %v15752_v33 = vadd.f32 %v8161_v47, %v15618_v15 }
 0x428   : > { %v12799_v12 = vpop.f32.mrf.mxu1  ;;  %v15754_v29 = vpop.f32.mrf.mxu0 }
 0x429   : > { %16220 = vst [vmem:[#allocation29_spill] sm:$0xff] %v15752_v33  ;;  %16221 = vst [vmem:[#allocation6_spill] sm:$0xff] %v15754_v29  ;;  %v15757_v28 = vadd.f32 %v12799_v12, %v15621_v34 }
 0x42a   : > { %v8174_v21 = vpop.f32.mrf.mxu1  ;;  %v15759_v11 = vpop.f32.mrf.mxu0 }
 0x42b   : > { %16222 = vst [vmem:[#allocation30_spill] sm:$0xff] %v15757_v28  ;;  %16223 = vst [vmem:[#allocation31_spill] sm:$0xff] %v15759_v11  ;;  %v15762_v25 = vadd.f32 %v8174_v21, %v15624_v2 }
 0x42c   : > { %v12800_v38 = vpop.f32.mrf.mxu1  ;;  %v15764_v60 = vpop.f32.mrf.mxu0 }
 0x42d   : > { %16224 = vst [vmem:[#allocation7_spill] sm:$0xff] %v15762_v25  ;;  %16225 = vst [vmem:[#allocation32_spill] sm:$0xff] %v15764_v60  ;;  %v15767_v31 = vadd.f32 %v12800_v38, %v15627_v19 }
 0x42e   : > { %v8177_v15 = vpop.f32.mrf.mxu1  ;;  %v15769_v32 = vpop.f32.mrf.mxu0 }
 0x42f   : > { %16226 = vst [vmem:[#allocation33_spill] sm:$0xff] %v15767_v31  ;;  %16227 = vst [vmem:[#allocation8_spill] sm:$0xff] %v15769_v32  ;;  %v15772_v53 = vadd.f32 %v8177_v15, %v15630_v23 }
 0x430   : > { %v12803_v34 = vpop.f32.mrf.mxu1  ;;  %v15774_v47 = vpop.f32.mrf.mxu0 }
 0x431   : > { %16228 = vst [vmem:[#allocation34_spill] sm:$0xff] %v15772_v53  ;;  %16229 = vst [vmem:[#allocation35_spill] sm:$0xff] %v15774_v47  ;;  %v15777_v12 = vadd.f32 %v12803_v34, %v15633_v57 }
 0x432   : > { %v8190_v2 = vpop.f32.mrf.mxu1  ;;  %v15779_v21 = vpop.f32.mrf.mxu0 }
 0x433   : > { %16230 = vst [vmem:[#allocation36_spill] sm:$0xff] %v15777_v12  ;;  %16231 = vst [vmem:[#allocation37_spill] sm:$0xff] %v15779_v21  ;;  %v15782_v60 = vadd.f32 %v8190_v2, %v15636_v20 }
 0x434   : > { %v12804_v19 = vpop.f32.mrf.mxu1  ;;  %v15784_v38 = vpop.f32.mrf.mxu0 }
 0x435   : > { %16232 = vst [vmem:[#allocation9_spill] sm:$0xff] %v15782_v60  ;;  %16233 = vst [vmem:[#allocation38_spill] sm:$0xff] %v15784_v38  ;;  %v15787_v32 = vadd.f32 %v12804_v19, %v15639_v54 }
 0x436   : > { %v8193_v23 = vpop.f32.mrf.mxu1  ;;  %v15789_v15 = vpop.f32.mrf.mxu0 }
 0x437   : > { %16234 = vst [vmem:[#allocation39_spill] sm:$0xff] %v15787_v32  ;;  %16235 = vst [vmem:[#allocation10_spill] sm:$0xff] %v15789_v15  ;;  %v15792_v47 = vadd.f32 %v8193_v23, %v15642_v5 }
 0x438   : > { %v12807_v57 = vpop.f32.mrf.mxu1  ;;  %v15794_v34 = vpop.f32.mrf.mxu0 }
 0x439   : > { %16236 = vst [vmem:[#allocation40_spill] sm:$0xff] %v15792_v47  ;;  %16237 = vst [vmem:[#allocation41_spill] sm:$0xff] %v15794_v34  ;;  %v15797_v21 = vadd.f32 %v12807_v57, %v15645_v8 }
 0x43a   : > { %v8206_v20 = vpop.f32.mrf.mxu1  ;;  %v15799_v2 = vpop.f32.mrf.mxu0 }
 0x43b   : > { %16238 = vst [vmem:[#allocation11_spill] sm:$0xff] %v15797_v21  ;;  %16239 = vst [vmem:[#allocation42_spill] sm:$0xff] %v15799_v2  ;;  %v15802_v38 = vadd.f32 %v8206_v20, %v15648_v13 }
 0x43c   : > { %v12808_v54 = vpop.f32.mrf.mxu1  ;;  %v15804_v19 = vpop.f32.mrf.mxu0 }
 0x43d   : > { %16240 = vst [vmem:[#allocation43_spill] sm:$0xff] %v15802_v38  ;;  %16241 = vst [vmem:[#allocation44_spill] sm:$0xff] %v15804_v19  ;;  %v15807_v15 = vadd.f32 %v12808_v54, %v15651_v17 }
 0x43e   : > { %v8209_v5 = vpop.f32.mrf.mxu1  ;;  %v15812_v47 = vpop.f32.mrf.mxu0 }
 0x43f   : > { %16242 = vst [vmem:[#allocation45_spill] sm:$0xff] %v15807_v15  ;;  %v15810_v23 = vadd.f32 %v8209_v5, %v15654_v48  ;;  %16244 = vst [vmem:[#allocation46_spill] sm:$0xff] %v15812_v47 }
 0x440   : > { %v12811_v34 = vpop.f32.mrf.mxu1  ;;  %v15820_v2 = vpop.f32.mrf.mxu0 }
 0x441   : > { %16243 = vst [vmem:[#allocation12_spill] sm:$0xff] %v15810_v23  ;;  %v15815_v8 = vadd.f32 %v12811_v34, %v15659_v58  ;;  %16247 = vst [vmem:[#allocation48_spill] sm:$0xff] %v15820_v2 }
 0x442   : > { %v8222_v57 = vpop.f32.mrf.mxu1  ;;  %v12927_v19 = vpop.f32.mrf.mxu0 }
 0x443   : > { %16245 = vst [vmem:[#allocation47_spill] sm:$0xff] %v15815_v8  ;;  %v15818_v13 = vadd.f32 %v8222_v57, %v15664_v61 }
 0x444   : > { %v12812_v20 = vpop.f32.mrf.mxu1  ;;  %v9268_v23 = vpop.f32.mrf.mxu0 }
 0x445   : > { %16246 = vst [vmem:[#allocation13_spill] sm:$0xff] %v15818_v13  ;;  %v15823_v17 = vadd.f32 %v12812_v20, %v15669_v41 }
 0x446   : > { %v8225_v54 = vpop.f32.mrf.mxu1  ;;  %v12928_v8 = vpop.f32.mrf.mxu0 }
 0x447   : > { %16248 = vst [vmem:[#allocation49_spill] sm:$0xff] %v15823_v17  ;;  %v15826_v48 = vadd.f32 %v8225_v54, %v15674_v35 }
 0x448   : > { %v12879_v5 = vpop.f32.mrf.mxu1  ;;  %v15830_v57 = vpop.f32.mrf.mxu0 }
 0x449   : > { %16249 = vst [vmem:[#allocation14_spill] sm:$0xff] %v15826_v48 }
 0x44a   : > { %v8882_v47 = vpop.f32.mrf.mxu1  ;;  %v15836_v20 = vpop.f32.mrf.mxu0 }
 0x44c   : > { %v12880_v58 = vpop.f32.mrf.mxu1  ;;  %v15842_v48 = vpop.f32.mrf.mxu0 }
 0x44e   : > { %v8885_v34 = vpop.f32.mrf.mxu1  ;;  %v15848_v38 = vpop.f32.mrf.mxu0 }
 0x450   : > { %v12883_v15 = vpop.f32.mrf.mxu1  ;;  %v15854_v60 = vpop.f32.mrf.mxu0 }
 0x452   : > { %v15828_v61 = vpop.f32.mrf.mxu1  ;;  %v15860_v29 = vpop.f32.mrf.mxu0 }
 0x454   : > { %v15832_v2 = vpop.f32.mrf.mxu1  ;;  %v15866_v31 = vpop.f32.mrf.mxu0 }
 0x456   : > { %v15834_v41 = vpop.f32.mrf.mxu1  ;;  %v15872_v52 = vpop.f32.mrf.mxu0 }
 0x458   : > { %v15838_v35 = vpop.f32.mrf.mxu1 }
 0x45a   : > { %v15840_v54 = vpop.f32.mrf.mxu1 }
 0x45c   : > { %v15844_v17 = vpop.f32.mrf.mxu1 }
 0x45e   : > { %v15846_v13 = vpop.f32.mrf.mxu1 }
 0x460   : > { %v15850_v21 = vpop.f32.mrf.mxu1 }
 0x462   : > { %v15852_v32 = vpop.f32.mrf.mxu1 }
 0x463   : > { %16250 = vst [vmem:[#allocation50_spill] sm:$0xff] %v15852_v32 }
 0x464   : > { %v15856_v11 = vpop.f32.mrf.mxu1 }
 0x465   : > { %16251 = vst [vmem:[#allocation51_spill] sm:$0xff] %v15856_v11  ;;  %v15878_v11 = vpop.f32.mrf.mxu0 }
 0x466   : > { %v15858_v12 = vpop.f32.mrf.mxu1  ;;  %16259 = vst [vmem:[#allocation56_spill] sm:$0xff] %v15878_v11 }
 0x467   : > { %16252 = vst [vmem:[#allocation15_spill] sm:$0xff] %v15858_v12 }
 0x468   : > { %v15862_v53 = vpop.f32.mrf.mxu1 }
 0x469   : > { %16253 = vst [vmem:[#allocation52_spill] sm:$0xff] %v15862_v53  ;;  %v15884_v53 = vpop.f32.mrf.mxu0 }
 0x46a   : > { %v15864_v9 = vpop.f32.mrf.mxu1  ;;  %16262 = vst [vmem:[#allocation59_spill] sm:$0xff] %v15884_v53 }
 0x46b   : > { %16254 = vst [vmem:[#allocation53_spill] sm:$0xff] %v15864_v9 }
 0x46c   : > { %v15868_v40 = vpop.f32.mrf.mxu1 }
 0x46d   : > { %16255 = vst [vmem:[#allocation16_spill] sm:$0xff] %v15868_v40 }
 0x46e   : > { %v15870_v25 = vpop.f32.mrf.mxu1 }
 0x46f   : > { %16256 = vst [vmem:[#allocation54_spill] sm:$0xff] %v15870_v25  ;;  %v15890_v25 = vpop.f32.mrf.mxu0 }
 0x470   : > { %v15874_v28 = vpop.f32.mrf.mxu1  ;;  %16265 = vst [vmem:[#allocation25_spill] sm:$0xff] %v15890_v25 }
 0x471   : > { %16257 = vst [vmem:[#allocation55_spill] sm:$0xff] %v15874_v28 }
 0x472   : > { %v15876_v62 = vpop.f32.mrf.mxu1 }
 0x473   : > { %16258 = vst [vmem:[#allocation17_spill] sm:$0xff] %v15876_v62  ;;  %v15896_v62 = vpop.f32.mrf.mxu0 }
 0x474   : > { %v15880_v12 = vpop.f32.mrf.mxu1  ;;  %16268 = vst [vmem:[#allocation62_spill] sm:$0xff] %v15896_v62 }
 0x475   : > { %16260 = vst [vmem:[#allocation57_spill] sm:$0xff] %v15880_v12 }
 0x476   : > { %v15882_v33 = vpop.f32.mrf.mxu1 }
 0x477   : > { %16261 = vst [vmem:[#allocation58_spill] sm:$0xff] %v15882_v33  ;;  %v8625_v33 = vadd.f32 %v15657_v36, %v15677_v50  ;;  %v8624_v36 = vadd.f32 %v15672_v39, %v15692_v0  ;;  %v8627_v39 = vadd.f32 %v15684_v37, %v15702_v22  ;;  %v8628_v37 = vadd.f32 %v15694_v63, %v15712_v14 }
 0x478   : > { %v15886_v9 = vpop.f32.mrf.mxu1 }
 0x479   : > { %16263 = vst [vmem:[#allocation18_spill] sm:$0xff] %v15886_v9  ;;  %v8623_v9 = vadd.f32 %v15662_v16, %v15682_v24  ;;  %v9011_v53 = vadd.f32 %v12879_v5, %v8625_v33  ;;  %v8630_v5 = vadd.f32 %v15689_v49, %v15707_v1  ;;  %v8633_v1 = vadd.f32 %v15699_v7, %v15717_v51 }
 0x47a   : > { %v15888_v40 = vpop.f32.mrf.mxu1  ;;  %v8634_v51 = vadd.f32 %v15709_v59, %v15727_v46  ;;  %v8637_v46 = vadd.f32 %v15719_v4, %v15737_v30  ;;  %v8638_v30 = vadd.f32 %v15729_v45, %v15747_v6  ;;  %v16277_v6 = vld [vmem:[#allocation30_spill] sm:$0xff] }
 0x47b   : > { %16264 = vst [vmem:[#allocation60_spill] sm:$0xff] %v15888_v40  ;;  %v15906_v40 = vpop.f32.mrf.mxu0  ;;  %v9397_v50 = vadd.f32 %v12927_v19, %v9011_v53 }
 0x47c   : > { %v15892_v32 = vpop.f32.mrf.mxu1 }
 0x47d   : > { %16266 = vst [vmem:[#allocation61_spill] sm:$0xff] %v15892_v32  ;;  %v9009_v32 = vadd.f32 %v8882_v47, %v8623_v9 }
 0x47e   : > { %v15894_v28 = vpop.f32.mrf.mxu1 }
 0x47f   : > { %16267 = vst [vmem:[#allocation20_spill] sm:$0xff] %v15894_v28  ;;  %v8626_v28 = vadd.f32 %v15667_v42, %v15687_v18  ;;  %v8629_v42 = vadd.f32 %v15679_v44, %v15697_v56  ;;  %v9395_v24 = vadd.f32 %v9268_v23, %v9009_v32  ;;  %v9010_v18 = vadd.f32 %v8885_v34, %v8624_v36 }
 0x480   : > { %v15898_v11 = vpop.f32.mrf.mxu1  ;;  %v9013_v56 = vadd.f32 %v15828_v61, %v8627_v39  ;;  %v9014_v34 = vadd.f32 %v15834_v41, %v8628_v37  ;;  %v8631_v61 = vadd.f32 %v15704_v55, %v15722_v27  ;;  %v16279_v37 = vld [vmem:[#allocation25_spill] sm:$0xff] }
 0x481   : > { %16269 = vst [vmem:[#allocation21_spill] sm:$0xff] %v15898_v11  ;;  %v15917_v11 = vpop.f32.mrf.mxu0  ;;  %v9396_v44 = vadd.f32 %v15830_v57, %v9010_v18  ;;  %v9019_v57 = vadd.f32 %v15838_v35, %v8633_v1 }
 0x482   : > { %v15902_v12 = vpop.f32.mrf.mxu1  ;;  %v9017_v41 = vadd.f32 %v15840_v54, %v8631_v61 }
 0x483   : > { %16270 = vst [vmem:[#allocation63_spill] sm:$0xff] %v15902_v12  ;;  %v9012_v12 = vadd.f32 %v12880_v58, %v8626_v28  ;;  %v9015_v28 = vadd.f32 %v12883_v15, %v8629_v42  ;;  %v15929_v47 = vpop.f32.mrf.mxu0  ;;  %v9399_v58 = vadd.f32 %v15842_v48, %v9013_v56  ;;  %v9400_v48 = vadd.f32 %v15854_v60, %v9014_v34  ;;  %v16282_v34 = vld [vmem:[#allocation27_spill] sm:$0xff] }
 0x484   : > { %v15908_v25 = vpop.f32.mrf.mxu1  ;;  %v9405_v35 = vadd.f32 %v15860_v29, %v9019_v57  ;;  %v9403_v60 = vadd.f32 %v15866_v31, %v9017_v41  ;;  %v8635_v29 = vadd.f32 %v15724_v26, %v15742_v3  ;;  %v16271_v31 = vld [vmem:[#allocation56_spill] sm:$0xff] }
 0x485   : > { %v9398_v0 = vadd.f32 %v12928_v8, %v9012_v12  ;;  %v9401_v22 = vadd.f32 %v15836_v20, %v9015_v28  ;;  %v9016_v12 = vadd.f32 %v15832_v2, %v8630_v5  ;;  %v15941_v8 = vpop.f32.mrf.mxu0  ;;  %v16286_v41 = vld [vmem:[#allocation28_spill] sm:$0xff] }
 0x486   : > { %v15913_v62 = vpop.f32.mrf.mxu1 }
 0x487   : > { %v9402_v2 = vadd.f32 %v15848_v38, %v9016_v12  ;;  %v15953_v36 = vpop.f32.mrf.mxu0  ;;  %v8632_v38 = vadd.f32 %v15714_v10, %v15732_v43  ;;  %v16280_v12 = vld [vmem:[#allocation15_spill] sm:$0xff] }
 0x488   : > { %v12975_v16 = vpop.f32.mrf.mxu1 }
 0x489   : > { %v9783_v9 = vadd.f32 %v12975_v16, %v9397_v50  ;;  %v9020_v50 = vadd.f32 %v15844_v17, %v8634_v51  ;;  %v15965_v42 = vpop.f32.mrf.mxu0  ;;  %v9018_v54 = vadd.f32 %v15846_v13, %v8632_v38  ;;  %v16287_v38 = vld [vmem:[#allocation53_spill] sm:$0xff] }
 0x48a   : > { %v9654_v33 = vpop.f32.mrf.mxu1 }
 0x48b   : > { %9815 = vst [vmem:[%s15922_s21 + $0x10] sm:$0xff] %v9783_v9  ;;  %v9781_v53 = vadd.f32 %v9654_v33, %v9395_v24  ;;  %v9406_v17 = vadd.f32 %v15872_v52, %v9020_v50  ;;  %v9023_v24 = vadd.f32 %v15850_v21, %v8637_v46  ;;  %v15977_v9 = vpop.f32.mrf.mxu0  ;;  %v9404_v13 = vadd.f32 %v16271_v31, %v9018_v54  ;;  %v16272_v33 = vld [vmem:[#allocation50_spill] sm:$0xff]  ;;  %v16275_v21 = vld [vmem:[#allocation59_spill] sm:$0xff] }
 0x48c   : > { %v12976_v19 = vpop.f32.mrf.mxu1  ;;  %v9021_v39 = vadd.f32 %v16272_v33, %v8635_v29  ;;  %v16274_v52 = vld [vmem:[#allocation26_spill] sm:$0xff] }
 0x48d   : > { %9813 = vst [vmem:[%s15922_s21] sm:$0xff] %v9781_v53  ;;  %v9784_v32 = vadd.f32 %v12976_v19, %v9398_v0  ;;  %v16273_v0 = vld [vmem:[#allocation29_spill] sm:$0xff]  ;;  %v9409_v53 = vadd.f32 %v16275_v21, %v9023_v24  ;;  %v16276_v19 = vld [vmem:[#allocation51_spill] sm:$0xff]  ;;  %v12948_v56 = vpop.f32.mrf.mxu0  ;;  %v16289_v46 = vld [vmem:[#allocation6_spill] sm:$0xff] }
 0x48e   : > { %v9657_v23 = vpop.f32.mrf.mxu1  ;;  %v8636_v28 = vadd.f32 %v16274_v52, %v16273_v0  ;;  %v9024_v5 = vadd.f32 %v16276_v19, %v8638_v30  ;;  %v16293_v31 = vld [vmem:[#allocation54_spill] sm:$0xff]  ;;  %v16296_v52 = vld [vmem:[#allocation55_spill] sm:$0xff] }
 0x48f   : > { %9816 = vst [vmem:[%s15922_s21 + $0x18] sm:$0xff] %v9784_v32  ;;  %v9782_v15 = vadd.f32 %v9657_v23, %v9396_v44  ;;  %v16278_v32 = vld [vmem:[#allocation5_spill] sm:$0xff] }
 0x490   : > { %v12979_v49 = vpop.f32.mrf.mxu1  ;;  %v8641_v23 = vadd.f32 %v16278_v32, %v16277_v6  ;;  %v16299_v6 = vld [vmem:[#allocation17_spill] sm:$0xff] }
 0x491   : > { %9814 = vst [vmem:[%s15922_s21 + $0x8] sm:$0xff] %v9782_v15  ;;  %v9787_v63 = vadd.f32 %v12979_v49, %v9401_v22  ;;  %v9407_v22 = vadd.f32 %v16279_v37, %v9021_v39  ;;  %v9022_v15 = vadd.f32 %v16280_v12, %v8636_v28  ;;  %v16301_v12 = vld [vmem:[#allocation35_spill] sm:$0xff] }
 0x492   : > { %v9670_v14 = vpop.f32.mrf.mxu1 }
 0x493   : > { %9819 = vst [vmem:[%s15922_s21 + $0x30] sm:$0xff] %v9787_v63  ;;  %v9785_v20 = vadd.f32 %v9670_v14, %v9399_v58  ;;  %v16281_v58 = vld [vmem:[#allocation7_spill] sm:$0xff]  ;;  %v16283_v14 = vld [vmem:[#allocation62_spill] sm:$0xff] }
 0x494   : > { %v12980_v7 = vpop.f32.mrf.mxu1  ;;  %v8639_v63 = vadd.f32 %v16282_v34, %v16281_v58  ;;  %v9410_v61 = vadd.f32 %v16283_v14, %v9024_v5  ;;  %v16297_v5 = vld [vmem:[#allocation39_spill] sm:$0xff] }
 0x495   : > { %9817 = vst [vmem:[%s15922_s21 + $0x20] sm:$0xff] %v9785_v20  ;;  %v9788_v55 = vadd.f32 %v12980_v7, %v9402_v2  ;;  %v16284_v2 = vld [vmem:[#allocation52_spill] sm:$0xff]  ;;  %v9351_v7 = vpop.f32.mrf.mxu0  ;;  %v16303_v14 = vld [vmem:[#allocation11_spill] sm:$0xff] }
 0x496   : > { %v9673_v27 = vpop.f32.mrf.mxu1  ;;  %v9027_v57 = vadd.f32 %v16284_v2, %v8641_v23 }
 0x497   : > { %9820 = vst [vmem:[%s15922_s21 + $0x38] sm:$0xff] %v9788_v55  ;;  %v9786_v16 = vadd.f32 %v9673_v27, %v9400_v48  ;;  %v16285_v48 = vld [vmem:[#allocation33_spill] sm:$0xff]  ;;  %v9408_v27 = vadd.f32 %v15906_v40, %v9022_v15 }
 0x498   : > { %v12983_v59 = vpop.f32.mrf.mxu1  ;;  %v8642_v55 = vadd.f32 %v16286_v41, %v16285_v48  ;;  %v9413_v54 = vadd.f32 %v15917_v11, %v9027_v57  ;;  %v16305_v57 = vld [vmem:[#allocation58_spill] sm:$0xff]  ;;  %v16306_v41 = vld [vmem:[#allocation43_spill] sm:$0xff] }
 0x499   : > { %9818 = vst [vmem:[%s15922_s21 + $0x28] sm:$0xff] %v9786_v16  ;;  %v9791_v10 = vadd.f32 %v12983_v59, %v9405_v35  ;;  %v9025_v35 = vadd.f32 %v16287_v38, %v8639_v63  ;;  %v16288_v59 = vld [vmem:[#allocation34_spill] sm:$0xff] }
 0x49a   : > { %v9686_v43 = vpop.f32.mrf.mxu1  ;;  %v16308_v38 = vld [vmem:[#allocation18_spill] sm:$0xff] }
 0x49b   : > { %9823 = vst [vmem:[%s15922_s21 + $0x50] sm:$0xff] %v9791_v10  ;;  %v9789_v18 = vadd.f32 %v9686_v43, %v9403_v60  ;;  %v8640_v60 = vadd.f32 %v16289_v46, %v16288_v59  ;;  %v16290_v10 = vld [vmem:[#allocation16_spill] sm:$0xff]  ;;  %v9411_v30 = vadd.f32 %v15929_v47, %v9025_v35  ;;  %v16309_v46 = vld [vmem:[#allocation45_spill] sm:$0xff] }
 0x49c   : > { %v12984_v4 = vpop.f32.mrf.mxu1  ;;  %v9028_v43 = vadd.f32 %v16290_v10, %v8642_v55  ;;  %v16307_v55 = vld [vmem:[#allocation38_spill] sm:$0xff]  ;;  %v16311_v10 = vld [vmem:[#allocation60_spill] sm:$0xff] }
 0x49d   : > { %9821 = vst [vmem:[%s15922_s21 + $0x40] sm:$0xff] %v9789_v18  ;;  %v9792_v26 = vadd.f32 %v12984_v4, %v9406_v17  ;;  %v12951_v17 = vpop.f32.mrf.mxu0  ;;  %v16291_v18 = vld [vmem:[#allocation36_spill] sm:$0xff]  ;;  %v16292_v4 = vld [vmem:[#allocation31_spill] sm:$0xff] }
 0x49e   : > { %v9689_v3 = vpop.f32.mrf.mxu1  ;;  %v8645_v40 = vadd.f32 %v16292_v4, %v16291_v18  ;;  %v9414_v0 = vadd.f32 %v15941_v8, %v9028_v43  ;;  %v16312_v4 = vld [vmem:[#allocation12_spill] sm:$0xff] }
 0x49f   : > { %9824 = vst [vmem:[%s15922_s21 + $0x58] sm:$0xff] %v9792_v26  ;;  %v9790_v44 = vadd.f32 %v9689_v3, %v9404_v13  ;;  %v9026_v13 = vadd.f32 %v16293_v31, %v8640_v60  ;;  %v16294_v26 = vld [vmem:[#allocation9_spill] sm:$0xff]  ;;  %v16295_v3 = vld [vmem:[#allocation32_spill] sm:$0xff]  ;;  %v16310_v60 = vld [vmem:[#allocation10_spill] sm:$0xff] }
 0x4a0   : > { %v12987_v45 = vpop.f32.mrf.mxu1  ;;  %v8643_v11 = vadd.f32 %v16295_v3, %v16294_v26  ;;  %v9031_v28 = vadd.f32 %v16296_v52, %v8645_v40  ;;  %v16314_v31 = vld [vmem:[#allocation61_spill] sm:$0xff]  ;;  %v16315_v26 = vld [vmem:[#allocation47_spill] sm:$0xff]  ;;  %v16316_v3 = vld [vmem:[#allocation42_spill] sm:$0xff] }
 0x4a1   : > { %9822 = vst [vmem:[%s15922_s21 + $0x48] sm:$0xff] %v9790_v44  ;;  %v9795_v49 = vadd.f32 %v12987_v45, %v9409_v53  ;;  %v9364_v53 = vpop.f32.mrf.mxu0  ;;  %v16298_v44 = vld [vmem:[#allocation8_spill] sm:$0xff]  ;;  %v9412_v45 = vadd.f32 %v15953_v36, %v9026_v13 }
 0x4a2   : > { %v9702_v1 = vpop.f32.mrf.mxu1  ;;  %v8646_v47 = vadd.f32 %v16298_v44, %v16297_v5  ;;  %v9029_v32 = vadd.f32 %v16299_v6, %v8643_v11  ;;  %v9417_v15 = vadd.f32 %v15965_v42, %v9031_v28  ;;  %v8647_v42 = vadd.f32 %v16307_v55, %v16306_v41  ;;  %v16318_v5 = vld [vmem:[#allocation13_spill] sm:$0xff]  ;;  %v16319_v44 = vld [vmem:[#allocation44_spill] sm:$0xff] }
 0x4a3   : > { %9827 = vst [vmem:[%s15922_s21 + $0x70] sm:$0xff] %v9795_v49  ;;  %v9793_v20 = vadd.f32 %v9702_v1, %v9407_v22  ;;  %v16300_v22 = vld [vmem:[#allocation40_spill] sm:$0xff]  ;;  %v16302_v49 = vld [vmem:[#allocation57_spill] sm:$0xff]  ;;  %v12952_v34 = vpop.f32.mrf.mxu0  ;;  %v8653_v11 = vadd.f32 %v16316_v3, %v16315_v26 }
 0x4a4   : > { %v12988_v51 = vpop.f32.mrf.mxu1  ;;  %v8644_v8 = vadd.f32 %v16301_v12, %v16300_v22  ;;  %v9032_v1 = vadd.f32 %v16302_v49, %v8646_v47  ;;  %v9415_v2 = vadd.f32 %v15977_v9, %v9029_v32  ;;  %v9033_v43 = vadd.f32 %v16311_v10, %v8647_v42  ;;  %v16322_v22 = vld [vmem:[#allocation46_spill] sm:$0xff] }
 0x4a5   : > { %9825 = vst [vmem:[%s15922_s21 + $0x60] sm:$0xff] %v9793_v20  ;;  %v9796_v50 = vadd.f32 %v12988_v51, %v9410_v61  ;;  %v16304_v61 = vld [vmem:[#allocation37_spill] sm:$0xff]  ;;  %v8651_v47 = vadd.f32 %v16319_v44, %v16318_v5 }
 0x4a6   : > { %v9705_v16 = vpop.f32.mrf.mxu1  ;;  %v8649_v36 = vadd.f32 %v16304_v61, %v16303_v14  ;;  %v9030_v20 = vadd.f32 %v16305_v57, %v8644_v8  ;;  %v16323_v8 = vld [vmem:[#allocation63_spill] sm:$0xff]  ;;  %v16325_v14 = vld [vmem:[#allocation48_spill] sm:$0xff] }
 0x4a7   : > { %9828 = vst [vmem:[%s15922_s21 + $0x78] sm:$0xff] %v9796_v50  ;;  %v9794_v29 = vadd.f32 %v9705_v16, %v9408_v27  ;;  %v9418_v27 = vadd.f32 %v12948_v56, %v9032_v1  ;;  %v9367_v16 = vpop.f32.mrf.mxu0  ;;  %v16313_v56 = vld [vmem:[#allocation41_spill] sm:$0xff] }
 0x4a8   : > { %v12991_v24 = vpop.f32.mrf.mxu1  ;;  %v9035_v35 = vadd.f32 %v16308_v38, %v8649_v36  ;;  %v9416_v9 = vadd.f32 %v9351_v7, %v9030_v20  ;;  %v8648_v40 = vadd.f32 %v16313_v56, %v16312_v4  ;;  %v9419_v7 = vadd.f32 %v9364_v53, %v9033_v43 }
 0x4a9   : > { %9826 = vst [vmem:[%s15922_s21 + $0x68] sm:$0xff] %v9794_v29  ;;  %v9799_v33 = vadd.f32 %v12991_v24, %v9413_v54  ;;  %v8650_v54 = vadd.f32 %v16310_v60, %v16309_v46  ;;  %v12955_v24 = vpop.f32.mrf.mxu0 }
 0x4aa   : > { %v9718_v39 = vpop.f32.mrf.mxu1 }
 0x4ab   : > { %9831 = vst [vmem:[%s15922_s21 + $0x90] sm:$0xff] %v9799_v33  ;;  %v9797_v21 = vadd.f32 %v9718_v39, %v9411_v30  ;;  %v9421_v30 = vadd.f32 %v12951_v17, %v9035_v35  ;;  %v9036_v13 = vadd.f32 %v16314_v31, %v8650_v54 }
 0x4ac   : > { %v12992_v19 = vpop.f32.mrf.mxu1 }
 0x4ad   : > { %9829 = vst [vmem:[%s15922_s21 + $0x80] sm:$0xff] %v9797_v21  ;;  %v9800_v23 = vadd.f32 %v12992_v19, %v9414_v0  ;;  %v16317_v0 = vld [vmem:[#allocation20_spill] sm:$0xff]  ;;  %v9380_v21 = vpop.f32.mrf.mxu0  ;;  %v9422_v17 = vadd.f32 %v12952_v34, %v9036_v13 }
 0x4ae   : > { %v9721_v37 = vpop.f32.mrf.mxu1  ;;  %v9034_v52 = vadd.f32 %v16317_v0, %v8648_v40 }
 0x4af   : > { %9832 = vst [vmem:[%s15922_s21 + $0x98] sm:$0xff] %v9800_v23  ;;  %v9798_v58 = vadd.f32 %v9721_v37, %v9412_v45  ;;  %v16320_v45 = vld [vmem:[#allocation21_spill] sm:$0xff]  ;;  %v12956_v1 = vpop.f32.mrf.mxu0 }
 0x4b0   : > { %v12995_v63 = vpop.f32.mrf.mxu1  ;;  %v9039_v6 = vadd.f32 %v16320_v45, %v8653_v11  ;;  %v16321_v37 = vld [vmem:[#allocation49_spill] sm:$0xff]  ;;  %v9420_v12 = vadd.f32 %v9367_v16, %v9034_v52 }
 0x4b1   : > { %9830 = vst [vmem:[%s15922_s21 + $0x88] sm:$0xff] %v9798_v58  ;;  %v9803_v51 = vadd.f32 %v12995_v63, %v9417_v15  ;;  %v8654_v53 = vadd.f32 %v16322_v22, %v16321_v37  ;;  %v9037_v15 = vadd.f32 %v16323_v8, %v8651_v47  ;;  %v16324_v63 = vld [vmem:[#allocation14_spill] sm:$0xff]  ;;  %v9383_v41 = vpop.f32.mrf.mxu0 }
 0x4b2   : > { %v9734_v48 = vpop.f32.mrf.mxu1  ;;  %v8652_v34 = vadd.f32 %v16325_v14, %v16324_v63  ;;  %v9425_v61 = vadd.f32 %v12955_v24, %v9039_v6 }
 0x4b3   : > { %9835 = vst [vmem:[%s15922_s21 + $0xb0] sm:$0xff] %v9803_v51  ;;  %v9801_v50 = vadd.f32 %v9734_v48, %v9415_v2  ;;  %v9040_v36 = vadd.f32 %v15908_v25, %v8654_v53  ;;  %v9423_v20 = vadd.f32 %v9380_v21, %v9037_v15 }
 0x4b4   : > { %v12996_v59 = vpop.f32.mrf.mxu1  ;;  %v9038_v51 = vadd.f32 %v15913_v62, %v8652_v34 }
 0x4b5   : > { %9833 = vst [vmem:[%s15922_s21 + $0xa0] sm:$0xff] %v9801_v50  ;;  %v9804_v29 = vadd.f32 %v12996_v59, %v9418_v27  ;;  %v9426_v42 = vadd.f32 %v12956_v1, %v9040_v36 }
 0x4b6   : > { %v9737_v18 = vpop.f32.mrf.mxu1  ;;  %v9424_v35 = vadd.f32 %v9383_v41, %v9038_v51 }
 0x4b7   : > { %9836 = vst [vmem:[%s15922_s21 + $0xb8] sm:$0xff] %v9804_v29  ;;  %v9802_v33 = vadd.f32 %v9737_v18, %v9416_v9 }
 0x4b8   : > { %v12999_v39 = vpop.f32.mrf.mxu1 }
 0x4b9   : > { %9834 = vst [vmem:[%s15922_s21 + $0xa8] sm:$0xff] %v9802_v33  ;;  %v9807_v28 = vadd.f32 %v12999_v39, %v9421_v30 }
 0x4ba   : > { %v9750_v19 = vpop.f32.mrf.mxu1 }
 0x4bb   : > { %9839 = vst [vmem:[%s15922_s21 + $0xd0] sm:$0xff] %v9807_v28  ;;  %v9805_v32 = vadd.f32 %v9750_v19, %v9419_v7 }
 0x4bc   : > { %v13000_v23 = vpop.f32.mrf.mxu1 }
 0x4bd   : > { %9837 = vst [vmem:[%s15922_s21 + $0xc0] sm:$0xff] %v9805_v32  ;;  %v9808_v49 = vadd.f32 %v13000_v23, %v9422_v17 }
 0x4be   : > { %v9753_v58 = vpop.f32.mrf.mxu1 }
 0x4bf   : > { %9840 = vst [vmem:[%s15922_s21 + $0xd8] sm:$0xff] %v9808_v49  ;;  %v9806_v2 = vadd.f32 %v9753_v58, %v9420_v12 }
 0x4c0   : > { %v13003_v57 = vpop.f32.mrf.mxu1 }
 0x4c1   : > { %9838 = vst [vmem:[%s15922_s21 + $0xc8] sm:$0xff] %v9806_v2  ;;  %v9811_v48 = vadd.f32 %v13003_v57, %v9425_v61 }
 0x4c2   : > { %v9766_v55 = vpop.f32.mrf.mxu1 }
 0x4c3   : > { %9843 = vst [vmem:[%s15922_s21 + $0xf0] sm:$0xff] %v9811_v48  ;;  %v9809_v27 = vadd.f32 %v9766_v55, %v9423_v20 }
 0x4c4   : > { %v13004_v38 = vpop.f32.mrf.mxu1 }
 0x4c5   : > { %9841 = vst [vmem:[%s15922_s21 + $0xe0] sm:$0xff] %v9809_v27  ;;  %v9812_v50 = vadd.f32 %v13004_v38, %v9426_v42 }
 0x4c6   : > { %v9769_v25 = vpop.f32.mrf.mxu1 }
 0x4c7   : > { %9844 = vst [vmem:[%s15922_s21 + $0xf8] sm:$0xff] %v9812_v50  ;;  %v9810_v16 = vadd.f32 %v9769_v25, %v9424_v35 }
 0x4c9   : > { %9842 = vst [vmem:[%s15922_s21 + $0xe8] sm:$0xff] %v9810_v16 }
 0x4ca PF: > { %s18_s27 = sadd.s32 1, %s13465_s27  }
 0x4cb   : > { %p15_p4 = scmp.ge.s32.totalorder %s18_s27, 4  }
 0x4cd   :  { %17 = sbr.rel (!%p15_p4) target bundleno = 1 (0x1), region = 104 }

</bundles_post_ra>
